<compile_context>
chip_gen: v7x
topology: tpu7x:2x2x1
jax: 0.10.0
libtpu: 0.0.40
codegen_flags: <defaults>
</compile_context>

<pallas_src>
import math

import jax
import jax.numpy as jnp
from jax import lax
from jax.experimental import pallas as pl
from jax.experimental.pallas import tpu as pltpu


# ----------------------------------------------------------------------------
# Shared in-kernel body: per-head attention + fused output projection
# ----------------------------------------------------------------------------
def _attention_and_output(q, k, v, wo_ref, bo_ref, o_ref, attn_ref,
                          num_heads, d_k):
    """q/k/v: (S, D) compute-dtype values. Writes o_ref = attn @ Wo + bo."""
    cd = attn_ref.dtype
    for h in range(num_heads):
        lo = h * d_k
        qh = q[:, lo:lo + d_k]                       # (S, d_k), already scaled
        kh = k[:, lo:lo + d_k]
        vh = v[:, lo:lo + d_k]
        # scores (S, S) in f32: contract over d_k without materializing kh.T
        s = lax.dot_general(qh, kh, (((1,), (1,)), ((), ())),
                            preferred_element_type=jnp.float32)
        s = s - jnp.max(s, axis=-1, keepdims=True)
        p = jnp.exp(s)
        p = p * pl.reciprocal(jnp.sum(p, axis=-1, keepdims=True), approx=True)
        oh = jnp.dot(p.astype(cd), vh, preferred_element_type=jnp.float32)
        attn_ref[:, lo:lo + d_k] = oh.astype(cd)
    out = jnp.dot(attn_ref[...], wo_ref[...],
                  preferred_element_type=jnp.float32) + bo_ref[...]
    o_ref[...] = out.astype(o_ref.dtype)


# ----------------------------------------------------------------------------
# Fused kernel, self-attention path (Q is K is V): one fused QKV matmul
# ----------------------------------------------------------------------------
def _make_self_mha_kernel(num_heads, d_k):
    D = num_heads * d_k
    scale = 1.0 / math.sqrt(d_k)

    def kernel(x_ref, wqkv_ref, bqkv_ref, wo_ref, bo_ref, o_ref, attn_ref):
        cd = x_ref.dtype
        qkv = jnp.dot(x_ref[...], wqkv_ref[...],
                      preferred_element_type=jnp.float32) + bqkv_ref[...]
        q = (qkv[:, :D] * scale).astype(cd)
        k = qkv[:, D:2 * D].astype(cd)
        v = qkv[:, 2 * D:].astype(cd)
        _attention_and_output(q, k, v, wo_ref, bo_ref, o_ref, attn_ref,
                              num_heads, d_k)

    return kernel


# ----------------------------------------------------------------------------
# Fused kernel, general path (distinct Q/K/V sources): three projections
# ----------------------------------------------------------------------------
def _make_cross_mha_kernel(num_heads, d_k):
    D = num_heads * d_k
    scale = 1.0 / math.sqrt(d_k)

    def kernel(xq_ref, xk_ref, xv_ref, wq_ref, wk_ref, wv_ref, bqkv_ref,
               wo_ref, bo_ref, o_ref, attn_ref):
        cd = xq_ref.dtype
        b_all = bqkv_ref[...]
        q = ((jnp.dot(xq_ref[...], wq_ref[...],
                      preferred_element_type=jnp.float32)
              + b_all[:, :D]) * scale).astype(cd)
        k = (jnp.dot(xk_ref[...], wk_ref[...],
                     preferred_element_type=jnp.float32)
             + b_all[:, D:2 * D]).astype(cd)
        v = (jnp.dot(xv_ref[...], wv_ref[...],
                     preferred_element_type=jnp.float32)
             + b_all[:, 2 * D:]).astype(cd)
        _attention_and_output(q, k, v, wo_ref, bo_ref, o_ref, attn_ref,
                              num_heads, d_k)

    return kernel


# ----------------------------------------------------------------------------
# Full MultiHeadAttention forward (one pallas_call)
# ----------------------------------------------------------------------------
def init_mha_params(key, d_model, num_heads, dtype=jnp.float32):
    assert d_model % num_heads == 0
    ks = jax.random.split(key, 4)
    std = 1.0 / math.sqrt(d_model)
    # Weights stored pre-transposed: (in_features, out_features).  Q/K/V fused.
    return {
        "Wqkv": jax.random.uniform(ks[0], (d_model, 3 * d_model), dtype, -std, std),
        "bqkv": jax.random.uniform(ks[1], (3 * d_model,), dtype, -std, std),
        "Wo":   jax.random.uniform(ks[2], (d_model, d_model), dtype, -std, std),
        "bo":   jax.random.uniform(ks[3], (d_model,), dtype, -std, std),
    }


def mha_forward(params, Q, K, V, num_heads, *, compute_dtype=jnp.bfloat16):
    """Eval-mode forward (dropout = identity, mask = None)."""
    B, S, D = Q.shape
    assert D % num_heads == 0
    d_k = D // num_heads
    out_dtype = Q.dtype
    cd = compute_dtype

    Wqkv = params["Wqkv"].astype(cd)                               # (D, 3D)
    bqkv = params["bqkv"].astype(jnp.float32).reshape(1, 3 * D)    # f32 bias
    Wo = params["Wo"].astype(cd)                                   # (D, D)
    bo = params["bo"].astype(jnp.float32).reshape(1, D)

    row_spec = pl.BlockSpec((None, S, D), lambda b: (b, 0, 0))     # lane-dense
    compiler_params = pltpu.CompilerParams(
        dimension_semantics=("parallel",),
        vmem_limit_bytes=48 * 1024 * 1024,
    )

    if (Q is K) and (K is V):
        # Self-attention fast path: X read once, fused (D, 3D) QKV weight.
        x = Q.astype(cd)
        return pl.pallas_call(
            _make_self_mha_kernel(num_heads, d_k),
            out_shape=jax.ShapeDtypeStruct((B, S, D), out_dtype),
            grid=(B,),
            in_specs=[
                row_spec,                                          # x
                pl.BlockSpec((D, 3 * D), lambda b: (0, 0)),        # Wqkv (resident)
                pl.BlockSpec((1, 3 * D), lambda b: (0, 0)),        # bqkv
                pl.BlockSpec((D, D), lambda b: (0, 0)),            # Wo (resident)
                pl.BlockSpec((1, D), lambda b: (0, 0)),            # bo
            ],
            out_specs=row_spec,
            scratch_shapes=[pltpu.VMEM((S, D), cd)],               # combined heads
            compiler_params=compiler_params,
        )(x, Wqkv, bqkv, Wo, bo)

    # General path (distinct Q/K/V sources): Wqkv passed three times with
    # per-column-block index_maps (no host-side weight slicing).
    xq, xk, xv = Q.astype(cd), K.astype(cd), V.astype(cd)
    return pl.pallas_call(
        _make_cross_mha_kernel(num_heads, d_k),
        out_shape=jax.ShapeDtypeStruct((B, S, D), out_dtype),
        grid=(B,),
        in_specs=[
            row_spec, row_spec, row_spec,                          # xq, xk, xv
            pl.BlockSpec((D, D), lambda b: (0, 0)),                # W_q columns
            pl.BlockSpec((D, D), lambda b: (0, 1)),                # W_k columns
            pl.BlockSpec((D, D), lambda b: (0, 2)),                # W_v columns
            pl.BlockSpec((1, 3 * D), lambda b: (0, 0)),            # bqkv
            pl.BlockSpec((D, D), lambda b: (0, 0)),                # Wo
            pl.BlockSpec((1, D), lambda b: (0, 0)),                # bo
        ],
        out_specs=row_spec,
        scratch_shapes=[pltpu.VMEM((S, D), cd)],
        compiler_params=compiler_params,
    )(xq, xk, xv, Wqkv, Wqkv, Wqkv, bqkv, Wo, bo)


# ----------------------------------------------------------------------------
# Pure-JAX f32 reference for verification
# ----------------------------------------------------------------------------
def mha_reference(params, Q, K, V, num_heads):
    B, S, D = Q.shape
    dk = D // num_heads
    Wqkv, bqkv = params["Wqkv"], params["bqkv"]

    def proj(x, w, b):
        y = x @ w + b
        return y.reshape(B, S, num_heads, dk).transpose(0, 2, 1, 3)

    Qh = proj(Q, Wqkv[:, :D], bqkv[:D])
    Kh = proj(K, Wqkv[:, D:2 * D], bqkv[D:2 * D])
    Vh = proj(V, Wqkv[:, 2 * D:], bqkv[2 * D:])
    s = jnp.einsum("bhqd,bhkd->bhqk", Qh, Kh) / math.sqrt(dk)
    p = jax.nn.softmax(s, axis=-1)
    o = jnp.einsum("bhqk,bhkd->bhqd", p, Vh)
    o = o.transpose(0, 2, 1, 3).reshape(B, S, D)
    return o @ params["Wo"] + params["bo"]


if __name__ == "__main__":
    # Module constants: d_model=768, num_heads=12; small batch/seq for the demo.
    batch, seq, d_model, num_heads = 2, 16, 768, 12

    key = jax.random.PRNGKey(0)
    kp, kq, kk, kv = jax.random.split(key, 4)
    params = init_mha_params(kp, d_model, num_heads)
    X = jax.random.normal(kq, (batch, seq, d_model), jnp.float32)
    Kx = jax.random.normal(kk, (batch, seq, d_model), jnp.float32)
    Vx = jax.random.normal(kv, (batch, seq, d_model), jnp.float32)

    # Self-attention (fused-QKV path), as used in GPT pretraining.
    self_attn = jax.jit(lambda p, x: mha_forward(p, x, x, x, num_heads))
    out = jax.block_until_ready(self_attn(params, X))
    ref = mha_reference(params, X, X, X, num_heads)
    assert out.shape == (batch, seq, d_model)
    # bf16 MXU inputs + approx reciprocal -> looser tolerance vs the f32 reference.
    assert jnp.allclose(out, ref, rtol=5e-2, atol=5e-2)

    # General path (distinct Q/K/V sources).
    cross_attn = jax.jit(lambda p, q, k, v: mha_forward(p, q, k, v, num_heads))
    out2 = jax.block_until_ready(cross_attn(params, X, Kx, Vx))
    ref2 = mha_reference(params, X, Kx, Vx, num_heads)
    assert jnp.allclose(out2, ref2, rtol=5e-2, atol=5e-2)

    print("KERNEL_OK")
</pallas_src>

<mosaic_0001>
module attributes {stable_mosaic.version = 11 : i64} {
  func.func @kernel(%arg0: i32, %arg1: memref<1x16x768xbf16, #tpu.memory_space<vmem>>, %arg2: memref<768x2304xbf16, #tpu.memory_space<vmem>>, %arg3: memref<1x2304xf32, #tpu.memory_space<vmem>>, %arg4: memref<768x768xbf16, #tpu.memory_space<vmem>>, %arg5: memref<1x768xf32, #tpu.memory_space<vmem>>, %arg6: memref<1x16x768xf32, #tpu.memory_space<vmem>>, %arg7: memref<16x768xbf16, #tpu.memory_space<vmem>>) attributes {dimension_semantics = [#tpu.dimension_semantics<parallel>], iteration_bounds = array<i64: 2>, scalar_prefetch = 0 : i64, scratch_operands = 1 : i64, tpu.core_type = #tpu.core_type<tc>, window_params = [{transform_indices = @transform_0, window_bounds = array<i64: 1, 16, 768>}, {pipeline_mode = #tpu.pipeline_mode<synchronous>, transform_indices = @transform_1, window_bounds = array<i64: 768, 2304>}, {pipeline_mode = #tpu.pipeline_mode<synchronous>, transform_indices = @transform_2, window_bounds = array<i64: 1, 2304>}, {pipeline_mode = #tpu.pipeline_mode<synchronous>, transform_indices = @transform_3, window_bounds = array<i64: 768, 768>}, {pipeline_mode = #tpu.pipeline_mode<synchronous>, transform_indices = @transform_4, window_bounds = array<i64: 1, 768>}, {transform_indices = @transform_5, window_bounds = array<i64: 1, 16, 768>}]} {
    %c0 = arith.constant 0 : index
    %c0_0 = arith.constant 0 : index
    %c0_1 = arith.constant 0 : index
    %0 = vector.load %arg1[%c0, %c0_0, %c0_1] : memref<1x16x768xbf16, #tpu.memory_space<vmem>>, vector<1x16x768xbf16>
    %1 = vector.shape_cast %0 : vector<1x16x768xbf16> to vector<16x768xbf16>
    %c0_2 = arith.constant 0 : index
    %c0_3 = arith.constant 0 : index
    %2 = vector.load %arg2[%c0_2, %c0_3] : memref<768x2304xbf16, #tpu.memory_space<vmem>>, vector<768x2304xbf16>
    %cst = arith.constant dense<0.000000e+00> : vector<16x2304xf32>
    %3 = tpu.matmul %1, %2, %cst {dimension_numbers = #tpu.dot_dimension_numbers<[1], [0], [0], [1], [0, 0, 1, 1], [], []>} : vector<16x768xbf16>, vector<768x2304xbf16>, vector<16x2304xf32> -> vector<16x2304xf32>
    %c0_4 = arith.constant 0 : index
    %c0_5 = arith.constant 0 : index
    %4 = vector.load %arg3[%c0_4, %c0_5] : memref<1x2304xf32, #tpu.memory_space<vmem>>, vector<1x2304xf32>
    %5 = vector.broadcast %4 : vector<1x2304xf32> to vector<16x2304xf32>
    %6 = arith.addf %3, %5 : vector<16x2304xf32>
    %7 = vector.extract_strided_slice %6 {offsets = [0, 0], sizes = [16, 768], strides = [1, 1]} : vector<16x2304xf32> to vector<16x768xf32>
    %cst_6 = arith.constant 1.250000e-01 : f32
    %8 = vector.broadcast %cst_6 : f32 to vector<16x768xf32>
    %9 = arith.mulf %7, %8 : vector<16x768xf32>
    %10 = arith.truncf %9 : vector<16x768xf32> to vector<16x768xbf16>
    %11 = vector.extract_strided_slice %6 {offsets = [0, 768], sizes = [16, 768], strides = [1, 1]} : vector<16x2304xf32> to vector<16x768xf32>
    %12 = arith.truncf %11 : vector<16x768xf32> to vector<16x768xbf16>
    %13 = vector.extract_strided_slice %6 {offsets = [0, 1536], sizes = [16, 768], strides = [1, 1]} : vector<16x2304xf32> to vector<16x768xf32>
    %14 = arith.truncf %13 : vector<16x768xf32> to vector<16x768xbf16>
    %15 = vector.extract_strided_slice %10 {offsets = [0, 0], sizes = [16, 64], strides = [1, 1]} : vector<16x768xbf16> to vector<16x64xbf16>
    %16 = vector.extract_strided_slice %12 {offsets = [0, 0], sizes = [16, 64], strides = [1, 1]} : vector<16x768xbf16> to vector<16x64xbf16>
    %17 = vector.extract_strided_slice %14 {offsets = [0, 0], sizes = [16, 64], strides = [1, 1]} : vector<16x768xbf16> to vector<16x64xbf16>
    %cst_7 = arith.constant dense<0.000000e+00> : vector<16x16xf32>
    %18 = tpu.matmul %15, %16, %cst_7 {dimension_numbers = #tpu.dot_dimension_numbers<[1], [1], [0], [0], [0, 0, 1, 0], [], []>} : vector<16x64xbf16>, vector<16x64xbf16>, vector<16x16xf32> -> vector<16x16xf32>
    %cst_8 = arith.constant dense<0xFF800000> : vector<16xf32>
    %19 = vector.multi_reduction <maximumf>, %18, %cst_8 [1] : vector<16x16xf32> to vector<16xf32>
    %20 = vector.shape_cast %19 : vector<16xf32> to vector<16x1xf32>
    %21 = vector.broadcast %20 : vector<16x1xf32> to vector<16x16xf32>
    %22 = arith.subf %18, %21 : vector<16x16xf32>
    %23 = math.exp %22 : vector<16x16xf32>
    %cst_9 = arith.constant dense<0.000000e+00> : vector<16xf32>
    %24 = vector.multi_reduction <add>, %23, %cst_9 [1] : vector<16x16xf32> to vector<16xf32>
    %25 = vector.shape_cast %24 : vector<16xf32> to vector<16x1xf32>
    %26 = tpu.reciprocal %25 {approx = true} : vector<16x1xf32> -> vector<16x1xf32>
    %27 = vector.broadcast %26 : vector<16x1xf32> to vector<16x16xf32>
    %28 = arith.mulf %23, %27 : vector<16x16xf32>
    %29 = arith.truncf %28 : vector<16x16xf32> to vector<16x16xbf16>
    %cst_10 = arith.constant dense<0.000000e+00> : vector<16x64xf32>
    %30 = tpu.matmul %29, %17, %cst_10 {dimension_numbers = #tpu.dot_dimension_numbers<[1], [0], [0], [1], [0, 0, 1, 1], [], []>} : vector<16x16xbf16>, vector<16x64xbf16>, vector<16x64xf32> -> vector<16x64xf32>
    %31 = arith.truncf %30 : vector<16x64xf32> to vector<16x64xbf16>
    %c0_11 = arith.constant 0 : index
    %c0_12 = arith.constant 0 : index
    %32 = vector.load %arg7[%c0_11, %c0_12] : memref<16x768xbf16, #tpu.memory_space<vmem>>, vector<16x64xbf16>
    tpu.vector_store %arg7[%c0_11, %c0_12], %31 {strides = array<i32>} : memref<16x768xbf16, #tpu.memory_space<vmem>>, vector<16x64xbf16>,
    %33 = vector.extract_strided_slice %10 {offsets = [0, 64], sizes = [16, 64], strides = [1, 1]} : vector<16x768xbf16> to vector<16x64xbf16>
    %34 = vector.extract_strided_slice %12 {offsets = [0, 64], sizes = [16, 64], strides = [1, 1]} : vector<16x768xbf16> to vector<16x64xbf16>
    %35 = vector.extract_strided_slice %14 {offsets = [0, 64], sizes = [16, 64], strides = [1, 1]} : vector<16x768xbf16> to vector<16x64xbf16>
    %cst_13 = arith.constant dense<0.000000e+00> : vector<16x16xf32>
    %36 = tpu.matmul %33, %34, %cst_13 {dimension_numbers = #tpu.dot_dimension_numbers<[1], [1], [0], [0], [0, 0, 1, 0], [], []>} : vector<16x64xbf16>, vector<16x64xbf16>, vector<16x16xf32> -> vector<16x16xf32>
    %cst_14 = arith.constant dense<0xFF800000> : vector<16xf32>
    %37 = vector.multi_reduction <maximumf>, %36, %cst_14 [1] : vector<16x16xf32> to vector<16xf32>
    %38 = vector.shape_cast %37 : vector<16xf32> to vector<16x1xf32>
    %39 = vector.broadcast %38 : vector<16x1xf32> to vector<16x16xf32>
    %40 = arith.subf %36, %39 : vector<16x16xf32>
    %41 = math.exp %40 : vector<16x16xf32>
    %cst_15 = arith.constant dense<0.000000e+00> : vector<16xf32>
    %42 = vector.multi_reduction <add>, %41, %cst_15 [1] : vector<16x16xf32> to vector<16xf32>
    %43 = vector.shape_cast %42 : vector<16xf32> to vector<16x1xf32>
    %44 = tpu.reciprocal %43 {approx = true} : vector<16x1xf32> -> vector<16x1xf32>
    %45 = vector.broadcast %44 : vector<16x1xf32> to vector<16x16xf32>
    %46 = arith.mulf %41, %45 : vector<16x16xf32>
    %47 = arith.truncf %46 : vector<16x16xf32> to vector<16x16xbf16>
    %cst_16 = arith.constant dense<0.000000e+00> : vector<16x64xf32>
    %48 = tpu.matmul %47, %35, %cst_16 {dimension_numbers = #tpu.dot_dimension_numbers<[1], [0], [0], [1], [0, 0, 1, 1], [], []>} : vector<16x16xbf16>, vector<16x64xbf16>, vector<16x64xf32> -> vector<16x64xf32>
    %49 = arith.truncf %48 : vector<16x64xf32> to vector<16x64xbf16>
    %c0_17 = arith.constant 0 : index
    %c64 = arith.constant 64 : index
    %50 = vector.load %arg7[%c0_17, %c64] : memref<16x768xbf16, #tpu.memory_space<vmem>>, vector<16x64xbf16>
    tpu.vector_store %arg7[%c0_17, %c64], %49 {strides = array<i32>} : memref<16x768xbf16, #tpu.memory_space<vmem>>, vector<16x64xbf16>,
    %51 = vector.extract_strided_slice %10 {offsets = [0, 128], sizes = [16, 64], strides = [1, 1]} : vector<16x768xbf16> to vector<16x64xbf16>
    %52 = vector.extract_strided_slice %12 {offsets = [0, 128], sizes = [16, 64], strides = [1, 1]} : vector<16x768xbf16> to vector<16x64xbf16>
    %53 = vector.extract_strided_slice %14 {offsets = [0, 128], sizes = [16, 64], strides = [1, 1]} : vector<16x768xbf16> to vector<16x64xbf16>
    %cst_18 = arith.constant dense<0.000000e+00> : vector<16x16xf32>
    %54 = tpu.matmul %51, %52, %cst_18 {dimension_numbers = #tpu.dot_dimension_numbers<[1], [1], [0], [0], [0, 0, 1, 0], [], []>} : vector<16x64xbf16>, vector<16x64xbf16>, vector<16x16xf32> -> vector<16x16xf32>
    %cst_19 = arith.constant dense<0xFF800000> : vector<16xf32>
    %55 = vector.multi_reduction <maximumf>, %54, %cst_19 [1] : vector<16x16xf32> to vector<16xf32>
    %56 = vector.shape_cast %55 : vector<16xf32> to vector<16x1xf32>
    %57 = vector.broadcast %56 : vector<16x1xf32> to vector<16x16xf32>
    %58 = arith.subf %54, %57 : vector<16x16xf32>
    %59 = math.exp %58 : vector<16x16xf32>
    %cst_20 = arith.constant dense<0.000000e+00> : vector<16xf32>
    %60 = vector.multi_reduction <add>, %59, %cst_20 [1] : vector<16x16xf32> to vector<16xf32>
    %61 = vector.shape_cast %60 : vector<16xf32> to vector<16x1xf32>
    %62 = tpu.reciprocal %61 {approx = true} : vector<16x1xf32> -> vector<16x1xf32>
    %63 = vector.broadcast %62 : vector<16x1xf32> to vector<16x16xf32>
    %64 = arith.mulf %59, %63 : vector<16x16xf32>
    %65 = arith.truncf %64 : vector<16x16xf32> to vector<16x16xbf16>
    %cst_21 = arith.constant dense<0.000000e+00> : vector<16x64xf32>
    %66 = tpu.matmul %65, %53, %cst_21 {dimension_numbers = #tpu.dot_dimension_numbers<[1], [0], [0], [1], [0, 0, 1, 1], [], []>} : vector<16x16xbf16>, vector<16x64xbf16>, vector<16x64xf32> -> vector<16x64xf32>
    %67 = arith.truncf %66 : vector<16x64xf32> to vector<16x64xbf16>
    %c0_22 = arith.constant 0 : index
    %c128 = arith.constant 128 : index
    %68 = vector.load %arg7[%c0_22, %c128] : memref<16x768xbf16, #tpu.memory_space<vmem>>, vector<16x64xbf16>
    tpu.vector_store %arg7[%c0_22, %c128], %67 {strides = array<i32>} : memref<16x768xbf16, #tpu.memory_space<vmem>>, vector<16x64xbf16>,
    %69 = vector.extract_strided_slice %10 {offsets = [0, 192], sizes = [16, 64], strides = [1, 1]} : vector<16x768xbf16> to vector<16x64xbf16>
    %70 = vector.extract_strided_slice %12 {offsets = [0, 192], sizes = [16, 64], strides = [1, 1]} : vector<16x768xbf16> to vector<16x64xbf16>
    %71 = vector.extract_strided_slice %14 {offsets = [0, 192], sizes = [16, 64], strides = [1, 1]} : vector<16x768xbf16> to vector<16x64xbf16>
    %cst_23 = arith.constant dense<0.000000e+00> : vector<16x16xf32>
    %72 = tpu.matmul %69, %70, %cst_23 {dimension_numbers = #tpu.dot_dimension_numbers<[1], [1], [0], [0], [0, 0, 1, 0], [], []>} : vector<16x64xbf16>, vector<16x64xbf16>, vector<16x16xf32> -> vector<16x16xf32>
    %cst_24 = arith.constant dense<0xFF800000> : vector<16xf32>
    %73 = vector.multi_reduction <maximumf>, %72, %cst_24 [1] : vector<16x16xf32> to vector<16xf32>
    %74 = vector.shape_cast %73 : vector<16xf32> to vector<16x1xf32>
    %75 = vector.broadcast %74 : vector<16x1xf32> to vector<16x16xf32>
    %76 = arith.subf %72, %75 : vector<16x16xf32>
    %77 = math.exp %76 : vector<16x16xf32>
    %cst_25 = arith.constant dense<0.000000e+00> : vector<16xf32>
    %78 = vector.multi_reduction <add>, %77, %cst_25 [1] : vector<16x16xf32> to vector<16xf32>
    %79 = vector.shape_cast %78 : vector<16xf32> to vector<16x1xf32>
    %80 = tpu.reciprocal %79 {approx = true} : vector<16x1xf32> -> vector<16x1xf32>
    %81 = vector.broadcast %80 : vector<16x1xf32> to vector<16x16xf32>
    %82 = arith.mulf %77, %81 : vector<16x16xf32>
    %83 = arith.truncf %82 : vector<16x16xf32> to vector<16x16xbf16>
    %cst_26 = arith.constant dense<0.000000e+00> : vector<16x64xf32>
    %84 = tpu.matmul %83, %71, %cst_26 {dimension_numbers = #tpu.dot_dimension_numbers<[1], [0], [0], [1], [0, 0, 1, 1], [], []>} : vector<16x16xbf16>, vector<16x64xbf16>, vector<16x64xf32> -> vector<16x64xf32>
    %85 = arith.truncf %84 : vector<16x64xf32> to vector<16x64xbf16>
    %c0_27 = arith.constant 0 : index
    %c192 = arith.constant 192 : index
    %86 = vector.load %arg7[%c0_27, %c192] : memref<16x768xbf16, #tpu.memory_space<vmem>>, vector<16x64xbf16>
    tpu.vector_store %arg7[%c0_27, %c192], %85 {strides = array<i32>} : memref<16x768xbf16, #tpu.memory_space<vmem>>, vector<16x64xbf16>,
    %87 = vector.extract_strided_slice %10 {offsets = [0, 256], sizes = [16, 64], strides = [1, 1]} : vector<16x768xbf16> to vector<16x64xbf16>
    %88 = vector.extract_strided_slice %12 {offsets = [0, 256], sizes = [16, 64], strides = [1, 1]} : vector<16x768xbf16> to vector<16x64xbf16>
    %89 = vector.extract_strided_slice %14 {offsets = [0, 256], sizes = [16, 64], strides = [1, 1]} : vector<16x768xbf16> to vector<16x64xbf16>
    %cst_28 = arith.constant dense<0.000000e+00> : vector<16x16xf32>
    %90 = tpu.matmul %87, %88, %cst_28 {dimension_numbers = #tpu.dot_dimension_numbers<[1], [1], [0], [0], [0, 0, 1, 0], [], []>} : vector<16x64xbf16>, vector<16x64xbf16>, vector<16x16xf32> -> vector<16x16xf32>
    %cst_29 = arith.constant dense<0xFF800000> : vector<16xf32>
    %91 = vector.multi_reduction <maximumf>, %90, %cst_29 [1] : vector<16x16xf32> to vector<16xf32>
    %92 = vector.shape_cast %91 : vector<16xf32> to vector<16x1xf32>
    %93 = vector.broadcast %92 : vector<16x1xf32> to vector<16x16xf32>
    %94 = arith.subf %90, %93 : vector<16x16xf32>
    %95 = math.exp %94 : vector<16x16xf32>
    %cst_30 = arith.constant dense<0.000000e+00> : vector<16xf32>
    %96 = vector.multi_reduction <add>, %95, %cst_30 [1] : vector<16x16xf32> to vector<16xf32>
    %97 = vector.shape_cast %96 : vector<16xf32> to vector<16x1xf32>
    %98 = tpu.reciprocal %97 {approx = true} : vector<16x1xf32> -> vector<16x1xf32>
    %99 = vector.broadcast %98 : vector<16x1xf32> to vector<16x16xf32>
    %100 = arith.mulf %95, %99 : vector<16x16xf32>
    %101 = arith.truncf %100 : vector<16x16xf32> to vector<16x16xbf16>
    %cst_31 = arith.constant dense<0.000000e+00> : vector<16x64xf32>
    %102 = tpu.matmul %101, %89, %cst_31 {dimension_numbers = #tpu.dot_dimension_numbers<[1], [0], [0], [1], [0, 0, 1, 1], [], []>} : vector<16x16xbf16>, vector<16x64xbf16>, vector<16x64xf32> -> vector<16x64xf32>
    %103 = arith.truncf %102 : vector<16x64xf32> to vector<16x64xbf16>
    %c0_32 = arith.constant 0 : index
    %c256 = arith.constant 256 : index
    %104 = vector.load %arg7[%c0_32, %c256] : memref<16x768xbf16, #tpu.memory_space<vmem>>, vector<16x64xbf16>
    tpu.vector_store %arg7[%c0_32, %c256], %103 {strides = array<i32>} : memref<16x768xbf16, #tpu.memory_space<vmem>>, vector<16x64xbf16>,
    %105 = vector.extract_strided_slice %10 {offsets = [0, 320], sizes = [16, 64], strides = [1, 1]} : vector<16x768xbf16> to vector<16x64xbf16>
    %106 = vector.extract_strided_slice %12 {offsets = [0, 320], sizes = [16, 64], strides = [1, 1]} : vector<16x768xbf16> to vector<16x64xbf16>
    %107 = vector.extract_strided_slice %14 {offsets = [0, 320], sizes = [16, 64], strides = [1, 1]} : vector<16x768xbf16> to vector<16x64xbf16>
    %cst_33 = arith.constant dense<0.000000e+00> : vector<16x16xf32>
    %108 = tpu.matmul %105, %106, %cst_33 {dimension_numbers = #tpu.dot_dimension_numbers<[1], [1], [0], [0], [0, 0, 1, 0], [], []>} : vector<16x64xbf16>, vector<16x64xbf16>, vector<16x16xf32> -> vector<16x16xf32>
    %cst_34 = arith.constant dense<0xFF800000> : vector<16xf32>
    %109 = vector.multi_reduction <maximumf>, %108, %cst_34 [1] : vector<16x16xf32> to vector<16xf32>
    %110 = vector.shape_cast %109 : vector<16xf32> to vector<16x1xf32>
    %111 = vector.broadcast %110 : vector<16x1xf32> to vector<16x16xf32>
    %112 = arith.subf %108, %111 : vector<16x16xf32>
    %113 = math.exp %112 : vector<16x16xf32>
    %cst_35 = arith.constant dense<0.000000e+00> : vector<16xf32>
    %114 = vector.multi_reduction <add>, %113, %cst_35 [1] : vector<16x16xf32> to vector<16xf32>
    %115 = vector.shape_cast %114 : vector<16xf32> to vector<16x1xf32>
    %116 = tpu.reciprocal %115 {approx = true} : vector<16x1xf32> -> vector<16x1xf32>
    %117 = vector.broadcast %116 : vector<16x1xf32> to vector<16x16xf32>
    %118 = arith.mulf %113, %117 : vector<16x16xf32>
    %119 = arith.truncf %118 : vector<16x16xf32> to vector<16x16xbf16>
    %cst_36 = arith.constant dense<0.000000e+00> : vector<16x64xf32>
    %120 = tpu.matmul %119, %107, %cst_36 {dimension_numbers = #tpu.dot_dimension_numbers<[1], [0], [0], [1], [0, 0, 1, 1], [], []>} : vector<16x16xbf16>, vector<16x64xbf16>, vector<16x64xf32> -> vector<16x64xf32>
    %121 = arith.truncf %120 : vector<16x64xf32> to vector<16x64xbf16>
    %c0_37 = arith.constant 0 : index
    %c320 = arith.constant 320 : index
    %122 = vector.load %arg7[%c0_37, %c320] : memref<16x768xbf16, #tpu.memory_space<vmem>>, vector<16x64xbf16>
    tpu.vector_store %arg7[%c0_37, %c320], %121 {strides = array<i32>} : memref<16x768xbf16, #tpu.memory_space<vmem>>, vector<16x64xbf16>,
    %123 = vector.extract_strided_slice %10 {offsets = [0, 384], sizes = [16, 64], strides = [1, 1]} : vector<16x768xbf16> to vector<16x64xbf16>
    %124 = vector.extract_strided_slice %12 {offsets = [0, 384], sizes = [16, 64], strides = [1, 1]} : vector<16x768xbf16> to vector<16x64xbf16>
    %125 = vector.extract_strided_slice %14 {offsets = [0, 384], sizes = [16, 64], strides = [1, 1]} : vector<16x768xbf16> to vector<16x64xbf16>
    %cst_38 = arith.constant dense<0.000000e+00> : vector<16x16xf32>
    %126 = tpu.matmul %123, %124, %cst_38 {dimension_numbers = #tpu.dot_dimension_numbers<[1], [1], [0], [0], [0, 0, 1, 0], [], []>} : vector<16x64xbf16>, vector<16x64xbf16>, vector<16x16xf32> -> vector<16x16xf32>
    %cst_39 = arith.constant dense<0xFF800000> : vector<16xf32>
    %127 = vector.multi_reduction <maximumf>, %126, %cst_39 [1] : vector<16x16xf32> to vector<16xf32>
    %128 = vector.shape_cast %127 : vector<16xf32> to vector<16x1xf32>
    %129 = vector.broadcast %128 : vector<16x1xf32> to vector<16x16xf32>
    %130 = arith.subf %126, %129 : vector<16x16xf32>
    %131 = math.exp %130 : vector<16x16xf32>
    %cst_40 = arith.constant dense<0.000000e+00> : vector<16xf32>
    %132 = vector.multi_reduction <add>, %131, %cst_40 [1] : vector<16x16xf32> to vector<16xf32>
    %133 = vector.shape_cast %132 : vector<16xf32> to vector<16x1xf32>
    %134 = tpu.reciprocal %133 {approx = true} : vector<16x1xf32> -> vector<16x1xf32>
    %135 = vector.broadcast %134 : vector<16x1xf32> to vector<16x16xf32>
    %136 = arith.mulf %131, %135 : vector<16x16xf32>
    %137 = arith.truncf %136 : vector<16x16xf32> to vector<16x16xbf16>
    %cst_41 = arith.constant dense<0.000000e+00> : vector<16x64xf32>
    %138 = tpu.matmul %137, %125, %cst_41 {dimension_numbers = #tpu.dot_dimension_numbers<[1], [0], [0], [1], [0, 0, 1, 1], [], []>} : vector<16x16xbf16>, vector<16x64xbf16>, vector<16x64xf32> -> vector<16x64xf32>
    %139 = arith.truncf %138 : vector<16x64xf32> to vector<16x64xbf16>
    %c0_42 = arith.constant 0 : index
    %c384 = arith.constant 384 : index
    %140 = vector.load %arg7[%c0_42, %c384] : memref<16x768xbf16, #tpu.memory_space<vmem>>, vector<16x64xbf16>
    tpu.vector_store %arg7[%c0_42, %c384], %139 {strides = array<i32>} : memref<16x768xbf16, #tpu.memory_space<vmem>>, vector<16x64xbf16>,
    %141 = vector.extract_strided_slice %10 {offsets = [0, 448], sizes = [16, 64], strides = [1, 1]} : vector<16x768xbf16> to vector<16x64xbf16>
    %142 = vector.extract_strided_slice %12 {offsets = [0, 448], sizes = [16, 64], strides = [1, 1]} : vector<16x768xbf16> to vector<16x64xbf16>
    %143 = vector.extract_strided_slice %14 {offsets = [0, 448], sizes = [16, 64], strides = [1, 1]} : vector<16x768xbf16> to vector<16x64xbf16>
    %cst_43 = arith.constant dense<0.000000e+00> : vector<16x16xf32>
    %144 = tpu.matmul %141, %142, %cst_43 {dimension_numbers = #tpu.dot_dimension_numbers<[1], [1], [0], [0], [0, 0, 1, 0], [], []>} : vector<16x64xbf16>, vector<16x64xbf16>, vector<16x16xf32> -> vector<16x16xf32>
    %cst_44 = arith.constant dense<0xFF800000> : vector<16xf32>
    %145 = vector.multi_reduction <maximumf>, %144, %cst_44 [1] : vector<16x16xf32> to vector<16xf32>
    %146 = vector.shape_cast %145 : vector<16xf32> to vector<16x1xf32>
    %147 = vector.broadcast %146 : vector<16x1xf32> to vector<16x16xf32>
    %148 = arith.subf %144, %147 : vector<16x16xf32>
    %149 = math.exp %148 : vector<16x16xf32>
    %cst_45 = arith.constant dense<0.000000e+00> : vector<16xf32>
    %150 = vector.multi_reduction <add>, %149, %cst_45 [1] : vector<16x16xf32> to vector<16xf32>
    %151 = vector.shape_cast %150 : vector<16xf32> to vector<16x1xf32>
    %152 = tpu.reciprocal %151 {approx = true} : vector<16x1xf32> -> vector<16x1xf32>
    %153 = vector.broadcast %152 : vector<16x1xf32> to vector<16x16xf32>
    %154 = arith.mulf %149, %153 : vector<16x16xf32>
    %155 = arith.truncf %154 : vector<16x16xf32> to vector<16x16xbf16>
    %cst_46 = arith.constant dense<0.000000e+00> : vector<16x64xf32>
    %156 = tpu.matmul %155, %143, %cst_46 {dimension_numbers = #tpu.dot_dimension_numbers<[1], [0], [0], [1], [0, 0, 1, 1], [], []>} : vector<16x16xbf16>, vector<16x64xbf16>, vector<16x64xf32> -> vector<16x64xf32>
    %157 = arith.truncf %156 : vector<16x64xf32> to vector<16x64xbf16>
    %c0_47 = arith.constant 0 : index
    %c448 = arith.constant 448 : index
    %158 = vector.load %arg7[%c0_47, %c448] : memref<16x768xbf16, #tpu.memory_space<vmem>>, vector<16x64xbf16>
    tpu.vector_store %arg7[%c0_47, %c448], %157 {strides = array<i32>} : memref<16x768xbf16, #tpu.memory_space<vmem>>, vector<16x64xbf16>,
    %159 = vector.extract_strided_slice %10 {offsets = [0, 512], sizes = [16, 64], strides = [1, 1]} : vector<16x768xbf16> to vector<16x64xbf16>
    %160 = vector.extract_strided_slice %12 {offsets = [0, 512], sizes = [16, 64], strides = [1, 1]} : vector<16x768xbf16> to vector<16x64xbf16>
    %161 = vector.extract_strided_slice %14 {offsets = [0, 512], sizes = [16, 64], strides = [1, 1]} : vector<16x768xbf16> to vector<16x64xbf16>
    %cst_48 = arith.constant dense<0.000000e+00> : vector<16x16xf32>
    %162 = tpu.matmul %159, %160, %cst_48 {dimension_numbers = #tpu.dot_dimension_numbers<[1], [1], [0], [0], [0, 0, 1, 0], [], []>} : vector<16x64xbf16>, vector<16x64xbf16>, vector<16x16xf32> -> vector<16x16xf32>
    %cst_49 = arith.constant dense<0xFF800000> : vector<16xf32>
    %163 = vector.multi_reduction <maximumf>, %162, %cst_49 [1] : vector<16x16xf32> to vector<16xf32>
    %164 = vector.shape_cast %163 : vector<16xf32> to vector<16x1xf32>
    %165 = vector.broadcast %164 : vector<16x1xf32> to vector<16x16xf32>
    %166 = arith.subf %162, %165 : vector<16x16xf32>
    %167 = math.exp %166 : vector<16x16xf32>
    %cst_50 = arith.constant dense<0.000000e+00> : vector<16xf32>
    %168 = vector.multi_reduction <add>, %167, %cst_50 [1] : vector<16x16xf32> to vector<16xf32>
    %169 = vector.shape_cast %168 : vector<16xf32> to vector<16x1xf32>
    %170 = tpu.reciprocal %169 {approx = true} : vector<16x1xf32> -> vector<16x1xf32>
    %171 = vector.broadcast %170 : vector<16x1xf32> to vector<16x16xf32>
    %172 = arith.mulf %167, %171 : vector<16x16xf32>
    %173 = arith.truncf %172 : vector<16x16xf32> to vector<16x16xbf16>
    %cst_51 = arith.constant dense<0.000000e+00> : vector<16x64xf32>
    %174 = tpu.matmul %173, %161, %cst_51 {dimension_numbers = #tpu.dot_dimension_numbers<[1], [0], [0], [1], [0, 0, 1, 1], [], []>} : vector<16x16xbf16>, vector<16x64xbf16>, vector<16x64xf32> -> vector<16x64xf32>
    %175 = arith.truncf %174 : vector<16x64xf32> to vector<16x64xbf16>
    %c0_52 = arith.constant 0 : index
    %c512 = arith.constant 512 : index
    %176 = vector.load %arg7[%c0_52, %c512] : memref<16x768xbf16, #tpu.memory_space<vmem>>, vector<16x64xbf16>
    tpu.vector_store %arg7[%c0_52, %c512], %175 {strides = array<i32>} : memref<16x768xbf16, #tpu.memory_space<vmem>>, vector<16x64xbf16>,
    %177 = vector.extract_strided_slice %10 {offsets = [0, 576], sizes = [16, 64], strides = [1, 1]} : vector<16x768xbf16> to vector<16x64xbf16>
    %178 = vector.extract_strided_slice %12 {offsets = [0, 576], sizes = [16, 64], strides = [1, 1]} : vector<16x768xbf16> to vector<16x64xbf16>
    %179 = vector.extract_strided_slice %14 {offsets = [0, 576], sizes = [16, 64], strides = [1, 1]} : vector<16x768xbf16> to vector<16x64xbf16>
    %cst_53 = arith.constant dense<0.000000e+00> : vector<16x16xf32>
    %180 = tpu.matmul %177, %178, %cst_53 {dimension_numbers = #tpu.dot_dimension_numbers<[1], [1], [0], [0], [0, 0, 1, 0], [], []>} : vector<16x64xbf16>, vector<16x64xbf16>, vector<16x16xf32> -> vector<16x16xf32>
    %cst_54 = arith.constant dense<0xFF800000> : vector<16xf32>
    %181 = vector.multi_reduction <maximumf>, %180, %cst_54 [1] : vector<16x16xf32> to vector<16xf32>
    %182 = vector.shape_cast %181 : vector<16xf32> to vector<16x1xf32>
    %183 = vector.broadcast %182 : vector<16x1xf32> to vector<16x16xf32>
    %184 = arith.subf %180, %183 : vector<16x16xf32>
    %185 = math.exp %184 : vector<16x16xf32>
    %cst_55 = arith.constant dense<0.000000e+00> : vector<16xf32>
    %186 = vector.multi_reduction <add>, %185, %cst_55 [1] : vector<16x16xf32> to vector<16xf32>
    %187 = vector.shape_cast %186 : vector<16xf32> to vector<16x1xf32>
    %188 = tpu.reciprocal %187 {approx = true} : vector<16x1xf32> -> vector<16x1xf32>
    %189 = vector.broadcast %188 : vector<16x1xf32> to vector<16x16xf32>
    %190 = arith.mulf %185, %189 : vector<16x16xf32>
    %191 = arith.truncf %190 : vector<16x16xf32> to vector<16x16xbf16>
    %cst_56 = arith.constant dense<0.000000e+00> : vector<16x64xf32>
    %192 = tpu.matmul %191, %179, %cst_56 {dimension_numbers = #tpu.dot_dimension_numbers<[1], [0], [0], [1], [0, 0, 1, 1], [], []>} : vector<16x16xbf16>, vector<16x64xbf16>, vector<16x64xf32> -> vector<16x64xf32>
    %193 = arith.truncf %192 : vector<16x64xf32> to vector<16x64xbf16>
    %c0_57 = arith.constant 0 : index
    %c576 = arith.constant 576 : index
    %194 = vector.load %arg7[%c0_57, %c576] : memref<16x768xbf16, #tpu.memory_space<vmem>>, vector<16x64xbf16>
    tpu.vector_store %arg7[%c0_57, %c576], %193 {strides = array<i32>} : memref<16x768xbf16, #tpu.memory_space<vmem>>, vector<16x64xbf16>,
    %195 = vector.extract_strided_slice %10 {offsets = [0, 640], sizes = [16, 64], strides = [1, 1]} : vector<16x768xbf16> to vector<16x64xbf16>
    %196 = vector.extract_strided_slice %12 {offsets = [0, 640], sizes = [16, 64], strides = [1, 1]} : vector<16x768xbf16> to vector<16x64xbf16>
    %197 = vector.extract_strided_slice %14 {offsets = [0, 640], sizes = [16, 64], strides = [1, 1]} : vector<16x768xbf16> to vector<16x64xbf16>
    %cst_58 = arith.constant dense<0.000000e+00> : vector<16x16xf32>
    %198 = tpu.matmul %195, %196, %cst_58 {dimension_numbers = #tpu.dot_dimension_numbers<[1], [1], [0], [0], [0, 0, 1, 0], [], []>} : vector<16x64xbf16>, vector<16x64xbf16>, vector<16x16xf32> -> vector<16x16xf32>
    %cst_59 = arith.constant dense<0xFF800000> : vector<16xf32>
    %199 = vector.multi_reduction <maximumf>, %198, %cst_59 [1] : vector<16x16xf32> to vector<16xf32>
    %200 = vector.shape_cast %199 : vector<16xf32> to vector<16x1xf32>
    %201 = vector.broadcast %200 : vector<16x1xf32> to vector<16x16xf32>
    %202 = arith.subf %198, %201 : vector<16x16xf32>
    %203 = math.exp %202 : vector<16x16xf32>
    %cst_60 = arith.constant dense<0.000000e+00> : vector<16xf32>
    %204 = vector.multi_reduction <add>, %203, %cst_60 [1] : vector<16x16xf32> to vector<16xf32>
    %205 = vector.shape_cast %204 : vector<16xf32> to vector<16x1xf32>
    %206 = tpu.reciprocal %205 {approx = true} : vector<16x1xf32> -> vector<16x1xf32>
    %207 = vector.broadcast %206 : vector<16x1xf32> to vector<16x16xf32>
    %208 = arith.mulf %203, %207 : vector<16x16xf32>
    %209 = arith.truncf %208 : vector<16x16xf32> to vector<16x16xbf16>
    %cst_61 = arith.constant dense<0.000000e+00> : vector<16x64xf32>
    %210 = tpu.matmul %209, %197, %cst_61 {dimension_numbers = #tpu.dot_dimension_numbers<[1], [0], [0], [1], [0, 0, 1, 1], [], []>} : vector<16x16xbf16>, vector<16x64xbf16>, vector<16x64xf32> -> vector<16x64xf32>
    %211 = arith.truncf %210 : vector<16x64xf32> to vector<16x64xbf16>
    %c0_62 = arith.constant 0 : index
    %c640 = arith.constant 640 : index
    %212 = vector.load %arg7[%c0_62, %c640] : memref<16x768xbf16, #tpu.memory_space<vmem>>, vector<16x64xbf16>
    tpu.vector_store %arg7[%c0_62, %c640], %211 {strides = array<i32>} : memref<16x768xbf16, #tpu.memory_space<vmem>>, vector<16x64xbf16>,
    %213 = vector.extract_strided_slice %10 {offsets = [0, 704], sizes = [16, 64], strides = [1, 1]} : vector<16x768xbf16> to vector<16x64xbf16>
    %214 = vector.extract_strided_slice %12 {offsets = [0, 704], sizes = [16, 64], strides = [1, 1]} : vector<16x768xbf16> to vector<16x64xbf16>
    %215 = vector.extract_strided_slice %14 {offsets = [0, 704], sizes = [16, 64], strides = [1, 1]} : vector<16x768xbf16> to vector<16x64xbf16>
    %cst_63 = arith.constant dense<0.000000e+00> : vector<16x16xf32>
    %216 = tpu.matmul %213, %214, %cst_63 {dimension_numbers = #tpu.dot_dimension_numbers<[1], [1], [0], [0], [0, 0, 1, 0], [], []>} : vector<16x64xbf16>, vector<16x64xbf16>, vector<16x16xf32> -> vector<16x16xf32>
    %cst_64 = arith.constant dense<0xFF800000> : vector<16xf32>
    %217 = vector.multi_reduction <maximumf>, %216, %cst_64 [1] : vector<16x16xf32> to vector<16xf32>
    %218 = vector.shape_cast %217 : vector<16xf32> to vector<16x1xf32>
    %219 = vector.broadcast %218 : vector<16x1xf32> to vector<16x16xf32>
    %220 = arith.subf %216, %219 : vector<16x16xf32>
    %221 = math.exp %220 : vector<16x16xf32>
    %cst_65 = arith.constant dense<0.000000e+00> : vector<16xf32>
    %222 = vector.multi_reduction <add>, %221, %cst_65 [1] : vector<16x16xf32> to vector<16xf32>
    %223 = vector.shape_cast %222 : vector<16xf32> to vector<16x1xf32>
    %224 = tpu.reciprocal %223 {approx = true} : vector<16x1xf32> -> vector<16x1xf32>
    %225 = vector.broadcast %224 : vector<16x1xf32> to vector<16x16xf32>
    %226 = arith.mulf %221, %225 : vector<16x16xf32>
    %227 = arith.truncf %226 : vector<16x16xf32> to vector<16x16xbf16>
    %cst_66 = arith.constant dense<0.000000e+00> : vector<16x64xf32>
    %228 = tpu.matmul %227, %215, %cst_66 {dimension_numbers = #tpu.dot_dimension_numbers<[1], [0], [0], [1], [0, 0, 1, 1], [], []>} : vector<16x16xbf16>, vector<16x64xbf16>, vector<16x64xf32> -> vector<16x64xf32>
    %229 = arith.truncf %228 : vector<16x64xf32> to vector<16x64xbf16>
    %c0_67 = arith.constant 0 : index
    %c704 = arith.constant 704 : index
    %230 = vector.load %arg7[%c0_67, %c704] : memref<16x768xbf16, #tpu.memory_space<vmem>>, vector<16x64xbf16>
    tpu.vector_store %arg7[%c0_67, %c704], %229 {strides = array<i32>} : memref<16x768xbf16, #tpu.memory_space<vmem>>, vector<16x64xbf16>,
    %c0_68 = arith.constant 0 : index
    %c0_69 = arith.constant 0 : index
    %231 = vector.load %arg7[%c0_68, %c0_69] : memref<16x768xbf16, #tpu.memory_space<vmem>>, vector<16x768xbf16>
    %c0_70 = arith.constant 0 : index
    %c0_71 = arith.constant 0 : index
    %232 = vector.load %arg4[%c0_70, %c0_71] : memref<768x768xbf16, #tpu.memory_space<vmem>>, vector<768x768xbf16>
    %cst_72 = arith.constant dense<0.000000e+00> : vector<16x768xf32>
    %233 = tpu.matmul %231, %232, %cst_72 {dimension_numbers = #tpu.dot_dimension_numbers<[1], [0], [0], [1], [0, 0, 1, 1], [], []>} : vector<16x768xbf16>, vector<768x768xbf16>, vector<16x768xf32> -> vector<16x768xf32>
    %c0_73 = arith.constant 0 : index
    %c0_74 = arith.constant 0 : index
    %234 = vector.load %arg5[%c0_73, %c0_74] : memref<1x768xf32, #tpu.memory_space<vmem>>, vector<1x768xf32>
    %235 = vector.broadcast %234 : vector<1x768xf32> to vector<16x768xf32>
    %236 = arith.addf %233, %235 : vector<16x768xf32>
    %c0_75 = arith.constant 0 : index
    %c0_76 = arith.constant 0 : index
    %c0_77 = arith.constant 0 : index
    %237 = vector.load %arg6[%c0_75, %c0_76, %c0_77] : memref<1x16x768xf32, #tpu.memory_space<vmem>>, vector<1x16x768xf32>
    %238 = vector.shape_cast %237 : vector<1x16x768xf32> to vector<16x768xf32>
    %239 = vector.shape_cast %236 : vector<16x768xf32> to vector<1x16x768xf32>
    tpu.vector_store %arg6[%c0_75, %c0_76, %c0_77], %239 {strides = array<i32>} : memref<1x16x768xf32, #tpu.memory_space<vmem>>, vector<1x16x768xf32>,
    return
  }
  func.func @transform_0(%arg0: i32) -> (i32, i32, i32) {
    %c0_i32 = arith.constant 0 : i32
    %c0_i32_0 = arith.constant 0 : i32
    %c0_i32_1 = arith.constant 0 : i32
    return %arg0, %c0_i32, %c0_i32_0 : i32, i32, i32
  }
  func.func @transform_1(%arg0: i32) -> (i32, i32) {
    %c0_i32 = arith.constant 0 : i32
    %c0_i32_0 = arith.constant 0 : i32
    %c0_i32_1 = arith.constant 0 : i32
    return %c0_i32, %c0_i32_0 : i32, i32
  }
  func.func @transform_2(%arg0: i32) -> (i32, i32) {
    %c0_i32 = arith.constant 0 : i32
    %c0_i32_0 = arith.constant 0 : i32
    %c0_i32_1 = arith.constant 0 : i32
    return %c0_i32, %c0_i32_0 : i32, i32
  }
  func.func @transform_3(%arg0: i32) -> (i32, i32) {
    %c0_i32 = arith.constant 0 : i32
    %c0_i32_0 = arith.constant 0 : i32
    %c0_i32_1 = arith.constant 0 : i32
    return %c0_i32, %c0_i32_0 : i32, i32
  }
  func.func @transform_4(%arg0: i32) -> (i32, i32) {
    %c0_i32 = arith.constant 0 : i32
    %c0_i32_0 = arith.constant 0 : i32
    %c0_i32_1 = arith.constant 0 : i32
    return %c0_i32, %c0_i32_0 : i32, i32
  }
  func.func @transform_5(%arg0: i32) -> (i32, i32, i32) {
    %c0_i32 = arith.constant 0 : i32
    %c0_i32_0 = arith.constant 0 : i32
    %c0_i32_1 = arith.constant 0 : i32
    return %arg0, %c0_i32, %c0_i32_0 : i32, i32, i32
  }
}

</mosaic_0001>

<bundles_post_ra>
// kernel: _lambda_.1
= control target key start
LH: loop header
LB: loop body
LE: loop exit
PB: predicated region body
PF: predicated region fallthrough
CT: control target
= control target key end

     0   :  { %10 = vsyncpa [#allocation4], 0  ;;  %s18109_s0 = inlined_call_operand.vmem [shape: bf16[2,16,768], index: 0, kind: input, shape index: {}]   ;;  %s18110_s1 = inlined_call_operand.vmem [shape: bf16[768,2304], index: 1, kind: input, shape index: {}]   ;;  %s18111_s2 = inlined_call_operand.vmem [shape: f32[1,2304], index: 2, kind: input, shape index: {}]   ;;  %s18112_s3 = inlined_call_operand.vmem [shape: bf16[768,768], index: 3, kind: input, shape index: {}]   ;;  %s18113_s4 = inlined_call_operand.vmem [shape: f32[1,768], index: 4, kind: input, shape index: {}]   ;;  %s18114_s5 = inlined_call_operand.hbm [shape: f32[2,16,768], index: 5, kind: output, shape index: {}]  }
   0x1   :  { %12 = vsyncpa [#allocation4 + $0x1], 0  ;;  %s13981_s18 = smov 0   ;;  %s13983_s19 = smov 0  }
   0x2   :  { %s13985_s20 = smov 0   ;;  %s13987_s21 = smov 0  }
   0x3 LB: > { %s14002_s22 = sadd.s32 4294967295, %s13943_s21   ;;  %s10451_s23 = sadd.s32 4294967294, %s13943_s21   ;;  %s13943_s21 = sphi %s13987_s21, %s18120_s21   ;;  %s13939_s20 = sphi %s13985_s20, %s18119_s20   ;;  %s13935_s19 = sphi %s13983_s19, %s18118_s19   ;;  %s13931_s18 = sphi %s13981_s18, %s18117_s18  }
   0x4   : > { %s14006_s24 = sadd.s32 1, %s13943_s21   ;;  %s135_s25 = sadd.s32 1, %s13939_s20 }
   0x5   : > { %s132_s26 = ssub.s32 %s13943_s21, %s14006_s24  ;;  %p145_p0 = scmp.ne.s32.totalorder %s13939_s20, %s13935_s19 }
   0x6   : > { %p133_p1 = scmp.eq.s32.totalorder %s132_s26, 0  ;;  %p146_p2 = scmp.eq.s32.totalorder %s14002_s22, 1 }
   0x7   : > { %p151_p3 = scmp.ne.s32.totalorder %s13935_s19, %s13931_s18  ;;  %p152_p4 = scmp.eq.s32.totalorder %s10451_s23, 1 }
   0x8   : > { %s14017_s27 = scalar_select %p133_p1, %s13939_s20, %s135_s25  }
   0x9   : > { %p14019_p5 = por %p146_p2, %p145_p0  ;;  %p14023_p6 = por %p152_p4, %p151_p3 }
   0xa   : > { %p10454_p7 = scmp.ge.s32.totalorder %s13943_s21, 1  ;;  %p190_p8 = scmp.lt.s32.totalorder %s13943_s21, 3 }
   0xc   : > { %p191_p9 = pnand %p10454_p7, %p190_p8 }
   0xd   : > { %v12024_v0 = vld [vmem:[%s18110_s1 + $0x4] ss:$72 sps:$4 sm:$0xff] (!%p191_p9)   ;;  %v12028_v2 = vld [vmem:[%s18110_s1] ss:$72 sps:$4 sm:$0xff] (!%p191_p9)   ;;  %v12030_v4 = vld [vmem:[%s18110_s1 + $0x94] ss:$72 sps:$4 sm:$0xff] (!%p191_p9)  }
   0xe   : > { %194 = sbr.rel (%p191_p9) target bundleno = 8093 (0x1f9d), region = 40  ;;  %v12026_v1 = vld [vmem:[%s18110_s1 + $0x904] ss:$72 sps:$4 sm:$0xff] (!%p191_p9)   ;;  %5540 = vmatprep.subr.bf16.mxu1 (!%p191_p9), %v12024_v0  ;;  %v12029_v3 = vld [vmem:[%s18110_s1 + $0x900] ss:$72 sps:$4 sm:$0xff] (!%p191_p9)   ;;  %p218_p10 = scmp.lt.s32.totalorder (!%p191_p9), %s14002_s22, 1 }
   0xf   : > { %5583 = vmatprep.subr.bf16.mxu0 (!%p191_p9), %v12026_v1  ;;  %5541 = vmatpush1.bf16.msra.mxu1 (!%p191_p9), %v12028_v2  ;;  %v12032_v5 = vld [vmem:[%s18110_s1 + $0x994] ss:$72 sps:$4 sm:$0xff] (!%p191_p9)   ;;  %v12034_v6 = vld [vmem:[%s18110_s1 + $0x90] ss:$72 sps:$4 sm:$0xff] (!%p191_p9)   ;;  %v12036_v8 = vld [vmem:[%s18110_s1 + $0x124] ss:$72 sps:$4 sm:$0xff] (!%p191_p9)  }
  0x10   : > { %5584 = vmatpush1.bf16.msra.mxu0 (!%p191_p9), %v12029_v3  ;;  %5542 = vmatprep.subr.bf16.mxu1 (!%p191_p9), %v12030_v4  ;;  %v12035_v7 = vld [vmem:[%s18110_s1 + $0x990] ss:$72 sps:$4 sm:$0xff] (!%p191_p9)   ;;  %v12038_v9 = vld [vmem:[%s18110_s1 + $0xa24] ss:$72 sps:$4 sm:$0xff] (!%p191_p9)   ;;  %v12040_v10 = vld [vmem:[%s18110_s1 + $0x120] ss:$72 sps:$4 sm:$0xff] (!%p191_p9)  }
  0x11   : > { %5585 = vmatprep.subr.bf16.mxu0 (!%p191_p9), %v12032_v5  ;;  %v12041_v11 = vld [vmem:[%s18110_s1 + $0xa20] ss:$72 sps:$4 sm:$0xff] (!%p191_p9)   ;;  %v12042_v12 = vld [vmem:[%s18110_s1 + $0x1b4] ss:$72 sps:$4 sm:$0xff] (!%p191_p9)   ;;  %v12046_v14 = vld [vmem:[%s18110_s1 + $0x1b0] ss:$72 sps:$4 sm:$0xff] (!%p191_p9)  }
  0x12   : > { %v12044_v13 = vld [vmem:[%s18110_s1 + $0xab4] ss:$72 sps:$4 sm:$0xff] (!%p191_p9)   ;;  %v12047_v15 = vld [vmem:[%s18110_s1 + $0xab0] ss:$72 sps:$4 sm:$0xff] (!%p191_p9)   ;;  %v12048_v16 = vld [vmem:[%s18110_s1 + $0x244] ss:$72 sps:$4 sm:$0xff] (!%p191_p9)  }
  0x13   : > { %5543 = vmatpush1.bf16.msra.mxu1 (!%p191_p9), %v12034_v6  ;;  %v12050_v17 = vld [vmem:[%s18110_s1 + $0xb44] ss:$72 sps:$4 sm:$0xff] (!%p191_p9)   ;;  %v12052_v18 = vld [vmem:[%s18110_s1 + $0x240] ss:$72 sps:$4 sm:$0xff] (!%p191_p9)   ;;  %v12054_v20 = vld [vmem:[%s18110_s1 + $0x2d4] ss:$72 sps:$4 sm:$0xff] (!%p191_p9)  }
  0x14   : > { %5586 = vmatpush1.bf16.msra.mxu0 (!%p191_p9), %v12035_v7  ;;  %5544 = vmatprep.subr.bf16.mxu1 (!%p191_p9), %v12036_v8  ;;  %v12053_v19 = vld [vmem:[%s18110_s1 + $0xb40] ss:$72 sps:$4 sm:$0xff] (!%p191_p9)   ;;  %v12056_v21 = vld [vmem:[%s18110_s1 + $0xbd4] ss:$72 sps:$4 sm:$0xff] (!%p191_p9)   ;;  %v12058_v22 = vld [vmem:[%s18110_s1 + $0x2d0] ss:$72 sps:$4 sm:$0xff] (!%p191_p9)  }
  0x15   : > { %5587 = vmatprep.subr.bf16.mxu0 %v12038_v9  ;;  %v12059_v23 = vld [vmem:[%s18110_s1 + $0xbd0] ss:$72 sps:$4 sm:$0xff]   ;;  %v12060_v24 = vld [vmem:[%s18110_s1 + $0x364] ss:$72 sps:$4 sm:$0xff]   ;;  %v12064_v26 = vld [vmem:[%s18110_s1 + $0x360] ss:$72 sps:$4 sm:$0xff]  }
  0x16   : > { %v12062_v25 = vld [vmem:[%s18110_s1 + $0xc64] ss:$72 sps:$4 sm:$0xff]   ;;  %v12065_v27 = vld [vmem:[%s18110_s1 + $0xc60] ss:$72 sps:$4 sm:$0xff]   ;;  %v12066_v28 = vld [vmem:[%s18110_s1 + $0x3f4] ss:$72 sps:$4 sm:$0xff]  }
  0x17   : > { %5545 = vmatpush1.bf16.msra.mxu1 %v12040_v10  ;;  %v12068_v29 = vld [vmem:[%s18110_s1 + $0xcf4] ss:$72 sps:$4 sm:$0xff]   ;;  %v12070_v30 = vld [vmem:[%s18110_s1 + $0x3f0] ss:$72 sps:$4 sm:$0xff]   ;;  %v12072_v32 = vld [vmem:[%s18110_s1 + $0x484] ss:$72 sps:$4 sm:$0xff]  }
  0x18   : > { %5588 = vmatpush1.bf16.msra.mxu0 %v12041_v11  ;;  %5546 = vmatprep.subr.bf16.mxu1 %v12042_v12  ;;  %v12071_v31 = vld [vmem:[%s18110_s1 + $0xcf0] ss:$72 sps:$4 sm:$0xff]   ;;  %v12074_v33 = vld [vmem:[%s18110_s1 + $0xd84] ss:$72 sps:$4 sm:$0xff]   ;;  %v12076_v34 = vld [vmem:[%s18110_s1 + $0x480] ss:$72 sps:$4 sm:$0xff]  }
  0x19   : > { %5589 = vmatprep.subr.bf16.mxu0 %v12044_v13  ;;  %v12077_v35 = vld [vmem:[%s18110_s1 + $0xd80] ss:$72 sps:$4 sm:$0xff]   ;;  %v12078_v36 = vld [vmem:[%s18110_s1 + $0x514] ss:$72 sps:$4 sm:$0xff]   ;;  %s219_s15 = scalar_select %p218_p10, %s14002_s22, 1  ;;  %vm13946_vm0 = vmmov 0  }
  0x1a   : > { %v12080_v37 = vld [vmem:[%s18110_s1 + $0xe14] ss:$72 sps:$4 sm:$0xff]   ;;  %v12082_v38 = vld [vmem:[%s18110_s1 + $0x510] ss:$72 sps:$4 sm:$0xff]   ;;  %v12084_v40 = vld [vmem:[%s18110_s1 + $0x5a4] ss:$72 sps:$4 sm:$0xff]  }
  0x1b   : > { %5547 = vmatpush1.bf16.msra.mxu1 %v12046_v14  ;;  %v12083_v39 = vld [vmem:[%s18110_s1 + $0xe10] ss:$72 sps:$4 sm:$0xff]   ;;  %s11978_s8 = smul.u32 48, %s219_s15  ;;  %v12086_v41 = vld [vmem:[%s18110_s1 + $0xea4] ss:$72 sps:$4 sm:$0xff]   ;;  %vm6731_vm1 = vcmask 523264  }
  0x1c   : > { %5590 = vmatpush1.bf16.msra.mxu0 %v12047_v15  ;;  %5548 = vmatprep.subr.bf16.mxu1 %v12048_v16  ;;  %v12088_v42 = vld [vmem:[%s18110_s1 + $0x5a0] ss:$72 sps:$4 sm:$0xff]   ;;  %v12090_v44 = vld [vmem:[%s18110_s1 + $0x634] ss:$72 sps:$4 sm:$0xff]   ;;  %v12094_v46 = vld [vmem:[%s18110_s1 + $0x630] ss:$72 sps:$4 sm:$0xff]  }
  0x1d   : > { %5591 = vmatprep.subr.bf16.mxu0 %v12050_v17  ;;  %v12089_v43 = vld [vmem:[%s18110_s1 + $0xea0] ss:$72 sps:$4 sm:$0xff]   ;;  %s14169_s25 = scalar_lea.vmem %s18109_s0, %s11978_s8  ;;  %v12092_v45 = vld [vmem:[%s18110_s1 + $0xf34] ss:$72 sps:$4 sm:$0xff]   ;;  %v12095_v47 = vld [vmem:[%s18110_s1 + $0xf30] ss:$72 sps:$4 sm:$0xff]  }
  0x1e   : > { %v12096_v48 = vld [vmem:[%s18110_s1 + $0x6c4] ss:$72 sps:$4 sm:$0xff]   ;;  %v12100_v52 = vld [vmem:[%s18110_s1 + $0x6c0] ss:$72 sps:$4 sm:$0xff]   ;;  %v12102_v54 = vld [vmem:[%s18110_s1 + $0x754] ss:$72 sps:$4 sm:$0xff]  }
  0x1f   : > { %5549 = vmatpush1.bf16.msra.mxu1 %v12052_v18  ;;  %v14184_v49 = vld [vmem:[%s14169_s25 + $0x4] ss:$24 sps:$4 sm:$0xff]   ;;  %v12101_v53 = vld [vmem:[%s18110_s1 + $0xfc0] ss:$72 sps:$4 sm:$0xff]   ;;  %v12106_v56 = vld [vmem:[%s18110_s1 + $0x750] ss:$72 sps:$4 sm:$0xff]  }
  0x20   : > { %5592 = vmatpush1.bf16.msra.mxu0 %v12053_v19  ;;  %5550 = vmatprep.subr.bf16.mxu1 %v12054_v20  ;;  %v14187_v50 = vld [vmem:[%s14169_s25 + $0xc] ss:$24 sps:$4 sm:$0xff]   ;;  %v12104_v55 = vld [vmem:[%s18110_s1 + $0x1054] ss:$72 sps:$4 sm:$0xff]   ;;  %v12107_v57 = vld [vmem:[%s18110_s1 + $0x1050] ss:$72 sps:$4 sm:$0xff]  }
  0x21   : > { %5593 = vmatprep.subr.bf16.mxu0 %v12056_v21  ;;  %v12098_v51 = vld [vmem:[%s18110_s1 + $0xfc4] ss:$72 sps:$4 sm:$0xff]   ;;  %5572 = vmatprep.mubr.bf16.mxu1 %v14184_v49  ;;  %v12112_v60 = vld [vmem:[%s18110_s1 + $0x7e0] ss:$72 sps:$4 sm:$0xff]   ;;  %v12114_v62 = vld [vmem:[%s18110_s1 + $0x874] ss:$72 sps:$4 sm:$0xff]  }
  0x22   : > { %5615 = vmatprep.mubr.bf16.mxu0 %v14187_v50  ;;  %v12108_v58 = vld [vmem:[%s18110_s1 + $0x7e4] ss:$72 sps:$4 sm:$0xff]   ;;  %v12113_v61 = vld [vmem:[%s18110_s1 + $0x10e0] ss:$72 sps:$4 sm:$0xff]   ;;  %v12116_v63 = vld [vmem:[%s18110_s1 + $0x1174] ss:$72 sps:$4 sm:$0xff]  }
  0x23   : > { %5551 = vmatpush1.bf16.msra.mxu1 %v12058_v22  ;;  %v12110_v59 = vld [vmem:[%s18110_s1 + $0x10e4] ss:$72 sps:$4 sm:$0xff]   ;;  %v12118_v0 = vld [vmem:[%s18110_s1 + $0x870] ss:$72 sps:$4 sm:$0xff]   ;;  %v12125_v5 = vld [vmem:[%s18110_s1 + $0x1200] ss:$72 sps:$4 sm:$0xff]  }
  0x24   : > { %5594 = vmatpush1.bf16.msra.mxu0 %v12059_v23  ;;  %5552 = vmatprep.subr.bf16.mxu1 %v12060_v24  ;;  %v12119_v1 = vld [vmem:[%s18110_s1 + $0x1170] ss:$72 sps:$4 sm:$0xff]   ;;  %v12127_v2 = vld [vmem:[%s18110_s1 + $0x1204] ss:$72 sps:$4 sm:$0xff]   ;;  %v14252_v7 = vld [vmem:[%s14169_s25 + $0x8] ss:$24 sps:$4 sm:$0xff]  }
  0x25   : > { %5595 = vmatprep.subr.bf16.mxu0 %v12062_v25  ;;  %v12130_v3 = vld [vmem:[%s18110_s1 + $0xc] ss:$72 sps:$4 sm:$0xff]   ;;  %v14243_v4 = vld [vmem:[%s14169_s25] ss:$24 sps:$4 sm:$0xff]   ;;  %v12128_v6 = vld [vmem:[%s18110_s1 + $0x8] ss:$72 sps:$4 sm:$0xff]  }
  0x26   : > { %v12134_v8 = vld [vmem:[%s18110_s1 + $0x1294] ss:$72 sps:$4 sm:$0xff]   ;;  %v12132_v10 = vld [vmem:[%s18110_s1 + $0x1290] ss:$72 sps:$4 sm:$0xff]   ;;  %v12140_v12 = vld [vmem:[%s18110_s1 + $0x1324] ss:$72 sps:$4 sm:$0xff]  }
  0x27   : > { %5553 = vmatpush1.bf16.msra.mxu1 %v12064_v26  ;;  %v12137_v9 = vld [vmem:[%s18110_s1 + $0x9c] ss:$72 sps:$4 sm:$0xff]   ;;  %v12135_v11 = vld [vmem:[%s18110_s1 + $0x98] ss:$72 sps:$4 sm:$0xff]   ;;  %v12143_v13 = vld [vmem:[%s18110_s1 + $0x12c] ss:$72 sps:$4 sm:$0xff]  }
  0x28   : > { %5596 = vmatpush1.bf16.msra.mxu0 %v12065_v27  ;;  %5554 = vmatprep.subr.bf16.mxu1 %v12066_v28  ;;  %v12138_v14 = vld [vmem:[%s18110_s1 + $0x1320] ss:$72 sps:$4 sm:$0xff]   ;;  %v12146_v16 = vld [vmem:[%s18110_s1 + $0x13b4] ss:$72 sps:$4 sm:$0xff]   ;;  %v12144_v18 = vld [vmem:[%s18110_s1 + $0x13b0] ss:$72 sps:$4 sm:$0xff]  }
  0x29   : > { %5597 = vmatprep.subr.bf16.mxu0 %v12068_v29  ;;  %v12141_v15 = vld [vmem:[%s18110_s1 + $0x128] ss:$72 sps:$4 sm:$0xff]   ;;  %v12149_v17 = vld [vmem:[%s18110_s1 + $0x1bc] ss:$72 sps:$4 sm:$0xff]   ;;  %v12147_v19 = vld [vmem:[%s18110_s1 + $0x1b8] ss:$72 sps:$4 sm:$0xff]  }
  0x2a   : > { %v12152_v20 = vld [vmem:[%s18110_s1 + $0x1444] ss:$72 sps:$4 sm:$0xff]   ;;  %v12150_v22 = vld [vmem:[%s18110_s1 + $0x1440] ss:$72 sps:$4 sm:$0xff]   ;;  %v12158_v24 = vld [vmem:[%s18110_s1 + $0x14d4] ss:$72 sps:$4 sm:$0xff]  }
  0x2b   : > { %5555 = vmatpush1.bf16.msra.mxu1 %v12070_v30  ;;  %v12155_v21 = vld [vmem:[%s18110_s1 + $0x24c] ss:$72 sps:$4 sm:$0xff]   ;;  %v12153_v23 = vld [vmem:[%s18110_s1 + $0x248] ss:$72 sps:$4 sm:$0xff]   ;;  %v12161_v25 = vld [vmem:[%s18110_s1 + $0x2dc] ss:$72 sps:$4 sm:$0xff]  }
  0x2c   : > { %5598 = vmatpush1.bf16.msra.mxu0 %v12071_v31  ;;  %5556 = vmatprep.subr.bf16.mxu1 %v12072_v32  ;;  %v12156_v26 = vld [vmem:[%s18110_s1 + $0x14d0] ss:$72 sps:$4 sm:$0xff]   ;;  %v12164_v28 = vld [vmem:[%s18110_s1 + $0x1564] ss:$72 sps:$4 sm:$0xff]   ;;  %v12162_v30 = vld [vmem:[%s18110_s1 + $0x1560] ss:$72 sps:$4 sm:$0xff]  }
  0x2d   : > { %5599 = vmatprep.subr.bf16.mxu0 %v12074_v33  ;;  %v12159_v27 = vld [vmem:[%s18110_s1 + $0x2d8] ss:$72 sps:$4 sm:$0xff]   ;;  %v12167_v29 = vld [vmem:[%s18110_s1 + $0x36c] ss:$72 sps:$4 sm:$0xff]   ;;  %v12165_v31 = vld [vmem:[%s18110_s1 + $0x368] ss:$72 sps:$4 sm:$0xff]  }
  0x2e   : > { %v12170_v32 = vld [vmem:[%s18110_s1 + $0x15f4] ss:$72 sps:$4 sm:$0xff]   ;;  %vm6779_vm2 = vcmask 130048   ;;  %s13947_s23 = smov 64   ;;  %vm6978_vm3 = vcmask 1048064   ;;  %s215_s11 = sand.u32 1, %s13935_s19  }
  0x2f   : > { %5557 = vmatpush1.bf16.msra.mxu1 %v12076_v34  ;;  %v14333_v33 = vld [vmem:[%s14169_s25 + $0x14] ss:$24 sps:$4 sm:$0xff]   ;;  %v12173_v34 = vld [vmem:[%s18110_s1 + $0x3fc] ss:$72 sps:$4 sm:$0xff]   ;;  %s11977_s13 = smul.u32 96, %s215_s11  ;;  %s13948_s30 = smov [#allocation3]  }
  0x30   : > { %5600 = vmatpush1.bf16.msra.mxu0 %v12077_v35  ;;  %5558 = vmatprep.subr.bf16.mxu1 %v12078_v36  ;;  %v12168_v35 = vld [vmem:[%s18110_s1 + $0x15f0] ss:$72 sps:$4 sm:$0xff]   ;;  %s11979_s14 = smul.u32 1536, %s14002_s22  ;;  %s18068_s22 = scalar_lea.sflag [#allocation4], %s215_s11 }
  0x31   : > { %5601 = vmatprep.subr.bf16.mxu0 %v12080_v37  ;;  %v12171_v36 = vld [vmem:[%s18110_s1 + $0x3f8] ss:$72 sps:$4 sm:$0xff]   ;;  %v12176_v37 = vld [vmem:[%s18110_s1 + $0x1684] ss:$72 sps:$4 sm:$0xff]   ;;  %s13885_s6 = sshll.u32 %s13948_s30, 4  ;;  %s13886_s6 = int_to_ptr.vmem [resolvable:$false] %s13885_s6 }
  0x32   : > { %s18059_s15 = scalar_lea.hbm %s18114_s5, %s11979_s14  ;;  %s13887_s7 = scalar_lea.vmem %s13886_s6, 3072 }
  0x33   : > { %5559 = vmatpush1.bf16.msra.mxu1 %v12082_v38  ;;  %v12179_v38 = vld [vmem:[%s18110_s1 + $0x48c] ss:$72 sps:$4 sm:$0xff]  }
  0x34   : > { %5602 = vmatpush1.bf16.msra.mxu0 %v12083_v39  ;;  %5560 = vmatprep.subr.bf16.mxu1 %v12084_v40  ;;  %v12174_v39 = vld [vmem:[%s18110_s1 + $0x1680] ss:$72 sps:$4 sm:$0xff]  }
  0x35   : > { %5603 = vmatprep.subr.bf16.mxu0 %v12086_v41  ;;  %v12177_v40 = vld [vmem:[%s18110_s1 + $0x488] ss:$72 sps:$4 sm:$0xff]   ;;  %v12182_v41 = vld [vmem:[%s18110_s1 + $0x1714] ss:$72 sps:$4 sm:$0xff]  }
  0x37   : > { %5561 = vmatpush1.bf16.msra.mxu1 %v12088_v42  ;;  %v12185_v42 = vld [vmem:[%s18110_s1 + $0x51c] ss:$72 sps:$4 sm:$0xff]  }
  0x38   : > { %5604 = vmatpush1.bf16.msra.mxu0 %v12089_v43  ;;  %5562 = vmatprep.subr.bf16.mxu1 %v12090_v44  ;;  %v12180_v43 = vld [vmem:[%s18110_s1 + $0x1710] ss:$72 sps:$4 sm:$0xff]  }
  0x39   : > { %5605 = vmatprep.subr.bf16.mxu0 %v12092_v45  ;;  %v12183_v44 = vld [vmem:[%s18110_s1 + $0x518] ss:$72 sps:$4 sm:$0xff]   ;;  %v12188_v45 = vld [vmem:[%s18110_s1 + $0x17a4] ss:$72 sps:$4 sm:$0xff]  }
  0x3b   : > { %5563 = vmatpush1.bf16.msra.mxu1 %v12094_v46  ;;  %v12191_v46 = vld [vmem:[%s18110_s1 + $0x5ac] ss:$72 sps:$4 sm:$0xff]  }
  0x3c   : > { %5606 = vmatpush1.bf16.msra.mxu0 %v12095_v47  ;;  %5564 = vmatprep.subr.bf16.mxu1 %v12096_v48  ;;  %v12186_v47 = vld [vmem:[%s18110_s1 + $0x17a0] ss:$72 sps:$4 sm:$0xff]  }
  0x3d   : > { %5607 = vmatprep.subr.bf16.mxu0 %v12098_v51  ;;  %v12189_v48 = vld [vmem:[%s18110_s1 + $0x5a8] ss:$72 sps:$4 sm:$0xff]   ;;  %v12194_v51 = vld [vmem:[%s18110_s1 + $0x1834] ss:$72 sps:$4 sm:$0xff]  }
  0x3f   : > { %5565 = vmatpush1.bf16.msra.mxu1 %v12100_v52  ;;  %v12197_v52 = vld [vmem:[%s18110_s1 + $0x63c] ss:$72 sps:$4 sm:$0xff]  }
  0x40   : > { %5608 = vmatpush1.bf16.msra.mxu0 %v12101_v53  ;;  %5566 = vmatprep.subr.bf16.mxu1 %v12102_v54  ;;  %v12192_v53 = vld [vmem:[%s18110_s1 + $0x1830] ss:$72 sps:$4 sm:$0xff]  }
  0x41   : > { %5609 = vmatprep.subr.bf16.mxu0 %v12104_v55  ;;  %v12195_v54 = vld [vmem:[%s18110_s1 + $0x638] ss:$72 sps:$4 sm:$0xff]   ;;  %v12200_v55 = vld [vmem:[%s18110_s1 + $0x18c4] ss:$72 sps:$4 sm:$0xff]  }
  0x43   : > { %5567 = vmatpush1.bf16.msra.mxu1 %v12106_v56  ;;  %v12203_v56 = vld [vmem:[%s18110_s1 + $0x6cc] ss:$72 sps:$4 sm:$0xff]  }
  0x44   : > { %5610 = vmatpush1.bf16.msra.mxu0 %v12107_v57  ;;  %5568 = vmatprep.subr.bf16.mxu1 %v12108_v58  ;;  %v12198_v57 = vld [vmem:[%s18110_s1 + $0x18c0] ss:$72 sps:$4 sm:$0xff]  }
  0x45   : > { %5611 = vmatprep.subr.bf16.mxu0 %v12110_v59  ;;  %v12201_v58 = vld [vmem:[%s18110_s1 + $0x6c8] ss:$72 sps:$4 sm:$0xff]   ;;  %v12206_v59 = vld [vmem:[%s18110_s1 + $0x1954] ss:$72 sps:$4 sm:$0xff]  }
  0x47   : > { %5569 = vmatpush1.bf16.msra.mxu1 %v12112_v60  ;;  %v12209_v60 = vld [vmem:[%s18110_s1 + $0x75c] ss:$72 sps:$4 sm:$0xff]  }
  0x48   : > { %5612 = vmatpush1.bf16.msra.mxu0 %v12113_v61  ;;  %5570 = vmatprep.subr.bf16.mxu1 %v12114_v62  ;;  %v12204_v61 = vld [vmem:[%s18110_s1 + $0x1950] ss:$72 sps:$4 sm:$0xff]  }
  0x49   : > { %5613 = vmatprep.subr.bf16.mxu0 %v12116_v63  ;;  %v12207_v62 = vld [vmem:[%s18110_s1 + $0x758] ss:$72 sps:$4 sm:$0xff]   ;;  %v12212_v63 = vld [vmem:[%s18110_s1 + $0x19e4] ss:$72 sps:$4 sm:$0xff]  }
  0x4b   : > { %5571 = vmatpush1.bf16.msra.mxu1 %v12118_v0  ;;  %v12215_v0 = vld [vmem:[%s18110_s1 + $0x7ec] ss:$72 sps:$4 sm:$0xff]  }
  0x4c   : > { %5614 = vmatpush1.bf16.msra.mxu0 %v12119_v1  ;;  %5669 = vmatprep.subr.bf16.mxu1 %v12130_v3  ;;  %v12210_v1 = vld [vmem:[%s18110_s1 + $0x19e0] ss:$72 sps:$4 sm:$0xff]   ;;  %v12218_v3 = vld [vmem:[%s18110_s1 + $0x1a74] ss:$72 sps:$4 sm:$0xff]  }
  0x4d   : > { %5626 = vmatprep.subr.bf16.mxu0 %v12127_v2  ;;  %v12213_v2 = vld [vmem:[%s18110_s1 + $0x7e8] ss:$72 sps:$4 sm:$0xff]  }
  0x4e   : > { %5573 = vmatmul.mubr.bf16.vlgmr.msra.gmra.mrb[0].mxu1 %v14243_v4 }
  0x4f   : > { %5616 = vmatmul.mubr.bf16.vlgmr.msra.gmra.mrb[0].mxu0 %v14252_v7  ;;  %5670 = vmatpush1.bf16.msra.mxu1 %v12128_v6  ;;  %v12216_v6 = vld [vmem:[%s18110_s1 + $0x1a70] ss:$72 sps:$4 sm:$0xff]  }
  0x50   : > { %5627 = vmatpush1.bf16.msra.mxu0 %v12125_v5  ;;  %5671 = vmatprep.subr.bf16.mxu1 %v12137_v9  ;;  %v12221_v5 = vld [vmem:[%s18110_s1 + $0x87c] ss:$72 sps:$4 sm:$0xff]   ;;  %v12227_v9 = vld [vmem:[%s18110_s1 + $0x90c] ss:$72 sps:$4 sm:$0xff]  }
  0x51   : > { %5628 = vmatprep.subr.bf16.mxu0 %v12134_v8  ;;  %5701 = vmatprep.mubr.bf16.mxu1 %v14184_v49  ;;  %v12219_v8 = vld [vmem:[%s18110_s1 + $0x878] ss:$72 sps:$4 sm:$0xff]  }
  0x52   : > { %5658 = vmatprep.mubr.bf16.mxu0 %v14333_v33 }
  0x53   : > { %5672 = vmatpush1.bf16.msra.mxu1 %v12135_v11  ;;  %v12225_v11 = vld [vmem:[%s18110_s1 + $0x908] ss:$72 sps:$4 sm:$0xff]  }
  0x54   : > { %5629 = vmatpush1.bf16.msra.mxu0 %v12132_v10  ;;  %5673 = vmatprep.subr.bf16.mxu1 %v12143_v13  ;;  %v14445_v10 = vld [vmem:[%s14169_s25 + $0x10] ss:$24 sps:$4 sm:$0xff]   ;;  %v12228_v13 = vld [vmem:[%s18110_s1 + $0x998] ss:$72 sps:$4 sm:$0xff]  }
  0x55   : > { %5630 = vmatprep.subr.bf16.mxu0 %v12140_v12  ;;  %v12230_v12 = vld [vmem:[%s18110_s1 + $0x99c] ss:$72 sps:$4 sm:$0xff]  }
  0x57   : > { %5674 = vmatpush1.bf16.msra.mxu1 %v12141_v15  ;;  %v12231_v15 = vld [vmem:[%s18110_s1 + $0xa28] ss:$72 sps:$4 sm:$0xff]  }
  0x58   : > { %5631 = vmatpush1.bf16.msra.mxu0 %v12138_v14  ;;  %5675 = vmatprep.subr.bf16.mxu1 %v12149_v17  ;;  %v12233_v14 = vld [vmem:[%s18110_s1 + $0xa2c] ss:$72 sps:$4 sm:$0xff]   ;;  %v12242_v17 = vld [vmem:[%s18110_s1 + $0xbdc] ss:$72 sps:$4 sm:$0xff]  }
  0x59   : > { %5632 = vmatprep.subr.bf16.mxu0 %v12146_v16  ;;  %v12239_v16 = vld [vmem:[%s18110_s1 + $0xb4c] ss:$72 sps:$4 sm:$0xff]  }
  0x5b   : > { %5676 = vmatpush1.bf16.msra.mxu1 %v12147_v19  ;;  %v12245_v19 = vld [vmem:[%s18110_s1 + $0xc6c] ss:$72 sps:$4 sm:$0xff]  }
  0x5c   : > { %5633 = vmatpush1.bf16.msra.mxu0 %v12144_v18  ;;  %5677 = vmatprep.subr.bf16.mxu1 %v12155_v21  ;;  %v12240_v18 = vld [vmem:[%s18110_s1 + $0xbd8] ss:$72 sps:$4 sm:$0xff]   ;;  %v12248_v21 = vld [vmem:[%s18110_s1 + $0xcfc] ss:$72 sps:$4 sm:$0xff]  }
  0x5d   : > { %5634 = vmatprep.subr.bf16.mxu0 %v12152_v20  ;;  %v12243_v20 = vld [vmem:[%s18110_s1 + $0xc68] ss:$72 sps:$4 sm:$0xff]  }
  0x5f   : > { %5678 = vmatpush1.bf16.msra.mxu1 %v12153_v23  ;;  %v12251_v23 = vld [vmem:[%s18110_s1 + $0xd8c] ss:$72 sps:$4 sm:$0xff]  }
  0x60   : > { %5635 = vmatpush1.bf16.msra.mxu0 %v12150_v22  ;;  %5679 = vmatprep.subr.bf16.mxu1 %v12161_v25  ;;  %v12246_v22 = vld [vmem:[%s18110_s1 + $0xcf8] ss:$72 sps:$4 sm:$0xff]   ;;  %v12254_v25 = vld [vmem:[%s18110_s1 + $0xe1c] ss:$72 sps:$4 sm:$0xff]  }
  0x61   : > { %5636 = vmatprep.subr.bf16.mxu0 %v12158_v24  ;;  %v12249_v24 = vld [vmem:[%s18110_s1 + $0xd88] ss:$72 sps:$4 sm:$0xff]  }
  0x63   : > { %5680 = vmatpush1.bf16.msra.mxu1 %v12159_v27  ;;  %v12257_v27 = vld [vmem:[%s18110_s1 + $0xeac] ss:$72 sps:$4 sm:$0xff]  }
  0x64   : > { %5637 = vmatpush1.bf16.msra.mxu0 %v12156_v26  ;;  %5681 = vmatprep.subr.bf16.mxu1 %v12167_v29  ;;  %v12252_v26 = vld [vmem:[%s18110_s1 + $0xe18] ss:$72 sps:$4 sm:$0xff]   ;;  %v12260_v29 = vld [vmem:[%s18110_s1 + $0xf3c] ss:$72 sps:$4 sm:$0xff]  }
  0x65   : > { %5638 = vmatprep.subr.bf16.mxu0 %v12164_v28  ;;  %v12255_v28 = vld [vmem:[%s18110_s1 + $0xea8] ss:$72 sps:$4 sm:$0xff]  }
  0x67   : > { %5682 = vmatpush1.bf16.msra.mxu1 %v12165_v31  ;;  %v12263_v31 = vld [vmem:[%s18110_s1 + $0xfcc] ss:$72 sps:$4 sm:$0xff]  }
  0x68   : > { %5639 = vmatpush1.bf16.msra.mxu0 %v12162_v30  ;;  %5683 = vmatprep.subr.bf16.mxu1 %v12173_v34  ;;  %v12258_v30 = vld [vmem:[%s18110_s1 + $0xf38] ss:$72 sps:$4 sm:$0xff]   ;;  %v12266_v34 = vld [vmem:[%s18110_s1 + $0x105c] ss:$72 sps:$4 sm:$0xff]  }
  0x69   : > { %5640 = vmatprep.subr.bf16.mxu0 %v12170_v32  ;;  %v12261_v32 = vld [vmem:[%s18110_s1 + $0xfc8] ss:$72 sps:$4 sm:$0xff]  }
  0x6b   : > { %5684 = vmatpush1.bf16.msra.mxu1 %v12171_v36  ;;  %v12269_v36 = vld [vmem:[%s18110_s1 + $0x10ec] ss:$72 sps:$4 sm:$0xff]  }
  0x6c   : > { %5641 = vmatpush1.bf16.msra.mxu0 %v12168_v35  ;;  %5685 = vmatprep.subr.bf16.mxu1 %v12179_v38  ;;  %v12264_v35 = vld [vmem:[%s18110_s1 + $0x1058] ss:$72 sps:$4 sm:$0xff]   ;;  %v12272_v38 = vld [vmem:[%s18110_s1 + $0x117c] ss:$72 sps:$4 sm:$0xff]  }
  0x6d   : > { %5642 = vmatprep.subr.bf16.mxu0 %v12176_v37  ;;  %v12267_v37 = vld [vmem:[%s18110_s1 + $0x10e8] ss:$72 sps:$4 sm:$0xff]  }
  0x6f   : > { %5686 = vmatpush1.bf16.msra.mxu1 %v12177_v40  ;;  %v12275_v40 = vld [vmem:[%s18110_s1 + $0x120c] ss:$72 sps:$4 sm:$0xff]  }
  0x70   : > { %5643 = vmatpush1.bf16.msra.mxu0 %v12174_v39  ;;  %5687 = vmatprep.subr.bf16.mxu1 %v12185_v42  ;;  %v12270_v39 = vld [vmem:[%s18110_s1 + $0x1178] ss:$72 sps:$4 sm:$0xff]   ;;  %v12278_v42 = vld [vmem:[%s18110_s1 + $0x129c] ss:$72 sps:$4 sm:$0xff]  }
  0x71   : > { %5644 = vmatprep.subr.bf16.mxu0 %v12182_v41  ;;  %v12273_v41 = vld [vmem:[%s18110_s1 + $0x1208] ss:$72 sps:$4 sm:$0xff]  }
  0x73   : > { %5688 = vmatpush1.bf16.msra.mxu1 %v12183_v44  ;;  %v12281_v44 = vld [vmem:[%s18110_s1 + $0x132c] ss:$72 sps:$4 sm:$0xff]  }
  0x74   : > { %5645 = vmatpush1.bf16.msra.mxu0 %v12180_v43  ;;  %5689 = vmatprep.subr.bf16.mxu1 %v12191_v46  ;;  %v12276_v43 = vld [vmem:[%s18110_s1 + $0x1298] ss:$72 sps:$4 sm:$0xff]  }
  0x75   : > { %5646 = vmatprep.subr.bf16.mxu0 %v12188_v45  ;;  %v12279_v45 = vld [vmem:[%s18110_s1 + $0x1328] ss:$72 sps:$4 sm:$0xff]   ;;  %v12282_v46 = vld [vmem:[%s18110_s1 + $0x13b8] ss:$72 sps:$4 sm:$0xff]  }
  0x77   : > { %5690 = vmatpush1.bf16.msra.mxu1 %v12189_v48  ;;  %v12290_v48 = vld [vmem:[%s18110_s1 + $0x14dc] ss:$72 sps:$4 sm:$0xff]  }
  0x78   : > { %5647 = vmatpush1.bf16.msra.mxu0 %v12186_v47  ;;  %5691 = vmatprep.subr.bf16.mxu1 %v12197_v52  ;;  %v12285_v47 = vld [vmem:[%s18110_s1 + $0x1448] ss:$72 sps:$4 sm:$0xff]   ;;  %v12293_v52 = vld [vmem:[%s18110_s1 + $0x156c] ss:$72 sps:$4 sm:$0xff]  }
  0x79   : > { %5648 = vmatprep.subr.bf16.mxu0 %v12194_v51  ;;  %v12288_v51 = vld [vmem:[%s18110_s1 + $0x14d8] ss:$72 sps:$4 sm:$0xff]  }
  0x7b   : > { %5692 = vmatpush1.bf16.msra.mxu1 %v12195_v54  ;;  %v12296_v54 = vld [vmem:[%s18110_s1 + $0x15fc] ss:$72 sps:$4 sm:$0xff]  }
  0x7c   : > { %5649 = vmatpush1.bf16.msra.mxu0 %v12192_v53  ;;  %5693 = vmatprep.subr.bf16.mxu1 %v12203_v56  ;;  %v12291_v53 = vld [vmem:[%s18110_s1 + $0x1568] ss:$72 sps:$4 sm:$0xff]   ;;  %v12299_v56 = vld [vmem:[%s18110_s1 + $0x168c] ss:$72 sps:$4 sm:$0xff]  }
  0x7d   : > { %5650 = vmatprep.subr.bf16.mxu0 %v12200_v55  ;;  %v12294_v55 = vld [vmem:[%s18110_s1 + $0x15f8] ss:$72 sps:$4 sm:$0xff]  }
  0x7f   : > { %5694 = vmatpush1.bf16.msra.mxu1 %v12201_v58  ;;  %v12302_v58 = vld [vmem:[%s18110_s1 + $0x171c] ss:$72 sps:$4 sm:$0xff]  }
  0x80   : > { %5651 = vmatpush1.bf16.msra.mxu0 %v12198_v57  ;;  %5695 = vmatprep.subr.bf16.mxu1 %v12209_v60  ;;  %v12297_v57 = vld [vmem:[%s18110_s1 + $0x1688] ss:$72 sps:$4 sm:$0xff]   ;;  %v12305_v60 = vld [vmem:[%s18110_s1 + $0x17ac] ss:$72 sps:$4 sm:$0xff]  }
  0x81   : > { %5652 = vmatprep.subr.bf16.mxu0 %v12206_v59  ;;  %v12300_v59 = vld [vmem:[%s18110_s1 + $0x1718] ss:$72 sps:$4 sm:$0xff]  }
  0x83   : > { %5696 = vmatpush1.bf16.msra.mxu1 %v12207_v62  ;;  %v12308_v62 = vld [vmem:[%s18110_s1 + $0x183c] ss:$72 sps:$4 sm:$0xff]  }
  0x84   : > { %5653 = vmatpush1.bf16.msra.mxu0 %v12204_v61  ;;  %5697 = vmatprep.subr.bf16.mxu1 %v12215_v0  ;;  %v12303_v61 = vld [vmem:[%s18110_s1 + $0x17a8] ss:$72 sps:$4 sm:$0xff]   ;;  %v12311_v0 = vld [vmem:[%s18110_s1 + $0x18cc] ss:$72 sps:$4 sm:$0xff]  }
  0x85   : > { %5654 = vmatprep.subr.bf16.mxu0 %v12212_v63  ;;  %v12306_v63 = vld [vmem:[%s18110_s1 + $0x1838] ss:$72 sps:$4 sm:$0xff]  }
  0x87   : > { %5698 = vmatpush1.bf16.msra.mxu1 %v12213_v2  ;;  %v12314_v2 = vld [vmem:[%s18110_s1 + $0x195c] ss:$72 sps:$4 sm:$0xff]  }
  0x88   : > { %5655 = vmatpush1.bf16.msra.mxu0 %v12210_v1  ;;  %5699 = vmatprep.subr.bf16.mxu1 %v12221_v5  ;;  %v12309_v1 = vld [vmem:[%s18110_s1 + $0x18c8] ss:$72 sps:$4 sm:$0xff]   ;;  %v12317_v5 = vld [vmem:[%s18110_s1 + $0x19ec] ss:$72 sps:$4 sm:$0xff]  }
  0x89   : > { %5656 = vmatprep.subr.bf16.mxu0 %v12218_v3  ;;  %v12312_v3 = vld [vmem:[%s18110_s1 + $0x1958] ss:$72 sps:$4 sm:$0xff]  }
  0x8b   : > { %5700 = vmatpush1.bf16.msra.mxu1 %v12219_v8  ;;  %v12320_v8 = vld [vmem:[%s18110_s1 + $0x1a7c] ss:$72 sps:$4 sm:$0xff]  }
  0x8c   : > { %5657 = vmatpush1.bf16.msra.mxu0 %v12216_v6  ;;  %5712 = vmatprep.subr.bf16.mxu1 %v12227_v9  ;;  %v12315_v6 = vld [vmem:[%s18110_s1 + $0x19e8] ss:$72 sps:$4 sm:$0xff]   ;;  %v12318_v9 = vld [vmem:[%s18110_s1 + $0x1a78] ss:$72 sps:$4 sm:$0xff]  }
  0x8e   : > { %5702 = vmatmul.mubr.bf16.vlgmr.msra.gmra.mrb[4].mxu1 %v14243_v4  ;;  %v12236_v4 = vld [vmem:[%s18110_s1 + $0xabc] ss:$72 sps:$4 sm:$0xff]  }
  0x8f   : > { %5659 = vmatmul.mubr.bf16.vlgmr.msra.gmra.mrb[0].mxu0 %v14445_v10  ;;  %5713 = vmatpush1.bf16.msra.mxu1 %v12225_v11  ;;  %v12323_v11 = vld [vmem:[%s18110_s1 + $0x1c] ss:$72 sps:$4 sm:$0xff]  }
  0x90   : > { %5744 = vmatprep.mubr.bf16.mxu1 %v14187_v50  ;;  %5714 = vmatprep.subr.bf16.mxu1 %v12230_v12  ;;  %v12234_v50 = vld [vmem:[%s18110_s1 + $0xab8] ss:$72 sps:$4 sm:$0xff]  }
  0x91   : > { %5830 = vmatprep.mubr.bf16.mxu0 %v14184_v49  ;;  %v12237_v49 = vld [vmem:[%s18110_s1 + $0xb48] ss:$72 sps:$4 sm:$0xff]   ;;  %v12321_v12 = vld [vmem:[%s18110_s1 + $0x18] ss:$72 sps:$4 sm:$0xff]  }
  0x93   : > { %5715 = vmatpush1.bf16.msra.mxu1 %v12228_v13  ;;  %v12326_v13 = vld [vmem:[%s18110_s1 + $0xac] ss:$72 sps:$4 sm:$0xff]  }
  0x94   : > { %5716 = vmatprep.subr.bf16.mxu1 %v12233_v14  ;;  %v12324_v14 = vld [vmem:[%s18110_s1 + $0xa8] ss:$72 sps:$4 sm:$0xff]  }
  0x97   : > { %5717 = vmatpush1.bf16.msra.mxu1 %v12231_v15  ;;  %v12329_v15 = vld [vmem:[%s18110_s1 + $0x13c] ss:$72 sps:$4 sm:$0xff]  }
  0x98   : > { %5718 = vmatprep.subr.bf16.mxu1 %v12236_v4  ;;  %v13857_v4 = vld [vmem:[%s14169_s25 + $0x4] ss:$24 sps:$4 sm:$0xff]  }
  0x9b   : > { %5719 = vmatpush1.bf16.msra.mxu1 %v12234_v50  ;;  %v12327_v50 = vld [vmem:[%s18110_s1 + $0x138] ss:$72 sps:$4 sm:$0xff]  }
  0x9c   : > { %5720 = vmatprep.subr.bf16.mxu1 %v12239_v16  ;;  %v12330_v16 = vld [vmem:[%s18110_s1 + $0x1c8] ss:$72 sps:$4 sm:$0xff]  }
  0x9f   : > { %5721 = vmatpush1.bf16.msra.mxu1 %v12237_v49  ;;  %v12335_v49 = vld [vmem:[%s18110_s1 + $0x25c] ss:$72 sps:$4 sm:$0xff]  }
  0xa0   : > { %5722 = vmatprep.subr.bf16.mxu1 %v12242_v17  ;;  %v12333_v17 = vld [vmem:[%s18110_s1 + $0x258] ss:$72 sps:$4 sm:$0xff]  }
  0xa3   : > { %5723 = vmatpush1.bf16.msra.mxu1 %v12240_v18  ;;  %v12338_v18 = vld [vmem:[%s18110_s1 + $0x2ec] ss:$72 sps:$4 sm:$0xff]  }
  0xa4   : > { %5724 = vmatprep.subr.bf16.mxu1 %v12245_v19  ;;  %v12336_v19 = vld [vmem:[%s18110_s1 + $0x2e8] ss:$72 sps:$4 sm:$0xff]  }
  0xa7   : > { %5725 = vmatpush1.bf16.msra.mxu1 %v12243_v20  ;;  %v12341_v20 = vld [vmem:[%s18110_s1 + $0x37c] ss:$72 sps:$4 sm:$0xff]  }
  0xa8   : > { %5726 = vmatprep.subr.bf16.mxu1 %v12248_v21 }
  0xab   : > { %5727 = vmatpush1.bf16.msra.mxu1 %v12246_v22 }
  0xac   : > { %5728 = vmatprep.subr.bf16.mxu1 %v12251_v23 }
  0xaf   : > { %5729 = vmatpush1.bf16.msra.mxu1 %v12249_v24  ;;  %v12339_v24 = vld [vmem:[%s18110_s1 + $0x378] ss:$72 sps:$4 sm:$0xff]  }
  0xb0   : > { %5730 = vmatprep.subr.bf16.mxu1 %v12254_v25  ;;  %v12344_v25 = vld [vmem:[%s18110_s1 + $0x40c] ss:$72 sps:$4 sm:$0xff]  }
  0xb3   : > { %5731 = vmatpush1.bf16.msra.mxu1 %v12252_v26 }
  0xb4   : > { %5732 = vmatprep.subr.bf16.mxu1 %v12257_v27  ;;  %v12342_v27 = vld [vmem:[%s18110_s1 + $0x408] ss:$72 sps:$4 sm:$0xff]  }
  0xb7   : > { %5733 = vmatpush1.bf16.msra.mxu1 %v12255_v28  ;;  %v12347_v28 = vld [vmem:[%s18110_s1 + $0x49c] ss:$72 sps:$4 sm:$0xff]  }
  0xb8   : > { %5734 = vmatprep.subr.bf16.mxu1 %v12260_v29  ;;  %v12345_v29 = vld [vmem:[%s18110_s1 + $0x498] ss:$72 sps:$4 sm:$0xff]  }
  0xbb   : > { %5735 = vmatpush1.bf16.msra.mxu1 %v12258_v30  ;;  %v12350_v30 = vld [vmem:[%s18110_s1 + $0x52c] ss:$72 sps:$4 sm:$0xff]  }
  0xbc   : > { %5736 = vmatprep.subr.bf16.mxu1 %v12263_v31  ;;  %v12348_v31 = vld [vmem:[%s18110_s1 + $0x528] ss:$72 sps:$4 sm:$0xff]  }
  0xbf   : > { %5737 = vmatpush1.bf16.msra.mxu1 %v12261_v32  ;;  %v12353_v32 = vld [vmem:[%s18110_s1 + $0x5bc] ss:$72 sps:$4 sm:$0xff]  }
  0xc0   : > { %5738 = vmatprep.subr.bf16.mxu1 %v12266_v34  ;;  %v12351_v34 = vld [vmem:[%s18110_s1 + $0x5b8] ss:$72 sps:$4 sm:$0xff]  }
  0xc3   : > { %5739 = vmatpush1.bf16.msra.mxu1 %v12264_v35  ;;  %v12356_v35 = vld [vmem:[%s18110_s1 + $0x64c] ss:$72 sps:$4 sm:$0xff]  }
  0xc4   : > { %5740 = vmatprep.subr.bf16.mxu1 %v12269_v36  ;;  %v12354_v36 = vld [vmem:[%s18110_s1 + $0x648] ss:$72 sps:$4 sm:$0xff]  }
  0xc7   : > { %5741 = vmatpush1.bf16.msra.mxu1 %v12267_v37  ;;  %v12359_v37 = vld [vmem:[%s18110_s1 + $0x6dc] ss:$72 sps:$4 sm:$0xff]  }
  0xc8   : > { %5742 = vmatprep.subr.bf16.mxu1 %v12272_v38  ;;  %v12357_v38 = vld [vmem:[%s18110_s1 + $0x6d8] ss:$72 sps:$4 sm:$0xff]  }
  0xcb   : > { %5743 = vmatpush1.bf16.msra.mxu1 %v12270_v39  ;;  %v12362_v39 = vld [vmem:[%s18110_s1 + $0x76c] ss:$72 sps:$4 sm:$0xff]  }
  0xcc   : > { %5755 = vmatprep.subr.bf16.mxu1 %v12275_v40  ;;  %v12360_v40 = vld [vmem:[%s18110_s1 + $0x768] ss:$72 sps:$4 sm:$0xff]  }
  0xce   : > { %5745 = vmatmul.mubr.bf16.vlgmr.msra.gmra.mrb[4].mxu1 %v14252_v7  ;;  %v12284_v7 = vld [vmem:[%s18110_s1 + $0x13bc] ss:$72 sps:$4 sm:$0xff]  }
  0xcf   : > { %5756 = vmatpush1.bf16.msra.mxu1 %v12273_v41  ;;  %5787 = vmatprep.mubr.bf16.mxu1 %v14333_v33  ;;  %v12287_v33 = vld [vmem:[%s18110_s1 + $0x144c] ss:$72 sps:$4 sm:$0xff]   ;;  %v12365_v41 = vld [vmem:[%s18110_s1 + $0x7fc] ss:$72 sps:$4 sm:$0xff]  }
  0xd0   : > { %5757 = vmatprep.subr.bf16.mxu1 %v12278_v42  ;;  %v12363_v42 = vld [vmem:[%s18110_s1 + $0x7f8] ss:$72 sps:$4 sm:$0xff]  }
  0xd3   : > { %5758 = vmatpush1.bf16.msra.mxu1 %v12276_v43  ;;  %v12368_v43 = vld [vmem:[%s18110_s1 + $0x88c] ss:$72 sps:$4 sm:$0xff]  }
  0xd4   : > { %5759 = vmatprep.subr.bf16.mxu1 %v12281_v44  ;;  %v12366_v44 = vld [vmem:[%s18110_s1 + $0x888] ss:$72 sps:$4 sm:$0xff]  }
  0xd7   : > { %5760 = vmatpush1.bf16.msra.mxu1 %v12279_v45  ;;  %v12371_v45 = vld [vmem:[%s18110_s1 + $0x91c] ss:$72 sps:$4 sm:$0xff]  }
  0xd8   : > { %5761 = vmatprep.subr.bf16.mxu1 %v12284_v7  ;;  %v12465_v7 = vld [vmem:[%s18110_s1 + $0x10] ss:$72 sps:$4 sm:$0xff]  }
  0xdb   : > { %5762 = vmatpush1.bf16.msra.mxu1 %v12282_v46  ;;  %v12467_v46 = vld [vmem:[%s18110_s1 + $0x14] ss:$72 sps:$4 sm:$0xff]  }
  0xdc   : > { %5763 = vmatprep.subr.bf16.mxu1 %v12287_v33  ;;  %v12369_v33 = vld [vmem:[%s18110_s1 + $0x918] ss:$72 sps:$4 sm:$0xff]   ;;  %5798 = vmatprep.subr.bf16.mxu0 %v12467_v46  ;;  %v12396_v46 = vld [vmem:[%s18110_s1 + $0xe28] ss:$72 sps:$4 sm:$0xff]  }
  0xdd   : > { %5799 = vmatpush1.bf16.msra.mxu0 %v12465_v7  ;;  %v12521_v7 = vld [vmem:[%s18110_s1 + $0x524] ss:$72 sps:$4 sm:$0xff]  }
  0xdf   : > { %5764 = vmatpush1.bf16.msra.mxu1 %v12285_v47  ;;  %v12374_v47 = vld [vmem:[%s18110_s1 + $0x9ac] ss:$72 sps:$4 sm:$0xff]  }
  0xe0   : > { %5765 = vmatprep.subr.bf16.mxu1 %v12290_v48  ;;  %v12473_v48 = vld [vmem:[%s18110_s1 + $0xa4] ss:$72 sps:$4 sm:$0xff]  }
  0xe1   : > { %5800 = vmatprep.subr.bf16.mxu0 %v12473_v48  ;;  %v12527_v48 = vld [vmem:[%s18110_s1 + $0x5b4] ss:$72 sps:$4 sm:$0xff]  }
  0xe3   : > { %5766 = vmatpush1.bf16.msra.mxu1 %v12288_v51  ;;  %v14767_v51 = vld [vmem:[%s14169_s25] ss:$24 sps:$4 sm:$0xff]  }
  0xe4   : > { %5767 = vmatprep.subr.bf16.mxu1 %v12293_v52  ;;  %v12471_v52 = vld [vmem:[%s18110_s1 + $0xa0] ss:$72 sps:$4 sm:$0xff]  }
  0xe5   : > { %5801 = vmatpush1.bf16.msra.mxu0 %v12471_v52  ;;  %v12399_v52 = vld [vmem:[%s18110_s1 + $0xeb8] ss:$72 sps:$4 sm:$0xff]  }
  0xe7   : > { %5768 = vmatpush1.bf16.msra.mxu1 %v12291_v53  ;;  %v12372_v53 = vld [vmem:[%s18110_s1 + $0x9a8] ss:$72 sps:$4 sm:$0xff]  }
  0xe8   : > { %5769 = vmatprep.subr.bf16.mxu1 %v12296_v54  ;;  %v12377_v54 = vld [vmem:[%s18110_s1 + $0xa3c] ss:$72 sps:$4 sm:$0xff]  }
  0xeb   : > { %5770 = vmatpush1.bf16.msra.mxu1 %v12294_v55  ;;  %v14780_v55 = vld [vmem:[%s14169_s25 + $0xc] ss:$24 sps:$4 sm:$0xff]  }
  0xec   : > { %5771 = vmatprep.subr.bf16.mxu1 %v12299_v56  ;;  %v1100_v56 = vlaneseq }
  0xef   : > { %5772 = vmatpush1.bf16.msra.mxu1 %v12297_v57  ;;  %v12477_v57 = vld [vmem:[%s18110_s1 + $0x130] ss:$72 sps:$4 sm:$0xff]  }
  0xf0   : > { %5773 = vmatprep.subr.bf16.mxu1 %v12302_v58  ;;  %v12479_v58 = vld [vmem:[%s18110_s1 + $0x134] ss:$72 sps:$4 sm:$0xff]  }
  0xf1   : > { %5802 = vmatprep.subr.bf16.mxu0 %v12479_v58  ;;  %v12407_v58 = vld [vmem:[%s18110_s1 + $0xfdc] ss:$72 sps:$4 sm:$0xff]  }
  0xf2   : > { %5803 = vmatpush1.bf16.msra.mxu0 %v12477_v57  ;;  %v12402_v57 = vld [vmem:[%s18110_s1 + $0xf48] ss:$72 sps:$4 sm:$0xff]  }
  0xf3   : > { %5774 = vmatpush1.bf16.msra.mxu1 %v12300_v59  ;;  %v12375_v59 = vld [vmem:[%s18110_s1 + $0xa38] ss:$72 sps:$4 sm:$0xff]  }
  0xf4   : > { %5775 = vmatprep.subr.bf16.mxu1 %v12305_v60  ;;  %v12380_v60 = vld [vmem:[%s18110_s1 + $0xacc] ss:$72 sps:$4 sm:$0xff]  }
  0xf7   : > { %5776 = vmatpush1.bf16.msra.mxu1 %v12303_v61  ;;  %v14795_v61 = vshrl.u32 %v1100_v56, 7  ;;  %v12533_v56 = vld [vmem:[%s18110_s1 + $0x644] ss:$72 sps:$4 sm:$0xff]  }
  0xf8   : > { %5777 = vmatprep.subr.bf16.mxu1 %v12308_v62  ;;  %v12483_v62 = vld [vmem:[%s18110_s1 + $0x1c0] ss:$72 sps:$4 sm:$0xff]  }
  0xfb   : > { %5778 = vmatpush1.bf16.msra.mxu1 %v12306_v63  ;;  %v12485_v63 = vld [vmem:[%s18110_s1 + $0x1c4] ss:$72 sps:$4 sm:$0xff]  }
  0xfc   : > { %5779 = vmatprep.subr.bf16.mxu1 %v12311_v0  ;;  %5804 = vmatprep.subr.bf16.mxu0 %v12485_v63  ;;  %v1094_v0 = vld [vmem:[%s18111_s2] sm:$0xff]  ;;  %v12410_v63 = vld [vmem:[%s18110_s1 + $0x106c] ss:$72 sps:$4 sm:$0xff]  }
  0xfd   : > { %5805 = vmatpush1.bf16.msra.mxu0 %v12483_v62  ;;  %v12405_v62 = vld [vmem:[%s18110_s1 + $0xfd8] ss:$72 sps:$4 sm:$0xff]  }
  0xff   : > { %5780 = vmatpush1.bf16.msra.mxu1 %v12309_v1  ;;  %v12378_v1 = vld [vmem:[%s18110_s1 + $0xac8] ss:$72 sps:$4 sm:$0xff]  }
 0x100   : > { %5781 = vmatprep.subr.bf16.mxu1 %v12314_v2  ;;  %v12383_v2 = vld [vmem:[%s18110_s1 + $0xb5c] ss:$72 sps:$4 sm:$0xff]  }
 0x103   : > { %5782 = vmatpush1.bf16.msra.mxu1 %v12312_v3  ;;  %v14813_v3 = vsub.s32 0, %v14795_v61 }
 0x104   : > { %5783 = vmatprep.subr.bf16.mxu1 %v12317_v5  ;;  %v12489_v5 = vld [vmem:[%s18110_s1 + $0x250] ss:$72 sps:$4 sm:$0xff]  }
 0x107   : > { %5784 = vmatpush1.bf16.msra.mxu1 %v12315_v6  ;;  %v12491_v6 = vld [vmem:[%s18110_s1 + $0x254] ss:$72 sps:$4 sm:$0xff]  }
 0x108   : > { %5785 = vmatprep.subr.bf16.mxu1 %v12320_v8  ;;  %v14822_v8 = vsub.s32 1, %v14795_v61  ;;  %5806 = vmatprep.subr.bf16.mxu0 %v12491_v6  ;;  %v12549_v6 = vld [vmem:[%s18110_s1 + $0x7f0] ss:$72 sps:$4 sm:$0xff]  }
 0x109   : > { %5807 = vmatpush1.bf16.msra.mxu0 %v12489_v5  ;;  %v12413_v5 = vld [vmem:[%s18110_s1 + $0x10fc] ss:$72 sps:$4 sm:$0xff]  }
 0x10b   : > { %5786 = vmatpush1.bf16.msra.mxu1 %v12318_v9  ;;  %v12381_v9 = vld [vmem:[%s18110_s1 + $0xb58] ss:$72 sps:$4 sm:$0xff]  }
 0x10c   : > { %5927 = vmatprep.subr.bf16.mxu1 %v12323_v11  ;;  %v12386_v11 = vld [vmem:[%s18110_s1 + $0xbec] ss:$72 sps:$4 sm:$0xff]  }
 0x10e   : > { %5788 = vmatmul.mubr.bf16.vlgmr.msra.gmra.mrb[4].mxu1 %v14445_v10  ;;  %v12332_v10 = vld [vmem:[%s18110_s1 + $0x1cc] ss:$72 sps:$4 sm:$0xff]  }
 0x10f   : > { %5928 = vmatpush1.bf16.msra.mxu1 %v12321_v12  ;;  %5959 = vmatprep.mubr.bf16.mxu1 %v13857_v4  ;;  %v1103_v12 = vrot.slane %v1094_v0, %v14813_v3  ;;  %v12384_v4 = vld [vmem:[%s18110_s1 + $0xbe8] ss:$72 sps:$4 sm:$0xff]  }
 0x110   : > { %5929 = vmatprep.subr.bf16.mxu1 %v12326_v13  ;;  %v12495_v13 = vld [vmem:[%s18110_s1 + $0x2e0] ss:$72 sps:$4 sm:$0xff]  }
 0x113   : > { %5930 = vmatpush1.bf16.msra.mxu1 %v12324_v14  ;;  %v12497_v14 = vld [vmem:[%s18110_s1 + $0x2e4] ss:$72 sps:$4 sm:$0xff]  }
 0x114   : > { %5931 = vmatprep.subr.bf16.mxu1 %v12329_v15  ;;  %v1107_v15 = vrot.slane %v1094_v0, %v14822_v8  ;;  %5808 = vmatprep.subr.bf16.mxu0 %v12497_v14  ;;  %v12543_v0 = vld [vmem:[%s18110_s1 + $0x760] ss:$72 sps:$4 sm:$0xff]   ;;  %v12557_v14 = vld [vmem:[%s18110_s1 + $0x884] ss:$72 sps:$4 sm:$0xff]  }
 0x115   : > { %5809 = vmatpush1.bf16.msra.mxu0 %v12495_v13  ;;  %v12555_v13 = vld [vmem:[%s18110_s1 + $0x880] ss:$72 sps:$4 sm:$0xff]  }
 0x117   : > { %5932 = vmatpush1.bf16.msra.mxu1 %v12327_v50 }
 0x118   : > { %5933 = vmatprep.subr.bf16.mxu1 %v12332_v10  ;;  %v12389_v10 = vld [vmem:[%s18110_s1 + $0xc7c] ss:$72 sps:$4 sm:$0xff]  }
 0x11b   : > { %5934 = vmatpush1.bf16.msra.mxu1 %v12330_v16 }
 0x11c   : > { %5935 = vmatprep.subr.bf16.mxu1 %v12335_v49 }
 0x11f   : > { %5936 = vmatpush1.bf16.msra.mxu1 %v12333_v17  ;;  %v12387_v17 = vld [vmem:[%s18110_s1 + $0xc78] ss:$72 sps:$4 sm:$0xff]  }
 0x120   : > { %5937 = vmatprep.subr.bf16.mxu1 %v12338_v18  ;;  %v12503_v18 = vld [vmem:[%s18110_s1 + $0x374] ss:$72 sps:$4 sm:$0xff]  }
 0x121   : > { %v14683_v21 = vpop.f32.mrb[0].mxu1  ;;  %5810 = vmatprep.subr.bf16.mxu0 %v12503_v18  ;;  %v12569_v18 = vld [vmem:[%s18110_s1 + $0x9a4] ss:$72 sps:$4 sm:$0xff]  }
 0x122   : > { %v14685_v22 = vpop.f32.mrb[1].mxu1  ;;  %v5575_v50 = vadd.f32 %v14683_v21, %v1103_v12 }
 0x123   : > { %v14687_v23 = vpop.f32.mrb[2].mxu1  ;;  %5938 = vmatpush1.bf16.msra.mxu1 %v12336_v19  ;;  %v5577_v16 = vadd.f32 %v14685_v22, %v1107_v15 }
 0x124   : > { %v14695_v26 = vpop.f32.mrb[3].mxu1  ;;  %5939 = vmatprep.subr.bf16.mxu1 %v12341_v20  ;;  %v5579_v19 = vadd.f32 %v14687_v23, %v1103_v12  ;;  %v12416_v12 = vld [vmem:[%s18110_s1 + $0x118c] ss:$72 sps:$4 sm:$0xff]  }
 0x125   : > { %v5581_v22 = vadd.f32 %v14695_v26, %v1107_v15  ;;  %v12509_v26 = vld [vmem:[%s18110_s1 + $0x404] ss:$72 sps:$4 sm:$0xff]   ;;  %v12414_v15 = vld [vmem:[%s18110_s1 + $0x1188] ss:$72 sps:$4 sm:$0xff]  }
 0x127   : > { %5940 = vmatpush1.bf16.msra.mxu1 %v12339_v24  ;;  %v12501_v24 = vld [vmem:[%s18110_s1 + $0x370] ss:$72 sps:$4 sm:$0xff]  }
 0x128   : > { %5941 = vmatprep.subr.bf16.mxu1 %v12344_v25  ;;  %5811 = vmatpush1.bf16.msra.mxu0 %v12501_v24  ;;  %v12575_v24 = vld [vmem:[%s18110_s1 + $0xa34] ss:$72 sps:$4 sm:$0xff]  }
 0x129   : > { %5812 = vmatprep.subr.bf16.mxu0 %v12509_v26  ;;  %v12429_v26 = vld [vmem:[%s18110_s1 + $0x1458] ss:$72 sps:$4 sm:$0xff]  }
 0x12b   : > { %5942 = vmatpush1.bf16.msra.mxu1 %v12342_v27 }
 0x12c   : > { %5943 = vmatprep.subr.bf16.mxu1 %v12347_v28 }
 0x12f   : > { %5944 = vmatpush1.bf16.msra.mxu1 %v12345_v29 }
 0x130   : > { %5945 = vmatprep.subr.bf16.mxu1 %v12350_v30  ;;  %v12392_v30 = vld [vmem:[%s18110_s1 + $0xd0c] ss:$72 sps:$4 sm:$0xff]  }
 0x133   : > { %5946 = vmatpush1.bf16.msra.mxu1 %v12348_v31  ;;  %v12390_v31 = vld [vmem:[%s18110_s1 + $0xd08] ss:$72 sps:$4 sm:$0xff]  }
 0x134   : > { %5947 = vmatprep.subr.bf16.mxu1 %v12353_v32 }
 0x137   : > { %5948 = vmatpush1.bf16.msra.mxu1 %v12351_v34 }
 0x138   : > { %5949 = vmatprep.subr.bf16.mxu1 %v12356_v35  ;;  %v12507_v35 = vld [vmem:[%s18110_s1 + $0x400] ss:$72 sps:$4 sm:$0xff]  }
 0x139   : > { %5813 = vmatpush1.bf16.msra.mxu0 %v12507_v35  ;;  %v12593_v35 = vld [vmem:[%s18110_s1 + $0xbe4] ss:$72 sps:$4 sm:$0xff]  }
 0x13b   : > { %5950 = vmatpush1.bf16.msra.mxu1 %v12354_v36 }
 0x13c   : > { %5951 = vmatprep.subr.bf16.mxu1 %v12359_v37 }
 0x13f   : > { %5952 = vmatpush1.bf16.msra.mxu1 %v12357_v38 }
 0x140   : > { %5953 = vmatprep.subr.bf16.mxu1 %v12362_v39  ;;  %v12395_v39 = vld [vmem:[%s18110_s1 + $0xd9c] ss:$72 sps:$4 sm:$0xff]  }
 0x143   : > { %5954 = vmatpush1.bf16.msra.mxu1 %v12360_v40 }
 0x144   : > { %5955 = vmatprep.subr.bf16.mxu1 %v12365_v41  ;;  %v12513_v41 = vld [vmem:[%s18110_s1 + $0x490] ss:$72 sps:$4 sm:$0xff]  }
 0x147   : > { %5956 = vmatpush1.bf16.msra.mxu1 %v12363_v42  ;;  %v12515_v42 = vld [vmem:[%s18110_s1 + $0x494] ss:$72 sps:$4 sm:$0xff]  }
 0x148   : > { %5957 = vmatprep.subr.bf16.mxu1 %v12368_v43  ;;  %v12393_v43 = vld [vmem:[%s18110_s1 + $0xd98] ss:$72 sps:$4 sm:$0xff]   ;;  %5814 = vmatprep.subr.bf16.mxu0 %v12515_v42 }
 0x149   : > { %5815 = vmatpush1.bf16.msra.mxu0 %v12513_v41  ;;  %v12599_v41 = vld [vmem:[%s18110_s1 + $0xc74] ss:$72 sps:$4 sm:$0xff]   ;;  %v12435_v42 = vld [vmem:[%s18110_s1 + $0x1578] ss:$72 sps:$4 sm:$0xff]  }
 0x14a   : > { %5816 = vmatprep.subr.bf16.mxu0 %v12521_v7  ;;  %v12438_v7 = vld [vmem:[%s18110_s1 + $0x1608] ss:$72 sps:$4 sm:$0xff]  }
 0x14b   : > { %5958 = vmatpush1.bf16.msra.mxu1 %v12366_v44  ;;  %v12398_v44 = vld [vmem:[%s18110_s1 + $0xe2c] ss:$72 sps:$4 sm:$0xff]  }
 0x14c   : > { %5970 = vmatprep.subr.bf16.mxu1 %v12371_v45  ;;  %v12519_v45 = vld [vmem:[%s18110_s1 + $0x520] ss:$72 sps:$4 sm:$0xff]  }
 0x14d   : > { %5817 = vmatpush1.bf16.msra.mxu0 %v12519_v45  ;;  %v12605_v45 = vld [vmem:[%s18110_s1 + $0xd04] ss:$72 sps:$4 sm:$0xff]  }
 0x14e   : > { %5960 = vmatmul.mubr.bf16.vlgmr.msra.gmra.mrb[8].mxu1 %v14767_v51  ;;  %5818 = vmatprep.subr.bf16.mxu0 %v12527_v48  ;;  %v12441_v48 = vld [vmem:[%s18110_s1 + $0x1698] ss:$72 sps:$4 sm:$0xff]  }
 0x14f   : > { %5971 = vmatpush1.bf16.msra.mxu1 %v12369_v33  ;;  %6002 = vmatprep.mubr.bf16.mxu1 %v14780_v55  ;;  %v12401_v33 = vld [vmem:[%s18110_s1 + $0xebc] ss:$72 sps:$4 sm:$0xff]  }
 0x150   : > { %5972 = vmatprep.subr.bf16.mxu1 %v12374_v47  ;;  %v12525_v47 = vld [vmem:[%s18110_s1 + $0x5b0] ss:$72 sps:$4 sm:$0xff]  }
 0x151   : > { %5819 = vmatpush1.bf16.msra.mxu0 %v12525_v47  ;;  %v12611_v47 = vld [vmem:[%s18110_s1 + $0xd94] ss:$72 sps:$4 sm:$0xff]  }
 0x152   : > { %5820 = vmatprep.subr.bf16.mxu0 %v12533_v56  ;;  %v12444_v56 = vld [vmem:[%s18110_s1 + $0x1728] ss:$72 sps:$4 sm:$0xff]  }
 0x153   : > { %5973 = vmatpush1.bf16.msra.mxu1 %v12372_v53  ;;  %v12404_v53 = vld [vmem:[%s18110_s1 + $0xf4c] ss:$72 sps:$4 sm:$0xff]  }
 0x154   : > { %5974 = vmatprep.subr.bf16.mxu1 %v12377_v54  ;;  %v12531_v54 = vld [vmem:[%s18110_s1 + $0x640] ss:$72 sps:$4 sm:$0xff]  }
 0x155   : > { %5821 = vmatpush1.bf16.msra.mxu0 %v12531_v54  ;;  %v12617_v54 = vld [vmem:[%s18110_s1 + $0xe24] ss:$72 sps:$4 sm:$0xff]  }
 0x157   : > { %5975 = vmatpush1.bf16.msra.mxu1 %v12375_v59  ;;  %v12537_v59 = vld [vmem:[%s18110_s1 + $0x6d0] ss:$72 sps:$4 sm:$0xff]  }
 0x158   : > { %5976 = vmatprep.subr.bf16.mxu1 %v12380_v60  ;;  %v12539_v60 = vld [vmem:[%s18110_s1 + $0x6d4] ss:$72 sps:$4 sm:$0xff]  }
 0x159   : > { %5822 = vmatprep.subr.bf16.mxu0 %v12539_v60  ;;  %v12447_v60 = vld [vmem:[%s18110_s1 + $0x17b8] ss:$72 sps:$4 sm:$0xff]  }
 0x15a   : > { %5823 = vmatpush1.bf16.msra.mxu0 %v12537_v59  ;;  %v12623_v59 = vld [vmem:[%s18110_s1 + $0xeb4] ss:$72 sps:$4 sm:$0xff]  }
 0x15b   : > { %5977 = vmatpush1.bf16.msra.mxu1 %v12378_v1  ;;  %v12545_v1 = vld [vmem:[%s18110_s1 + $0x764] ss:$72 sps:$4 sm:$0xff]  }
 0x15c   : > { %5978 = vmatprep.subr.bf16.mxu1 %v12383_v2  ;;  %5824 = vmatprep.subr.bf16.mxu0 %v12545_v1  ;;  %v12408_v2 = vld [vmem:[%s18110_s1 + $0x1068] ss:$72 sps:$4 sm:$0xff]  }
 0x15d   : > { %v12450_v1 = vld [vmem:[%s18110_s1 + $0x1848] ss:$72 sps:$4 sm:$0xff]  }
 0x15e   : > { %5825 = vmatpush1.bf16.msra.mxu0 %v12543_v0  ;;  %v12629_v0 = vld [vmem:[%s18110_s1 + $0xf44] ss:$72 sps:$4 sm:$0xff]  }
 0x15f   : > { %5979 = vmatpush1.bf16.msra.mxu1 %v12381_v9  ;;  %v12551_v9 = vld [vmem:[%s18110_s1 + $0x7f4] ss:$72 sps:$4 sm:$0xff]  }
 0x160   : > { %5980 = vmatprep.subr.bf16.mxu1 %v12386_v11  ;;  %5826 = vmatprep.subr.bf16.mxu0 %v12551_v9  ;;  %v12411_v11 = vld [vmem:[%s18110_s1 + $0x10f8] ss:$72 sps:$4 sm:$0xff]  }
 0x161   : > { %v12453_v9 = vld [vmem:[%s18110_s1 + $0x18d8] ss:$72 sps:$4 sm:$0xff]  }
 0x162   : > { %v5660_v49 = vpop.f32.mrb[0].mxu0  ;;  %5827 = vmatpush1.bf16.msra.mxu0 %v12549_v6  ;;  %v12635_v6 = vld [vmem:[%s18110_s1 + $0xfd4] ss:$72 sps:$4 sm:$0xff]  }
 0x163   : > { %v11834_v20 = vadd.f32 %v5660_v49, %v5575_v50  ;;  %v5662_v21 = vpop.f32.mrb[1].mxu0  ;;  %5981 = vmatpush1.bf16.msra.mxu1 %v12384_v4  ;;  %5828 = vmatprep.subr.bf16.mxu0 %v12557_v14  ;;  %v12419_v4 = vld [vmem:[%s18110_s1 + $0x121c] ss:$72 sps:$4 sm:$0xff]   ;;  %v12561_v50 = vld [vmem:[%s18110_s1 + $0x910] ss:$72 sps:$4 sm:$0xff]  }
 0x164   : > { %v11836_v25 = vadd.f32 %v5662_v21, %v5577_v16  ;;  %v5664_v27 = vpop.f32.mrb[2].mxu0  ;;  %5982 = vmatprep.subr.bf16.mxu1 %v12389_v10  ;;  %v12563_v10 = vld [vmem:[%s18110_s1 + $0x914] ss:$72 sps:$4 sm:$0xff]   ;;  %v12417_v16 = vld [vmem:[%s18110_s1 + $0x1218] ss:$72 sps:$4 sm:$0xff]  }
 0x165   : > { %v11838_v28 = vadd.f32 %v5664_v27, %v5579_v19  ;;  %v5666_v29 = vpop.f32.mrb[3].mxu0  ;;  %v6701_v32 = vmul.f32 0.125, %v11834_v20  ;;  %v12422_v49 = vld [vmem:[%s18110_s1 + $0x12ac] ss:$72 sps:$4 sm:$0xff]   ;;  %v14993_v19 = vld [vmem:[%s14169_s25 + $0x8] ss:$24 sps:$4 sm:$0xff]  }
 0x166   : > { %v11840_v23 = vadd.f32 %v5666_v29, %v5581_v22  ;;  %v6702_v36 = vmul.f32 0.125, %v11836_v25  ;;  %5829 = vmatpush1.bf16.msra.mxu0 %v12555_v13  ;;  %v12425_v20 = vld [vmem:[%s18110_s1 + $0x133c] ss:$72 sps:$4 sm:$0xff]   ;;  %v15003_v21 = vld [vmem:[%s14169_s25 + $0x14] ss:$24 sps:$4 sm:$0xff]  }
 0x167   : > { %v6707_v34 = vmul.f32 0.125, %v11838_v28  ;;  %5983 = vmatpush1.bf16.msra.mxu1 %v12387_v17  ;;  %5841 = vmatprep.subr.bf16.mxu0 %v12563_v10  ;;  %v12567_v17 = vld [vmem:[%s18110_s1 + $0x9a0] ss:$72 sps:$4 sm:$0xff]   ;;  %v12428_v25 = vld [vmem:[%s18110_s1 + $0x13cc] ss:$72 sps:$4 sm:$0xff]  }
 0x168   : > { %v6708_v37 = vmul.f32 0.125, %v11840_v23  ;;  %5984 = vmatprep.subr.bf16.mxu1 %v12392_v30  ;;  %v12423_v22 = vld [vmem:[%s18110_s1 + $0x1338] ss:$72 sps:$4 sm:$0xff]   ;;  %v12581_v28 = vld [vmem:[%s18110_s1 + $0xac4] ss:$72 sps:$4 sm:$0xff]  }
 0x169   : > { %v14869_v38 = vpack.c.bf16 %v6707_v34, %v6701_v32  ;;  %5831 = vmatmul.mubr.bf16.vlgmr.msra.gmra.mrb[4].mxu0 %v14767_v51  ;;  %v12420_v51 = vld [vmem:[%s18110_s1 + $0x12a8] ss:$72 sps:$4 sm:$0xff]   ;;  %v12431_v30 = vld [vmem:[%s18110_s1 + $0x145c] ss:$72 sps:$4 sm:$0xff]   ;;  %v12434_v32 = vld [vmem:[%s18110_s1 + $0x14ec] ss:$72 sps:$4 sm:$0xff]  }
 0x16a   : > { %v14874_v40 = vpack.c.bf16 %v6708_v37, %v6702_v36  ;;  %5842 = vmatpush1.bf16.msra.mxu0 %v12561_v50  ;;  %5873 = vmatprep.mubr.bf16.mxu0 %v14780_v55  ;;  %v12573_v55 = vld [vmem:[%s18110_s1 + $0xa30] ss:$72 sps:$4 sm:$0xff]   ;;  %v12579_v27 = vld [vmem:[%s18110_s1 + $0xac0] ss:$72 sps:$4 sm:$0xff]   ;;  %v12437_v37 = vld [vmem:[%s18110_s1 + $0x157c] ss:$72 sps:$4 sm:$0xff]  }
 0x16b   : > { %5985 = vmatpush1.bf16.msra.mxu1 %v12390_v31  ;;  %5843 = vmatprep.subr.bf16.mxu0 %v12569_v18  ;;  %v12426_v29 = vld [vmem:[%s18110_s1 + $0x13c8] ss:$72 sps:$4 sm:$0xff]   ;;  %v12587_v31 = vld [vmem:[%s18110_s1 + $0xb54] ss:$72 sps:$4 sm:$0xff]   ;;  %v12641_v13 = vld [vmem:[%s18110_s1 + $0x1064] ss:$72 sps:$4 sm:$0xff]  }
 0x16c   : > { %5986 = vmatprep.subr.bf16.mxu1 %v12395_v39  ;;  %v12585_v23 = vld [vmem:[%s18110_s1 + $0xb50] ss:$72 sps:$4 sm:$0xff]   ;;  %v12591_v34 = vld [vmem:[%s18110_s1 + $0xbe0] ss:$72 sps:$4 sm:$0xff]   ;;  %v12647_v50 = vld [vmem:[%s18110_s1 + $0x10f4] ss:$72 sps:$4 sm:$0xff]  }
 0x16d   : > { %v12432_v36 = vld [vmem:[%s18110_s1 + $0x14e8] ss:$72 sps:$4 sm:$0xff]   ;;  %v12459_v10 = vld [vmem:[%s18110_s1 + $0x19f8] ss:$72 sps:$4 sm:$0xff]  }
 0x16e   : > { %5844 = vmatpush1.bf16.msra.mxu0 %v12567_v17  ;;  %v12597_v39 = vld [vmem:[%s18110_s1 + $0xc70] ss:$72 sps:$4 sm:$0xff]   ;;  %v12653_v17 = vld [vmem:[%s18110_s1 + $0x1184] ss:$72 sps:$4 sm:$0xff]  }
 0x16f   : > { %5987 = vmatpush1.bf16.msra.mxu1 %v12393_v43  ;;  %5845 = vmatprep.subr.bf16.mxu0 %v12575_v24  ;;  %v12440_v43 = vld [vmem:[%s18110_s1 + $0x160c] ss:$72 sps:$4 sm:$0xff]   ;;  %v12456_v14 = vld [vmem:[%s18110_s1 + $0x1968] ss:$72 sps:$4 sm:$0xff]  }
 0x170   : > { %5988 = vmatprep.subr.bf16.mxu1 %v12398_v44  ;;  %v12603_v44 = vld [vmem:[%s18110_s1 + $0xd00] ss:$72 sps:$4 sm:$0xff]  }
 0x171   : > { %v12462_v18 = vld [vmem:[%s18110_s1 + $0x1a88] ss:$72 sps:$4 sm:$0xff]  }
 0x172   : > { %5846 = vmatpush1.bf16.msra.mxu0 %v12573_v55  ;;  %v12659_v55 = vld [vmem:[%s18110_s1 + $0x1214] ss:$72 sps:$4 sm:$0xff]   ;;  %v12468_v24 = vld [vmem:[%s18110_s1 + $0x28] ss:$72 sps:$4 sm:$0xff]  }
 0x173   : > { %5989 = vmatpush1.bf16.msra.mxu1 %v12396_v46  ;;  %5847 = vmatprep.subr.bf16.mxu0 %v12581_v28  ;;  %v12443_v46 = vld [vmem:[%s18110_s1 + $0x169c] ss:$72 sps:$4 sm:$0xff]   ;;  %v15195_v28 = vld [vmem:[%s14169_s25 + $0x10] ss:$24 sps:$4 sm:$0xff]  }
 0x174   : > { %5990 = vmatprep.subr.bf16.mxu1 %v12401_v33  ;;  %v12609_v33 = vld [vmem:[%s18110_s1 + $0xd90] ss:$72 sps:$4 sm:$0xff]  }
 0x176   : > { %5848 = vmatpush1.bf16.msra.mxu0 %v12579_v27  ;;  %v12665_v27 = vld [vmem:[%s18110_s1 + $0x12a4] ss:$72 sps:$4 sm:$0xff]  }
 0x177   : > { %5991 = vmatpush1.bf16.msra.mxu1 %v12399_v52  ;;  %5849 = vmatprep.subr.bf16.mxu0 %v12587_v31  ;;  %v12446_v52 = vld [vmem:[%s18110_s1 + $0x172c] ss:$72 sps:$4 sm:$0xff]   ;;  %v12480_v31 = vld [vmem:[%s18110_s1 + $0x148] ss:$72 sps:$4 sm:$0xff]  }
 0x178   : > { %5992 = vmatprep.subr.bf16.mxu1 %v12404_v53  ;;  %v12615_v53 = vld [vmem:[%s18110_s1 + $0xe20] ss:$72 sps:$4 sm:$0xff]  }
 0x17a   : > { %5850 = vmatpush1.bf16.msra.mxu0 %v12585_v23  ;;  %v12671_v23 = vld [vmem:[%s18110_s1 + $0x1334] ss:$72 sps:$4 sm:$0xff]  }
 0x17b   : > { %5993 = vmatpush1.bf16.msra.mxu1 %v12402_v57  ;;  %5851 = vmatprep.subr.bf16.mxu0 %v12593_v35  ;;  %v12449_v57 = vld [vmem:[%s18110_s1 + $0x17bc] ss:$72 sps:$4 sm:$0xff]   ;;  %v12486_v35 = vld [vmem:[%s18110_s1 + $0x1d8] ss:$72 sps:$4 sm:$0xff]  }
 0x17c   : > { %5994 = vmatprep.subr.bf16.mxu1 %v12407_v58  ;;  %v12621_v58 = vld [vmem:[%s18110_s1 + $0xeb0] ss:$72 sps:$4 sm:$0xff]  }
 0x17e   : > { %5852 = vmatpush1.bf16.msra.mxu0 %v12591_v34  ;;  %v12677_v34 = vld [vmem:[%s18110_s1 + $0x13c4] ss:$72 sps:$4 sm:$0xff]  }
 0x17f   : > { %5995 = vmatpush1.bf16.msra.mxu1 %v12405_v62  ;;  %5853 = vmatprep.subr.bf16.mxu0 %v12599_v41  ;;  %v12452_v62 = vld [vmem:[%s18110_s1 + $0x184c] ss:$72 sps:$4 sm:$0xff]   ;;  %v15239_v41 = vsub.s32 2, %v14795_v61 }
 0x180   : > { %5996 = vmatprep.subr.bf16.mxu1 %v12410_v63  ;;  %v12627_v63 = vld [vmem:[%s18110_s1 + $0xf40] ss:$72 sps:$4 sm:$0xff]  }
 0x182   : > { %5854 = vmatpush1.bf16.msra.mxu0 %v12597_v39  ;;  %v12683_v39 = vld [vmem:[%s18110_s1 + $0x1454] ss:$72 sps:$4 sm:$0xff]  }
 0x183   : > { %5997 = vmatpush1.bf16.msra.mxu1 %v12408_v2  ;;  %5855 = vmatprep.subr.bf16.mxu0 %v12605_v45  ;;  %v12455_v2 = vld [vmem:[%s18110_s1 + $0x18dc] ss:$72 sps:$4 sm:$0xff]   ;;  %v12687_v45 = vld [vmem:[%s18110_s1 + $0x14e0] ss:$72 sps:$4 sm:$0xff]  }
 0x184   : > { %5998 = vmatprep.subr.bf16.mxu1 %v12413_v5  ;;  %v12633_v5 = vld [vmem:[%s18110_s1 + $0xfd0] ss:$72 sps:$4 sm:$0xff]  }
 0x186   : > { %5856 = vmatpush1.bf16.msra.mxu0 %v12603_v44  ;;  %v12500_v44 = vld [vmem:[%s18110_s1 + $0x2fc] ss:$72 sps:$4 sm:$0xff]  }
 0x187   : > { %5999 = vmatpush1.bf16.msra.mxu1 %v12411_v11  ;;  %5857 = vmatprep.subr.bf16.mxu0 %v12611_v47  ;;  %v12458_v11 = vld [vmem:[%s18110_s1 + $0x196c] ss:$72 sps:$4 sm:$0xff]  }
 0x188   : > { %6000 = vmatprep.subr.bf16.mxu1 %v12416_v12  ;;  %v12639_v12 = vld [vmem:[%s18110_s1 + $0x1060] ss:$72 sps:$4 sm:$0xff]  }
 0x18a   : > { %5858 = vmatpush1.bf16.msra.mxu0 %v12609_v33 }
 0x18b   : > { %6001 = vmatpush1.bf16.msra.mxu1 %v12414_v15  ;;  %5859 = vmatprep.subr.bf16.mxu0 %v12617_v54  ;;  %v12461_v15 = vld [vmem:[%s18110_s1 + $0x19fc] ss:$72 sps:$4 sm:$0xff]  }
 0x18c   : > { %6013 = vmatprep.subr.bf16.mxu1 %v12419_v4  ;;  %v12645_v4 = vld [vmem:[%s18110_s1 + $0x10f0] ss:$72 sps:$4 sm:$0xff]   ;;  %v12695_v54 = vld [vmem:[%s18110_s1 + $0x1574] ss:$72 sps:$4 sm:$0xff]  }
 0x18e   : > { %6003 = vmatmul.mubr.bf16.vlgmr.msra.gmra.mrb[8].mxu1 %v14993_v19  ;;  %5860 = vmatpush1.bf16.msra.mxu0 %v12615_v53  ;;  %v12693_v53 = vld [vmem:[%s18110_s1 + $0x1570] ss:$72 sps:$4 sm:$0xff]  }
 0x18f   : > { %6014 = vmatpush1.bf16.msra.mxu1 %v12417_v16  ;;  %6045 = vmatprep.mubr.bf16.mxu1 %v15003_v21  ;;  %v12464_v16 = vld [vmem:[%s18110_s1 + $0x1a8c] ss:$72 sps:$4 sm:$0xff]  }
 0x190   : > { %6015 = vmatprep.subr.bf16.mxu1 %v12422_v49  ;;  %5861 = vmatprep.subr.bf16.mxu0 %v12623_v59  ;;  %v12651_v49 = vld [vmem:[%s18110_s1 + $0x1180] ss:$72 sps:$4 sm:$0xff]  }
 0x192   : > { %5862 = vmatpush1.bf16.msra.mxu0 %v12621_v58 }
 0x193   : > { %6016 = vmatpush1.bf16.msra.mxu1 %v12420_v51  ;;  %5863 = vmatprep.subr.bf16.mxu0 %v12629_v0  ;;  %v12470_v51 = vld [vmem:[%s18110_s1 + $0x2c] ss:$72 sps:$4 sm:$0xff]  }
 0x194   : > { %6017 = vmatprep.subr.bf16.mxu1 %v12425_v20  ;;  %v12657_v20 = vld [vmem:[%s18110_s1 + $0x1210] ss:$72 sps:$4 sm:$0xff]  }
 0x196   : > { %5864 = vmatpush1.bf16.msra.mxu0 %v12627_v63  ;;  %v12512_v63 = vld [vmem:[%s18110_s1 + $0x41c] ss:$72 sps:$4 sm:$0xff]  }
 0x197   : > { %6018 = vmatpush1.bf16.msra.mxu1 %v12423_v22  ;;  %5865 = vmatprep.subr.bf16.mxu0 %v12635_v6  ;;  %v12476_v22 = vld [vmem:[%s18110_s1 + $0xbc] ss:$72 sps:$4 sm:$0xff]  }
 0x198   : > { %6019 = vmatprep.subr.bf16.mxu1 %v12428_v25  ;;  %v12663_v25 = vld [vmem:[%s18110_s1 + $0x12a0] ss:$72 sps:$4 sm:$0xff]  }
 0x19a   : > { %5866 = vmatpush1.bf16.msra.mxu0 %v12633_v5  ;;  %v12701_v5 = vld [vmem:[%s18110_s1 + $0x1604] ss:$72 sps:$4 sm:$0xff]  }
 0x19b   : > { %6020 = vmatpush1.bf16.msra.mxu1 %v12426_v29  ;;  %5867 = vmatprep.subr.bf16.mxu0 %v12641_v13  ;;  %v12482_v29 = vld [vmem:[%s18110_s1 + $0x14c] ss:$72 sps:$4 sm:$0xff]  }
 0x19c   : > { %6021 = vmatprep.subr.bf16.mxu1 %v12431_v30  ;;  %v15205_v30 = vld [vmem:[%s14169_s25 + $0x4] ss:$24 sps:$4 sm:$0xff]  }
 0x19e   : > { %5868 = vmatpush1.bf16.msra.mxu0 %v12639_v12 }
 0x19f   : > { %6022 = vmatpush1.bf16.msra.mxu1 %v12429_v26  ;;  %5869 = vmatprep.subr.bf16.mxu0 %v12647_v50  ;;  %v12488_v26 = vld [vmem:[%s18110_s1 + $0x1dc] ss:$72 sps:$4 sm:$0xff]   ;;  %v12705_v50 = vld [vmem:[%s18110_s1 + $0x1690] ss:$72 sps:$4 sm:$0xff]  }
 0x1a0   : > { %6023 = vmatprep.subr.bf16.mxu1 %v12434_v32  ;;  %v12675_v32 = vld [vmem:[%s18110_s1 + $0x13c0] ss:$72 sps:$4 sm:$0xff]  }
 0x1a2   : > { %5870 = vmatpush1.bf16.msra.mxu0 %v12645_v4 }
 0x1a3   : > { %6024 = vmatpush1.bf16.msra.mxu1 %v12432_v36  ;;  %5871 = vmatprep.subr.bf16.mxu0 %v12653_v17  ;;  %v12494_v36 = vld [vmem:[%s18110_s1 + $0x26c] ss:$72 sps:$4 sm:$0xff]   ;;  %v12524_v17 = vld [vmem:[%s18110_s1 + $0x53c] ss:$72 sps:$4 sm:$0xff]  }
 0x1a4   : > { %6025 = vmatprep.subr.bf16.mxu1 %v12437_v37  ;;  %v12681_v37 = vld [vmem:[%s18110_s1 + $0x1450] ss:$72 sps:$4 sm:$0xff]  }
 0x1a6   : > { %5872 = vmatpush1.bf16.msra.mxu0 %v12651_v49  ;;  %v12516_v49 = vld [vmem:[%s18110_s1 + $0x4a8] ss:$72 sps:$4 sm:$0xff]  }
 0x1a7   : > { %6026 = vmatpush1.bf16.msra.mxu1 %v12435_v42  ;;  %5884 = vmatprep.subr.bf16.mxu0 %v12659_v55  ;;  %v12492_v42 = vld [vmem:[%s18110_s1 + $0x268] ss:$72 sps:$4 sm:$0xff]   ;;  %v12530_v55 = vld [vmem:[%s18110_s1 + $0x5cc] ss:$72 sps:$4 sm:$0xff]  }
 0x1a8   : > { %6027 = vmatprep.subr.bf16.mxu1 %v12440_v43  ;;  %v15245_v43 = vsub.s32 3, %v14795_v61 }
 0x1a9   : > { %5874 = vmatmul.mubr.bf16.vlgmr.msra.gmra.mrb[4].mxu0 %v14993_v19  ;;  %v12474_v19 = vld [vmem:[%s18110_s1 + $0xb8] ss:$72 sps:$4 sm:$0xff]  }
 0x1aa   : > { %5885 = vmatpush1.bf16.msra.mxu0 %v12657_v20  ;;  %5916 = vmatprep.mubr.bf16.mxu0 %v15003_v21  ;;  %v12669_v21 = vld [vmem:[%s18110_s1 + $0x1330] ss:$72 sps:$4 sm:$0xff]  }
 0x1ab   : > { %6028 = vmatpush1.bf16.msra.mxu1 %v12438_v7  ;;  %5886 = vmatprep.subr.bf16.mxu0 %v12665_v27  ;;  %v12689_v7 = vld [vmem:[%s18110_s1 + $0x14e4] ss:$72 sps:$4 sm:$0xff]   ;;  %v12522_v20 = vld [vmem:[%s18110_s1 + $0x538] ss:$72 sps:$4 sm:$0xff]  }
 0x1ac   : > { %6029 = vmatprep.subr.bf16.mxu1 %v12443_v46  ;;  %v13864_v46 = vld [vmem:[%s18111_s2] sm:$0xff] }
 0x1ad   : > { %v1111_v33 = vrot.slane %v13864_v46, %v15239_v41  ;;  %v1115_v47 = vrot.slane %v13864_v46, %v15245_v43  ;;  %v12536_v27 = vld [vmem:[%s18110_s1 + $0x65c] ss:$72 sps:$4 sm:$0xff]   ;;  %v12747_v46 = vld [vmem:[%s18110_s1 + $0x1a80] ss:$72 sps:$4 sm:$0xff]  }
 0x1ae   : > { %5887 = vmatpush1.bf16.msra.mxu0 %v12663_v25  ;;  %v12528_v25 = vld [vmem:[%s18110_s1 + $0x5c8] ss:$72 sps:$4 sm:$0xff]  }
 0x1af   : > { %6030 = vmatpush1.bf16.msra.mxu1 %v12441_v48  ;;  %5888 = vmatprep.subr.bf16.mxu0 %v12671_v23  ;;  %v12498_v48 = vld [vmem:[%s18110_s1 + $0x2f8] ss:$72 sps:$4 sm:$0xff]   ;;  %v12542_v23 = vld [vmem:[%s18110_s1 + $0x6ec] ss:$72 sps:$4 sm:$0xff]  }
 0x1b0   : > { %6031 = vmatprep.subr.bf16.mxu1 %v12446_v52  ;;  %v12506_v52 = vld [vmem:[%s18110_s1 + $0x38c] ss:$72 sps:$4 sm:$0xff]  }
 0x1b2   : > { %5889 = vmatpush1.bf16.msra.mxu0 %v12669_v21  ;;  %v12534_v21 = vld [vmem:[%s18110_s1 + $0x658] ss:$72 sps:$4 sm:$0xff]  }
 0x1b3   : > { %6032 = vmatpush1.bf16.msra.mxu1 %v12444_v56  ;;  %5890 = vmatprep.subr.bf16.mxu0 %v12677_v34  ;;  %v12548_v34 = vld [vmem:[%s18110_s1 + $0x77c] ss:$72 sps:$4 sm:$0xff]  }
 0x1b4   : > { %6033 = vmatprep.subr.bf16.mxu1 %v12449_v57 }
 0x1b6   : > { %5891 = vmatpush1.bf16.msra.mxu0 %v12675_v32  ;;  %v12540_v32 = vld [vmem:[%s18110_s1 + $0x6e8] ss:$72 sps:$4 sm:$0xff]  }
 0x1b7   : > { %6034 = vmatpush1.bf16.msra.mxu1 %v12447_v60  ;;  %5892 = vmatprep.subr.bf16.mxu0 %v12683_v39  ;;  %v12554_v39 = vld [vmem:[%s18110_s1 + $0x80c] ss:$72 sps:$4 sm:$0xff]  }
 0x1b8   : > { %6035 = vmatprep.subr.bf16.mxu1 %v12452_v62  ;;  %v12504_v62 = vld [vmem:[%s18110_s1 + $0x388] ss:$72 sps:$4 sm:$0xff]  }
 0x1ba   : > { %5893 = vmatpush1.bf16.msra.mxu0 %v12681_v37  ;;  %v12546_v37 = vld [vmem:[%s18110_s1 + $0x778] ss:$72 sps:$4 sm:$0xff]  }
 0x1bb   : > { %6036 = vmatpush1.bf16.msra.mxu1 %v12450_v1  ;;  %5894 = vmatprep.subr.bf16.mxu0 %v12689_v7  ;;  %v12560_v7 = vld [vmem:[%s18110_s1 + $0x89c] ss:$72 sps:$4 sm:$0xff]  }
 0x1bc   : > { %6037 = vmatprep.subr.bf16.mxu1 %v12455_v2  ;;  %v12699_v2 = vld [vmem:[%s18110_s1 + $0x1600] ss:$72 sps:$4 sm:$0xff]  }
 0x1be   : > { %5895 = vmatpush1.bf16.msra.mxu0 %v12687_v45  ;;  %v12552_v45 = vld [vmem:[%s18110_s1 + $0x808] ss:$72 sps:$4 sm:$0xff]  }
 0x1bf   : > { %6038 = vmatpush1.bf16.msra.mxu1 %v12453_v9  ;;  %5896 = vmatprep.subr.bf16.mxu0 %v12695_v54  ;;  %v12510_v9 = vld [vmem:[%s18110_s1 + $0x418] ss:$72 sps:$4 sm:$0xff]   ;;  %v12564_v54 = vld [vmem:[%s18110_s1 + $0x928] ss:$72 sps:$4 sm:$0xff]  }
 0x1c0   : > { %6039 = vmatprep.subr.bf16.mxu1 %v12458_v11 }
 0x1c2   : > { %5897 = vmatpush1.bf16.msra.mxu0 %v12693_v53  ;;  %v12755_v53 = vld [vmem:[%s18110_s1 + $0x24] ss:$72 sps:$4 sm:$0xff]  }
 0x1c3   : > { %6040 = vmatpush1.bf16.msra.mxu1 %v12456_v14  ;;  %5898 = vmatprep.subr.bf16.mxu0 %v12701_v5  ;;  %v12773_v5 = vld [vmem:[%s18110_s1 + $0x1d4] ss:$72 sps:$4 sm:$0xff]  }
 0x1c4   : > { %6041 = vmatprep.subr.bf16.mxu1 %v12461_v15  ;;  %v12518_v15 = vld [vmem:[%s18110_s1 + $0x4ac] ss:$72 sps:$4 sm:$0xff]  }
 0x1c6   : > { %5899 = vmatpush1.bf16.msra.mxu0 %v12699_v2  ;;  %v12771_v2 = vld [vmem:[%s18110_s1 + $0x1d0] ss:$72 sps:$4 sm:$0xff]  }
 0x1c7   : > { %6042 = vmatpush1.bf16.msra.mxu1 %v12459_v10  ;;  %v12707_v10 = vld [vmem:[%s18110_s1 + $0x1694] ss:$72 sps:$4 sm:$0xff]  }
 0x1c8   : > { %6043 = vmatprep.subr.bf16.mxu1 %v12464_v16  ;;  %5900 = vmatprep.subr.bf16.mxu0 %v12707_v10  ;;  %v12594_v10 = vld [vmem:[%s18110_s1 + $0xbf8] ss:$72 sps:$4 sm:$0xff]  }
 0x1ca   : > { %5901 = vmatpush1.bf16.msra.mxu0 %v12705_v50  ;;  %v12785_v50 = vld [vmem:[%s18110_s1 + $0x2f4] ss:$72 sps:$4 sm:$0xff]  }
 0x1cb   : > { %6044 = vmatpush1.bf16.msra.mxu1 %v12462_v18  ;;  %v12711_v18 = vld [vmem:[%s18110_s1 + $0x1720] ss:$72 sps:$4 sm:$0xff]  }
 0x1cc   : > { %6185 = vmatprep.subr.bf16.mxu1 %v12470_v51  ;;  %v12713_v51 = vld [vmem:[%s18110_s1 + $0x1724] ss:$72 sps:$4 sm:$0xff]  }
 0x1cd   : > { %5902 = vmatprep.subr.bf16.mxu0 %v12713_v51  ;;  %v12789_v51 = vld [vmem:[%s18110_s1 + $0x380] ss:$72 sps:$4 sm:$0xff]  }
 0x1ce   : > { %6046 = vmatmul.mubr.bf16.vlgmr.msra.gmra.mrb[8].mxu1 %v15195_v28  ;;  %5903 = vmatpush1.bf16.msra.mxu0 %v12711_v18  ;;  %v12791_v18 = vld [vmem:[%s18110_s1 + $0x384] ss:$72 sps:$4 sm:$0xff]  }
 0x1cf   : > { %6186 = vmatpush1.bf16.msra.mxu1 %v12468_v24  ;;  %6217 = vmatprep.mubr.bf16.mxu1 %v15205_v30  ;;  %v12717_v24 = vld [vmem:[%s18110_s1 + $0x17b0] ss:$72 sps:$4 sm:$0xff]  }
 0x1d0   : > { %6187 = vmatprep.subr.bf16.mxu1 %v12476_v22  ;;  %v12719_v22 = vld [vmem:[%s18110_s1 + $0x17b4] ss:$72 sps:$4 sm:$0xff]  }
 0x1d1   : > { %5904 = vmatprep.subr.bf16.mxu0 %v12719_v22  ;;  %v12606_v22 = vld [vmem:[%s18110_s1 + $0xd18] ss:$72 sps:$4 sm:$0xff]  }
 0x1d2   : > { %5905 = vmatpush1.bf16.msra.mxu0 %v12717_v24  ;;  %v12795_v24 = vld [vmem:[%s18110_s1 + $0x410] ss:$72 sps:$4 sm:$0xff]  }
 0x1d3   : > { %6188 = vmatpush1.bf16.msra.mxu1 %v12474_v19  ;;  %v12723_v19 = vld [vmem:[%s18110_s1 + $0x1840] ss:$72 sps:$4 sm:$0xff]  }
 0x1d4   : > { %6189 = vmatprep.subr.bf16.mxu1 %v12482_v29  ;;  %v12725_v29 = vld [vmem:[%s18110_s1 + $0x1844] ss:$72 sps:$4 sm:$0xff]  }
 0x1d5   : > { %5906 = vmatprep.subr.bf16.mxu0 %v12725_v29  ;;  %v12612_v29 = vld [vmem:[%s18110_s1 + $0xda8] ss:$72 sps:$4 sm:$0xff]  }
 0x1d6   : > { %5907 = vmatpush1.bf16.msra.mxu0 %v12723_v19  ;;  %v12803_v19 = vld [vmem:[%s18110_s1 + $0x4a4] ss:$72 sps:$4 sm:$0xff]  }
 0x1d7   : > { %6190 = vmatpush1.bf16.msra.mxu1 %v12480_v31  ;;  %v12729_v31 = vld [vmem:[%s18110_s1 + $0x18d0] ss:$72 sps:$4 sm:$0xff]  }
 0x1d8   : > { %6191 = vmatprep.subr.bf16.mxu1 %v12488_v26  ;;  %v12731_v26 = vld [vmem:[%s18110_s1 + $0x18d4] ss:$72 sps:$4 sm:$0xff]  }
 0x1d9   : > { %5908 = vmatprep.subr.bf16.mxu0 %v12731_v26  ;;  %v12618_v26 = vld [vmem:[%s18110_s1 + $0xe38] ss:$72 sps:$4 sm:$0xff]  }
 0x1da   : > { %5909 = vmatpush1.bf16.msra.mxu0 %v12729_v31  ;;  %v12809_v31 = vld [vmem:[%s18110_s1 + $0x534] ss:$72 sps:$4 sm:$0xff]  }
 0x1db   : > { %6192 = vmatpush1.bf16.msra.mxu1 %v12486_v35  ;;  %v12735_v35 = vld [vmem:[%s18110_s1 + $0x1960] ss:$72 sps:$4 sm:$0xff]  }
 0x1dc   : > { %6193 = vmatprep.subr.bf16.mxu1 %v12494_v36  ;;  %v12737_v36 = vld [vmem:[%s18110_s1 + $0x1964] ss:$72 sps:$4 sm:$0xff]  }
 0x1dd   : > { %5910 = vmatprep.subr.bf16.mxu0 %v12737_v36  ;;  %v12624_v36 = vld [vmem:[%s18110_s1 + $0xec8] ss:$72 sps:$4 sm:$0xff]  }
 0x1de   : > { %5911 = vmatpush1.bf16.msra.mxu0 %v12735_v35  ;;  %v12815_v35 = vld [vmem:[%s18110_s1 + $0x5c4] ss:$72 sps:$4 sm:$0xff]  }
 0x1df   : > { %6194 = vmatpush1.bf16.msra.mxu1 %v12492_v42  ;;  %v12741_v42 = vld [vmem:[%s18110_s1 + $0x19f0] ss:$72 sps:$4 sm:$0xff]  }
 0x1e0   : > { %6195 = vmatprep.subr.bf16.mxu1 %v12500_v44  ;;  %v12743_v44 = vld [vmem:[%s18110_s1 + $0x19f4] ss:$72 sps:$4 sm:$0xff]  }
 0x1e1   : > { %v5789_v56 = vpop.f32.mrb[4].mxu1  ;;  %5912 = vmatprep.subr.bf16.mxu0 %v12743_v44  ;;  %v12630_v44 = vld [vmem:[%s18110_s1 + $0xf58] ss:$72 sps:$4 sm:$0xff]  }
 0x1e2   : > { %v11841_v57 = vadd.f32 %v5789_v56, %v1111_v33  ;;  %v5791_v58 = vpop.f32.mrb[5].mxu1  ;;  %5913 = vmatpush1.bf16.msra.mxu0 %v12741_v42  ;;  %v12572_v56 = vld [vmem:[%s18110_s1 + $0x9bc] ss:$72 sps:$4 sm:$0xff]  }
 0x1e3   : > { %v11842_v59 = vadd.f32 %v5791_v58, %v1115_v47  ;;  %v5793_v60 = vpop.f32.mrb[6].mxu1  ;;  %6196 = vmatpush1.bf16.msra.mxu1 %v12498_v48  ;;  %v12566_v48 = vld [vmem:[%s18110_s1 + $0x92c] ss:$72 sps:$4 sm:$0xff]   ;;  %v15409_v58 = vld [vmem:[%s14169_s25] ss:$24 sps:$4 sm:$0xff]  }
 0x1e4   : > { %v11843_v0 = vadd.f32 %v5793_v60, %v1111_v33  ;;  %v5795_v1 = vpop.f32.mrb[7].mxu1  ;;  %6197 = vmatprep.subr.bf16.mxu1 %v12506_v52  ;;  %v6703_v11 = vmul.f32 0.125, %v11841_v57  ;;  %v12749_v33 = vld [vmem:[%s18110_s1 + $0x1a84] ss:$72 sps:$4 sm:$0xff]   ;;  %v12753_v52 = vld [vmem:[%s18110_s1 + $0x20] ss:$72 sps:$4 sm:$0xff]  }
 0x1e5   : > { %v11844_v6 = vadd.f32 %v5795_v1, %v1115_v47  ;;  %v6704_v13 = vmul.f32 0.125, %v11842_v59  ;;  %5914 = vmatprep.subr.bf16.mxu0 %v12749_v33  ;;  %v12558_v47 = vld [vmem:[%s18110_s1 + $0x898] ss:$72 sps:$4 sm:$0xff]   ;;  %v12761_v57 = vld [vmem:[%s18110_s1 + $0xb4] ss:$72 sps:$4 sm:$0xff]  }
 0x1e6   : > { %v6709_v12 = vmul.f32 0.125, %v11843_v0  ;;  %5915 = vmatpush1.bf16.msra.mxu0 %v12747_v46  ;;  %v12759_v59 = vld [vmem:[%s18110_s1 + $0xb0] ss:$72 sps:$4 sm:$0xff]   ;;  %v12578_v60 = vld [vmem:[%s18110_s1 + $0xa4c] ss:$72 sps:$4 sm:$0xff]  }
 0x1e7   : > { %v6710_v14 = vmul.f32 0.125, %v11844_v6  ;;  %6198 = vmatpush1.bf16.msra.mxu1 %v12504_v62  ;;  %6056 = vmatprep.subr.bf16.mxu0 %v12755_v53  ;;  %v15422_v62 = vld [vmem:[%s14169_s25 + $0xc] ss:$24 sps:$4 sm:$0xff]   ;;  %v12576_v0 = vld [vmem:[%s18110_s1 + $0xa48] ss:$72 sps:$4 sm:$0xff]  }
 0x1e8   : > { %v15291_v4 = vpack.c.bf16 %v6709_v12, %v6703_v11  ;;  %6199 = vmatprep.subr.bf16.mxu1 %v12512_v63  ;;  %v12767_v63 = vld [vmem:[%s18110_s1 + $0x144] ss:$72 sps:$4 sm:$0xff]   ;;  %v12582_v6 = vld [vmem:[%s18110_s1 + $0xad8] ss:$72 sps:$4 sm:$0xff]   ;;  %v12821_v42 = vld [vmem:[%s18110_s1 + $0x654] ss:$72 sps:$4 sm:$0xff]  }
 0x1e9   : > { %v15299_v16 = vpack.c.bf16 %v6710_v14, %v6704_v13  ;;  %5917 = vmatmul.mubr.bf16.vlgmr.msra.gmra.mrb[4].mxu0 %v15195_v28  ;;  %v12570_v28 = vld [vmem:[%s18110_s1 + $0x9b8] ss:$72 sps:$4 sm:$0xff]   ;;  %v12584_v1 = vld [vmem:[%s18110_s1 + $0xadc] ss:$72 sps:$4 sm:$0xff]   ;;  %v12588_v13 = vld [vmem:[%s18110_s1 + $0xb68] ss:$72 sps:$4 sm:$0xff]  }
 0x1ea   : > { %6057 = vmatpush1.bf16.msra.mxu0 %v12753_v52  ;;  %6088 = vmatprep.mubr.bf16.mxu0 %v15205_v30  ;;  %v12765_v30 = vld [vmem:[%s18110_s1 + $0x140] ss:$72 sps:$4 sm:$0xff]   ;;  %v12779_v12 = vld [vmem:[%s18110_s1 + $0x264] ss:$72 sps:$4 sm:$0xff]   ;;  %v12833_v52 = vld [vmem:[%s18110_s1 + $0x774] ss:$72 sps:$4 sm:$0xff]  }
 0x1eb   : > { %6200 = vmatpush1.bf16.msra.mxu1 %v12510_v9  ;;  %6058 = vmatprep.subr.bf16.mxu0 %v12761_v57  ;;  %v12590_v9 = vld [vmem:[%s18110_s1 + $0xb6c] ss:$72 sps:$4 sm:$0xff]   ;;  %v12777_v11 = vld [vmem:[%s18110_s1 + $0x260] ss:$72 sps:$4 sm:$0xff]   ;;  %v12596_v14 = vld [vmem:[%s18110_s1 + $0xbfc] ss:$72 sps:$4 sm:$0xff]  }
 0x1ec   : > { %6201 = vmatprep.subr.bf16.mxu1 %v12518_v15  ;;  %v12783_v15 = vld [vmem:[%s18110_s1 + $0x2f0] ss:$72 sps:$4 sm:$0xff]   ;;  %v12827_v46 = vld [vmem:[%s18110_s1 + $0x6e4] ss:$72 sps:$4 sm:$0xff]  }
 0x1ed   : > { %v12636_v33 = vld [vmem:[%s18110_s1 + $0xfe8] ss:$72 sps:$4 sm:$0xff]   ;;  %v12642_v53 = vld [vmem:[%s18110_s1 + $0x1078] ss:$72 sps:$4 sm:$0xff]   ;;  %v12839_v57 = vld [vmem:[%s18110_s1 + $0x804] ss:$72 sps:$4 sm:$0xff]  }
 0x1ee   : > { %6059 = vmatpush1.bf16.msra.mxu0 %v12759_v59  ;;  %v12648_v59 = vld [vmem:[%s18110_s1 + $0x1108] ss:$72 sps:$4 sm:$0xff]  }
 0x1ef   : > { %6202 = vmatpush1.bf16.msra.mxu1 %v12516_v49  ;;  %6060 = vmatprep.subr.bf16.mxu0 %v12767_v63  ;;  %v12602_v49 = vld [vmem:[%s18110_s1 + $0xc8c] ss:$72 sps:$4 sm:$0xff]   ;;  %v12654_v63 = vld [vmem:[%s18110_s1 + $0x1198] ss:$72 sps:$4 sm:$0xff]  }
 0x1f0   : > { %6203 = vmatprep.subr.bf16.mxu1 %v12524_v17  ;;  %v12600_v17 = vld [vmem:[%s18110_s1 + $0xc88] ss:$72 sps:$4 sm:$0xff]  }
 0x1f2   : > { %6061 = vmatpush1.bf16.msra.mxu0 %v12765_v30  ;;  %v12843_v30 = vld [vmem:[%s18110_s1 + $0x890] ss:$72 sps:$4 sm:$0xff]  }
 0x1f3   : > { %6204 = vmatpush1.bf16.msra.mxu1 %v12522_v20  ;;  %6062 = vmatprep.subr.bf16.mxu0 %v12773_v5  ;;  %v12608_v20 = vld [vmem:[%s18110_s1 + $0xd1c] ss:$72 sps:$4 sm:$0xff]   ;;  %v12660_v5 = vld [vmem:[%s18110_s1 + $0x1228] ss:$72 sps:$4 sm:$0xff]  }
 0x1f4   : > { %6205 = vmatprep.subr.bf16.mxu1 %v12530_v55  ;;  %v12797_v55 = vld [vmem:[%s18110_s1 + $0x414] ss:$72 sps:$4 sm:$0xff]  }
 0x1f6   : > { %6063 = vmatpush1.bf16.msra.mxu0 %v12771_v2  ;;  %v12849_v2 = vld [vmem:[%s18110_s1 + $0x920] ss:$72 sps:$4 sm:$0xff]  }
 0x1f7   : > { %6206 = vmatpush1.bf16.msra.mxu1 %v12528_v25  ;;  %6064 = vmatprep.subr.bf16.mxu0 %v12779_v12  ;;  %v12614_v25 = vld [vmem:[%s18110_s1 + $0xdac] ss:$72 sps:$4 sm:$0xff]   ;;  %v15614_v12 = vld [vmem:[%s14169_s25 + $0x8] ss:$24 sps:$4 sm:$0xff]  }
 0x1f8   : > { %6207 = vmatprep.subr.bf16.mxu1 %v12536_v27  ;;  %v12801_v27 = vld [vmem:[%s18110_s1 + $0x4a0] ss:$72 sps:$4 sm:$0xff]  }
 0x1fa   : > { %6065 = vmatpush1.bf16.msra.mxu0 %v12777_v11  ;;  %v12855_v11 = vld [vmem:[%s18110_s1 + $0x9b0] ss:$72 sps:$4 sm:$0xff]  }
 0x1fb   : > { %6208 = vmatpush1.bf16.msra.mxu1 %v12534_v21  ;;  %6066 = vmatprep.subr.bf16.mxu0 %v12785_v50  ;;  %v12620_v21 = vld [vmem:[%s18110_s1 + $0xe3c] ss:$72 sps:$4 sm:$0xff]   ;;  %v12672_v50 = vld [vmem:[%s18110_s1 + $0x1348] ss:$72 sps:$4 sm:$0xff]  }
 0x1fc   : > { %6209 = vmatprep.subr.bf16.mxu1 %v12542_v23  ;;  %v12807_v23 = vld [vmem:[%s18110_s1 + $0x530] ss:$72 sps:$4 sm:$0xff]  }
 0x1fe   : > { %6067 = vmatpush1.bf16.msra.mxu0 %v12783_v15  ;;  %v12861_v15 = vld [vmem:[%s18110_s1 + $0xa40] ss:$72 sps:$4 sm:$0xff]  }
 0x1ff   : > { %6210 = vmatpush1.bf16.msra.mxu1 %v12540_v32  ;;  %6068 = vmatprep.subr.bf16.mxu0 %v12791_v18  ;;  %v12626_v32 = vld [vmem:[%s18110_s1 + $0xecc] ss:$72 sps:$4 sm:$0xff]   ;;  %v12678_v18 = vld [vmem:[%s18110_s1 + $0x13d8] ss:$72 sps:$4 sm:$0xff]  }
 0x200   : > { %6211 = vmatprep.subr.bf16.mxu1 %v12548_v34  ;;  %v12813_v34 = vld [vmem:[%s18110_s1 + $0x5c0] ss:$72 sps:$4 sm:$0xff]  }
 0x202   : > { %6069 = vmatpush1.bf16.msra.mxu0 %v12789_v51  ;;  %v12686_v51 = vld [vmem:[%s18110_s1 + $0x146c] ss:$72 sps:$4 sm:$0xff]  }
 0x203   : > { %6212 = vmatpush1.bf16.msra.mxu1 %v12546_v37  ;;  %6070 = vmatprep.subr.bf16.mxu0 %v12797_v55  ;;  %v12632_v37 = vld [vmem:[%s18110_s1 + $0xf5c] ss:$72 sps:$4 sm:$0xff]   ;;  %v12873_v55 = vld [vmem:[%s18110_s1 + $0xb60] ss:$72 sps:$4 sm:$0xff]  }
 0x204   : > { %6213 = vmatprep.subr.bf16.mxu1 %v12554_v39  ;;  %v12819_v39 = vld [vmem:[%s18110_s1 + $0x650] ss:$72 sps:$4 sm:$0xff]  }
 0x206   : > { %6071 = vmatpush1.bf16.msra.mxu0 %v12795_v24  ;;  %v12684_v24 = vld [vmem:[%s18110_s1 + $0x1468] ss:$72 sps:$4 sm:$0xff]  }
 0x207   : > { %6214 = vmatpush1.bf16.msra.mxu1 %v12552_v45  ;;  %6072 = vmatprep.subr.bf16.mxu0 %v12803_v19  ;;  %v12638_v45 = vld [vmem:[%s18110_s1 + $0xfec] ss:$72 sps:$4 sm:$0xff]   ;;  %v12690_v19 = vld [vmem:[%s18110_s1 + $0x14f8] ss:$72 sps:$4 sm:$0xff]  }
 0x208   : > { %6215 = vmatprep.subr.bf16.mxu1 %v12560_v7  ;;  %v12825_v7 = vld [vmem:[%s18110_s1 + $0x6e0] ss:$72 sps:$4 sm:$0xff]  }
 0x20a   : > { %6073 = vmatpush1.bf16.msra.mxu0 %v12801_v27  ;;  %v12879_v27 = vld [vmem:[%s18110_s1 + $0xbf0] ss:$72 sps:$4 sm:$0xff]  }
 0x20b   : > { %6216 = vmatpush1.bf16.msra.mxu1 %v12558_v47  ;;  %6074 = vmatprep.subr.bf16.mxu0 %v12809_v31  ;;  %v12644_v47 = vld [vmem:[%s18110_s1 + $0x107c] ss:$72 sps:$4 sm:$0xff]   ;;  %v12696_v31 = vld [vmem:[%s18110_s1 + $0x1588] ss:$72 sps:$4 sm:$0xff]  }
 0x20c   : > { %6228 = vmatprep.subr.bf16.mxu1 %v12566_v48  ;;  %v12831_v48 = vld [vmem:[%s18110_s1 + $0x770] ss:$72 sps:$4 sm:$0xff]  }
 0x20e   : > { %6218 = vmatmul.mubr.bf16.vlgmr.msra.gmra.mrb[12].mxu1 %v15409_v58  ;;  %6075 = vmatpush1.bf16.msra.mxu0 %v12807_v23  ;;  %v12885_v23 = vld [vmem:[%s18110_s1 + $0xc80] ss:$72 sps:$4 sm:$0xff]  }
 0x20f   : > { %6229 = vmatpush1.bf16.msra.mxu1 %v12564_v54  ;;  %6260 = vmatprep.mubr.bf16.mxu1 %v15422_v62  ;;  %v12650_v54 = vld [vmem:[%s18110_s1 + $0x110c] ss:$72 sps:$4 sm:$0xff]  }
 0x210   : > { %6230 = vmatprep.subr.bf16.mxu1 %v12572_v56  ;;  %6076 = vmatprep.subr.bf16.mxu0 %v12815_v35  ;;  %v12837_v56 = vld [vmem:[%s18110_s1 + $0x800] ss:$72 sps:$4 sm:$0xff]  }
 0x211   : > { %v12702_v35 = vld [vmem:[%s18110_s1 + $0x1618] ss:$72 sps:$4 sm:$0xff]  }
 0x212   : > { %6077 = vmatpush1.bf16.msra.mxu0 %v12813_v34  ;;  %v12891_v34 = vld [vmem:[%s18110_s1 + $0xd10] ss:$72 sps:$4 sm:$0xff]  }
 0x213   : > { %6231 = vmatpush1.bf16.msra.mxu1 %v12570_v28  ;;  %6078 = vmatprep.subr.bf16.mxu0 %v12821_v42  ;;  %v12656_v28 = vld [vmem:[%s18110_s1 + $0x119c] ss:$72 sps:$4 sm:$0xff]   ;;  %v12708_v42 = vld [vmem:[%s18110_s1 + $0x16a8] ss:$72 sps:$4 sm:$0xff]  }
 0x214   : > { %6232 = vmatprep.subr.bf16.mxu1 %v12578_v60  ;;  %v12845_v60 = vld [vmem:[%s18110_s1 + $0x894] ss:$72 sps:$4 sm:$0xff]  }
 0x216   : > { %6079 = vmatpush1.bf16.msra.mxu0 %v12819_v39  ;;  %v12897_v39 = vld [vmem:[%s18110_s1 + $0xda0] ss:$72 sps:$4 sm:$0xff]  }
 0x217   : > { %6233 = vmatpush1.bf16.msra.mxu1 %v12576_v0  ;;  %6080 = vmatprep.subr.bf16.mxu0 %v12827_v46  ;;  %v12662_v0 = vld [vmem:[%s18110_s1 + $0x122c] ss:$72 sps:$4 sm:$0xff]   ;;  %v12714_v46 = vld [vmem:[%s18110_s1 + $0x1738] ss:$72 sps:$4 sm:$0xff]  }
 0x218   : > { %6234 = vmatprep.subr.bf16.mxu1 %v12584_v1  ;;  %v12851_v1 = vld [vmem:[%s18110_s1 + $0x924] ss:$72 sps:$4 sm:$0xff]  }
 0x21a   : > { %6081 = vmatpush1.bf16.msra.mxu0 %v12825_v7  ;;  %v12903_v7 = vld [vmem:[%s18110_s1 + $0xe30] ss:$72 sps:$4 sm:$0xff]  }
 0x21b   : > { %6235 = vmatpush1.bf16.msra.mxu1 %v12582_v6  ;;  %6082 = vmatprep.subr.bf16.mxu0 %v12833_v52  ;;  %v12668_v6 = vld [vmem:[%s18110_s1 + $0x12bc] ss:$72 sps:$4 sm:$0xff]   ;;  %v12720_v52 = vld [vmem:[%s18110_s1 + $0x17c8] ss:$72 sps:$4 sm:$0xff]  }
 0x21c   : > { %6236 = vmatprep.subr.bf16.mxu1 %v12590_v9  ;;  %v12857_v9 = vld [vmem:[%s18110_s1 + $0x9b4] ss:$72 sps:$4 sm:$0xff]  }
 0x21e   : > { %6083 = vmatpush1.bf16.msra.mxu0 %v12831_v48  ;;  %v12909_v48 = vld [vmem:[%s18110_s1 + $0xec0] ss:$72 sps:$4 sm:$0xff]  }
 0x21f   : > { %6237 = vmatpush1.bf16.msra.mxu1 %v12588_v13  ;;  %6084 = vmatprep.subr.bf16.mxu0 %v12839_v57  ;;  %v15621_v13 = vld [vmem:[%s14169_s25 + $0x14] ss:$24 sps:$4 sm:$0xff]   ;;  %v12726_v57 = vld [vmem:[%s18110_s1 + $0x1858] ss:$72 sps:$4 sm:$0xff]  }
 0x220   : > { %6238 = vmatprep.subr.bf16.mxu1 %v12596_v14  ;;  %v12674_v14 = vld [vmem:[%s18110_s1 + $0x134c] ss:$72 sps:$4 sm:$0xff]  }
 0x222   : > { %6085 = vmatpush1.bf16.msra.mxu0 %v12837_v56  ;;  %v12915_v56 = vld [vmem:[%s18110_s1 + $0xf50] ss:$72 sps:$4 sm:$0xff]  }
 0x223   : > { %6239 = vmatpush1.bf16.msra.mxu1 %v12594_v10  ;;  %6086 = vmatprep.subr.bf16.mxu0 %v12845_v60  ;;  %v12680_v10 = vld [vmem:[%s18110_s1 + $0x13dc] ss:$72 sps:$4 sm:$0xff]   ;;  %v12921_v60 = vld [vmem:[%s18110_s1 + $0xfe0] ss:$72 sps:$4 sm:$0xff]  }
 0x224   : > { %6240 = vmatprep.subr.bf16.mxu1 %v12602_v49  ;;  %v12869_v49 = vld [vmem:[%s18110_s1 + $0xad4] ss:$72 sps:$4 sm:$0xff]  }
 0x226   : > { %6087 = vmatpush1.bf16.msra.mxu0 %v12843_v30  ;;  %v12732_v30 = vld [vmem:[%s18110_s1 + $0x18e8] ss:$72 sps:$4 sm:$0xff]  }
 0x227   : > { %6241 = vmatpush1.bf16.msra.mxu1 %v12600_v17  ;;  %6099 = vmatprep.subr.bf16.mxu0 %v12851_v1  ;;  %v12867_v17 = vld [vmem:[%s18110_s1 + $0xad0] ss:$72 sps:$4 sm:$0xff]  }
 0x228   : > { %6242 = vmatprep.subr.bf16.mxu1 %v12608_v20  ;;  %v12875_v20 = vld [vmem:[%s18110_s1 + $0xb64] ss:$72 sps:$4 sm:$0xff]   ;;  %v12927_v1 = vld [vmem:[%s18110_s1 + $0x1070] ss:$72 sps:$4 sm:$0xff]  }
 0x229   : > { %6089 = vmatmul.mubr.bf16.vlgmr.msra.gmra.mrb[8].mxu0 %v15409_v58  ;;  %v12666_v58 = vld [vmem:[%s18110_s1 + $0x12b8] ss:$72 sps:$4 sm:$0xff]  }
 0x22a   : > { %6100 = vmatpush1.bf16.msra.mxu0 %v12849_v2  ;;  %6131 = vmatprep.mubr.bf16.mxu0 %v15422_v62  ;;  %v12863_v62 = vld [vmem:[%s18110_s1 + $0xa44] ss:$72 sps:$4 sm:$0xff]   ;;  %v12738_v2 = vld [vmem:[%s18110_s1 + $0x1978] ss:$72 sps:$4 sm:$0xff]  }
 0x22b   : > { %6243 = vmatpush1.bf16.msra.mxu1 %v12606_v22  ;;  %6101 = vmatprep.subr.bf16.mxu0 %v12857_v9  ;;  %v12692_v22 = vld [vmem:[%s18110_s1 + $0x14fc] ss:$72 sps:$4 sm:$0xff]   ;;  %v12933_v9 = vld [vmem:[%s18110_s1 + $0x1100] ss:$72 sps:$4 sm:$0xff]  }
 0x22c   : > { %6244 = vmatprep.subr.bf16.mxu1 %v12614_v25  ;;  %v12881_v25 = vld [vmem:[%s18110_s1 + $0xbf4] ss:$72 sps:$4 sm:$0xff]  }
 0x22e   : > { %6102 = vmatpush1.bf16.msra.mxu0 %v12855_v11  ;;  %v12744_v11 = vld [vmem:[%s18110_s1 + $0x1a08] ss:$72 sps:$4 sm:$0xff]  }
 0x22f   : > { %6245 = vmatpush1.bf16.msra.mxu1 %v12612_v29  ;;  %6103 = vmatprep.subr.bf16.mxu0 %v12863_v62  ;;  %v12698_v29 = vld [vmem:[%s18110_s1 + $0x158c] ss:$72 sps:$4 sm:$0xff]   ;;  %v12939_v62 = vld [vmem:[%s18110_s1 + $0x1190] ss:$72 sps:$4 sm:$0xff]  }
 0x230   : > { %6246 = vmatprep.subr.bf16.mxu1 %v12620_v21  ;;  %v12887_v21 = vld [vmem:[%s18110_s1 + $0xc84] ss:$72 sps:$4 sm:$0xff]  }
 0x232   : > { %6104 = vmatpush1.bf16.msra.mxu0 %v12861_v15  ;;  %v12750_v15 = vld [vmem:[%s18110_s1 + $0x1a98] ss:$72 sps:$4 sm:$0xff]  }
 0x233   : > { %6247 = vmatpush1.bf16.msra.mxu1 %v12618_v26  ;;  %6105 = vmatprep.subr.bf16.mxu0 %v12869_v49  ;;  %v12704_v26 = vld [vmem:[%s18110_s1 + $0x161c] ss:$72 sps:$4 sm:$0xff]   ;;  %v12945_v49 = vld [vmem:[%s18110_s1 + $0x1220] ss:$72 sps:$4 sm:$0xff]  }
 0x234   : > { %6248 = vmatprep.subr.bf16.mxu1 %v12626_v32  ;;  %v12893_v32 = vld [vmem:[%s18110_s1 + $0xd14] ss:$72 sps:$4 sm:$0xff]  }
 0x236   : > { %6106 = vmatpush1.bf16.msra.mxu0 %v12867_v17  ;;  %v12756_v17 = vld [vmem:[%s18110_s1 + $0x38] ss:$72 sps:$4 sm:$0xff]  }
 0x237   : > { %6249 = vmatpush1.bf16.msra.mxu1 %v12624_v36  ;;  %6107 = vmatprep.subr.bf16.mxu0 %v12875_v20  ;;  %v12710_v36 = vld [vmem:[%s18110_s1 + $0x16ac] ss:$72 sps:$4 sm:$0xff]   ;;  %v12951_v20 = vld [vmem:[%s18110_s1 + $0x12b0] ss:$72 sps:$4 sm:$0xff]  }
 0x238   : > { %6250 = vmatprep.subr.bf16.mxu1 %v12632_v37  ;;  %v12899_v37 = vld [vmem:[%s18110_s1 + $0xda4] ss:$72 sps:$4 sm:$0xff]  }
 0x23a   : > { %6108 = vmatpush1.bf16.msra.mxu0 %v12873_v55  ;;  %v15816_v55 = vld [vmem:[%s14169_s25 + $0x10] ss:$24 sps:$4 sm:$0xff]  }
 0x23b   : > { %6251 = vmatpush1.bf16.msra.mxu1 %v12630_v44  ;;  %6109 = vmatprep.subr.bf16.mxu0 %v12881_v25  ;;  %v12716_v44 = vld [vmem:[%s18110_s1 + $0x173c] ss:$72 sps:$4 sm:$0xff]  }
 0x23c   : > { %6252 = vmatprep.subr.bf16.mxu1 %v12638_v45  ;;  %v12905_v45 = vld [vmem:[%s18110_s1 + $0xe34] ss:$72 sps:$4 sm:$0xff]  }
 0x23d   : > { %v12770_v25 = vld [vmem:[%s18110_s1 + $0x15c] ss:$72 sps:$4 sm:$0xff]  }
 0x23e   : > { %6110 = vmatpush1.bf16.msra.mxu0 %v12879_v27  ;;  %v12959_v27 = vld [vmem:[%s18110_s1 + $0x1344] ss:$72 sps:$4 sm:$0xff]  }
 0x23f   : > { %6253 = vmatpush1.bf16.msra.mxu1 %v12636_v33  ;;  %6111 = vmatprep.subr.bf16.mxu0 %v12887_v21  ;;  %v12722_v33 = vld [vmem:[%s18110_s1 + $0x17cc] ss:$72 sps:$4 sm:$0xff]  }
 0x240   : > { %6254 = vmatprep.subr.bf16.mxu1 %v12644_v47  ;;  %v12911_v47 = vld [vmem:[%s18110_s1 + $0xec4] ss:$72 sps:$4 sm:$0xff]  }
 0x241   : > { %v12776_v21 = vld [vmem:[%s18110_s1 + $0x1ec] ss:$72 sps:$4 sm:$0xff]  }
 0x242   : > { %6112 = vmatpush1.bf16.msra.mxu0 %v12885_v23  ;;  %v12965_v23 = vld [vmem:[%s18110_s1 + $0x13d4] ss:$72 sps:$4 sm:$0xff]  }
 0x243   : > { %6255 = vmatpush1.bf16.msra.mxu1 %v12642_v53  ;;  %6113 = vmatprep.subr.bf16.mxu0 %v12893_v32  ;;  %v12728_v53 = vld [vmem:[%s18110_s1 + $0x185c] ss:$72 sps:$4 sm:$0xff]  }
 0x244   : > { %6256 = vmatprep.subr.bf16.mxu1 %v12650_v54  ;;  %v12917_v54 = vld [vmem:[%s18110_s1 + $0xf54] ss:$72 sps:$4 sm:$0xff]  }
 0x245   : > { %v12782_v32 = vld [vmem:[%s18110_s1 + $0x27c] ss:$72 sps:$4 sm:$0xff]  }
 0x246   : > { %6114 = vmatpush1.bf16.msra.mxu0 %v12891_v34  ;;  %v12971_v34 = vld [vmem:[%s18110_s1 + $0x1464] ss:$72 sps:$4 sm:$0xff]  }
 0x247   : > { %6257 = vmatpush1.bf16.msra.mxu1 %v12648_v59  ;;  %6115 = vmatprep.subr.bf16.mxu0 %v12899_v37  ;;  %v12734_v59 = vld [vmem:[%s18110_s1 + $0x18ec] ss:$72 sps:$4 sm:$0xff]   ;;  %v1126_v37 = vsub.s32 6, %v14795_v61 }
 0x248   : > { %6258 = vmatprep.subr.bf16.mxu1 %v12656_v28  ;;  %v12923_v28 = vld [vmem:[%s18110_s1 + $0xfe4] ss:$72 sps:$4 sm:$0xff]  }
 0x24a   : > { %6116 = vmatpush1.bf16.msra.mxu0 %v12897_v39  ;;  %v12788_v39 = vld [vmem:[%s18110_s1 + $0x30c] ss:$72 sps:$4 sm:$0xff]  }
 0x24b   : > { %6259 = vmatpush1.bf16.msra.mxu1 %v12654_v63  ;;  %6117 = vmatprep.subr.bf16.mxu0 %v12905_v45  ;;  %v12740_v63 = vld [vmem:[%s18110_s1 + $0x197c] ss:$72 sps:$4 sm:$0xff]   ;;  %v12975_v45 = vld [vmem:[%s18110_s1 + $0x14f0] ss:$72 sps:$4 sm:$0xff]  }
 0x24c   : > { %6271 = vmatprep.subr.bf16.mxu1 %v12662_v0  ;;  %v12929_v0 = vld [vmem:[%s18110_s1 + $0x1074] ss:$72 sps:$4 sm:$0xff]  }
 0x24e   : > { %6261 = vmatmul.mubr.bf16.vlgmr.msra.gmra.mrb[12].mxu1 %v15614_v12  ;;  %6118 = vmatpush1.bf16.msra.mxu0 %v12903_v7  ;;  %v12786_v7 = vld [vmem:[%s18110_s1 + $0x308] ss:$72 sps:$4 sm:$0xff]  }
 0x24f   : > { %6272 = vmatpush1.bf16.msra.mxu1 %v12660_v5  ;;  %6303 = vmatprep.mubr.bf16.mxu1 %v15621_v13  ;;  %v12746_v5 = vld [vmem:[%s18110_s1 + $0x1a0c] ss:$72 sps:$4 sm:$0xff]  }
 0x250   : > { %6273 = vmatprep.subr.bf16.mxu1 %v12668_v6  ;;  %6119 = vmatprep.subr.bf16.mxu0 %v12911_v47  ;;  %v12935_v6 = vld [vmem:[%s18110_s1 + $0x1104] ss:$72 sps:$4 sm:$0xff]  }
 0x251   : > { %v12794_v47 = vld [vmem:[%s18110_s1 + $0x39c] ss:$72 sps:$4 sm:$0xff]  }
 0x252   : > { %6120 = vmatpush1.bf16.msra.mxu0 %v12909_v48  ;;  %v12983_v48 = vld [vmem:[%s18110_s1 + $0x1584] ss:$72 sps:$4 sm:$0xff]  }
 0x253   : > { %6274 = vmatpush1.bf16.msra.mxu1 %v12666_v58  ;;  %6121 = vmatprep.subr.bf16.mxu0 %v12917_v54  ;;  %v12752_v58 = vld [vmem:[%s18110_s1 + $0x1a9c] ss:$72 sps:$4 sm:$0xff]   ;;  %v12981_v54 = vld [vmem:[%s18110_s1 + $0x1580] ss:$72 sps:$4 sm:$0xff]  }
 0x254   : > { %6275 = vmatprep.subr.bf16.mxu1 %v12674_v14  ;;  %v12941_v14 = vld [vmem:[%s18110_s1 + $0x1194] ss:$72 sps:$4 sm:$0xff]  }
 0x256   : > { %6122 = vmatpush1.bf16.msra.mxu0 %v12915_v56 }
 0x257   : > { %6276 = vmatpush1.bf16.msra.mxu1 %v12672_v50  ;;  %6123 = vmatprep.subr.bf16.mxu0 %v12923_v28  ;;  %v12758_v50 = vld [vmem:[%s18110_s1 + $0x3c] ss:$72 sps:$4 sm:$0xff]  }
 0x258   : > { %6277 = vmatprep.subr.bf16.mxu1 %v12680_v10  ;;  %v12947_v10 = vld [vmem:[%s18110_s1 + $0x1224] ss:$72 sps:$4 sm:$0xff]  }
 0x25a   : > { %6124 = vmatpush1.bf16.msra.mxu0 %v12921_v60 }
 0x25b   : > { %6278 = vmatpush1.bf16.msra.mxu1 %v12678_v18  ;;  %6125 = vmatprep.subr.bf16.mxu0 %v12929_v0  ;;  %v12764_v18 = vld [vmem:[%s18110_s1 + $0xcc] ss:$72 sps:$4 sm:$0xff]  }
 0x25c   : > { %6279 = vmatprep.subr.bf16.mxu1 %v12686_v51  ;;  %v12953_v51 = vld [vmem:[%s18110_s1 + $0x12b4] ss:$72 sps:$4 sm:$0xff]  }
 0x25d   : > { %v12989_v0 = vld [vmem:[%s18110_s1 + $0x1614] ss:$72 sps:$4 sm:$0xff]  }
 0x25e   : > { %6126 = vmatpush1.bf16.msra.mxu0 %v12927_v1 }
 0x25f   : > { %6280 = vmatpush1.bf16.msra.mxu1 %v12684_v24  ;;  %6127 = vmatprep.subr.bf16.mxu0 %v12935_v6  ;;  %v12762_v24 = vld [vmem:[%s18110_s1 + $0xc8] ss:$72 sps:$4 sm:$0xff]  }
 0x260   : > { %6281 = vmatprep.subr.bf16.mxu1 %v12692_v22  ;;  %v15823_v22 = vld [vmem:[%s14169_s25 + $0x4] ss:$24 sps:$4 sm:$0xff]  }
 0x262   : > { %6128 = vmatpush1.bf16.msra.mxu0 %v12933_v9 }
 0x263   : > { %6282 = vmatpush1.bf16.msra.mxu1 %v12690_v19  ;;  %6129 = vmatprep.subr.bf16.mxu0 %v12941_v14  ;;  %v12957_v19 = vld [vmem:[%s18110_s1 + $0x1340] ss:$72 sps:$4 sm:$0xff]   ;;  %v12995_v14 = vld [vmem:[%s18110_s1 + $0x16a4] ss:$72 sps:$4 sm:$0xff]  }
 0x264   : > { %6283 = vmatprep.subr.bf16.mxu1 %v12698_v29  ;;  %v12768_v29 = vld [vmem:[%s18110_s1 + $0x158] ss:$72 sps:$4 sm:$0xff]  }
 0x266   : > { %6130 = vmatpush1.bf16.msra.mxu0 %v12939_v62  ;;  %v12993_v62 = vld [vmem:[%s18110_s1 + $0x16a0] ss:$72 sps:$4 sm:$0xff]  }
 0x267   : > { %6284 = vmatpush1.bf16.msra.mxu1 %v12696_v31  ;;  %6142 = vmatprep.subr.bf16.mxu0 %v12947_v10  ;;  %v12963_v31 = vld [vmem:[%s18110_s1 + $0x13d0] ss:$72 sps:$4 sm:$0xff]   ;;  %v13001_v10 = vld [vmem:[%s18110_s1 + $0x1734] ss:$72 sps:$4 sm:$0xff]  }
 0x268   : > { %6285 = vmatprep.subr.bf16.mxu1 %v12704_v26  ;;  %v12774_v26 = vld [vmem:[%s18110_s1 + $0x1e8] ss:$72 sps:$4 sm:$0xff]  }
 0x269   : > { %6132 = vmatmul.mubr.bf16.vlgmr.msra.gmra.mrb[8].mxu0 %v15614_v12 }
 0x26a   : > { %6143 = vmatpush1.bf16.msra.mxu0 %v12945_v49  ;;  %6174 = vmatprep.mubr.bf16.mxu0 %v15621_v13  ;;  %v12999_v49 = vld [vmem:[%s18110_s1 + $0x1730] ss:$72 sps:$4 sm:$0xff]  }
 0x26b   : > { %6286 = vmatpush1.bf16.msra.mxu1 %v12702_v35  ;;  %6144 = vmatprep.subr.bf16.mxu0 %v12953_v51  ;;  %v12969_v35 = vld [vmem:[%s18110_s1 + $0x1460] ss:$72 sps:$4 sm:$0xff]   ;;  %v13007_v51 = vld [vmem:[%s18110_s1 + $0x17c4] ss:$72 sps:$4 sm:$0xff]  }
 0x26c   : > { %6287 = vmatprep.subr.bf16.mxu1 %v12710_v36  ;;  %v12780_v36 = vld [vmem:[%s18110_s1 + $0x278] ss:$72 sps:$4 sm:$0xff]  }
 0x26e   : > { %6145 = vmatpush1.bf16.msra.mxu0 %v12951_v20  ;;  %v13005_v20 = vld [vmem:[%s18110_s1 + $0x17c0] ss:$72 sps:$4 sm:$0xff]  }
 0x26f   : > { %6288 = vmatpush1.bf16.msra.mxu1 %v12708_v42  ;;  %6146 = vmatprep.subr.bf16.mxu0 %v12959_v27  ;;  %v12977_v42 = vld [vmem:[%s18110_s1 + $0x14f4] ss:$72 sps:$4 sm:$0xff]  }
 0x270   : > { %6289 = vmatprep.subr.bf16.mxu1 %v12716_v44  ;;  %v1130_v44 = vsub.s32 7, %v14795_v61  ;;  %v13013_v27 = vld [vmem:[%s18110_s1 + $0x1854] ss:$72 sps:$4 sm:$0xff]  }
 0x272   : > { %6147 = vmatpush1.bf16.msra.mxu0 %v12957_v19  ;;  %v13011_v19 = vld [vmem:[%s18110_s1 + $0x1850] ss:$72 sps:$4 sm:$0xff]  }
 0x273   : > { %6290 = vmatpush1.bf16.msra.mxu1 %v12714_v46  ;;  %6148 = vmatprep.subr.bf16.mxu0 %v12965_v23  ;;  %v15879_v46 = vld [vmem:[%s18111_s2] sm:$0xff] }
 0x274   : > { %6291 = vmatprep.subr.bf16.mxu1 %v12722_v33  ;;  %v1127_v33 = vrot.slane %v15879_v46, %v1126_v37  ;;  %v13019_v23 = vld [vmem:[%s18110_s1 + $0x18e4] ss:$72 sps:$4 sm:$0xff]  }
 0x276   : > { %6149 = vmatpush1.bf16.msra.mxu0 %v12963_v31  ;;  %v13017_v31 = vld [vmem:[%s18110_s1 + $0x18e0] ss:$72 sps:$4 sm:$0xff]  }
 0x277   : > { %6292 = vmatpush1.bf16.msra.mxu1 %v12720_v52  ;;  %6150 = vmatprep.subr.bf16.mxu0 %v12971_v34  ;;  %v13025_v34 = vld [vmem:[%s18110_s1 + $0x1974] ss:$72 sps:$4 sm:$0xff]  }
 0x278   : > { %6293 = vmatprep.subr.bf16.mxu1 %v12728_v53  ;;  %v1131_v53 = vrot.slane %v15879_v46, %v1130_v44 }
 0x27a   : > { %6151 = vmatpush1.bf16.msra.mxu0 %v12969_v35  ;;  %v13023_v35 = vld [vmem:[%s18110_s1 + $0x1970] ss:$72 sps:$4 sm:$0xff]  }
 0x27b   : > { %6294 = vmatpush1.bf16.msra.mxu1 %v12726_v57  ;;  %6152 = vmatprep.subr.bf16.mxu0 %v12977_v42  ;;  %v13031_v42 = vld [vmem:[%s18110_s1 + $0x1a04] ss:$72 sps:$4 sm:$0xff]  }
 0x27c   : > { %6295 = vmatprep.subr.bf16.mxu1 %v12734_v59  ;;  %v12792_v59 = vld [vmem:[%s18110_s1 + $0x398] ss:$72 sps:$4 sm:$0xff]  }
 0x27e   : > { %6153 = vmatpush1.bf16.msra.mxu0 %v12975_v45  ;;  %v13029_v45 = vld [vmem:[%s18110_s1 + $0x1a00] ss:$72 sps:$4 sm:$0xff]  }
 0x27f   : > { %6296 = vmatpush1.bf16.msra.mxu1 %v12732_v30  ;;  %6154 = vmatprep.subr.bf16.mxu0 %v12983_v48  ;;  %v13035_v48 = vld [vmem:[%s18110_s1 + $0x1a90] ss:$72 sps:$4 sm:$0xff]  }
 0x280   : > { %6297 = vmatprep.subr.bf16.mxu1 %v12740_v63  ;;  %v12800_v63 = vld [vmem:[%s18110_s1 + $0x42c] ss:$72 sps:$4 sm:$0xff]  }
 0x282   : > { %6155 = vmatpush1.bf16.msra.mxu0 %v12981_v54  ;;  %v13043_v54 = vld [vmem:[%s18110_s1 + $0x34] ss:$72 sps:$4 sm:$0xff]  }
 0x283   : > { %6298 = vmatpush1.bf16.msra.mxu1 %v12738_v2  ;;  %6156 = vmatprep.subr.bf16.mxu0 %v12989_v0  ;;  %v12858_v0 = vld [vmem:[%s18110_s1 + $0x9c8] ss:$72 sps:$4 sm:$0xff]  }
 0x284   : > { %6299 = vmatprep.subr.bf16.mxu1 %v12746_v5  ;;  %v12987_v5 = vld [vmem:[%s18110_s1 + $0x1610] ss:$72 sps:$4 sm:$0xff]  }
 0x286   : > { %6157 = vmatpush1.bf16.msra.mxu0 %v12987_v5  ;;  %v13047_v5 = vld [vmem:[%s18110_s1 + $0x150] ss:$72 sps:$4 sm:$0xff]  }
 0x287   : > { %6300 = vmatpush1.bf16.msra.mxu1 %v12744_v11  ;;  %v12798_v11 = vld [vmem:[%s18110_s1 + $0x428] ss:$72 sps:$4 sm:$0xff]   ;;  %6158 = vmatprep.subr.bf16.mxu0 %v12995_v14  ;;  %v13052_v14 = vld [vmem:[%s18110_s1 + $0x1e4] ss:$72 sps:$4 sm:$0xff]  }
 0x288   : > { %6301 = vmatprep.subr.bf16.mxu1 %v12752_v58  ;;  %v12806_v58 = vld [vmem:[%s18110_s1 + $0x4bc] ss:$72 sps:$4 sm:$0xff]  }
 0x28a   : > { %6159 = vmatpush1.bf16.msra.mxu0 %v12993_v62  ;;  %v13050_v62 = vld [vmem:[%s18110_s1 + $0x1e0] ss:$72 sps:$4 sm:$0xff]  }
 0x28b   : > { %6302 = vmatpush1.bf16.msra.mxu1 %v12750_v15  ;;  %v12804_v15 = vld [vmem:[%s18110_s1 + $0x4b8] ss:$72 sps:$4 sm:$0xff]   ;;  %6160 = vmatprep.subr.bf16.mxu0 %v13001_v10  ;;  %v12878_v10 = vld [vmem:[%s18110_s1 + $0xb7c] ss:$72 sps:$4 sm:$0xff]  }
 0x28c   : > { %6443 = vmatprep.subr.bf16.mxu1 %v12758_v50  ;;  %v12812_v50 = vld [vmem:[%s18110_s1 + $0x54c] ss:$72 sps:$4 sm:$0xff]  }
 0x28e   : > { %6304 = vmatmul.mubr.bf16.vlgmr.msra.gmra.mrb[12].mxu1 %v15816_v55  ;;  %6161 = vmatpush1.bf16.msra.mxu0 %v12999_v49  ;;  %v13053_v49 = vld [vmem:[%s18110_s1 + $0x270] ss:$72 sps:$4 sm:$0xff]  }
 0x28f   : > { %6444 = vmatpush1.bf16.msra.mxu1 %v12756_v17  ;;  %6475 = vmatprep.mubr.bf16.mxu1 %v15823_v22  ;;  %v12810_v17 = vld [vmem:[%s18110_s1 + $0x548] ss:$72 sps:$4 sm:$0xff]  }
 0x290   : > { %6445 = vmatprep.subr.bf16.mxu1 %v12764_v18  ;;  %v12818_v18 = vld [vmem:[%s18110_s1 + $0x5dc] ss:$72 sps:$4 sm:$0xff]   ;;  %6162 = vmatprep.subr.bf16.mxu0 %v13007_v51  ;;  %v16085_v51 = vsub.s32 5, %v14795_v61 }
 0x292   : > { %6163 = vmatpush1.bf16.msra.mxu0 %v13005_v20  ;;  %v13058_v20 = vld [vmem:[%s18110_s1 + $0x304] ss:$72 sps:$4 sm:$0xff]  }
 0x293   : > { %6446 = vmatpush1.bf16.msra.mxu1 %v12762_v24  ;;  %v12816_v24 = vld [vmem:[%s18110_s1 + $0x5d8] ss:$72 sps:$4 sm:$0xff]   ;;  %6164 = vmatprep.subr.bf16.mxu0 %v13013_v27  ;;  %v1123_v27 = vrot.slane %v15879_v46, %v16085_v51 }
 0x294   : > { %6447 = vmatprep.subr.bf16.mxu1 %v12770_v25  ;;  %v12824_v25 = vld [vmem:[%s18110_s1 + $0x66c] ss:$72 sps:$4 sm:$0xff]  }
 0x296   : > { %6165 = vmatpush1.bf16.msra.mxu0 %v13011_v19  ;;  %v13056_v19 = vld [vmem:[%s18110_s1 + $0x300] ss:$72 sps:$4 sm:$0xff]  }
 0x297   : > { %6448 = vmatpush1.bf16.msra.mxu1 %v12768_v29  ;;  %v12822_v29 = vld [vmem:[%s18110_s1 + $0x668] ss:$72 sps:$4 sm:$0xff]   ;;  %6166 = vmatprep.subr.bf16.mxu0 %v13019_v23  ;;  %v12890_v23 = vld [vmem:[%s18110_s1 + $0xc9c] ss:$72 sps:$4 sm:$0xff]  }
 0x298   : > { %6449 = vmatprep.subr.bf16.mxu1 %v12776_v21  ;;  %v12830_v21 = vld [vmem:[%s18110_s1 + $0x6fc] ss:$72 sps:$4 sm:$0xff]  }
 0x29a   : > { %6167 = vmatpush1.bf16.msra.mxu0 %v13017_v31 }
 0x29b   : > { %6450 = vmatpush1.bf16.msra.mxu1 %v12774_v26  ;;  %v12828_v26 = vld [vmem:[%s18110_s1 + $0x6f8] ss:$72 sps:$4 sm:$0xff]   ;;  %6168 = vmatprep.subr.bf16.mxu0 %v13025_v34  ;;  %v13061_v34 = vld [vmem:[%s18110_s1 + $0x394] ss:$72 sps:$4 sm:$0xff]  }
 0x29c   : > { %6451 = vmatprep.subr.bf16.mxu1 %v12782_v32  ;;  %v12836_v32 = vld [vmem:[%s18110_s1 + $0x78c] ss:$72 sps:$4 sm:$0xff]  }
 0x29e   : > { %6169 = vmatpush1.bf16.msra.mxu0 %v13023_v35 }
 0x29f   : > { %6452 = vmatpush1.bf16.msra.mxu1 %v12780_v36  ;;  %v12834_v36 = vld [vmem:[%s18110_s1 + $0x788] ss:$72 sps:$4 sm:$0xff]   ;;  %6170 = vmatprep.subr.bf16.mxu0 %v13031_v42 }
 0x2a0   : > { %6453 = vmatprep.subr.bf16.mxu1 %v12788_v39  ;;  %v12842_v39 = vld [vmem:[%s18110_s1 + $0x81c] ss:$72 sps:$4 sm:$0xff]   ;;  %v13059_v42 = vld [vmem:[%s18110_s1 + $0x390] ss:$72 sps:$4 sm:$0xff]  }
 0x2a1   : > { %v6047_v52 = vpop.f32.mrb[8].mxu1 }
 0x2a2   : > { %v6049_v56 = vpop.f32.mrb[9].mxu1  ;;  %v11849_v28 = vadd.f32 %v6047_v52, %v1127_v33  ;;  %6171 = vmatpush1.bf16.msra.mxu0 %v13029_v45  ;;  %v12846_v52 = vld [vmem:[%s18110_s1 + $0x8a8] ss:$72 sps:$4 sm:$0xff]   ;;  %v12888_v45 = vld [vmem:[%s18110_s1 + $0xc98] ss:$72 sps:$4 sm:$0xff]  }
 0x2a3   : > { %v6051_v57 = vpop.f32.mrb[10].mxu1  ;;  %6454 = vmatpush1.bf16.msra.mxu1 %v12786_v7  ;;  %v11850_v1 = vadd.f32 %v6049_v56, %v1131_v53  ;;  %v12840_v7 = vld [vmem:[%s18110_s1 + $0x818] ss:$72 sps:$4 sm:$0xff]  }
 0x2a4   : > { %v11851_v60 = vadd.f32 %v6051_v57, %v1127_v33  ;;  %v6053_v30 = vpop.f32.mrb[11].mxu1  ;;  %6455 = vmatprep.subr.bf16.mxu1 %v12794_v47  ;;  %v12848_v33 = vld [vmem:[%s18110_s1 + $0x8ac] ss:$72 sps:$4 sm:$0xff]   ;;  %v13041_v56 = vld [vmem:[%s18110_s1 + $0x30] ss:$72 sps:$4 sm:$0xff]  }
 0x2a5   : > { %v11852_v2 = vadd.f32 %v6053_v30, %v1131_v53  ;;  %v13037_v47 = vld [vmem:[%s18110_s1 + $0x1a94] ss:$72 sps:$4 sm:$0xff]   ;;  %v12852_v57 = vld [vmem:[%s18110_s1 + $0x938] ss:$72 sps:$4 sm:$0xff]  }
 0x2a6   : > { %v15908_v6 = vpack.c.bf16 %v11851_v60, %v11849_v28  ;;  %6172 = vmatprep.subr.bf16.mxu0 %v13037_v47  ;;  %v12854_v53 = vld [vmem:[%s18110_s1 + $0x93c] ss:$72 sps:$4 sm:$0xff]   ;;  %v16032_v60 = vld [vmem:[%s14169_s25] ss:$24 sps:$4 sm:$0xff]   ;;  %v12896_v47 = vld [vmem:[%s18110_s1 + $0xd2c] ss:$72 sps:$4 sm:$0xff]  }
 0x2a7   : > { %v15910_v9 = vpack.c.bf16 %v11852_v2, %v11850_v1  ;;  %6456 = vmatpush1.bf16.msra.mxu1 %v12792_v59  ;;  %6173 = vmatpush1.bf16.msra.mxu0 %v13035_v48  ;;  %v12860_v59 = vld [vmem:[%s18110_s1 + $0x9cc] ss:$72 sps:$4 sm:$0xff]   ;;  %v13044_v30 = vld [vmem:[%s18110_s1 + $0xc0] ss:$72 sps:$4 sm:$0xff]   ;;  %v12866_v2 = vld [vmem:[%s18110_s1 + $0xa5c] ss:$72 sps:$4 sm:$0xff]  }
 0x2a8   : > { %6457 = vmatprep.subr.bf16.mxu1 %v12800_v63  ;;  %6314 = vmatprep.subr.bf16.mxu0 %v13043_v54  ;;  %v13046_v28 = vld [vmem:[%s18110_s1 + $0xc4] ss:$72 sps:$4 sm:$0xff]   ;;  %v13049_v63 = vld [vmem:[%s18110_s1 + $0x154] ss:$72 sps:$4 sm:$0xff]  }
 0x2a9   : > { %v16045_v1 = vld [vmem:[%s14169_s25 + $0xc] ss:$24 sps:$4 sm:$0xff]  }
 0x2aa   : > { %6175 = vmatmul.mubr.bf16.vlgmr.msra.gmra.mrb[8].mxu0 %v15816_v55 }
 0x2ab   : > { %6458 = vmatpush1.bf16.msra.mxu1 %v12798_v11  ;;  %6315 = vmatpush1.bf16.msra.mxu0 %v13041_v56  ;;  %v12864_v11 = vld [vmem:[%s18110_s1 + $0xa58] ss:$72 sps:$4 sm:$0xff]  }
 0x2ac   : > { %6459 = vmatprep.subr.bf16.mxu1 %v12806_v58  ;;  %6346 = vmatprep.mubr.bf16.mxu0 %v15823_v22  ;;  %v12872_v58 = vld [vmem:[%s18110_s1 + $0xaec] ss:$72 sps:$4 sm:$0xff]   ;;  %v13062_v56 = vld [vmem:[%s18110_s1 + $0x420] ss:$72 sps:$4 sm:$0xff]  }
 0x2ad   : > { %6316 = vmatprep.subr.bf16.mxu0 %v13046_v28  ;;  %v13067_v28 = vld [vmem:[%s18110_s1 + $0x4b4] ss:$72 sps:$4 sm:$0xff]  }
 0x2af   : > { %6460 = vmatpush1.bf16.msra.mxu1 %v12804_v15  ;;  %6317 = vmatpush1.bf16.msra.mxu0 %v13044_v30  ;;  %v13055_v15 = vld [vmem:[%s18110_s1 + $0x274] ss:$72 sps:$4 sm:$0xff]  }
 0x2b0   : > { %6461 = vmatprep.subr.bf16.mxu1 %v12812_v50  ;;  %6318 = vmatprep.subr.bf16.mxu0 %v13049_v63  ;;  %v12870_v50 = vld [vmem:[%s18110_s1 + $0xae8] ss:$72 sps:$4 sm:$0xff]   ;;  %v12902_v30 = vld [vmem:[%s18110_s1 + $0xdbc] ss:$72 sps:$4 sm:$0xff]  }
 0x2b1   : > { %v13065_v63 = vld [vmem:[%s18110_s1 + $0x4b0] ss:$72 sps:$4 sm:$0xff]  }
 0x2b3   : > { %6462 = vmatpush1.bf16.msra.mxu1 %v12810_v17  ;;  %6319 = vmatpush1.bf16.msra.mxu0 %v13047_v5  ;;  %v12876_v17 = vld [vmem:[%s18110_s1 + $0xb78] ss:$72 sps:$4 sm:$0xff]   ;;  %v12908_v5 = vld [vmem:[%s18110_s1 + $0xe4c] ss:$72 sps:$4 sm:$0xff]  }
 0x2b4   : > { %6463 = vmatprep.subr.bf16.mxu1 %v12818_v18  ;;  %6320 = vmatprep.subr.bf16.mxu0 %v13052_v14  ;;  %v16082_v18 = vsub.s32 4, %v14795_v61  ;;  %v12906_v14 = vld [vmem:[%s18110_s1 + $0xe48] ss:$72 sps:$4 sm:$0xff]  }
 0x2b7   : > { %6464 = vmatpush1.bf16.msra.mxu1 %v12816_v24  ;;  %6321 = vmatpush1.bf16.msra.mxu0 %v13050_v62  ;;  %v12884_v24 = vld [vmem:[%s18110_s1 + $0xc0c] ss:$72 sps:$4 sm:$0xff]   ;;  %v12914_v62 = vld [vmem:[%s18110_s1 + $0xedc] ss:$72 sps:$4 sm:$0xff]  }
 0x2b8   : > { %6465 = vmatprep.subr.bf16.mxu1 %v12824_v25  ;;  %6322 = vmatprep.subr.bf16.mxu0 %v13055_v15  ;;  %v1119_v25 = vrot.slane %v15879_v46, %v16082_v18  ;;  %v13071_v15 = vld [vmem:[%s18110_s1 + $0x5d0] ss:$72 sps:$4 sm:$0xff]  }
 0x2bb   : > { %6466 = vmatpush1.bf16.msra.mxu1 %v12822_v29  ;;  %6323 = vmatpush1.bf16.msra.mxu0 %v13053_v49  ;;  %v12882_v29 = vld [vmem:[%s18110_s1 + $0xc08] ss:$72 sps:$4 sm:$0xff]   ;;  %v12920_v49 = vld [vmem:[%s18110_s1 + $0xf6c] ss:$72 sps:$4 sm:$0xff]  }
 0x2bc   : > { %6467 = vmatprep.subr.bf16.mxu1 %v12830_v21  ;;  %6324 = vmatprep.subr.bf16.mxu0 %v13058_v20  ;;  %v5918_v21 = vpop.f32.mrb[4].mxu0  ;;  %v13079_v20 = vld [vmem:[%s18110_s1 + $0x6f4] ss:$72 sps:$4 sm:$0xff]  }
 0x2bd   : > { %v11845_v31 = vadd.f32 %v5918_v21, %v1119_v25  ;;  %v12932_v21 = vld [vmem:[%s18110_s1 + $0x108c] ss:$72 sps:$4 sm:$0xff]  }
 0x2bf   : > { %6468 = vmatpush1.bf16.msra.mxu1 %v12828_v26  ;;  %v5920_v26 = vpop.f32.mrb[5].mxu0  ;;  %6325 = vmatpush1.bf16.msra.mxu0 %v13056_v19  ;;  %v6705_v35 = vmul.f32 0.125, %v11845_v31  ;;  %v13082_v19 = vld [vmem:[%s18110_s1 + $0x784] ss:$72 sps:$4 sm:$0xff]   ;;  %v13085_v31 = vld [vmem:[%s18110_s1 + $0x814] ss:$72 sps:$4 sm:$0xff]  }
 0x2c0   : > { %6469 = vmatprep.subr.bf16.mxu1 %v12836_v32  ;;  %v11846_v32 = vadd.f32 %v5920_v26, %v1123_v27  ;;  %v5922_v46 = vpop.f32.mrb[6].mxu0  ;;  %6326 = vmatprep.subr.bf16.mxu0 %v13061_v34  ;;  %v12930_v26 = vld [vmem:[%s18110_s1 + $0x1088] ss:$72 sps:$4 sm:$0xff]   ;;  %v13088_v34 = vld [vmem:[%s18110_s1 + $0x8a4] ss:$72 sps:$4 sm:$0xff]  }
 0x2c3   : > { %6470 = vmatpush1.bf16.msra.mxu1 %v12834_v36  ;;  %v11847_v36 = vadd.f32 %v5922_v46, %v1119_v25  ;;  %6327 = vmatpush1.bf16.msra.mxu0 %v13059_v42  ;;  %v12926_v25 = vld [vmem:[%s18110_s1 + $0xffc] ss:$72 sps:$4 sm:$0xff]   ;;  %v13083_v46 = vld [vmem:[%s18110_s1 + $0x810] ss:$72 sps:$4 sm:$0xff]  }
 0x2c4   : > { %6471 = vmatprep.subr.bf16.mxu1 %v12842_v39  ;;  %v5924_v39 = vpop.f32.mrb[7].mxu0  ;;  %v13091_v42 = vld [vmem:[%s18110_s1 + $0x934] ss:$72 sps:$4 sm:$0xff]  }
 0x2c5   : > { %v6711_v48 = vmul.f32 0.125, %v11847_v36  ;;  %v12944_v36 = vld [vmem:[%s18110_s1 + $0x11ac] ss:$72 sps:$4 sm:$0xff]  }
 0x2c7   : > { %6472 = vmatpush1.bf16.msra.mxu1 %v12840_v7  ;;  %v6706_v7 = vmul.f32 0.125, %v11846_v32  ;;  %v16121_v54 = vpack.c.bf16 %v6711_v48, %v6705_v35  ;;  %v12938_v32 = vld [vmem:[%s18110_s1 + $0x111c] ss:$72 sps:$4 sm:$0xff]   ;;  %v12936_v35 = vld [vmem:[%s18110_s1 + $0x1118] ss:$72 sps:$4 sm:$0xff]  }
 0x2c8   : > { %6473 = vmatprep.subr.bf16.mxu1 %v12848_v33  ;;  %v11848_v33 = vadd.f32 %v5924_v39, %v1123_v27  ;;  %v13077_v27 = vld [vmem:[%s18110_s1 + $0x6f0] ss:$72 sps:$4 sm:$0xff]   ;;  %v13086_v39 = vld [vmem:[%s18110_s1 + $0x8a0] ss:$72 sps:$4 sm:$0xff]  }
 0x2c9   : > { %v12948_v48 = vld [vmem:[%s18110_s1 + $0x1238] ss:$72 sps:$4 sm:$0xff]  }
 0x2cb   : > { %6474 = vmatpush1.bf16.msra.mxu1 %v12846_v52  ;;  %v6712_v52 = vmul.f32 0.125, %v11848_v33  ;;  %v13089_v33 = vld [vmem:[%s18110_s1 + $0x930] ss:$72 sps:$4 sm:$0xff]  }
 0x2cc   : > { %6486 = vmatprep.subr.bf16.mxu1 %v12854_v53  ;;  %v13064_v53 = vld [vmem:[%s18110_s1 + $0x424] ss:$72 sps:$4 sm:$0xff]  }
 0x2cd   : > { %6328 = vmatprep.subr.bf16.mxu0 %v13064_v53  ;;  %v13092_v53 = vld [vmem:[%s18110_s1 + $0x9c0] ss:$72 sps:$4 sm:$0xff]  }
 0x2ce   : > { %6476 = vmatmul.mubr.bf16.vlgmr.msra.gmra.mrb[16].mxu1 %v16032_v60  ;;  %6329 = vmatpush1.bf16.msra.mxu0 %v13062_v56  ;;  %v13097_v56 = vld [vmem:[%s18110_s1 + $0xa54] ss:$72 sps:$4 sm:$0xff]  }
 0x2cf   : > { %6487 = vmatpush1.bf16.msra.mxu1 %v12852_v57  ;;  %6518 = vmatprep.mubr.bf16.mxu1 %v16045_v1  ;;  %v12894_v57 = vld [vmem:[%s18110_s1 + $0xd28] ss:$72 sps:$4 sm:$0xff]  }
 0x2d0   : > { %6488 = vmatprep.subr.bf16.mxu1 %v12860_v59  ;;  %v16129_v59 = vpack.c.bf16 %v6712_v52, %v6706_v7  ;;  %6330 = vmatprep.subr.bf16.mxu0 %v13067_v28  ;;  %v12950_v7 = vld [vmem:[%s18110_s1 + $0x123c] ss:$72 sps:$4 sm:$0xff]   ;;  %v12956_v52 = vld [vmem:[%s18110_s1 + $0x12cc] ss:$72 sps:$4 sm:$0xff]  }
 0x2d1   : > { %v12968_v28 = vld [vmem:[%s18110_s1 + $0x13ec] ss:$72 sps:$4 sm:$0xff]  }
 0x2d2   : > { %6331 = vmatpush1.bf16.msra.mxu0 %v13065_v63  ;;  %v13103_v63 = vld [vmem:[%s18110_s1 + $0xb74] ss:$72 sps:$4 sm:$0xff]  }
 0x2d3   : > { %6489 = vmatpush1.bf16.msra.mxu1 %v12858_v0  ;;  %v13070_v0 = vld [vmem:[%s18110_s1 + $0x544] ss:$72 sps:$4 sm:$0xff]  }
 0x2d4   : > { %6490 = vmatprep.subr.bf16.mxu1 %v12866_v2  ;;  %v12900_v2 = vld [vmem:[%s18110_s1 + $0xdb8] ss:$72 sps:$4 sm:$0xff]   ;;  %6332 = vmatprep.subr.bf16.mxu0 %v13070_v0  ;;  %v12966_v0 = vld [vmem:[%s18110_s1 + $0x13e8] ss:$72 sps:$4 sm:$0xff]  }
 0x2d7   : > { %6491 = vmatpush1.bf16.msra.mxu1 %v12864_v11  ;;  %v13068_v11 = vld [vmem:[%s18110_s1 + $0x540] ss:$72 sps:$4 sm:$0xff]  }
 0x2d8   : > { %6492 = vmatprep.subr.bf16.mxu1 %v12872_v58  ;;  %v13073_v58 = vld [vmem:[%s18110_s1 + $0x5d4] ss:$72 sps:$4 sm:$0xff]   ;;  %6333 = vmatpush1.bf16.msra.mxu0 %v13068_v11  ;;  %v13106_v11 = vld [vmem:[%s18110_s1 + $0xc04] ss:$72 sps:$4 sm:$0xff]  }
 0x2d9   : > { %6334 = vmatprep.subr.bf16.mxu0 %v13073_v58  ;;  %v12972_v58 = vld [vmem:[%s18110_s1 + $0x1478] ss:$72 sps:$4 sm:$0xff]  }
 0x2db   : > { %6493 = vmatpush1.bf16.msra.mxu1 %v12870_v50  ;;  %v13076_v50 = vld [vmem:[%s18110_s1 + $0x664] ss:$72 sps:$4 sm:$0xff]  }
 0x2dc   : > { %6494 = vmatprep.subr.bf16.mxu1 %v12878_v10  ;;  %v12912_v10 = vld [vmem:[%s18110_s1 + $0xed8] ss:$72 sps:$4 sm:$0xff]   ;;  %6335 = vmatpush1.bf16.msra.mxu0 %v13071_v15  ;;  %v13109_v15 = vld [vmem:[%s18110_s1 + $0xc94] ss:$72 sps:$4 sm:$0xff]  }
 0x2dd   : > { %6336 = vmatprep.subr.bf16.mxu0 %v13076_v50  ;;  %v12978_v50 = vld [vmem:[%s18110_s1 + $0x1508] ss:$72 sps:$4 sm:$0xff]  }
 0x2df   : > { %6495 = vmatpush1.bf16.msra.mxu1 %v12876_v17  ;;  %v13074_v17 = vld [vmem:[%s18110_s1 + $0x660] ss:$72 sps:$4 sm:$0xff]  }
 0x2e0   : > { %6496 = vmatprep.subr.bf16.mxu1 %v12884_v24  ;;  %v12918_v24 = vld [vmem:[%s18110_s1 + $0xf68] ss:$72 sps:$4 sm:$0xff]   ;;  %6337 = vmatpush1.bf16.msra.mxu0 %v13074_v17  ;;  %v13112_v17 = vld [vmem:[%s18110_s1 + $0xd24] ss:$72 sps:$4 sm:$0xff]  }
 0x2e1   : > { %6338 = vmatprep.subr.bf16.mxu0 %v13079_v20  ;;  %v12984_v20 = vld [vmem:[%s18110_s1 + $0x1598] ss:$72 sps:$4 sm:$0xff]  }
 0x2e3   : > { %6497 = vmatpush1.bf16.msra.mxu1 %v12882_v29  ;;  %v12924_v29 = vld [vmem:[%s18110_s1 + $0xff8] ss:$72 sps:$4 sm:$0xff]  }
 0x2e4   : > { %6498 = vmatprep.subr.bf16.mxu1 %v12890_v23  ;;  %6339 = vmatpush1.bf16.msra.mxu0 %v13077_v27  ;;  %v13080_v23 = vld [vmem:[%s18110_s1 + $0x780] ss:$72 sps:$4 sm:$0xff]   ;;  %v13115_v27 = vld [vmem:[%s18110_s1 + $0xdb4] ss:$72 sps:$4 sm:$0xff]  }
 0x2e5   : > { %6340 = vmatprep.subr.bf16.mxu0 %v13082_v19  ;;  %v12990_v19 = vld [vmem:[%s18110_s1 + $0x1628] ss:$72 sps:$4 sm:$0xff]  }
 0x2e7   : > { %6499 = vmatpush1.bf16.msra.mxu1 %v12888_v45  ;;  %v12942_v45 = vld [vmem:[%s18110_s1 + $0x11a8] ss:$72 sps:$4 sm:$0xff]  }
 0x2e8   : > { %6500 = vmatprep.subr.bf16.mxu1 %v12896_v47  ;;  %6341 = vmatpush1.bf16.msra.mxu0 %v13080_v23  ;;  %v13094_v47 = vld [vmem:[%s18110_s1 + $0x9c4] ss:$72 sps:$4 sm:$0xff]  }
 0x2e9   : > { %6342 = vmatprep.subr.bf16.mxu0 %v13085_v31  ;;  %v13118_v23 = vld [vmem:[%s18110_s1 + $0xe44] ss:$72 sps:$4 sm:$0xff]   ;;  %v12996_v31 = vld [vmem:[%s18110_s1 + $0x16b8] ss:$72 sps:$4 sm:$0xff]  }
 0x2eb   : > { %6501 = vmatpush1.bf16.msra.mxu1 %v12894_v57  ;;  %v12954_v57 = vld [vmem:[%s18110_s1 + $0x12c8] ss:$72 sps:$4 sm:$0xff]  }
 0x2ec   : > { %6502 = vmatprep.subr.bf16.mxu1 %v12902_v30  ;;  %6343 = vmatpush1.bf16.msra.mxu0 %v13083_v46  ;;  %v13098_v30 = vld [vmem:[%s18110_s1 + $0xae0] ss:$72 sps:$4 sm:$0xff]   ;;  %v13121_v46 = vld [vmem:[%s18110_s1 + $0xed4] ss:$72 sps:$4 sm:$0xff]  }
 0x2ed   : > { %6344 = vmatprep.subr.bf16.mxu0 %v13088_v34  ;;  %v13002_v34 = vld [vmem:[%s18110_s1 + $0x1748] ss:$72 sps:$4 sm:$0xff]  }
 0x2ef   : > { %6503 = vmatpush1.bf16.msra.mxu1 %v12900_v2  ;;  %v12974_v2 = vld [vmem:[%s18110_s1 + $0x147c] ss:$72 sps:$4 sm:$0xff]  }
 0x2f0   : > { %6504 = vmatprep.subr.bf16.mxu1 %v12908_v5  ;;  %6345 = vmatpush1.bf16.msra.mxu0 %v13086_v39  ;;  %v13101_v5 = vld [vmem:[%s18110_s1 + $0xb70] ss:$72 sps:$4 sm:$0xff]   ;;  %v13124_v39 = vld [vmem:[%s18110_s1 + $0xf64] ss:$72 sps:$4 sm:$0xff]  }
 0x2f1   : > { %6357 = vmatprep.subr.bf16.mxu0 %v13091_v42  ;;  %v13008_v42 = vld [vmem:[%s18110_s1 + $0x17d8] ss:$72 sps:$4 sm:$0xff]  }
 0x2f3   : > { %6505 = vmatpush1.bf16.msra.mxu1 %v12906_v14  ;;  %6347 = vmatmul.mubr.bf16.vlgmr.msra.gmra.mrb[12].mxu0 %v16032_v60  ;;  %v12962_v60 = vld [vmem:[%s18110_s1 + $0x135c] ss:$72 sps:$4 sm:$0xff]   ;;  %v12980_v14 = vld [vmem:[%s18110_s1 + $0x150c] ss:$72 sps:$4 sm:$0xff]  }
 0x2f4   : > { %6506 = vmatprep.subr.bf16.mxu1 %v12914_v62  ;;  %6358 = vmatpush1.bf16.msra.mxu0 %v13089_v33  ;;  %v13104_v62 = vld [vmem:[%s18110_s1 + $0xc00] ss:$72 sps:$4 sm:$0xff]   ;;  %v13127_v33 = vld [vmem:[%s18110_s1 + $0xff4] ss:$72 sps:$4 sm:$0xff]  }
 0x2f5   : > { %6389 = vmatprep.mubr.bf16.mxu0 %v16045_v1  ;;  %6359 = vmatprep.subr.bf16.mxu0 %v13094_v47  ;;  %v13100_v1 = vld [vmem:[%s18110_s1 + $0xae4] ss:$72 sps:$4 sm:$0xff]   ;;  %v13014_v47 = vld [vmem:[%s18110_s1 + $0x1868] ss:$72 sps:$4 sm:$0xff]  }
 0x2f7   : > { %6507 = vmatpush1.bf16.msra.mxu1 %v12912_v10  ;;  %v12986_v10 = vld [vmem:[%s18110_s1 + $0x159c] ss:$72 sps:$4 sm:$0xff]  }
 0x2f8   : > { %6508 = vmatprep.subr.bf16.mxu1 %v12920_v49  ;;  %6360 = vmatpush1.bf16.msra.mxu0 %v13092_v53  ;;  %v13107_v49 = vld [vmem:[%s18110_s1 + $0xc90] ss:$72 sps:$4 sm:$0xff]   ;;  %v13130_v53 = vld [vmem:[%s18110_s1 + $0x1084] ss:$72 sps:$4 sm:$0xff]  }
 0x2f9   : > { %6361 = vmatprep.subr.bf16.mxu0 %v13097_v56  ;;  %v13020_v56 = vld [vmem:[%s18110_s1 + $0x18f8] ss:$72 sps:$4 sm:$0xff]  }
 0x2fb   : > { %6509 = vmatpush1.bf16.msra.mxu1 %v12918_v24  ;;  %v12992_v24 = vld [vmem:[%s18110_s1 + $0x162c] ss:$72 sps:$4 sm:$0xff]  }
 0x2fc   : > { %6510 = vmatprep.subr.bf16.mxu1 %v12926_v25  ;;  %v13110_v25 = vld [vmem:[%s18110_s1 + $0xd20] ss:$72 sps:$4 sm:$0xff]  }
 0x2ff   : > { %6511 = vmatpush1.bf16.msra.mxu1 %v12924_v29  ;;  %v12998_v29 = vld [vmem:[%s18110_s1 + $0x16bc] ss:$72 sps:$4 sm:$0xff]  }
 0x300   : > { %6512 = vmatprep.subr.bf16.mxu1 %v12932_v21  ;;  %v13113_v21 = vld [vmem:[%s18110_s1 + $0xdb0] ss:$72 sps:$4 sm:$0xff]  }
 0x303   : > { %6513 = vmatpush1.bf16.msra.mxu1 %v12930_v26  ;;  %v13004_v26 = vld [vmem:[%s18110_s1 + $0x174c] ss:$72 sps:$4 sm:$0xff]  }
 0x304   : > { %6514 = vmatprep.subr.bf16.mxu1 %v12938_v32  ;;  %v13116_v32 = vld [vmem:[%s18110_s1 + $0xe40] ss:$72 sps:$4 sm:$0xff]  }
 0x307   : > { %6515 = vmatpush1.bf16.msra.mxu1 %v12936_v35  ;;  %v13010_v35 = vld [vmem:[%s18110_s1 + $0x17dc] ss:$72 sps:$4 sm:$0xff]  }
 0x308   : > { %6516 = vmatprep.subr.bf16.mxu1 %v12944_v36  ;;  %v13119_v36 = vld [vmem:[%s18110_s1 + $0xed0] ss:$72 sps:$4 sm:$0xff]  }
 0x30b   : > { %6517 = vmatpush1.bf16.msra.mxu1 %v12942_v45  ;;  %v13016_v45 = vld [vmem:[%s18110_s1 + $0x186c] ss:$72 sps:$4 sm:$0xff]  }
 0x30c   : > { %6529 = vmatprep.subr.bf16.mxu1 %v12950_v7  ;;  %v13122_v7 = vld [vmem:[%s18110_s1 + $0xf60] ss:$72 sps:$4 sm:$0xff]  }
 0x30e   : > { %6519 = vmatmul.mubr.bf16.vlgmr.msra.gmra.mrb[16].mxu1 %v15614_v12  ;;  %v13095_v12 = vld [vmem:[%s18110_s1 + $0xa50] ss:$72 sps:$4 sm:$0xff]  }
 0x30f   : > { %6530 = vmatpush1.bf16.msra.mxu1 %v12948_v48  ;;  %6561 = vmatprep.mubr.bf16.mxu1 %v15621_v13  ;;  %v12960_v13 = vld [vmem:[%s18110_s1 + $0x1358] ss:$72 sps:$4 sm:$0xff]   ;;  %v13022_v48 = vld [vmem:[%s18110_s1 + $0x18fc] ss:$72 sps:$4 sm:$0xff]  }
 0x310   : > { %6531 = vmatprep.subr.bf16.mxu1 %v12956_v52  ;;  %6362 = vmatpush1.bf16.msra.mxu0 %v13095_v12  ;;  %v13125_v52 = vld [vmem:[%s18110_s1 + $0xff0] ss:$72 sps:$4 sm:$0xff]   ;;  %v13133_v12 = vld [vmem:[%s18110_s1 + $0x1114] ss:$72 sps:$4 sm:$0xff]  }
 0x311   : > { %6363 = vmatprep.subr.bf16.mxu0 %v13100_v1  ;;  %v13026_v1 = vld [vmem:[%s18110_s1 + $0x1988] ss:$72 sps:$4 sm:$0xff]  }
 0x313   : > { %6532 = vmatpush1.bf16.msra.mxu1 %v12954_v57  ;;  %v13028_v57 = vld [vmem:[%s18110_s1 + $0x198c] ss:$72 sps:$4 sm:$0xff]  }
 0x314   : > { %6533 = vmatprep.subr.bf16.mxu1 %v12962_v60  ;;  %6364 = vmatpush1.bf16.msra.mxu0 %v13098_v30  ;;  %v13128_v60 = vld [vmem:[%s18110_s1 + $0x1080] ss:$72 sps:$4 sm:$0xff]   ;;  %v13136_v30 = vld [vmem:[%s18110_s1 + $0x11a4] ss:$72 sps:$4 sm:$0xff]  }
 0x315   : > { %6365 = vmatprep.subr.bf16.mxu0 %v13103_v63  ;;  %v13032_v63 = vld [vmem:[%s18110_s1 + $0x1a18] ss:$72 sps:$4 sm:$0xff]  }
 0x317   : > { %6534 = vmatpush1.bf16.msra.mxu1 %v12960_v13  ;;  %v13034_v13 = vld [vmem:[%s18110_s1 + $0x1a1c] ss:$72 sps:$4 sm:$0xff]  }
 0x318   : > { %6535 = vmatprep.subr.bf16.mxu1 %v12968_v28  ;;  %6366 = vmatpush1.bf16.msra.mxu0 %v13101_v5  ;;  %v13131_v28 = vld [vmem:[%s18110_s1 + $0x1110] ss:$72 sps:$4 sm:$0xff]   ;;  %v13139_v5 = vld [vmem:[%s18110_s1 + $0x1234] ss:$72 sps:$4 sm:$0xff]  }
 0x319   : > { %6367 = vmatprep.subr.bf16.mxu0 %v13106_v11  ;;  %v13038_v11 = vld [vmem:[%s18110_s1 + $0x1aa8] ss:$72 sps:$4 sm:$0xff]  }
 0x31b   : > { %6536 = vmatpush1.bf16.msra.mxu1 %v12966_v0  ;;  %v13040_v0 = vld [vmem:[%s18110_s1 + $0x1aac] ss:$72 sps:$4 sm:$0xff]  }
 0x31c   : > { %6537 = vmatprep.subr.bf16.mxu1 %v12974_v2  ;;  %6368 = vmatpush1.bf16.msra.mxu0 %v13104_v62  ;;  %v13134_v2 = vld [vmem:[%s18110_s1 + $0x11a0] ss:$72 sps:$4 sm:$0xff]   ;;  %v13945_v62 = vmov 0.0  }
 0x31d   : > { %6369 = vmatprep.subr.bf16.mxu0 %v13109_v15  ;;  %v13874_v15 = vld [vmem:[%s14169_s25 + $0x8] ss:$24 sps:$4 sm:$0xff]  }
 0x31f   : > { %6538 = vmatpush1.bf16.msra.mxu1 %v12972_v58  ;;  %v13137_v58 = vld [vmem:[%s18110_s1 + $0x1230] ss:$72 sps:$4 sm:$0xff]  }
 0x320   : > { %6539 = vmatprep.subr.bf16.mxu1 %v12980_v14  ;;  %6370 = vmatpush1.bf16.msra.mxu0 %v13107_v49  ;;  %v13142_v14 = vld [vmem:[%s18110_s1 + $0x12c4] ss:$72 sps:$4 sm:$0xff]   ;;  %v13145_v49 = vld [vmem:[%s18110_s1 + $0x1354] ss:$72 sps:$4 sm:$0xff]  }
 0x321   : > { %6371 = vmatprep.subr.bf16.mxu0 %v13112_v17  ;;  %v13143_v17 = vld [vmem:[%s18110_s1 + $0x1350] ss:$72 sps:$4 sm:$0xff]  }
 0x323   : > { %6540 = vmatpush1.bf16.msra.mxu1 %v12978_v50  ;;  %v13140_v50 = vld [vmem:[%s18110_s1 + $0x12c0] ss:$72 sps:$4 sm:$0xff]  }
 0x324   : > { %6541 = vmatprep.subr.bf16.mxu1 %v12986_v10  ;;  %6372 = vmatpush1.bf16.msra.mxu0 %v13110_v25  ;;  %v13875_v10 = vld [vmem:[%s14169_s25 + $0x14] ss:$24 sps:$4 sm:$0xff]   ;;  %v13146_v25 = vld [vmem:[%s18110_s1 + $0x13e0] ss:$72 sps:$4 sm:$0xff]  }
 0x325   : > { %6373 = vmatprep.subr.bf16.mxu0 %v13115_v27  ;;  %v13151_v27 = vld [vmem:[%s18110_s1 + $0x1474] ss:$72 sps:$4 sm:$0xff]  }
 0x327   : > { %6542 = vmatpush1.bf16.msra.mxu1 %v12984_v20  ;;  %v13148_v20 = vld [vmem:[%s18110_s1 + $0x13e4] ss:$72 sps:$4 sm:$0xff]  }
 0x328   : > { %6543 = vmatprep.subr.bf16.mxu1 %v12992_v24  ;;  %6374 = vmatpush1.bf16.msra.mxu0 %v13113_v21  ;;  %v6736_v24 = vsel %vm6731_vm1, %v15908_v6, 0  ;;  %v16472_v21 = vld [vmem:[%s18111_s2 + $0x8] sm:$0xff] }
 0x329   : > { %6375 = vmatprep.subr.bf16.mxu0 %v13118_v23  ;;  %v13152_v23 = vld [vmem:[%s18110_s1 + $0x1500] ss:$72 sps:$4 sm:$0xff]  }
 0x32b   : > { %6544 = vmatpush1.bf16.msra.mxu1 %v12990_v19  ;;  %v13149_v19 = vld [vmem:[%s18110_s1 + $0x1470] ss:$72 sps:$4 sm:$0xff]  }
 0x32c   : > { %6545 = vmatprep.subr.bf16.mxu1 %v12998_v29  ;;  %6376 = vmatpush1.bf16.msra.mxu0 %v13116_v32  ;;  %v13154_v29 = vld [vmem:[%s18110_s1 + $0x1504] ss:$72 sps:$4 sm:$0xff]  }
 0x32d   : > { %6377 = vmatprep.subr.bf16.mxu0 %v13121_v46  ;;  %v1147_v46 = vrot.slane %v16472_v21, %v15245_v43 }
 0x32f   : > { %6546 = vmatpush1.bf16.msra.mxu1 %v12996_v31  ;;  %v13157_v31 = vld [vmem:[%s18110_s1 + $0x1594] ss:$72 sps:$4 sm:$0xff]  }
 0x330   : > { %6547 = vmatprep.subr.bf16.mxu1 %v13004_v26  ;;  %6378 = vmatpush1.bf16.msra.mxu0 %v13119_v36  ;;  %v1143_v26 = vrot.slane %v16472_v21, %v15239_v41  ;;  %v13160_v36 = vld [vmem:[%s18110_s1 + $0x1624] ss:$72 sps:$4 sm:$0xff]  }
 0x331   : > { %6379 = vmatprep.subr.bf16.mxu0 %v13124_v39 }
 0x333   : > { %6548 = vmatpush1.bf16.msra.mxu1 %v13002_v34  ;;  %v13155_v34 = vld [vmem:[%s18110_s1 + $0x1590] ss:$72 sps:$4 sm:$0xff]  }
 0x334   : > { %6549 = vmatprep.subr.bf16.mxu1 %v13010_v35  ;;  %6380 = vmatpush1.bf16.msra.mxu0 %v13122_v7 }
 0x335   : > { %6381 = vmatprep.subr.bf16.mxu0 %v13127_v33 }
 0x337   : > { %6550 = vmatpush1.bf16.msra.mxu1 %v13008_v42 }
 0x338   : > { %6551 = vmatprep.subr.bf16.mxu1 %v13016_v45  ;;  %6382 = vmatpush1.bf16.msra.mxu0 %v13125_v52 }
 0x339   : > { %6383 = vmatprep.subr.bf16.mxu0 %v13130_v53  ;;  %v13163_v53 = vld [vmem:[%s18110_s1 + $0x16b4] ss:$72 sps:$4 sm:$0xff]  }
 0x33b   : > { %6552 = vmatpush1.bf16.msra.mxu1 %v13014_v47 }
 0x33c   : > { %6553 = vmatprep.subr.bf16.mxu1 %v13022_v48  ;;  %6384 = vmatpush1.bf16.msra.mxu0 %v13128_v60  ;;  %v13158_v48 = vld [vmem:[%s18110_s1 + $0x1620] ss:$72 sps:$4 sm:$0xff]   ;;  %v13166_v60 = vld [vmem:[%s18110_s1 + $0x1744] ss:$72 sps:$4 sm:$0xff]  }
 0x33d   : > { %6385 = vmatprep.subr.bf16.mxu0 %v13133_v12  ;;  %v13164_v12 = vld [vmem:[%s18110_s1 + $0x1740] ss:$72 sps:$4 sm:$0xff]  }
 0x33f   : > { %6554 = vmatpush1.bf16.msra.mxu1 %v13020_v56 }
 0x340   : > { %6555 = vmatprep.subr.bf16.mxu1 %v13028_v57  ;;  %6386 = vmatpush1.bf16.msra.mxu0 %v13131_v28  ;;  %v13161_v57 = vld [vmem:[%s18110_s1 + $0x16b0] ss:$72 sps:$4 sm:$0xff]   ;;  %v13172_v28 = vld [vmem:[%s18110_s1 + $0x1864] ss:$72 sps:$4 sm:$0xff]  }
 0x341   : > { %6387 = vmatprep.subr.bf16.mxu0 %v13136_v30  ;;  %v13170_v30 = vld [vmem:[%s18110_s1 + $0x1860] ss:$72 sps:$4 sm:$0xff]  }
 0x343   : > { %6556 = vmatpush1.bf16.msra.mxu1 %v13026_v1  ;;  %v13169_v1 = vld [vmem:[%s18110_s1 + $0x17d4] ss:$72 sps:$4 sm:$0xff]  }
 0x344   : > { %6557 = vmatprep.subr.bf16.mxu1 %v13034_v13  ;;  %6388 = vmatpush1.bf16.msra.mxu0 %v13134_v2  ;;  %v13167_v13 = vld [vmem:[%s18110_s1 + $0x17d0] ss:$72 sps:$4 sm:$0xff]   ;;  %v13178_v2 = vld [vmem:[%s18110_s1 + $0x1984] ss:$72 sps:$4 sm:$0xff]  }
 0x345   : > { %6400 = vmatprep.subr.bf16.mxu0 %v13139_v5  ;;  %v13176_v5 = vld [vmem:[%s18110_s1 + $0x1980] ss:$72 sps:$4 sm:$0xff]  }
 0x347   : > { %6558 = vmatpush1.bf16.msra.mxu1 %v13032_v63  ;;  %6390 = vmatmul.mubr.bf16.vlgmr.msra.gmra.mrb[12].mxu0 %v13874_v15  ;;  %v13175_v63 = vld [vmem:[%s18110_s1 + $0x18f4] ss:$72 sps:$4 sm:$0xff]   ;;  %v13182_v15 = vld [vmem:[%s18110_s1 + $0x1aa0] ss:$72 sps:$4 sm:$0xff]  }
 0x348   : > { %6559 = vmatprep.subr.bf16.mxu1 %v13040_v0  ;;  %6401 = vmatpush1.bf16.msra.mxu0 %v13137_v58  ;;  %v13173_v0 = vld [vmem:[%s18110_s1 + $0x18f0] ss:$72 sps:$4 sm:$0xff]  }
 0x349   : > { %6432 = vmatprep.mubr.bf16.mxu0 %v13875_v10  ;;  %6402 = vmatprep.subr.bf16.mxu0 %v13142_v14  ;;  %v13179_v58 = vld [vmem:[%s18110_s1 + $0x1a10] ss:$72 sps:$4 sm:$0xff]   ;;  %v13184_v14 = vld [vmem:[%s18110_s1 + $0x1aa4] ss:$72 sps:$4 sm:$0xff]   ;;  %v1139_v10 = vrot.slane %v16472_v21, %v14822_v8 }
 0x34b   : > { %6560 = vmatpush1.bf16.msra.mxu1 %v13038_v11  ;;  %v13181_v11 = vld [vmem:[%s18110_s1 + $0x1a14] ss:$72 sps:$4 sm:$0xff]  }
 0x34c   : > { %11689 = vmatprep.subr.bf16.mxu1 %v13945_v62  ;;  %6403 = vmatpush1.bf16.msra.mxu0 %v13140_v50  ;;  %v1135_v50 = vrot.slane %v16472_v21, %v14813_v3 }
 0x34d   : > { %6404 = vmatprep.subr.bf16.mxu0 %v13145_v49 }
 0x34e   : > { %6562 = vmatmul.mubr.bf16.vlgmr.msra.gmra.mrb[16].mxu1 %v15816_v55 }
 0x34f   : > { %11691 = vmatprep.mubr.msk.bf16.mxu1 %vm13946_vm0, %v13945_v62 }
 0x350   : > { %6405 = vmatpush1.bf16.msra.mxu0 %v13143_v17 }
 0x351   : > { %6406 = vmatprep.subr.bf16.mxu0 %v13148_v20 }
 0x354   : > { %11690 = vmatpush3.bf16.xpose.msra.mxu1 %v6736_v24  ;;  %6407 = vmatpush1.bf16.msra.mxu0 %v13146_v25 }
 0x355   : > { %11695 = vmatprep.subr.bf16.mxu1 %v13945_v62  ;;  %6408 = vmatprep.subr.bf16.mxu0 %v13151_v27 }
 0x358   : > { %6409 = vmatpush1.bf16.msra.mxu0 %v13149_v19 }
 0x359   : > { %6410 = vmatprep.subr.bf16.mxu0 %v13154_v29 }
 0x35b   : > { %11692 = vmatmul.mubr.msk.bf16.vlgmr.msra.gmra.mrb[20].mxu1 %vm6731_vm1, %v14869_v38 }
 0x35c   : > { %11697 = vmatprep.mubr.msk.bf16.mxu1 %vm13946_vm0, %v13945_v62  ;;  %6411 = vmatpush1.bf16.msra.mxu0 %v13152_v23 }
 0x35d   : > { %6412 = vmatprep.subr.bf16.mxu0 %v13157_v31 }
 0x360   : > { %6413 = vmatpush1.bf16.msra.mxu0 %v13155_v34 }
 0x361   : > { %v6305_v32 = vpop.f32.mrb[12].mxu1  ;;  %6414 = vmatprep.subr.bf16.mxu0 %v13160_v36 }
 0x362   : > { %v6307_v35 = vpop.f32.mrb[13].mxu1  ;;  %v11857_v42 = vadd.f32 %v6305_v32, %v1143_v26 }
 0x363   : > { %v6309_v39 = vpop.f32.mrb[14].mxu1  ;;  %v11858_v33 = vadd.f32 %v6307_v35, %v1147_v46 }
 0x364   : > { %v11859_v45 = vadd.f32 %v6309_v39, %v1143_v26  ;;  %v6311_v7 = vpop.f32.mrb[15].mxu1  ;;  %6415 = vmatpush1.bf16.msra.mxu0 %v13158_v48  ;;  %v1163_v26 = vrot.slane %v16472_v21, %v1130_v44 }
 0x365   : > { %v11860_v47 = vadd.f32 %v6311_v7, %v1147_v46  ;;  %6416 = vmatprep.subr.bf16.mxu0 %v13163_v53  ;;  %v1151_v53 = vrot.slane %v16472_v21, %v16082_v18 }
 0x366   : > { %v16493_v52 = vpack.c.bf16 %v11859_v45, %v11857_v42 }
 0x367   : > { %v16498_v56 = vpack.c.bf16 %v11860_v47, %v11858_v33 }
 0x368   : > { %6417 = vmatpush1.bf16.msra.mxu0 %v13161_v57  ;;  %v1155_v57 = vrot.slane %v16472_v21, %v16085_v51 }
 0x369   : > { %6418 = vmatprep.subr.bf16.mxu0 %v13166_v60 }
 0x36c   : > { %6419 = vmatpush1.bf16.msra.mxu0 %v13164_v12 }
 0x36d   : > { %6420 = vmatprep.subr.bf16.mxu0 %v13169_v1 }
 0x370   : > { %6421 = vmatpush1.bf16.msra.mxu0 %v13167_v13 }
 0x371   : > { %6422 = vmatprep.subr.bf16.mxu0 %v13172_v28 }
 0x374   : > { %6423 = vmatpush1.bf16.msra.mxu0 %v13170_v30 }
 0x375   : > { %6424 = vmatprep.subr.bf16.mxu0 %v13175_v63 }
 0x378   : > { %6425 = vmatpush1.bf16.msra.mxu0 %v13173_v0 }
 0x379   : > { %6426 = vmatprep.subr.bf16.mxu0 %v13178_v2 }
 0x37c   : > { %6427 = vmatpush1.bf16.msra.mxu0 %v13176_v5 }
 0x37d   : > { %6428 = vmatprep.subr.bf16.mxu0 %v13181_v11  ;;  %v6176_v49 = vpop.f32.mrb[8].mxu0 }
 0x37e   : > { %v11853_v17 = vadd.f32 %v6176_v49, %v1135_v50  ;;  %v6178_v20 = vpop.f32.mrb[9].mxu0 }
 0x37f   : > { %v11854_v24 = vadd.f32 %v6178_v20, %v1139_v10  ;;  %v6180_v25 = vpop.f32.mrb[10].mxu0 }
 0x380   : > { %6429 = vmatpush1.bf16.msra.mxu0 %v13179_v58  ;;  %v11855_v27 = vadd.f32 %v6180_v25, %v1135_v50  ;;  %v6182_v19 = vpop.f32.mrb[11].mxu0 }
 0x381   : > { %6430 = vmatprep.subr.bf16.mxu0 %v13184_v14  ;;  %v11856_v29 = vadd.f32 %v6182_v19, %v1139_v10 }
 0x382   : > { %v16551_v23 = vpack.c.bf16 %v11855_v27, %v11853_v17 }
 0x383   : > { %v16553_v31 = vpack.c.bf16 %v11856_v29, %v11854_v24 }
 0x384   : > { %6431 = vmatpush1.bf16.msra.mxu0 %v13182_v15 }
 0x387   : > { %6433 = vmatmul.mubr.bf16.vlgmr.msra.gmra.mrb[12].mxu0 %v15816_v55  ;;  %v1159_v55 = vrot.slane %v16472_v21, %v1126_v37 }
 0x388   : > { %6604 = vmatprep.mubr.bf16.mxu0 %v15823_v22 }
 0x421   : > { %v6563_v22 = vpop.f32.mrb[16].mxu1 }
 0x422   : > { %v6565_v32 = vpop.f32.mrb[17].mxu1  ;;  %v11865_v34 = vadd.f32 %v6563_v22, %v1159_v55 }
 0x423   : > { %v6567_v46 = vpop.f32.mrb[18].mxu1  ;;  %v11866_v39 = vadd.f32 %v6565_v32, %v1163_v26 }
 0x424   : > { %v11867_v35 = vadd.f32 %v6567_v46, %v1159_v55  ;;  %v6569_v36 = vpop.f32.mrb[19].mxu1 }
 0x425   : > { %v11868_v42 = vadd.f32 %v6569_v36, %v1163_v26 }
 0x426   : > { %v16561_v45 = vpack.c.bf16 %v11867_v35, %v11865_v34 }
 0x427   : > { %v16563_v7 = vpack.c.bf16 %v11868_v42, %v11866_v39 }
 0x42e   : > { %v6772_v33 = vpop.f32.mrb[20].mxu1 }
 0x42f   : > { %v11693_v47 = vpop.f32.mrb[21].mxu1  ;;  %v6780_v37 = vsel %vm6779_vm2, %v6772_v33, -inf }
 0x430   : > { %6781 = vmax.xlane.f32.xlu0 %v6780_v37  ;;  %v6775_v61 = vpop.f32.mrb[22].mxu1 }
 0x431   : > { %v11694_v48 = vpop.f32.mrb[23].mxu1  ;;  %v6783_v44 = vsel %vm6779_vm2, %v6775_v61, -inf }
 0x434   : > { %6784 = vmax.xlane.f32.xlu0 %v6783_v44 }
 0x44a   : > { %6853 = vrot.lane.b32.xlu0 %v15908_v6, %s13947_s23 }
 0x45a   : > { %v6434_v60 = vpop.f32.mrb[12].mxu0 }
 0x45b   : > { %v11861_v12 = vadd.f32 %v6434_v60, %v1151_v53  ;;  %v6436_v1 = vpop.f32.mrb[13].mxu0 }
 0x45c   : > { %v11862_v13 = vadd.f32 %v6436_v1, %v1155_v57  ;;  %v6438_v28 = vpop.f32.mrb[14].mxu0 }
 0x45d   : > { %v11863_v30 = vadd.f32 %v6438_v28, %v1151_v53  ;;  %v6440_v63 = vpop.f32.mrb[15].mxu0 }
 0x45e   : > { %v11864_v0 = vadd.f32 %v6440_v63, %v1155_v57 }
 0x45f   : > { %v16573_v2 = vpack.c.bf16 %v11863_v30, %v11861_v12 }
 0x460   : > { %v16575_v5 = vpack.c.bf16 %v11864_v0, %v11862_v13 }
 0x461   : > { %11696 = vmatpush3.bf16.msra.mxu1 %v16573_v2 }
 0x462   : > { %11701 = vmatprep.subr.bf16.mxu1 %v13945_v62 }
 0x4bd   : > { %v6782_v6 = vpop.xlane.xlu0 %6781 }
 0x4be   : > { %v6786_v11 = vsub.f32 %v6772_v33, %v6782_v6 }
 0x4c0   : > { %v6788_v58 = vmul.f32 1.442695, %v6786_v11 }
 0x4c1   : > { %v6785_v21 = vpop.xlane.xlu0 %6784 }
 0x4c2   : > { %13761 = vpow2.f32 %v6788_v58  ;;  %v6787_v14 = vsub.f32 %v6775_v61, %v6785_v21 }
 0x4c4   : > { %v6790_v15 = vmul.f32 1.442695, %v6787_v14 }
 0x4c5   : > { %v6854_v55 = vpop.permute.xlu0 %6853 }
 0x4c6   : > { %13763 = vpow2.f32 %v6790_v15  ;;  %v6859_v26 = vsel %vm6731_vm1, %v6854_v55, 0 }
 0x4cc   : > { %v13762_v50 = vpop.eup %13761 }
 0x4cd   : > { %v6792_v10 = vsel %vm6779_vm2, %v13762_v50, 0.0 }
 0x4ce   : > { %6793 = vadd.xlane.f32.xlu1 %v6792_v10 }
 0x4d0   : > { %v13764_v49 = vpop.eup %13763 }
 0x4d1   : > { %v6795_v17 = vsel %vm6779_vm2, %v13764_v49, 0.0 }
 0x4d2   : > { %6796 = vadd.xlane.f32.xlu1 %v6795_v17 }
 0x4e3   : > { %6850 = vrot.lane.b32.xlu1 %v14869_v38, %s13947_s23 }
 0x55b   : > { %v6794_v20 = vpop.xlane.xlu1 %6793 }
 0x55c   : > { %13765 = vrcp.f32 %v6794_v20 }
 0x55f   : > { %v6797_v24 = vpop.xlane.xlu1 %6796 }
 0x560   : > { %13767 = vrcp.f32 %v6797_v24 }
 0x563   : > { %v6851_v38 = vpop.permute.xlu1 %6850 }
 0x566   : > { %v13766_v25 = vpop.eup %13765 }
 0x567   : > { %v6800_v19 = vmul.f32 %v13766_v25, %v13762_v50 }
 0x56a   : > { %v13768_v27 = vpop.eup %13767 }
 0x56b   : > { %v6801_v29 = vmul.f32 %v13768_v27, %v13764_v49 }
 0x56d   : > { %v6802_v22 = vpack.c.bf16 %v6801_v29, %v6800_v19 }
 0x56f   : > { %11698 = vmatmul.mubr.msk.bf16.vlgmr.msra.gmra.mrb[24].mxu1 %vm6779_vm2, %v6802_v22 }
 0x570   : > { %11702 = vmatpush3.bf16.xpose.msra.mxu1 %v6859_v26  ;;  %11703 = vmatprep.mubr.msk.bf16.mxu1 %vm13946_vm0, %v13945_v62 }
 0x571   : > { %11707 = vmatprep.subr.bf16.mxu1 %v13945_v62 }
 0x577   : > { %11704 = vmatmul.mubr.msk.bf16.vlgmr.msra.gmra.mrb[28].mxu1 %vm6731_vm1, %v6851_v38 }
 0x578   : > { %11709 = vmatprep.mubr.msk.bf16.mxu1 %vm13946_vm0, %v13945_v62 }
 0x642   : > { %v6840_v32 = vpop.f32.mrb[24].mxu1 }
 0x643   : > { %v11699_v46 = vpop.f32.mrb[25].mxu1 }
 0x644   : > { %v6843_v34 = vpop.f32.mrb[26].mxu1 }
 0x645   : > { %v6847_v35 = vpack.c.bf16 %v6843_v34, %v6840_v32  ;;  %v11700_v36 = vpop.f32.mrb[27].mxu1 }
 0x647   : > { %6848 = vst.msk [vmem:[#allocation2] sm:$0xff] %vm6731_vm1, %v6847_v35 }
 0x64a   : > { %v6895_v39 = vpop.f32.mrb[28].mxu1 }
 0x64b   : > { %v11705_v42 = vpop.f32.mrb[29].mxu1  ;;  %v6902_v33 = vsel %vm6779_vm2, %v6895_v39, -inf }
 0x64c   : > { %6903 = vmax.xlane.f32.xlu1 %v6902_v33  ;;  %v6898_v47 = vpop.f32.mrb[30].mxu1 }
 0x64d   : > { %v11706_v37 = vpop.f32.mrb[31].mxu1  ;;  %v6905_v61 = vsel %vm6779_vm2, %v6898_v47, -inf }
 0x64e   : > { %6906 = vmax.xlane.f32.xlu0 %v6905_v61 }
 0x6d9   : > { %v6904_v48 = vpop.xlane.xlu1 %6903 }
 0x6da   : > { %v6908_v44 = vsub.f32 %v6895_v39, %v6904_v48 }
 0x6db   : > { %v6907_v53 = vpop.xlane.xlu0 %6906 }
 0x6dc   : > { %v6910_v57 = vmul.f32 1.442695, %v6908_v44  ;;  %v6909_v60 = vsub.f32 %v6898_v47, %v6907_v53 }
 0x6de   : > { %13769 = vpow2.f32 %v6910_v57  ;;  %v6912_v12 = vmul.f32 1.442695, %v6909_v60 }
 0x6e0   : > { %13771 = vpow2.f32 %v6912_v12 }
 0x6e8   : > { %v13770_v1 = vpop.eup %13769 }
 0x6e9   : > { %v6914_v13 = vsel %vm6779_vm2, %v13770_v1, 0.0 }
 0x6ea   : > { %v13772_v28 = vpop.eup %13771  ;;  %6915 = vadd.xlane.f32.xlu0 %v6914_v13 }
 0x6eb   : > { %v6917_v30 = vsel %vm6779_vm2, %v13772_v28, 0.0 }
 0x6ec   : > { %6918 = vadd.xlane.f32.xlu1 %v6917_v30 }
 0x700   : > { %6926 = vrot.lane.b32.xlu0 %v16573_v2, %s13947_s23  ;;  %v6984_v2 = vsel %vm6731_vm1, %v15910_v9, 0 }
 0x704   : > { %7097 = vrot.lane.b32.xlu0 %v14874_v40, %s13947_s23 }
 0x777   : > { %v6916_v63 = vpop.xlane.xlu0 %6915 }
 0x778   : > { %13773 = vrcp.f32 %v6916_v63 }
 0x779   : > { %v6919_v0 = vpop.xlane.xlu1 %6918 }
 0x77a   : > { %13775 = vrcp.f32 %v6919_v0 }
 0x77b   : > { %v6927_v6 = vpop.permute.xlu0 %6926 }
 0x77c   : > { %11708 = vmatpush3.bf16.msra.mxu1 %v6927_v6 }
 0x77d   : > { %11713 = vmatprep.subr.bf16.mxu1 %v13945_v62 }
 0x782   : > { %v13774_v11 = vpop.eup %13773 }
 0x783   : > { %v6922_v21 = vmul.f32 %v13774_v11, %v13770_v1 }
 0x784   : > { %v13776_v58 = vpop.eup %13775 }
 0x785   : > { %v6923_v14 = vmul.f32 %v13776_v58, %v13772_v28 }
 0x787   : > { %v6924_v15 = vpack.c.bf16 %v6923_v14, %v6922_v21 }
 0x789   : > { %11710 = vmatmul.mubr.msk.bf16.vlgmr.msra.gmra.mrb[32].mxu1 %vm6779_vm2, %v6924_v15 }
 0x78a   : > { %11714 = vmatpush3.bf16.xpose.msra.mxu1 %v6984_v2  ;;  %11715 = vmatprep.mubr.msk.bf16.mxu1 %vm13946_vm0, %v13945_v62 }
 0x78b   : > { %11719 = vmatprep.subr.bf16.mxu1 %v13945_v62 }
 0x791   : > { %11716 = vmatmul.mubr.msk.bf16.vlgmr.msra.gmra.mrb[36].mxu1 %vm6731_vm1, %v14874_v40 }
 0x792   : > { %11720 = vmatpush3.bf16.msra.mxu1 %v16575_v5  ;;  %11721 = vmatprep.mubr.msk.bf16.mxu1 %vm13946_vm0, %v13945_v62 }
 0x793   : > { %11725 = vmatprep.subr.bf16.mxu1 %v13945_v62 }
 0x85c   : > { %v16613_v50 = vpop.f32.mrb[32].mxu1 }
 0x85d   : > { %v11711_v10 = vpop.f32.mrb[33].mxu1 }
 0x85e   : > { %v16615_v49 = vpop.f32.mrb[34].mxu1 }
 0x85f   : > { %v6973_v17 = vpack.c.bf16 %v16615_v49, %v16613_v50  ;;  %v11712_v20 = vpop.f32.mrb[35].mxu1  ;;  %v13379_v49 = vld [vmem:[%s18112_s3 + $0xc] ss:$24 sps:$4 sm:$0xff]  }
 0x864   : > { %v7020_v24 = vpop.f32.mrb[36].mxu1 }
 0x865   : > { %v11717_v25 = vpop.f32.mrb[37].mxu1  ;;  %v7027_v40 = vsel %vm6779_vm2, %v7020_v24, -inf }
 0x866   : > { %7028 = vmax.xlane.f32.xlu1 %v7027_v40  ;;  %v7023_v27 = vpop.f32.mrb[38].mxu1 }
 0x867   : > { %v11718_v19 = vpop.f32.mrb[39].mxu1  ;;  %v7030_v29 = vsel %vm6779_vm2, %v7023_v27, -inf }
 0x86a   : > { %7031 = vmax.xlane.f32.xlu1 %v7030_v29 }
 0x8f3   : > { %v7029_v55 = vpop.xlane.xlu1 %7028 }
 0x8f4   : > { %v7033_v22 = vsub.f32 %v7020_v24, %v7029_v55 }
 0x8f6   : > { %v7035_v26 = vmul.f32 1.442695, %v7033_v22 }
 0x8f7   : > { %v7032_v38 = vpop.xlane.xlu1 %7031 }
 0x8f8   : > { %13777 = vpow2.f32 %v7035_v26  ;;  %v7034_v32 = vsub.f32 %v7023_v27, %v7032_v38 }
 0x8fa   : > { %v7037_v46 = vmul.f32 1.442695, %v7034_v32 }
 0x8fc   : > { %13779 = vpow2.f32 %v7037_v46 }
 0x902   : > { %v13778_v34 = vpop.eup %13777 }
 0x903   : > { %v7039_v35 = vsel %vm6779_vm2, %v13778_v34, 0.0 }
 0x904   : > { %7040 = vadd.xlane.f32.xlu1 %v7039_v35 }
 0x906   : > { %v13780_v36 = vpop.eup %13779 }
 0x907   : > { %v7042_v39 = vsel %vm6779_vm2, %v13780_v36, 0.0 }
 0x908   : > { %7043 = vadd.xlane.f32.xlu1 %v7042_v39 }
 0x919   : > { %7100 = vrot.lane.b32.xlu1 %v15910_v9, %s13947_s23  ;;  %v7098_v9 = vpop.permute.xlu0 %7097 }
 0x991   : > { %v7041_v42 = vpop.xlane.xlu1 %7040 }
 0x992   : > { %13781 = vrcp.f32 %v7041_v42 }
 0x995   : > { %v7044_v33 = vpop.xlane.xlu1 %7043 }
 0x996   : > { %13783 = vrcp.f32 %v7044_v33 }
 0x999   : > { %v7101_v44 = vpop.permute.xlu1 %7100 }
 0x99a   : > { %v7106_v57 = vsel %vm6731_vm1, %v7101_v44, 0 }
 0x99c   : > { %v13782_v47 = vpop.eup %13781 }
 0x99d   : > { %v7047_v61 = vmul.f32 %v13782_v47, %v13778_v34 }
 0x9a0   : > { %v13784_v37 = vpop.eup %13783 }
 0x9a1   : > { %v7048_v48 = vmul.f32 %v13784_v37, %v13780_v36 }
 0x9a3   : > { %v7049_v53 = vpack.c.bf16 %v7048_v48, %v7047_v61 }
 0x9a5   : > { %11722 = vmatmul.mubr.msk.bf16.vlgmr.msra.gmra.mrb[40].mxu1 %vm6779_vm2, %v7049_v53 }
 0x9a6   : > { %11726 = vmatpush3.bf16.xpose.msra.mxu1 %v7106_v57  ;;  %11727 = vmatprep.mubr.msk.bf16.mxu1 %vm13946_vm0, %v13945_v62 }
 0x9a7   : > { %11731 = vmatprep.subr.bf16.mxu1 %v13945_v62 }
 0x9ad   : > { %11728 = vmatmul.mubr.msk.bf16.vlgmr.msra.gmra.mrb[44].mxu1 %vm6731_vm1, %v7098_v9 }
 0x9ae   : > { %11733 = vmatprep.mubr.msk.bf16.mxu1 %vm13946_vm0, %v13945_v62 }
 0xa78   : > { %v7087_v60 = vpop.f32.mrb[40].mxu1 }
 0xa79   : > { %v11723_v12 = vpop.f32.mrb[41].mxu1 }
 0xa7a   : > { %v7090_v1 = vpop.f32.mrb[42].mxu1 }
 0xa7b   : > { %v7094_v13 = vpack.c.bf16 %v7090_v1, %v7087_v60  ;;  %v11724_v28 = vpop.f32.mrb[43].mxu1 }
 0xa7d   : > { %7095 = vst.msk [vmem:[#allocation2 + $0x8] sm:$0xff] %vm6731_vm1, %v7094_v13 }
 0xa80   : > { %v7142_v30 = vpop.f32.mrb[44].mxu1 }
 0xa81   : > { %v11729_v63 = vpop.f32.mrb[45].mxu1  ;;  %v7149_v0 = vsel %vm6779_vm2, %v7142_v30, -inf }
 0xa82   : > { %7150 = vmax.xlane.f32.xlu0 %v7149_v0  ;;  %v7145_v6 = vpop.f32.mrb[46].mxu1 }
 0xa83   : > { %v11730_v11 = vpop.f32.mrb[47].mxu1  ;;  %v7152_v58 = vsel %vm6779_vm2, %v7145_v6, -inf }
 0xa84   : > { %7153 = vmax.xlane.f32.xlu1 %v7152_v58 }
 0xb0f   : > { %v7151_v21 = vpop.xlane.xlu0 %7150 }
 0xb10   : > { %v7155_v14 = vsub.f32 %v7142_v30, %v7151_v21 }
 0xb11   : > { %v7154_v15 = vpop.xlane.xlu1 %7153 }
 0xb12   : > { %v7157_v2 = vmul.f32 1.442695, %v7155_v14  ;;  %v7156_v10 = vsub.f32 %v7145_v6, %v7154_v15 }
 0xb14   : > { %13785 = vpow2.f32 %v7157_v2  ;;  %v7159_v20 = vmul.f32 1.442695, %v7156_v10 }
 0xb16   : > { %13787 = vpow2.f32 %v7159_v20 }
 0xb1e   : > { %v13786_v24 = vpop.eup %13785 }
 0xb1f   : > { %v7161_v25 = vsel %vm6779_vm2, %v13786_v24, 0.0 }
 0xb20   : > { %v13788_v40 = vpop.eup %13787  ;;  %7162 = vadd.xlane.f32.xlu0 %v7161_v25 }
 0xb21   : > { %v7164_v27 = vsel %vm6779_vm2, %v13788_v40, 0.0 }
 0xb24   : > { %7165 = vadd.xlane.f32.xlu0 %v7164_v27 }
 0xb3a   : > { %7173 = vrot.lane.b32.xlu0 %v16575_v5, %s13947_s23  ;;  %v7230_v5 = vsel %vm6731_vm1, %v16551_v23, 0 }
 0xb3e   : > { %7343 = vrot.lane.b32.xlu0 %v15291_v4, %s13947_s23 }
 0xbad   : > { %v7163_v19 = vpop.xlane.xlu0 %7162 }
 0xbae   : > { %13789 = vrcp.f32 %v7163_v19 }
 0xbb1   : > { %v7166_v29 = vpop.xlane.xlu0 %7165 }
 0xbb2   : > { %13791 = vrcp.f32 %v7166_v29 }
 0xbb5   : > { %v7174_v55 = vpop.permute.xlu0 %7173 }
 0xbb6   : > { %11732 = vmatpush3.bf16.msra.mxu1 %v7174_v55 }
 0xbb7   : > { %11737 = vmatprep.subr.bf16.mxu1 %v13945_v62 }
 0xbb8   : > { %v13790_v22 = vpop.eup %13789 }
 0xbb9   : > { %v7169_v38 = vmul.f32 %v13790_v22, %v13786_v24 }
 0xbbc   : > { %v13792_v26 = vpop.eup %13791 }
 0xbbd   : > { %v7170_v32 = vmul.f32 %v13792_v26, %v13788_v40 }
 0xbbf   : > { %v7171_v46 = vpack.c.bf16 %v7170_v32, %v7169_v38 }
 0xbc1   : > { %11734 = vmatmul.mubr.msk.bf16.vlgmr.msra.gmra.mrb[48].mxu1 %vm6779_vm2, %v7171_v46 }
 0xbc2   : > { %11738 = vmatpush3.bf16.xpose.msra.mxu1 %v7230_v5  ;;  %11739 = vmatprep.mubr.msk.bf16.mxu1 %vm13946_vm0, %v13945_v62 }
 0xbc3   : > { %11743 = vmatprep.subr.bf16.mxu1 %v13945_v62 }
 0xbc9   : > { %11740 = vmatmul.mubr.msk.bf16.vlgmr.msra.gmra.mrb[52].mxu1 %vm6731_vm1, %v15291_v4 }
 0xbca   : > { %11744 = vmatpush3.bf16.msra.mxu1 %v16561_v45  ;;  %11745 = vmatprep.mubr.msk.bf16.mxu1 %vm13946_vm0, %v13945_v62 }
 0xbcb   : > { %11749 = vmatprep.subr.bf16.mxu1 %v13945_v62 }
 0xc94   : > { %v16655_v34 = vpop.f32.mrb[48].mxu1 }
 0xc95   : > { %v11735_v35 = vpop.f32.mrb[49].mxu1 }
 0xc96   : > { %v16657_v36 = vpop.f32.mrb[50].mxu1 }
 0xc97   : > { %v7220_v39 = vpack.c.bf16 %v16657_v36, %v16655_v34  ;;  %v11736_v42 = vpop.f32.mrb[51].mxu1  ;;  %v13332_v34 = vld [vmem:[%s18112_s3 + $0x30] ss:$24 sps:$4 sm:$0xff]   ;;  %v13337_v36 = vld [vmem:[%s18112_s3 + $0x64] ss:$24 sps:$4 sm:$0xff]  }
 0xc9c   : > { %v7266_v33 = vpop.f32.mrb[52].mxu1 }
 0xc9d   : > { %v11741_v47 = vpop.f32.mrb[53].mxu1  ;;  %v7273_v4 = vsel %vm6779_vm2, %v7266_v33, -inf }
 0xc9e   : > { %7274 = vmax.xlane.f32.xlu1 %v7273_v4  ;;  %v7269_v37 = vpop.f32.mrb[54].mxu1 }
 0xc9f   : > { %v11742_v61 = vpop.f32.mrb[55].mxu1  ;;  %v7276_v48 = vsel %vm6779_vm2, %v7269_v37, -inf }
 0xca2   : > { %7277 = vmax.xlane.f32.xlu1 %v7276_v48 }
 0xd2b   : > { %v7275_v44 = vpop.xlane.xlu1 %7274 }
 0xd2c   : > { %v7279_v53 = vsub.f32 %v7266_v33, %v7275_v44 }
 0xd2e   : > { %v7281_v57 = vmul.f32 1.442695, %v7279_v53 }
 0xd2f   : > { %v7278_v9 = vpop.xlane.xlu1 %7277 }
 0xd30   : > { %13793 = vpow2.f32 %v7281_v57  ;;  %v7280_v60 = vsub.f32 %v7269_v37, %v7278_v9 }
 0xd32   : > { %v7283_v12 = vmul.f32 1.442695, %v7280_v60 }
 0xd34   : > { %13795 = vpow2.f32 %v7283_v12 }
 0xd3a   : > { %v13794_v1 = vpop.eup %13793 }
 0xd3b   : > { %v7285_v13 = vsel %vm6779_vm2, %v13794_v1, 0.0 }
 0xd3c   : > { %7286 = vadd.xlane.f32.xlu1 %v7285_v13 }
 0xd3e   : > { %v13796_v28 = vpop.eup %13795 }
 0xd3f   : > { %v7288_v30 = vsel %vm6779_vm2, %v13796_v28, 0.0 }
 0xd40   : > { %7289 = vadd.xlane.f32.xlu1 %v7288_v30 }
 0xd51   : > { %7346 = vrot.lane.b32.xlu1 %v16551_v23, %s13947_s23  ;;  %v7344_v23 = vpop.permute.xlu0 %7343 }
 0xdc9   : > { %v7287_v63 = vpop.xlane.xlu1 %7286 }
 0xdca   : > { %13797 = vrcp.f32 %v7287_v63 }
 0xdcd   : > { %v7290_v0 = vpop.xlane.xlu1 %7289 }
 0xdce   : > { %13799 = vrcp.f32 %v7290_v0 }
 0xdd1   : > { %v7347_v14 = vpop.permute.xlu1 %7346 }
 0xdd2   : > { %v7352_v2 = vsel %vm6731_vm1, %v7347_v14, 0 }
 0xdd4   : > { %v13798_v6 = vpop.eup %13797 }
 0xdd5   : > { %v7293_v58 = vmul.f32 %v13798_v6, %v13794_v1 }
 0xdd8   : > { %v13800_v11 = vpop.eup %13799 }
 0xdd9   : > { %v7294_v21 = vmul.f32 %v13800_v11, %v13796_v28 }
 0xddb   : > { %v7295_v15 = vpack.c.bf16 %v7294_v21, %v7293_v58 }
 0xddd   : > { %11746 = vmatmul.mubr.msk.bf16.vlgmr.msra.gmra.mrb[56].mxu1 %vm6779_vm2, %v7295_v15 }
 0xdde   : > { %11750 = vmatpush3.bf16.xpose.msra.mxu1 %v7352_v2  ;;  %11751 = vmatprep.mubr.msk.bf16.mxu1 %vm13946_vm0, %v13945_v62 }
 0xddf   : > { %11755 = vmatprep.subr.bf16.mxu1 %v13945_v62 }
 0xde5   : > { %11752 = vmatmul.mubr.msk.bf16.vlgmr.msra.gmra.mrb[60].mxu1 %vm6731_vm1, %v7344_v23 }
 0xde6   : > { %11757 = vmatprep.mubr.msk.bf16.mxu1 %vm13946_vm0, %v13945_v62 }
 0xeb0   : > { %v7333_v10 = vpop.f32.mrb[56].mxu1 }
 0xeb1   : > { %v11747_v20 = vpop.f32.mrb[57].mxu1 }
 0xeb2   : > { %v7336_v24 = vpop.f32.mrb[58].mxu1 }
 0xeb3   : > { %v7340_v25 = vpack.c.bf16 %v7336_v24, %v7333_v10  ;;  %v11748_v40 = vpop.f32.mrb[59].mxu1 }
 0xeb5   : > { %7341 = vst.msk [vmem:[#allocation2 + $0x10] sm:$0xff] %vm6731_vm1, %v7340_v25 }
 0xeb8   : > { %v7388_v27 = vpop.f32.mrb[60].mxu1 }
 0xeb9   : > { %v11753_v19 = vpop.f32.mrb[61].mxu1  ;;  %v7395_v29 = vsel %vm6779_vm2, %v7388_v27, -inf }
 0xeba   : > { %7396 = vmax.xlane.f32.xlu0 %v7395_v29  ;;  %v7391_v55 = vpop.f32.mrb[62].mxu1 }
 0xebb   : > { %v11754_v22 = vpop.f32.mrb[63].mxu1  ;;  %v7398_v26 = vsel %vm6779_vm2, %v7391_v55, -inf }
 0xebc   : > { %7399 = vmax.xlane.f32.xlu1 %v7398_v26 }
 0xf47   : > { %v7397_v38 = vpop.xlane.xlu0 %7396 }
 0xf48   : > { %v7401_v32 = vsub.f32 %v7388_v27, %v7397_v38 }
 0xf49   : > { %v7400_v46 = vpop.xlane.xlu1 %7399 }
 0xf4a   : > { %v7403_v5 = vmul.f32 1.442695, %v7401_v32  ;;  %v7402_v35 = vsub.f32 %v7391_v55, %v7400_v46 }
 0xf4c   : > { %13801 = vpow2.f32 %v7403_v5  ;;  %v7405_v42 = vmul.f32 1.442695, %v7402_v35 }
 0xf4e   : > { %13803 = vpow2.f32 %v7405_v42 }
 0xf56   : > { %v13802_v33 = vpop.eup %13801 }
 0xf57   : > { %v7407_v47 = vsel %vm6779_vm2, %v13802_v33, 0.0 }
 0xf58   : > { %v13804_v4 = vpop.eup %13803  ;;  %7408 = vadd.xlane.f32.xlu0 %v7407_v47 }
 0xf59   : > { %v7410_v37 = vsel %vm6779_vm2, %v13804_v4, 0.0 }
 0xf5c   : > { %7411 = vadd.xlane.f32.xlu0 %v7410_v37 }
 0xf72   : > { %7419 = vrot.lane.b32.xlu0 %v16561_v45, %s13947_s23  ;;  %v7476_v45 = vsel %vm6731_vm1, %v16553_v31, 0 }
 0xf76   : > { %7592 = vrot.lane.b32.xlu0 %v16553_v31, %s13947_s23 }
 0xfe5   : > { %v7409_v61 = vpop.xlane.xlu0 %7408 }
 0xfe6   : > { %13805 = vrcp.f32 %v7409_v61 }
 0xfe9   : > { %v7412_v48 = vpop.xlane.xlu0 %7411 }
 0xfea   : > { %13807 = vrcp.f32 %v7412_v48 }
 0xfed   : > { %v7420_v44 = vpop.permute.xlu0 %7419 }
 0xfee   : > { %11756 = vmatpush3.bf16.msra.mxu1 %v7420_v44 }
 0xfef   : > { %11761 = vmatprep.subr.bf16.mxu1 %v13945_v62 }
 0xff0   : > { %v13806_v53 = vpop.eup %13805 }
 0xff1   : > { %v7415_v9 = vmul.f32 %v13806_v53, %v13802_v33  ;;  %v7593_v32 = vpop.permute.xlu0 %7592 }
 0xff2   : > { %v7598_v5 = vsel %vm6731_vm1, %v7593_v32, 0  ;;  %v13212_v32 = vld [vmem:[%s18110_s1 + $0x550] ss:$72 sps:$4 sm:$0xff]  }
 0xff4   : > { %v13808_v57 = vpop.eup %13807 }
 0xff5   : > { %v7416_v60 = vmul.f32 %v13808_v57, %v13804_v4 }
 0xff7   : > { %v7417_v12 = vpack.c.bf16 %v7416_v60, %v7415_v9 }
 0xff9   : > { %11758 = vmatmul.mubr.msk.bf16.vlgmr.msra.gmra.mrb[64].mxu1 %vm6779_vm2, %v7417_v12 }
 0xffa   : > { %11762 = vmatpush3.bf16.xpose.msra.mxu1 %v7476_v45  ;;  %11763 = vmatprep.mubr.msk.bf16.mxu1 %vm13946_vm0, %v13945_v62 }
 0xffb   : > { %11767 = vmatprep.subr.bf16.mxu1 %v13945_v62 }
0x1001   : > { %11764 = vmatmul.mubr.msk.bf16.vlgmr.msra.gmra.mrb[68].mxu1 %vm6731_vm1, %v15299_v16 }
0x1002   : > { %11768 = vmatpush3.bf16.msra.mxu1 %v16563_v7  ;;  %11769 = vmatprep.mubr.msk.bf16.mxu1 %vm13946_vm0, %v13945_v62 }
0x1003   : > { %11773 = vmatprep.subr.bf16.mxu1 %v13945_v62 }
0x10cc   : > { %v16697_v1 = vpop.f32.mrb[64].mxu1 }
0x10cd   : > { %v11759_v13 = vpop.f32.mrb[65].mxu1 }
0x10ce   : > { %v16699_v31 = vpop.f32.mrb[66].mxu1 }
0x10cf   : > { %v7466_v28 = vpack.c.bf16 %v16699_v31, %v16697_v1  ;;  %v11760_v30 = vpop.f32.mrb[67].mxu1  ;;  %v13377_v31 = vld [vmem:[%s18112_s3 + $0x8] ss:$24 sps:$4 sm:$0xff]  }
0x10d4   : > { %v7512_v63 = vpop.f32.mrb[68].mxu1 }
0x10d5   : > { %v11765_v0 = vpop.f32.mrb[69].mxu1  ;;  %v7519_v6 = vsel %vm6779_vm2, %v7512_v63, -inf }
0x10d6   : > { %7520 = vmax.xlane.f32.xlu1 %v7519_v6  ;;  %v7515_v11 = vpop.f32.mrb[70].mxu1 }
0x10d7   : > { %v11766_v58 = vpop.f32.mrb[71].mxu1  ;;  %v7522_v21 = vsel %vm6779_vm2, %v7515_v11, -inf }
0x10d8   : > { %v13187_v58 = vld [vmem:[%s18110_s1 + $0x44] ss:$72 sps:$4 sm:$0xff]  }
0x10d9   : > { %6572 = vmatprep.subr.bf16.mxu0 %v13187_v58  ;;  %v13247_v58 = vld [vmem:[%s18110_s1 + $0xb84] ss:$72 sps:$4 sm:$0xff]  }
0x10da   : > { %7523 = vmax.xlane.f32.xlu1 %v7522_v21  ;;  %v13185_v21 = vld [vmem:[%s18110_s1 + $0x40] ss:$72 sps:$4 sm:$0xff]  }
0x10db   : > { %6573 = vmatpush1.bf16.msra.mxu0 %v13185_v21  ;;  %v13245_v21 = vld [vmem:[%s18110_s1 + $0xb80] ss:$72 sps:$4 sm:$0xff]  }
0x1163   : > { %v7521_v14 = vpop.xlane.xlu1 %7520 }
0x1164   : > { %v7525_v15 = vsub.f32 %v7512_v63, %v7521_v14  ;;  %v13190_v14 = vld [vmem:[%s18110_s1 + $0xd4] ss:$72 sps:$4 sm:$0xff]  }
0x1165   : > { %6574 = vmatprep.subr.bf16.mxu0 %v13190_v14  ;;  %v13250_v14 = vld [vmem:[%s18110_s1 + $0xc14] ss:$72 sps:$4 sm:$0xff]  }
0x1166   : > { %v7527_v2 = vmul.f32 1.442695, %v7525_v15  ;;  %v13188_v15 = vld [vmem:[%s18110_s1 + $0xd0] ss:$72 sps:$4 sm:$0xff]  }
0x1167   : > { %v7524_v23 = vpop.xlane.xlu1 %7523  ;;  %6575 = vmatpush1.bf16.msra.mxu0 %v13188_v15  ;;  %v13248_v15 = vld [vmem:[%s18110_s1 + $0xc10] ss:$72 sps:$4 sm:$0xff]  }
0x1168   : > { %13809 = vpow2.f32 %v7527_v2  ;;  %v7526_v10 = vsub.f32 %v7515_v11, %v7524_v23  ;;  %v13193_v2 = vld [vmem:[%s18110_s1 + $0x164] ss:$72 sps:$4 sm:$0xff]   ;;  %v13196_v23 = vld [vmem:[%s18110_s1 + $0x1f4] ss:$72 sps:$4 sm:$0xff]  }
0x1169   : > { %6576 = vmatprep.subr.bf16.mxu0 %v13193_v2  ;;  %v13253_v2 = vld [vmem:[%s18110_s1 + $0xca4] ss:$72 sps:$4 sm:$0xff]  }
0x116a   : > { %v7529_v20 = vmul.f32 1.442695, %v7526_v10  ;;  %v13194_v10 = vld [vmem:[%s18110_s1 + $0x1f0] ss:$72 sps:$4 sm:$0xff]  }
0x116c   : > { %13811 = vpow2.f32 %v7529_v20  ;;  %v13199_v20 = vld [vmem:[%s18110_s1 + $0x284] ss:$72 sps:$4 sm:$0xff]  }
0x1172   : > { %v13810_v24 = vpop.eup %13809 }
0x1173   : > { %v7531_v25 = vsel %vm6779_vm2, %v13810_v24, 0.0 }
0x1174   : > { %7532 = vadd.xlane.f32.xlu1 %v7531_v25  ;;  %v13202_v25 = vld [vmem:[%s18110_s1 + $0x314] ss:$72 sps:$4 sm:$0xff]  }
0x1176   : > { %v13812_v40 = vpop.eup %13811 }
0x1177   : > { %v7534_v27 = vsel %vm6779_vm2, %v13812_v40, 0.0 }
0x1178   : > { %7535 = vadd.xlane.f32.xlu1 %v7534_v27  ;;  %v13205_v27 = vld [vmem:[%s18110_s1 + $0x3a4] ss:$72 sps:$4 sm:$0xff]  }
0x1189   : > { %7589 = vrot.lane.b32.xlu1 %v15299_v16, %s13947_s23 }
0x1201   : > { %v7533_v19 = vpop.xlane.xlu1 %7532 }
0x1202   : > { %13813 = vrcp.f32 %v7533_v19  ;;  %v13203_v19 = vld [vmem:[%s18110_s1 + $0x3a0] ss:$72 sps:$4 sm:$0xff]  }
0x1205   : > { %v7536_v29 = vpop.xlane.xlu1 %7535 }
0x1206   : > { %13815 = vrcp.f32 %v7536_v29  ;;  %v13208_v29 = vld [vmem:[%s18110_s1 + $0x434] ss:$72 sps:$4 sm:$0xff]  }
0x1209   : > { %v7590_v16 = vpop.permute.xlu1 %7589 }
0x120c   : > { %v13814_v55 = vpop.eup %13813 }
0x120d   : > { %v7539_v26 = vmul.f32 %v13814_v55, %v13810_v24  ;;  %v13197_v24 = vld [vmem:[%s18110_s1 + $0x280] ss:$72 sps:$4 sm:$0xff]   ;;  %v13206_v55 = vld [vmem:[%s18110_s1 + $0x430] ss:$72 sps:$4 sm:$0xff]  }
0x1210   : > { %v13816_v22 = vpop.eup %13815 }
0x1211   : > { %v7540_v38 = vmul.f32 %v13816_v22, %v13812_v40  ;;  %v13200_v40 = vld [vmem:[%s18110_s1 + $0x310] ss:$72 sps:$4 sm:$0xff]   ;;  %v13211_v22 = vld [vmem:[%s18110_s1 + $0x4c4] ss:$72 sps:$4 sm:$0xff]  }
0x1213   : > { %v7541_v46 = vpack.c.bf16 %v7540_v38, %v7539_v26  ;;  %v13209_v26 = vld [vmem:[%s18110_s1 + $0x4c0] ss:$72 sps:$4 sm:$0xff]   ;;  %v13214_v38 = vld [vmem:[%s18110_s1 + $0x554] ss:$72 sps:$4 sm:$0xff]  }
0x1215   : > { %11770 = vmatmul.mubr.msk.bf16.vlgmr.msra.gmra.mrb[72].mxu1 %vm6779_vm2, %v7541_v46  ;;  %v13217_v46 = vld [vmem:[%s18110_s1 + $0x5e4] ss:$72 sps:$4 sm:$0xff]  }
0x1216   : > { %11774 = vmatpush3.bf16.xpose.msra.mxu1 %v7598_v5  ;;  %11775 = vmatprep.mubr.msk.bf16.mxu1 %vm13946_vm0, %v13945_v62  ;;  %v13215_v5 = vld [vmem:[%s18110_s1 + $0x5e0] ss:$72 sps:$4 sm:$0xff]  }
0x1217   : > { %11779 = vmatprep.subr.bf16.mxu1 %v13945_v62 }
0x121d   : > { %11776 = vmatmul.mubr.msk.bf16.vlgmr.msra.gmra.mrb[76].mxu1 %vm6731_vm1, %v7590_v16  ;;  %v13220_v16 = vld [vmem:[%s18110_s1 + $0x674] ss:$72 sps:$4 sm:$0xff]  }
0x121e   : > { %11781 = vmatprep.mubr.msk.bf16.mxu1 %vm13946_vm0, %v13945_v62 }
0x12e8   : > { %v7579_v35 = vpop.f32.mrb[72].mxu1 }
0x12e9   : > { %v11771_v42 = vpop.f32.mrb[73].mxu1 }
0x12ea   : > { %v7582_v33 = vpop.f32.mrb[74].mxu1  ;;  %v13223_v42 = vld [vmem:[%s18110_s1 + $0x704] ss:$72 sps:$4 sm:$0xff]  }
0x12eb   : > { %v7586_v47 = vpack.c.bf16 %v7582_v33, %v7579_v35  ;;  %v11772_v4 = vpop.f32.mrb[75].mxu1  ;;  %v13218_v35 = vld [vmem:[%s18110_s1 + $0x670] ss:$72 sps:$4 sm:$0xff]   ;;  %v13221_v33 = vld [vmem:[%s18110_s1 + $0x700] ss:$72 sps:$4 sm:$0xff]  }
0x12ec   : > { %v13224_v4 = vld [vmem:[%s18110_s1 + $0x790] ss:$72 sps:$4 sm:$0xff]  }
0x12ed   : > { %7587 = vst.msk [vmem:[#allocation2 + $0x18] sm:$0xff] %vm6731_vm1, %v7586_v47  ;;  %v13226_v47 = vld [vmem:[%s18110_s1 + $0x794] ss:$72 sps:$4 sm:$0xff]  }
0x12f0   : > { %v7634_v37 = vpop.f32.mrb[76].mxu1 }
0x12f1   : > { %v11777_v61 = vpop.f32.mrb[77].mxu1  ;;  %v7641_v48 = vsel %vm6779_vm2, %v7634_v37, -inf }
0x12f2   : > { %7642 = vmax.xlane.f32.xlu0 %v7641_v48  ;;  %v7637_v44 = vpop.f32.mrb[78].mxu1  ;;  %v13227_v61 = vld [vmem:[%s18110_s1 + $0x820] ss:$72 sps:$4 sm:$0xff]   ;;  %v13232_v48 = vld [vmem:[%s18110_s1 + $0x8b4] ss:$72 sps:$4 sm:$0xff]  }
0x12f3   : > { %v11778_v53 = vpop.f32.mrb[79].mxu1  ;;  %v7644_v57 = vsel %vm6779_vm2, %v7637_v44, -inf }
0x12f4   : > { %7645 = vmax.xlane.f32.xlu1 %v7644_v57  ;;  %v13235_v53 = vld [vmem:[%s18110_s1 + $0x944] ss:$72 sps:$4 sm:$0xff]   ;;  %v13233_v57 = vld [vmem:[%s18110_s1 + $0x940] ss:$72 sps:$4 sm:$0xff]  }
0x137f   : > { %v7643_v9 = vpop.xlane.xlu0 %7642 }
0x1380   : > { %v7647_v60 = vsub.f32 %v7634_v37, %v7643_v9  ;;  %v13229_v37 = vld [vmem:[%s18110_s1 + $0x824] ss:$72 sps:$4 sm:$0xff]   ;;  %v13238_v9 = vld [vmem:[%s18110_s1 + $0x9d4] ss:$72 sps:$4 sm:$0xff]  }
0x1381   : > { %v7646_v12 = vpop.xlane.xlu1 %7645 }
0x1382   : > { %v7649_v45 = vmul.f32 1.442695, %v7647_v60  ;;  %v7648_v13 = vsub.f32 %v7637_v44, %v7646_v12  ;;  %v13230_v44 = vld [vmem:[%s18110_s1 + $0x8b0] ss:$72 sps:$4 sm:$0xff]  }
0x1383   : > { %v13876_v60 = vld [vmem:[%s14169_s25] ss:$24 sps:$4 sm:$0xff]  }
0x1384   : > { %13817 = vpow2.f32 %v7649_v45  ;;  %v7651_v30 = vmul.f32 1.442695, %v7648_v13  ;;  %v13236_v12 = vld [vmem:[%s18110_s1 + $0x9d0] ss:$72 sps:$4 sm:$0xff]   ;;  %v13877_v45 = vld [vmem:[%s14169_s25 + $0xc] ss:$24 sps:$4 sm:$0xff]  }
0x1385   : > { %v13241_v13 = vld [vmem:[%s18110_s1 + $0xa64] ss:$72 sps:$4 sm:$0xff]  }
0x1386   : > { %13819 = vpow2.f32 %v7651_v30  ;;  %v13239_v30 = vld [vmem:[%s18110_s1 + $0xa60] ss:$72 sps:$4 sm:$0xff]  }
0x138e   : > { %v16720_v63 = vpop.eup %13817 }
0x138f   : > { %v7653_v0 = vsel %vm6779_vm2, %v16720_v63, 0.0 }
0x1390   : > { %v16724_v6 = vpop.eup %13819  ;;  %7654 = vadd.xlane.f32.xlu0 %v7653_v0  ;;  %v13244_v0 = vld [vmem:[%s18110_s1 + $0xaf4] ss:$72 sps:$4 sm:$0xff]  }
0x1391   : > { %v7656_v11 = vsel %vm6779_vm2, %v16724_v6, 0.0 }
0x1394   : > { %7657 = vadd.xlane.f32.xlu0 %v7656_v11  ;;  %v13242_v11 = vld [vmem:[%s18110_s1 + $0xaf0] ss:$72 sps:$4 sm:$0xff]  }
0x13aa   : > { %7665 = vrot.lane.b32.xlu0 %v16563_v7, %s13947_s23  ;;  %v13191_v7 = vld [vmem:[%s18110_s1 + $0x160] ss:$72 sps:$4 sm:$0xff]  }
0x13ab   : > { %6577 = vmatpush1.bf16.msra.mxu0 %v13191_v7  ;;  %v13251_v7 = vld [vmem:[%s18110_s1 + $0xca0] ss:$72 sps:$4 sm:$0xff]  }
0x13ac   : > { %6578 = vmatprep.subr.bf16.mxu0 %v13196_v23  ;;  %v13256_v23 = vld [vmem:[%s18110_s1 + $0xd34] ss:$72 sps:$4 sm:$0xff]  }
0x13af   : > { %6579 = vmatpush1.bf16.msra.mxu0 %v13194_v10  ;;  %v13254_v10 = vld [vmem:[%s18110_s1 + $0xd30] ss:$72 sps:$4 sm:$0xff]  }
0x13b0   : > { %6580 = vmatprep.subr.bf16.mxu0 %v13199_v20  ;;  %v13259_v20 = vld [vmem:[%s18110_s1 + $0xdc4] ss:$72 sps:$4 sm:$0xff]  }
0x13b3   : > { %6581 = vmatpush1.bf16.msra.mxu0 %v13197_v24  ;;  %v13257_v24 = vld [vmem:[%s18110_s1 + $0xdc0] ss:$72 sps:$4 sm:$0xff]  }
0x13b4   : > { %6582 = vmatprep.subr.bf16.mxu0 %v13202_v25  ;;  %v13262_v25 = vld [vmem:[%s18110_s1 + $0xe54] ss:$72 sps:$4 sm:$0xff]  }
0x13b7   : > { %6583 = vmatpush1.bf16.msra.mxu0 %v13200_v40  ;;  %v13260_v40 = vld [vmem:[%s18110_s1 + $0xe50] ss:$72 sps:$4 sm:$0xff]  }
0x13b8   : > { %6584 = vmatprep.subr.bf16.mxu0 %v13205_v27  ;;  %v13265_v27 = vld [vmem:[%s18110_s1 + $0xee4] ss:$72 sps:$4 sm:$0xff]  }
0x13bb   : > { %6585 = vmatpush1.bf16.msra.mxu0 %v13203_v19  ;;  %v13263_v19 = vld [vmem:[%s18110_s1 + $0xee0] ss:$72 sps:$4 sm:$0xff]  }
0x13bc   : > { %6586 = vmatprep.subr.bf16.mxu0 %v13208_v29  ;;  %v13268_v29 = vld [vmem:[%s18110_s1 + $0xf74] ss:$72 sps:$4 sm:$0xff]  }
0x13bf   : > { %6587 = vmatpush1.bf16.msra.mxu0 %v13206_v55  ;;  %v13266_v55 = vld [vmem:[%s18110_s1 + $0xf70] ss:$72 sps:$4 sm:$0xff]  }
0x13c0   : > { %6588 = vmatprep.subr.bf16.mxu0 %v13211_v22  ;;  %v13271_v22 = vld [vmem:[%s18110_s1 + $0x1004] ss:$72 sps:$4 sm:$0xff]  }
0x13c3   : > { %6589 = vmatpush1.bf16.msra.mxu0 %v13209_v26  ;;  %v13269_v26 = vld [vmem:[%s18110_s1 + $0x1000] ss:$72 sps:$4 sm:$0xff]  }
0x13c4   : > { %6590 = vmatprep.subr.bf16.mxu0 %v13214_v38  ;;  %v13274_v38 = vld [vmem:[%s18110_s1 + $0x1094] ss:$72 sps:$4 sm:$0xff]  }
0x13c7   : > { %6591 = vmatpush1.bf16.msra.mxu0 %v13212_v32  ;;  %v13272_v32 = vld [vmem:[%s18110_s1 + $0x1090] ss:$72 sps:$4 sm:$0xff]  }
0x13c8   : > { %6592 = vmatprep.subr.bf16.mxu0 %v13217_v46  ;;  %v13277_v46 = vld [vmem:[%s18110_s1 + $0x1124] ss:$72 sps:$4 sm:$0xff]  }
0x13cb   : > { %6593 = vmatpush1.bf16.msra.mxu0 %v13215_v5 }
0x13cc   : > { %6594 = vmatprep.subr.bf16.mxu0 %v13220_v16  ;;  %v13275_v16 = vld [vmem:[%s18110_s1 + $0x1120] ss:$72 sps:$4 sm:$0xff]  }
0x13cf   : > { %6595 = vmatpush1.bf16.msra.mxu0 %v13218_v35  ;;  %v13280_v35 = vld [vmem:[%s18110_s1 + $0x11b4] ss:$72 sps:$4 sm:$0xff]  }
0x13d0   : > { %6596 = vmatprep.subr.bf16.mxu0 %v13223_v42 }
0x13d3   : > { %6597 = vmatpush1.bf16.msra.mxu0 %v13221_v33  ;;  %v13278_v33 = vld [vmem:[%s18110_s1 + $0x11b0] ss:$72 sps:$4 sm:$0xff]  }
0x13d4   : > { %6598 = vmatprep.subr.bf16.mxu0 %v13226_v47  ;;  %v13283_v47 = vld [vmem:[%s18110_s1 + $0x1244] ss:$72 sps:$4 sm:$0xff]  }
0x13d7   : > { %6599 = vmatpush1.bf16.msra.mxu0 %v13224_v4 }
0x13d8   : > { %6600 = vmatprep.subr.bf16.mxu0 %v13229_v37  ;;  %v13281_v37 = vld [vmem:[%s18110_s1 + $0x1240] ss:$72 sps:$4 sm:$0xff]  }
0x13db   : > { %6601 = vmatpush1.bf16.msra.mxu0 %v13227_v61  ;;  %v13286_v61 = vld [vmem:[%s18110_s1 + $0x12d4] ss:$72 sps:$4 sm:$0xff]  }
0x13dc   : > { %6602 = vmatprep.subr.bf16.mxu0 %v13232_v48 }
0x13df   : > { %6603 = vmatpush1.bf16.msra.mxu0 %v13230_v44  ;;  %v13878_v44 = vld [vmem:[%s14169_s25 + $0x8] ss:$24 sps:$4 sm:$0xff]  }
0x13e0   : > { %6615 = vmatprep.subr.bf16.mxu0 %v13235_v53  ;;  %v13284_v53 = vld [vmem:[%s18110_s1 + $0x12d0] ss:$72 sps:$4 sm:$0xff]  }
0x13e2   : > { %6605 = vmatmul.mubr.bf16.vlgmr.msra.gmra.mrb[16].mxu0 %v13876_v60  ;;  %v13289_v60 = vld [vmem:[%s18110_s1 + $0x1364] ss:$72 sps:$4 sm:$0xff]  }
0x13e3   : > { %6616 = vmatpush1.bf16.msra.mxu0 %v13233_v57  ;;  %6647 = vmatprep.mubr.bf16.mxu0 %v13877_v45  ;;  %v13879_v57 = vld [vmem:[%s14169_s25 + $0x14] ss:$24 sps:$4 sm:$0xff]  }
0x13e4   : > { %6617 = vmatprep.subr.bf16.mxu0 %v13238_v9 }
0x13e7   : > { %6618 = vmatpush1.bf16.msra.mxu0 %v13236_v12 }
0x13e8   : > { %6619 = vmatprep.subr.bf16.mxu0 %v13241_v13 }
0x13eb   : > { %6620 = vmatpush1.bf16.msra.mxu0 %v13239_v30  ;;  %v13287_v30 = vld [vmem:[%s18110_s1 + $0x1360] ss:$72 sps:$4 sm:$0xff]  }
0x13ec   : > { %6621 = vmatprep.subr.bf16.mxu0 %v13244_v0  ;;  %v13292_v0 = vld [vmem:[%s18110_s1 + $0x13f4] ss:$72 sps:$4 sm:$0xff]  }
0x13ef   : > { %6622 = vmatpush1.bf16.msra.mxu0 %v13242_v11  ;;  %v7722_v11 = vsel %vm6731_vm1, %v16493_v52, 0 }
0x13f0   : > { %6623 = vmatprep.subr.bf16.mxu0 %v13247_v58  ;;  %v13293_v58 = vld [vmem:[%s18110_s1 + $0x1480] ss:$72 sps:$4 sm:$0xff]  }
0x13f3   : > { %6624 = vmatpush1.bf16.msra.mxu0 %v13245_v21  ;;  %v13298_v21 = vld [vmem:[%s18110_s1 + $0x1514] ss:$72 sps:$4 sm:$0xff]  }
0x13f4   : > { %6625 = vmatprep.subr.bf16.mxu0 %v13250_v14  ;;  %v13296_v14 = vld [vmem:[%s18110_s1 + $0x1510] ss:$72 sps:$4 sm:$0xff]  }
0x13f7   : > { %6626 = vmatpush1.bf16.msra.mxu0 %v13248_v15  ;;  %v13301_v15 = vld [vmem:[%s18110_s1 + $0x15a4] ss:$72 sps:$4 sm:$0xff]  }
0x13f8   : > { %6627 = vmatprep.subr.bf16.mxu0 %v13253_v2  ;;  %v13299_v2 = vld [vmem:[%s18110_s1 + $0x15a0] ss:$72 sps:$4 sm:$0xff]  }
0x13fb   : > { %6628 = vmatpush1.bf16.msra.mxu0 %v13251_v7  ;;  %v13304_v7 = vld [vmem:[%s18110_s1 + $0x1634] ss:$72 sps:$4 sm:$0xff]  }
0x13fc   : > { %6629 = vmatprep.subr.bf16.mxu0 %v13256_v23  ;;  %v13302_v23 = vld [vmem:[%s18110_s1 + $0x1630] ss:$72 sps:$4 sm:$0xff]  }
0x13ff   : > { %6630 = vmatpush1.bf16.msra.mxu0 %v13254_v10  ;;  %v13307_v10 = vld [vmem:[%s18110_s1 + $0x16c4] ss:$72 sps:$4 sm:$0xff]  }
0x1400   : > { %6631 = vmatprep.subr.bf16.mxu0 %v13259_v20  ;;  %v13305_v20 = vld [vmem:[%s18110_s1 + $0x16c0] ss:$72 sps:$4 sm:$0xff]  }
0x1403   : > { %6632 = vmatpush1.bf16.msra.mxu0 %v13257_v24  ;;  %v13310_v24 = vld [vmem:[%s18110_s1 + $0x1754] ss:$72 sps:$4 sm:$0xff]  }
0x1404   : > { %6633 = vmatprep.subr.bf16.mxu0 %v13262_v25  ;;  %v13308_v25 = vld [vmem:[%s18110_s1 + $0x1750] ss:$72 sps:$4 sm:$0xff]  }
0x1407   : > { %6634 = vmatpush1.bf16.msra.mxu0 %v13260_v40  ;;  %v13313_v40 = vld [vmem:[%s18110_s1 + $0x17e4] ss:$72 sps:$4 sm:$0xff]  }
0x1408   : > { %6635 = vmatprep.subr.bf16.mxu0 %v13265_v27  ;;  %v13311_v27 = vld [vmem:[%s18110_s1 + $0x17e0] ss:$72 sps:$4 sm:$0xff]  }
0x140b   : > { %6636 = vmatpush1.bf16.msra.mxu0 %v13263_v19  ;;  %v13316_v19 = vld [vmem:[%s18110_s1 + $0x1874] ss:$72 sps:$4 sm:$0xff]  }
0x140c   : > { %6637 = vmatprep.subr.bf16.mxu0 %v13268_v29  ;;  %v13314_v29 = vld [vmem:[%s18110_s1 + $0x1870] ss:$72 sps:$4 sm:$0xff]  }
0x140f   : > { %6638 = vmatpush1.bf16.msra.mxu0 %v13266_v55  ;;  %v13319_v55 = vld [vmem:[%s18110_s1 + $0x1904] ss:$72 sps:$4 sm:$0xff]  }
0x1410   : > { %6639 = vmatprep.subr.bf16.mxu0 %v13271_v22  ;;  %v13317_v22 = vld [vmem:[%s18110_s1 + $0x1900] ss:$72 sps:$4 sm:$0xff]  }
0x1413   : > { %6640 = vmatpush1.bf16.msra.mxu0 %v13269_v26  ;;  %v13322_v26 = vld [vmem:[%s18110_s1 + $0x1994] ss:$72 sps:$4 sm:$0xff]  }
0x1414   : > { %6641 = vmatprep.subr.bf16.mxu0 %v13274_v38  ;;  %v13320_v38 = vld [vmem:[%s18110_s1 + $0x1990] ss:$72 sps:$4 sm:$0xff]  }
0x1417   : > { %6642 = vmatpush1.bf16.msra.mxu0 %v13272_v32  ;;  %v13325_v32 = vld [vmem:[%s18110_s1 + $0x1a24] ss:$72 sps:$4 sm:$0xff]  }
0x1418   : > { %6643 = vmatprep.subr.bf16.mxu0 %v13277_v46  ;;  %v13323_v46 = vld [vmem:[%s18110_s1 + $0x1a20] ss:$72 sps:$4 sm:$0xff]  }
0x141b   : > { %6644 = vmatpush1.bf16.msra.mxu0 %v13275_v16  ;;  %v13326_v16 = vld [vmem:[%s18110_s1 + $0x1ab0] ss:$72 sps:$4 sm:$0xff]  }
0x141c   : > { %6645 = vmatprep.subr.bf16.mxu0 %v13280_v35  ;;  %v13880_v35 = vld [vmem:[%s14169_s25 + $0x10] ss:$24 sps:$4 sm:$0xff]   ;;  %s18041_s25 = scalar_lea.vmem [#allocation3], %s11977_s13 }
0x141d   : > { %v7655_v5 = vpop.xlane.xlu0 %7654 }
0x141e   : > { %13821 = vrcp.f32 %v7655_v5  ;;  %v13328_v5 = vld [vmem:[%s18110_s1 + $0x1ab4] ss:$72 sps:$4 sm:$0xff]  }
0x141f   : > { %6646 = vmatpush1.bf16.msra.mxu0 %v13278_v33 }
0x1420   : > { %6658 = vmatprep.subr.bf16.mxu0 %v13283_v47 }
0x1421   : > { %v7658_v42 = vpop.xlane.xlu0 %7657 }
0x1422   : > { %13823 = vrcp.f32 %v7658_v42  ;;  %6648 = vmatmul.mubr.bf16.vlgmr.msra.gmra.mrb[16].mxu0 %v13878_v44 }
0x1423   : > { %6659 = vmatpush1.bf16.msra.mxu0 %v13281_v37  ;;  %6690 = vmatprep.mubr.bf16.mxu0 %v13879_v57 }
0x1424   : > { %6660 = vmatprep.subr.bf16.mxu0 %v13286_v61 }
0x1425   : > { %v7666_v4 = vpop.permute.xlu0 %7665 }
0x1426   : > { %11780 = vmatpush3.bf16.msra.mxu1 %v7666_v4 }
0x1427   : > { %11785 = vmatprep.subr.bf16.mxu1 %v13945_v62  ;;  %6661 = vmatpush1.bf16.msra.mxu0 %v13284_v53 }
0x1428   : > { %v13822_v48 = vpop.eup %13821  ;;  %6662 = vmatprep.subr.bf16.mxu0 %v13289_v60  ;;  %v1096_v60 = vld [vmem:[%s18111_s2 + $0x10] sm:$0x3] }
0x1429   : > { %v7661_v12 = vmul.f32 %v13822_v48, %v16720_v63  ;;  %v13290_v63 = vld [vmem:[%s18110_s1 + $0x13f0] ss:$72 sps:$4 sm:$0xff]  }
0x142b   : > { %6663 = vmatpush1.bf16.msra.mxu0 %v13287_v30 }
0x142c   : > { %v13824_v9 = vpop.eup %13823  ;;  %6664 = vmatprep.subr.bf16.mxu0 %v13292_v0 }
0x142d   : > { %v7662_v45 = vmul.f32 %v13824_v9, %v16724_v6  ;;  %v13295_v6 = vld [vmem:[%s18110_s1 + $0x1484] ss:$72 sps:$4 sm:$0xff]  }
0x142f   : > { %v7663_v13 = vpack.c.bf16 %v7662_v45, %v7661_v12  ;;  %6665 = vmatpush1.bf16.msra.mxu0 %v13290_v63  ;;  %v1167_v12 = vrot.slane %v1096_v60, %v14813_v3  ;;  %v1171_v45 = vrot.slane %v1096_v60, %v14822_v8 }
0x1430   : > { %6666 = vmatprep.subr.bf16.mxu0 %v13295_v6 }
0x1431   : > { %11782 = vmatmul.mubr.msk.bf16.vlgmr.msra.gmra.mrb[80].mxu1 %vm6779_vm2, %v7663_v13 }
0x1432   : > { %11786 = vmatpush3.bf16.xpose.msra.mxu1 %v7722_v11  ;;  %11787 = vmatprep.mubr.msk.bf16.mxu1 %vm13946_vm0, %v13945_v62 }
0x1433   : > { %11791 = vmatprep.subr.bf16.mxu1 %v13945_v62  ;;  %6667 = vmatpush1.bf16.msra.mxu0 %v13293_v58 }
0x1434   : > { %6668 = vmatprep.subr.bf16.mxu0 %v13298_v21 }
0x1437   : > { %6669 = vmatpush1.bf16.msra.mxu0 %v13296_v14 }
0x1438   : > { %6670 = vmatprep.subr.bf16.mxu0 %v13301_v15 }
0x1439   : > { %11788 = vmatmul.mubr.msk.bf16.vlgmr.msra.gmra.mrb[84].mxu1 %vm6731_vm1, %v16121_v54 }
0x143a   : > { %11793 = vmatprep.mubr.msk.bf16.mxu1 %vm13946_vm0, %v13945_v62 }
0x143b   : > { %6671 = vmatpush1.bf16.msra.mxu0 %v13299_v2 }
0x143c   : > { %6672 = vmatprep.subr.bf16.mxu0 %v13304_v7 }
0x143f   : > { %6673 = vmatpush1.bf16.msra.mxu0 %v13302_v23 }
0x1440   : > { %6674 = vmatprep.subr.bf16.mxu0 %v13307_v10 }
0x1443   : > { %6675 = vmatpush1.bf16.msra.mxu0 %v13305_v20 }
0x1444   : > { %6676 = vmatprep.subr.bf16.mxu0 %v13310_v24 }
0x1447   : > { %6677 = vmatpush1.bf16.msra.mxu0 %v13308_v25 }
0x1448   : > { %6678 = vmatprep.subr.bf16.mxu0 %v13313_v40 }
0x144b   : > { %6679 = vmatpush1.bf16.msra.mxu0 %v13311_v27 }
0x144c   : > { %6680 = vmatprep.subr.bf16.mxu0 %v13316_v19 }
0x144f   : > { %6681 = vmatpush1.bf16.msra.mxu0 %v13314_v29 }
0x1450   : > { %6682 = vmatprep.subr.bf16.mxu0 %v13319_v55 }
0x1453   : > { %6683 = vmatpush1.bf16.msra.mxu0 %v13317_v22 }
0x1454   : > { %6684 = vmatprep.subr.bf16.mxu0 %v13322_v26 }
0x1457   : > { %6685 = vmatpush1.bf16.msra.mxu0 %v13320_v38 }
0x1458   : > { %6686 = vmatprep.subr.bf16.mxu0 %v13325_v32 }
0x145b   : > { %6687 = vmatpush1.bf16.msra.mxu0 %v13323_v46 }
0x145c   : > { %6688 = vmatprep.subr.bf16.mxu0 %v13328_v5 }
0x145f   : > { %6689 = vmatpush1.bf16.msra.mxu0 %v13326_v16 }
0x1462   : > { %6691 = vmatmul.mubr.bf16.vlgmr.msra.gmra.mrb[16].mxu0 %v13880_v35 }
0x1504   : > { %v17036_v42 = vpop.f32.mrb[80].mxu1 }
0x1505   : > { %v11783_v33 = vpop.f32.mrb[81].mxu1 }
0x1506   : > { %v17038_v47 = vpop.f32.mrb[82].mxu1 }
0x1507   : > { %v7712_v4 = vpack.c.bf16 %v17038_v47, %v17036_v42  ;;  %v11784_v37 = vpop.f32.mrb[83].mxu1 }
0x150c   : > { %v7758_v61 = vpop.f32.mrb[84].mxu1 }
0x150d   : > { %v11789_v48 = vpop.f32.mrb[85].mxu1  ;;  %v7765_v44 = vsel %vm6779_vm2, %v7758_v61, -inf }
0x150e   : > { %7766 = vmax.xlane.f32.xlu1 %v7765_v44  ;;  %v7761_v53 = vpop.f32.mrb[86].mxu1 }
0x150f   : > { %v11790_v57 = vpop.f32.mrb[87].mxu1  ;;  %v7768_v9 = vsel %vm6779_vm2, %v7761_v53, -inf }
0x1512   : > { %7769 = vmax.xlane.f32.xlu1 %v7768_v9 }
0x1535   : > { %v6692_v13 = vpop.f32.mrb[16].mxu0 }
0x1536   : > { %v11869_v30 = vadd.f32 %v6692_v13, %v1167_v12  ;;  %v6694_v0 = vpop.f32.mrb[17].mxu0 }
0x1537   : > { %v11870_v11 = vadd.f32 %v6694_v0, %v1171_v45  ;;  %v6696_v63 = vpop.f32.mrb[18].mxu0 }
0x1538   : > { %v11871_v6 = vadd.f32 %v6696_v63, %v1167_v12  ;;  %v6698_v58 = vpop.f32.mrb[19].mxu0 }
0x1539   : > { %v11872_v21 = vadd.f32 %v6698_v58, %v1171_v45 }
0x153a   : > { %v17049_v14 = vpack.c.bf16 %v11871_v6, %v11869_v30 }
0x153b   : > { %v17051_v15 = vpack.c.bf16 %v11872_v21, %v11870_v11 }
0x153c   : > { %11792 = vmatpush3.bf16.msra.mxu1 %v17049_v14 }
0x153d   : > { %11797 = vmatprep.subr.bf16.mxu1 %v13945_v62 }
0x159b   : > { %v7767_v2 = vpop.xlane.xlu1 %7766 }
0x159c   : > { %v7771_v7 = vsub.f32 %v7758_v61, %v7767_v2 }
0x159e   : > { %v7773_v23 = vmul.f32 1.442695, %v7771_v7 }
0x159f   : > { %v7770_v10 = vpop.xlane.xlu1 %7769 }
0x15a0   : > { %13825 = vpow2.f32 %v7773_v23  ;;  %v7772_v20 = vsub.f32 %v7761_v53, %v7770_v10 }
0x15a2   : > { %v7775_v24 = vmul.f32 1.442695, %v7772_v20 }
0x15a4   : > { %13827 = vpow2.f32 %v7775_v24 }
0x15aa   : > { %v13826_v25 = vpop.eup %13825 }
0x15ab   : > { %v7777_v40 = vsel %vm6779_vm2, %v13826_v25, 0.0 }
0x15ac   : > { %7778 = vadd.xlane.f32.xlu1 %v7777_v40 }
0x15ae   : > { %v13828_v27 = vpop.eup %13827 }
0x15af   : > { %v7780_v19 = vsel %vm6779_vm2, %v13828_v27, 0.0 }
0x15b0   : > { %7781 = vadd.xlane.f32.xlu0 %v7780_v19 }
0x15bd   : > { %7838 = vrot.lane.b32.xlu1 %v16493_v52, %s13947_s23 }
0x15c1   : > { %7835 = vrot.lane.b32.xlu1 %v16121_v54, %s13947_s23 }
0x1639   : > { %v7779_v29 = vpop.xlane.xlu1 %7778 }
0x163a   : > { %13829 = vrcp.f32 %v7779_v29 }
0x163d   : > { %v7782_v55 = vpop.xlane.xlu0 %7781  ;;  %v7839_v46 = vpop.permute.xlu1 %7838 }
0x163e   : > { %13831 = vrcp.f32 %v7782_v55  ;;  %v7844_v16 = vsel %vm6731_vm1, %v7839_v46, 0 }
0x1641   : > { %v7836_v54 = vpop.permute.xlu1 %7835 }
0x1644   : > { %v13830_v22 = vpop.eup %13829 }
0x1645   : > { %v7785_v38 = vmul.f32 %v13830_v22, %v13826_v25 }
0x1648   : > { %v13832_v26 = vpop.eup %13831 }
0x1649   : > { %v7786_v32 = vmul.f32 %v13832_v26, %v13828_v27  ;;  %v7968_v27 = vsel %vm6731_vm1, %v16498_v56, 0 }
0x164b   : > { %v7787_v5 = vpack.c.bf16 %v7786_v32, %v7785_v38 }
0x164d   : > { %11794 = vmatmul.mubr.msk.bf16.vlgmr.msra.gmra.mrb[88].mxu1 %vm6779_vm2, %v7787_v5 }
0x164e   : > { %11798 = vmatpush3.bf16.xpose.msra.mxu1 %v7844_v16  ;;  %11799 = vmatprep.mubr.msk.bf16.mxu1 %vm13946_vm0, %v13945_v62 }
0x164f   : > { %11803 = vmatprep.subr.bf16.mxu1 %v13945_v62 }
0x1655   : > { %11800 = vmatmul.mubr.msk.bf16.vlgmr.msra.gmra.mrb[92].mxu1 %vm6731_vm1, %v7836_v54 }
0x1656   : > { %11805 = vmatprep.mubr.msk.bf16.mxu1 %vm13946_vm0, %v13945_v62 }
0x1720   : > { %v7825_v52 = vpop.f32.mrb[88].mxu1 }
0x1721   : > { %v11795_v35 = vpop.f32.mrb[89].mxu1 }
0x1722   : > { %v7828_v33 = vpop.f32.mrb[90].mxu1 }
0x1723   : > { %v7832_v37 = vpack.c.bf16 %v7828_v33, %v7825_v52  ;;  %v11796_v61 = vpop.f32.mrb[91].mxu1 }
0x1725   : > { %7833 = vst.msk [vmem:[#allocation2 + $0x20] sm:$0xff] %vm6731_vm1, %v7832_v37 }
0x1728   : > { %v7880_v48 = vpop.f32.mrb[92].mxu1 }
0x1729   : > { %v11801_v44 = vpop.f32.mrb[93].mxu1  ;;  %v7887_v53 = vsel %vm6779_vm2, %v7880_v48, -inf }
0x172a   : > { %7888 = vmax.xlane.f32.xlu1 %v7887_v53  ;;  %v7883_v57 = vpop.f32.mrb[94].mxu1 }
0x172b   : > { %v11802_v9 = vpop.f32.mrb[95].mxu1  ;;  %v7890_v60 = vsel %vm6779_vm2, %v7883_v57, -inf }
0x172c   : > { %7891 = vmax.xlane.f32.xlu0 %v7890_v60 }
0x17b7   : > { %v7889_v12 = vpop.xlane.xlu1 %7888 }
0x17b8   : > { %v7893_v45 = vsub.f32 %v7880_v48, %v7889_v12 }
0x17b9   : > { %v7892_v13 = vpop.xlane.xlu0 %7891 }
0x17ba   : > { %v7895_v30 = vmul.f32 1.442695, %v7893_v45  ;;  %v7894_v0 = vsub.f32 %v7883_v57, %v7892_v13 }
0x17bc   : > { %13833 = vpow2.f32 %v7895_v30  ;;  %v7897_v11 = vmul.f32 1.442695, %v7894_v0 }
0x17be   : > { %13835 = vpow2.f32 %v7897_v11 }
0x17c6   : > { %v13834_v63 = vpop.eup %13833 }
0x17c7   : > { %v7899_v6 = vsel %vm6779_vm2, %v13834_v63, 0.0 }
0x17c8   : > { %v13836_v58 = vpop.eup %13835  ;;  %7900 = vadd.xlane.f32.xlu0 %v7899_v6 }
0x17c9   : > { %v7902_v21 = vsel %vm6779_vm2, %v13836_v58, 0.0 }
0x17cc   : > { %7903 = vadd.xlane.f32.xlu0 %v7902_v21 }
0x17e2   : > { %7911 = vrot.lane.b32.xlu0 %v17049_v14, %s13947_s23 }
0x1855   : > { %v7901_v2 = vpop.xlane.xlu0 %7900 }
0x1856   : > { %13837 = vrcp.f32 %v7901_v2 }
0x1859   : > { %v7904_v7 = vpop.xlane.xlu0 %7903 }
0x185a   : > { %13839 = vrcp.f32 %v7904_v7 }
0x185d   : > { %v7912_v23 = vpop.permute.xlu0 %7911 }
0x185e   : > { %11804 = vmatpush3.bf16.msra.mxu1 %v7912_v23 }
0x185f   : > { %11809 = vmatprep.subr.bf16.mxu1 %v13945_v62 }
0x1860   : > { %v13838_v10 = vpop.eup %13837 }
0x1861   : > { %v7907_v24 = vmul.f32 %v13838_v10, %v13834_v63 }
0x1864   : > { %v13840_v20 = vpop.eup %13839 }
0x1865   : > { %v7908_v25 = vmul.f32 %v13840_v20, %v13836_v58 }
0x1867   : > { %v7909_v40 = vpack.c.bf16 %v7908_v25, %v7907_v24 }
0x1869   : > { %11806 = vmatmul.mubr.msk.bf16.vlgmr.msra.gmra.mrb[96].mxu1 %vm6779_vm2, %v7909_v40  ;;  %v13331_v40 = vld [vmem:[%s18112_s3 + $0x4] ss:$24 sps:$4 sm:$0xff]  }
0x186a   : > { %11810 = vmatpush3.bf16.xpose.msra.mxu1 %v7968_v27  ;;  %11811 = vmatprep.mubr.msk.bf16.mxu1 %vm13946_vm0, %v13945_v62  ;;  %v13334_v27 = vld [vmem:[%s18112_s3 + $0x34] ss:$24 sps:$4 sm:$0xff]  }
0x186b   : > { %11815 = vmatprep.subr.bf16.mxu1 %v13945_v62  ;;  %9976 = vmatprep.subr.bf16.mxu0 %v13331_v40  ;;  %v13385_v40 = vld [vmem:[%s18112_s3 + $0x3c] ss:$24 sps:$4 sm:$0xff]  }
0x1871   : > { %11812 = vmatmul.mubr.msk.bf16.vlgmr.msra.gmra.mrb[100].mxu1 %vm6731_vm1, %v16129_v59 }
0x1872   : > { %11816 = vmatpush3.bf16.msra.mxu1 %v17051_v15  ;;  %11817 = vmatprep.mubr.msk.bf16.mxu1 %vm13946_vm0, %v13945_v62 }
0x1873   : > { %11821 = vmatprep.subr.bf16.mxu1 %v13945_v62 }
0x193c   : > { %v7951_v14 = vpop.f32.mrb[96].mxu1 }
0x193d   : > { %v11807_v19 = vpop.f32.mrb[97].mxu1 }
0x193e   : > { %v7954_v29 = vpop.f32.mrb[98].mxu1  ;;  %v13338_v19 = vld [vmem:[%s18112_s3 + $0x90] ss:$24 sps:$4 sm:$0xff]  }
0x193f   : > { %v7958_v55 = vpack.c.bf16 %v7954_v29, %v7951_v14  ;;  %v11808_v22 = vpop.f32.mrb[99].mxu1  ;;  %v13340_v14 = vld [vmem:[%s18112_s3 + $0x94] ss:$24 sps:$4 sm:$0xff]   ;;  %v13343_v29 = vld [vmem:[%s18112_s3 + $0xc4] ss:$24 sps:$4 sm:$0xff]  }
0x1940   : > { %v13346_v22 = vld [vmem:[%s18112_s3 + $0xf4] ss:$24 sps:$4 sm:$0xff]  }
0x1944   : > { %v8004_v26 = vpop.f32.mrb[100].mxu1 }
0x1945   : > { %v11813_v38 = vpop.f32.mrb[101].mxu1  ;;  %v8011_v32 = vsel %vm6779_vm2, %v8004_v26, -inf }
0x1946   : > { %8012 = vmax.xlane.f32.xlu1 %v8011_v32  ;;  %v8007_v46 = vpop.f32.mrb[102].mxu1  ;;  %v13349_v38 = vld [vmem:[%s18112_s3 + $0x124] ss:$24 sps:$4 sm:$0xff]   ;;  %v13347_v32 = vld [vmem:[%s18112_s3 + $0x120] ss:$24 sps:$4 sm:$0xff]  }
0x1947   : > { %v11814_v5 = vpop.f32.mrb[103].mxu1  ;;  %v8014_v16 = vsel %vm6779_vm2, %v8007_v46, -inf }
0x1948   : > { %v13350_v5 = vld [vmem:[%s18112_s3 + $0x150] ss:$24 sps:$4 sm:$0xff]  }
0x194a   : > { %8015 = vmax.xlane.f32.xlu1 %v8014_v16  ;;  %v13355_v16 = vld [vmem:[%s18112_s3 + $0x184] ss:$24 sps:$4 sm:$0xff]  }
0x19d3   : > { %v8013_v54 = vpop.xlane.xlu1 %8012 }
0x19d4   : > { %v8017_v52 = vsub.f32 %v8004_v26, %v8013_v54  ;;  %v13344_v26 = vld [vmem:[%s18112_s3 + $0xf0] ss:$24 sps:$4 sm:$0xff]   ;;  %v13353_v54 = vld [vmem:[%s18112_s3 + $0x180] ss:$24 sps:$4 sm:$0xff]  }
0x19d6   : > { %v8019_v35 = vmul.f32 1.442695, %v8017_v52  ;;  %v13358_v52 = vld [vmem:[%s18112_s3 + $0x1b4] ss:$24 sps:$4 sm:$0xff]  }
0x19d7   : > { %v8016_v33 = vpop.xlane.xlu1 %8015 }
0x19d8   : > { %13841 = vpow2.f32 %v8019_v35  ;;  %v8018_v37 = vsub.f32 %v8007_v46, %v8016_v33  ;;  %v13352_v46 = vld [vmem:[%s18112_s3 + $0x154] ss:$24 sps:$4 sm:$0xff]   ;;  %v13356_v35 = vld [vmem:[%s18112_s3 + $0x1b0] ss:$24 sps:$4 sm:$0xff]   ;;  %v13361_v33 = vld [vmem:[%s18112_s3 + $0x1e4] ss:$24 sps:$4 sm:$0xff]  }
0x19da   : > { %v8021_v61 = vmul.f32 1.442695, %v8018_v37  ;;  %v13359_v37 = vld [vmem:[%s18112_s3 + $0x1e0] ss:$24 sps:$4 sm:$0xff]  }
0x19dc   : > { %13843 = vpow2.f32 %v8021_v61  ;;  %v13364_v61 = vld [vmem:[%s18112_s3 + $0x214] ss:$24 sps:$4 sm:$0xff]  }
0x19e2   : > { %v13842_v48 = vpop.eup %13841 }
0x19e3   : > { %v8023_v44 = vsel %vm6779_vm2, %v13842_v48, 0.0 }
0x19e4   : > { %8024 = vadd.xlane.f32.xlu0 %v8023_v44 }
0x19e6   : > { %v13844_v53 = vpop.eup %13843 }
0x19e7   : > { %v8026_v57 = vsel %vm6779_vm2, %v13844_v53, 0.0 }
0x19e8   : > { %8027 = vadd.xlane.f32.xlu1 %v8026_v57 }
0x19f9   : > { %8084 = vrot.lane.b32.xlu1 %v16498_v56, %s13947_s23 }
0x19fd   : > { %8081 = vrot.lane.b32.xlu1 %v16129_v59, %s13947_s23 }
0x1a71   : > { %v8025_v9 = vpop.xlane.xlu0 %8024 }
0x1a72   : > { %13845 = vrcp.f32 %v8025_v9 }
0x1a75   : > { %v8028_v60 = vpop.xlane.xlu1 %8027 }
0x1a76   : > { %13847 = vrcp.f32 %v8028_v60 }
0x1a79   : > { %v8085_v0 = vpop.permute.xlu1 %8084 }
0x1a7a   : > { %v8090_v63 = vsel %vm6731_vm1, %v8085_v0, 0 }
0x1a7c   : > { %v13846_v12 = vpop.eup %13845 }
0x1a7d   : > { %v8031_v13 = vmul.f32 %v13846_v12, %v13842_v48  ;;  %v8082_v59 = vpop.permute.xlu1 %8081  ;;  %v13362_v48 = vld [vmem:[%s18112_s3 + $0x210] ss:$24 sps:$4 sm:$0xff]  }
0x1a80   : > { %v13848_v45 = vpop.eup %13847 }
0x1a81   : > { %v8032_v30 = vmul.f32 %v13848_v45, %v13844_v53 }
0x1a83   : > { %v8033_v11 = vpack.c.bf16 %v8032_v30, %v8031_v13 }
0x1a85   : > { %11818 = vmatmul.mubr.msk.bf16.vlgmr.msra.gmra.mrb[104].mxu1 %vm6779_vm2, %v8033_v11 }
0x1a86   : > { %11822 = vmatpush3.bf16.xpose.msra.mxu1 %v8090_v63  ;;  %11823 = vmatprep.mubr.msk.bf16.mxu1 %vm13946_vm0, %v13945_v62 }
0x1a87   : > { %11827 = vmatprep.subr.bf16.mxu1 %v13945_v62 }
0x1a8d   : > { %11824 = vmatmul.mubr.msk.bf16.vlgmr.msra.gmra.mrb[108].mxu1 %vm6731_vm1, %v8082_v59 }
0x1a8e   : > { %11829 = vmatprep.mubr.msk.bf16.mxu1 %vm13946_vm0, %v13945_v62  ;;  %v13329_v62 = vld [vmem:[%s18112_s3] ss:$24 sps:$4 sm:$0xff]  }
0x1a8f   : > { %9977 = vmatpush1.bf16.msra.mxu0 %v13329_v62  ;;  %v13380_v62 = vld [vmem:[%s18112_s3 + $0x300] ss:$24 sps:$4 sm:$0xff]  }
0x1a90   : > { %9978 = vmatprep.subr.bf16.mxu0 %v13334_v27  ;;  %v13388_v27 = vld [vmem:[%s18112_s3 + $0x334] ss:$24 sps:$4 sm:$0xff]  }
0x1a93   : > { %9979 = vmatpush1.bf16.msra.mxu0 %v13332_v34 }
0x1a94   : > { %9980 = vmatprep.subr.bf16.mxu0 %v13337_v36 }
0x1b58   : > { %v8071_v56 = vpop.f32.mrb[104].mxu1 }
0x1b59   : > { %v11819_v6 = vpop.f32.mrb[105].mxu1 }
0x1b5a   : > { %v8074_v58 = vpop.f32.mrb[106].mxu1  ;;  %v13365_v6 = vld [vmem:[%s18112_s3 + $0x240] ss:$24 sps:$4 sm:$0xff]  }
0x1b5b   : > { %v8078_v21 = vpack.c.bf16 %v8074_v58, %v8071_v56  ;;  %v11820_v2 = vpop.f32.mrb[107].mxu1  ;;  %v13367_v56 = vld [vmem:[%s18112_s3 + $0x244] ss:$24 sps:$4 sm:$0xff]   ;;  %v13370_v58 = vld [vmem:[%s18112_s3 + $0x274] ss:$24 sps:$4 sm:$0xff]  }
0x1b5c   : > { %v13373_v2 = vld [vmem:[%s18112_s3 + $0x2a4] ss:$24 sps:$4 sm:$0xff]  }
0x1b5d   : > { %8079 = vst.msk [vmem:[#allocation2 + $0x28] sm:$0xff] %vm6731_vm1, %v8078_v21  ;;  %v13368_v21 = vld [vmem:[%s18112_s3 + $0x270] ss:$24 sps:$4 sm:$0xff]  }
0x1b60   : > { %v8126_v7 = vpop.f32.mrb[108].mxu1 }
0x1b61   : > { %v11825_v23 = vpop.f32.mrb[109].mxu1  ;;  %v8133_v10 = vsel %vm6779_vm2, %v8126_v7, -inf }
0x1b62   : > { %8134 = vmax.xlane.f32.xlu1 %v8133_v10  ;;  %v8129_v20 = vpop.f32.mrb[110].mxu1  ;;  %v13376_v23 = vld [vmem:[%s18112_s3 + $0x2d4] ss:$24 sps:$4 sm:$0xff]   ;;  %v13374_v10 = vld [vmem:[%s18112_s3 + $0x2d0] ss:$24 sps:$4 sm:$0xff]  }
0x1b63   : > { %v11826_v24 = vpop.f32.mrb[111].mxu1  ;;  %v8136_v25 = vsel %vm6779_vm2, %v8129_v20, -inf }
0x1b64   : > { %8137 = vmax.xlane.f32.xlu0 %v8136_v25 }
0x1b73   : > { %7222 = vrot.lane.b32.xlu1 %v7220_v39, %s13947_s23  ;;  %v13335_v39 = vld [vmem:[%s18112_s3 + $0x60] ss:$24 sps:$4 sm:$0xff]  }
0x1b74   : > { %9981 = vmatpush1.bf16.msra.mxu0 %v13335_v39  ;;  %v13383_v39 = vld [vmem:[%s18112_s3 + $0x38] ss:$24 sps:$4 sm:$0xff]  }
0x1b75   : > { %9982 = vmatprep.subr.bf16.mxu0 %v13340_v14  ;;  %v13386_v14 = vld [vmem:[%s18112_s3 + $0x330] ss:$24 sps:$4 sm:$0xff]  }
0x1b77   : > { %7960 = vrot.lane.b32.xlu1 %v7958_v55, %s13947_s23  ;;  %v13341_v55 = vld [vmem:[%s18112_s3 + $0xc0] ss:$24 sps:$4 sm:$0xff]  }
0x1b78   : > { %9983 = vmatpush1.bf16.msra.mxu0 %v13338_v19  ;;  %v13391_v19 = vld [vmem:[%s18112_s3 + $0x6c] ss:$24 sps:$4 sm:$0xff]  }
0x1b79   : > { %9984 = vmatprep.subr.bf16.mxu0 %v13343_v29  ;;  %v13394_v29 = vld [vmem:[%s18112_s3 + $0x364] ss:$24 sps:$4 sm:$0xff]  }
0x1b7c   : > { %9985 = vmatpush1.bf16.msra.mxu0 %v13341_v55 }
0x1b7d   : > { %9986 = vmatprep.subr.bf16.mxu0 %v13346_v22  ;;  %v13389_v22 = vld [vmem:[%s18112_s3 + $0x68] ss:$24 sps:$4 sm:$0xff]  }
0x1b80   : > { %9987 = vmatpush1.bf16.msra.mxu0 %v13344_v26  ;;  %v13392_v26 = vld [vmem:[%s18112_s3 + $0x360] ss:$24 sps:$4 sm:$0xff]  }
0x1b81   : > { %9988 = vmatprep.subr.bf16.mxu0 %v13349_v38  ;;  %v13397_v38 = vld [vmem:[%s18112_s3 + $0x9c] ss:$24 sps:$4 sm:$0xff]  }
0x1b84   : > { %9989 = vmatpush1.bf16.msra.mxu0 %v13347_v32  ;;  %v13400_v32 = vld [vmem:[%s18112_s3 + $0x394] ss:$24 sps:$4 sm:$0xff]  }
0x1b85   : > { %9990 = vmatprep.subr.bf16.mxu0 %v13352_v46  ;;  %v13395_v46 = vld [vmem:[%s18112_s3 + $0x98] ss:$24 sps:$4 sm:$0xff]  }
0x1b88   : > { %9991 = vmatpush1.bf16.msra.mxu0 %v13350_v5  ;;  %v13398_v5 = vld [vmem:[%s18112_s3 + $0x390] ss:$24 sps:$4 sm:$0xff]  }
0x1b89   : > { %9992 = vmatprep.subr.bf16.mxu0 %v13355_v16  ;;  %v13403_v16 = vld [vmem:[%s18112_s3 + $0xcc] ss:$24 sps:$4 sm:$0xff]  }
0x1b8c   : > { %9993 = vmatpush1.bf16.msra.mxu0 %v13353_v54  ;;  %v13406_v54 = vld [vmem:[%s18112_s3 + $0x3c4] ss:$24 sps:$4 sm:$0xff]  }
0x1b8d   : > { %9994 = vmatprep.subr.bf16.mxu0 %v13358_v52  ;;  %v13401_v52 = vld [vmem:[%s18112_s3 + $0xc8] ss:$24 sps:$4 sm:$0xff]  }
0x1b90   : > { %9995 = vmatpush1.bf16.msra.mxu0 %v13356_v35  ;;  %v13404_v35 = vld [vmem:[%s18112_s3 + $0x3c0] ss:$24 sps:$4 sm:$0xff]  }
0x1b91   : > { %9996 = vmatprep.subr.bf16.mxu0 %v13361_v33  ;;  %v13409_v33 = vld [vmem:[%s18112_s3 + $0xfc] ss:$24 sps:$4 sm:$0xff]  }
0x1b94   : > { %9997 = vmatpush1.bf16.msra.mxu0 %v13359_v37  ;;  %v13412_v37 = vld [vmem:[%s18112_s3 + $0x3f4] ss:$24 sps:$4 sm:$0xff]  }
0x1b95   : > { %9998 = vmatprep.subr.bf16.mxu0 %v13364_v61  ;;  %v13407_v61 = vld [vmem:[%s18112_s3 + $0xf8] ss:$24 sps:$4 sm:$0xff]  }
0x1b98   : > { %9999 = vmatpush1.bf16.msra.mxu0 %v13362_v48  ;;  %v13410_v48 = vld [vmem:[%s18112_s3 + $0x3f0] ss:$24 sps:$4 sm:$0xff]  }
0x1b99   : > { %10000 = vmatprep.subr.bf16.mxu0 %v13367_v56  ;;  %v13433_v56 = vld [vmem:[%s18112_s3 + $0x1bc] ss:$24 sps:$4 sm:$0xff]  }
0x1b9c   : > { %10001 = vmatpush1.bf16.msra.mxu0 %v13365_v6  ;;  %v13436_v6 = vld [vmem:[%s18112_s3 + $0x4b4] ss:$24 sps:$4 sm:$0xff]  }
0x1b9d   : > { %10002 = vmatprep.subr.bf16.mxu0 %v13370_v58  ;;  %v13431_v58 = vld [vmem:[%s18112_s3 + $0x1b8] ss:$24 sps:$4 sm:$0xff]  }
0x1ba0   : > { %10003 = vmatpush1.bf16.msra.mxu0 %v13368_v21  ;;  %v13434_v21 = vld [vmem:[%s18112_s3 + $0x4b0] ss:$24 sps:$4 sm:$0xff]  }
0x1ba1   : > { %10004 = vmatprep.subr.bf16.mxu0 %v13373_v2  ;;  %v13439_v2 = vld [vmem:[%s18112_s3 + $0x1ec] ss:$24 sps:$4 sm:$0xff]  }
0x1bef   : > { %v8135_v44 = vpop.xlane.xlu1 %8134 }
0x1bf0   : > { %v8139_v53 = vsub.f32 %v8126_v7, %v8135_v44  ;;  %v13371_v7 = vld [vmem:[%s18112_s3 + $0x2a0] ss:$24 sps:$4 sm:$0xff]   ;;  %v13415_v44 = vld [vmem:[%s18112_s3 + $0x12c] ss:$24 sps:$4 sm:$0xff]  }
0x1bf1   : > { %v8138_v57 = vpop.xlane.xlu0 %8137  ;;  %10005 = vmatpush1.bf16.msra.mxu0 %v13371_v7  ;;  %v13442_v7 = vld [vmem:[%s18112_s3 + $0x4e4] ss:$24 sps:$4 sm:$0xff]  }
0x1bf2   : > { %v8141_v9 = vmul.f32 1.442695, %v8139_v53  ;;  %v8140_v60 = vsub.f32 %v8129_v20, %v8138_v57  ;;  %10006 = vmatprep.subr.bf16.mxu0 %v13376_v23  ;;  %v13418_v53 = vld [vmem:[%s18112_s3 + $0x424] ss:$24 sps:$4 sm:$0xff]   ;;  %v13413_v57 = vld [vmem:[%s18112_s3 + $0x128] ss:$24 sps:$4 sm:$0xff]  }
0x1bf3   : > { %v7223_v12 = vpop.permute.xlu1 %7222  ;;  %v13437_v23 = vld [vmem:[%s18112_s3 + $0x1e8] ss:$24 sps:$4 sm:$0xff]  }
0x1bf4   : > { %13849 = vpow2.f32 %v8141_v9  ;;  %v8143_v45 = vmul.f32 1.442695, %v8140_v60  ;;  %7225 = vst.msk [vmem:[#allocation2 + $0x8] sm:$0xff] %vm6978_vm3, %v7223_v12  ;;  %v13416_v9 = vld [vmem:[%s18112_s3 + $0x420] ss:$24 sps:$4 sm:$0xff]  }
0x1bf5   : > { %10007 = vmatpush1.bf16.msra.mxu0 %v13374_v10  ;;  %v13421_v60 = vld [vmem:[%s18112_s3 + $0x15c] ss:$24 sps:$4 sm:$0xff]   ;;  %v13440_v10 = vld [vmem:[%s18112_s3 + $0x4e0] ss:$24 sps:$4 sm:$0xff]  }
0x1bf6   : > { %13851 = vpow2.f32 %v8143_v45  ;;  %v13424_v12 = vld [vmem:[%s18112_s3 + $0x454] ss:$24 sps:$4 sm:$0xff]   ;;  %v13419_v45 = vld [vmem:[%s18112_s3 + $0x158] ss:$24 sps:$4 sm:$0xff]  }
0x1bf7   : > { %v7961_v13 = vpop.permute.xlu1 %7960 }
0x1bf8   : > { %7963 = vst.msk [vmem:[#allocation2 + $0x20] sm:$0xff] %vm6978_vm3, %v7961_v13  ;;  %v13422_v13 = vld [vmem:[%s18112_s3 + $0x450] ss:$24 sps:$4 sm:$0xff]  }
0x1bfb   : > { %v17187_v30 = vld [vmem:[#allocation2 + $0x8] sm:$0xff] }
0x1bfc   : > { %10008 = vmatprep.mubr.bf16.mxu0 %v17187_v30 }
0x1bfe   : > { %v13850_v0 = vpop.eup %13849 }
0x1bff   : > { %v8145_v11 = vsel %vm6779_vm2, %v13850_v0, 0.0 }
0x1c00   : > { %v13852_v63 = vpop.eup %13851  ;;  %8146 = vadd.xlane.f32.xlu0 %v8145_v11  ;;  %v13430_v11 = vld [vmem:[%s18112_s3 + $0x484] ss:$24 sps:$4 sm:$0xff]  }
0x1c01   : > { %v8148_v59 = vsel %vm6779_vm2, %v13852_v63, 0.0 }
0x1c04   : > { %8149 = vadd.xlane.f32.xlu0 %v8148_v59  ;;  %v13428_v59 = vld [vmem:[%s18112_s3 + $0x480] ss:$24 sps:$4 sm:$0xff]  }
0x1c1a   : > { %8157 = vrot.lane.b32.xlu0 %v17051_v15, %s13947_s23  ;;  %v13382_v15 = vld [vmem:[%s18112_s3 + $0x304] ss:$24 sps:$4 sm:$0xff]  }
0x1c1b   : > { %10019 = vmatprep.subr.bf16.mxu0 %v13382_v15  ;;  %v13445_v15 = vld [vmem:[%s18112_s3 + $0x21c] ss:$24 sps:$4 sm:$0xff]  }
0x1c1e   : > { %6975 = vrot.lane.b32.xlu0 %v6973_v17, %s13947_s23 }
0x1c22   : > { %7714 = vrot.lane.b32.xlu0 %v7712_v4, %s13947_s23 }
0x1c26   : > { %7468 = vrot.lane.b32.xlu0 %v7466_v28, %s13947_s23 }
0x1c8d   : > { %v8147_v20 = vpop.xlane.xlu0 %8146 }
0x1c8e   : > { %13853 = vrcp.f32 %v8147_v20  ;;  %v13448_v20 = vld [vmem:[%s18112_s3 + $0x514] ss:$24 sps:$4 sm:$0xff]  }
0x1c91   : > { %v8150_v50 = vpop.xlane.xlu0 %8149 }
0x1c92   : > { %13855 = vrcp.f32 %v8150_v50  ;;  %v13443_v50 = vld [vmem:[%s18112_s3 + $0x218] ss:$24 sps:$4 sm:$0xff]  }
0x1c95   : > { %v8158_v17 = vpop.permute.xlu0 %8157 }
0x1c96   : > { %11828 = vmatpush3.bf16.msra.mxu1 %v8158_v17  ;;  %v13451_v17 = vld [vmem:[%s18112_s3 + $0x24c] ss:$24 sps:$4 sm:$0xff]  }
0x1c97   : > { %10105 = vmatprep.subr.bf16.mxu1 %v13379_v49  ;;  %v13446_v49 = vld [vmem:[%s18112_s3 + $0x510] ss:$24 sps:$4 sm:$0xff]  }
0x1c98   : > { %v13854_v42 = vpop.eup %13853 }
0x1c99   : > { %v6976_v24 = vpop.permute.xlu0 %6975  ;;  %v8153_v4 = vmul.f32 %v13854_v42, %v13850_v0  ;;  %v13427_v0 = vld [vmem:[%s18112_s3 + $0x18c] ss:$24 sps:$4 sm:$0xff]   ;;  %v13449_v42 = vld [vmem:[%s18112_s3 + $0x248] ss:$24 sps:$4 sm:$0xff]  }
0x1c9a   : > { %6979 = vst.msk [vmem:[#allocation2] sm:$0xff] %vm6978_vm3, %v6976_v24  ;;  %v13454_v24 = vld [vmem:[%s18112_s3 + $0x544] ss:$24 sps:$4 sm:$0xff]  }
0x1c9c   : > { %v13856_v47 = vpop.eup %13855 }
0x1c9d   : > { %v8154_v25 = vmul.f32 %v13856_v47, %v13852_v63  ;;  %v7715_v1 = vpop.permute.xlu0 %7714  ;;  %v13425_v63 = vld [vmem:[%s18112_s3 + $0x188] ss:$24 sps:$4 sm:$0xff]  }
0x1c9e   : > { %7717 = vst.msk [vmem:[#allocation2 + $0x18] sm:$0xff] %vm6978_vm3, %v7715_v1  ;;  %v13452_v47 = vld [vmem:[%s18112_s3 + $0x540] ss:$24 sps:$4 sm:$0xff]  }
0x1c9f   : > { %v8155_v28 = vpack.c.bf16 %v8154_v25, %v8153_v4  ;;  %v13457_v4 = vld [vmem:[%s18112_s3 + $0x27c] ss:$24 sps:$4 sm:$0xff]   ;;  %v13455_v1 = vld [vmem:[%s18112_s3 + $0x278] ss:$24 sps:$4 sm:$0xff]  }
0x1ca0   : > { %v13460_v25 = vld [vmem:[%s18112_s3 + $0x574] ss:$24 sps:$4 sm:$0xff]  }
0x1ca1   : > { %11830 = vmatmul.mubr.msk.bf16.vlgmr.msra.gmra.mrb[112].mxu1 %vm6779_vm2, %v8155_v28  ;;  %v7469_v34 = vpop.permute.xlu0 %7468  ;;  %v17251_v36 = vld [vmem:[#allocation2] sm:$0xff] }
0x1ca2   : > { %10106 = vmatpush1.bf16.msra.mxu1 %v13377_v31  ;;  %7471 = vst.msk [vmem:[#allocation2 + $0x10] sm:$0xff] %vm6978_vm3, %v7469_v34  ;;  %10009 = vmatmul.mubr.bf16.vlgmr.msra.gmra.mrb[20].mxu0 %v17251_v36  ;;  %v13458_v31 = vld [vmem:[%s18112_s3 + $0x570] ss:$24 sps:$4 sm:$0xff]   ;;  %v13463_v28 = vld [vmem:[%s18112_s3 + $0x2ac] ss:$24 sps:$4 sm:$0xff]  }
0x1ca3   : > { %10020 = vmatpush1.bf16.msra.mxu0 %v13380_v62  ;;  %10137 = vmatprep.mubr.bf16.mxu1 %v17187_v30  ;;  %v13466_v62 = vld [vmem:[%s18112_s3 + $0x5a4] ss:$24 sps:$4 sm:$0xff]  }
0x1ca4   : > { %10107 = vmatprep.subr.bf16.mxu1 %v13385_v40  ;;  %10021 = vmatprep.subr.bf16.mxu0 %v13388_v27  ;;  %v13461_v40 = vld [vmem:[%s18112_s3 + $0x2a8] ss:$24 sps:$4 sm:$0xff]   ;;  %v13469_v34 = vld [vmem:[%s18112_s3 + $0x2dc] ss:$24 sps:$4 sm:$0xff]  }
0x1ca5   : > { %v17268_v55 = vld [vmem:[#allocation2 + $0x18] sm:$0xff] }
0x1ca6   : > { %10108 = vmatpush1.bf16.msra.mxu1 %v13383_v39  ;;  %10051 = vmatprep.mubr.bf16.mxu0 %v17268_v55  ;;  %v13464_v27 = vld [vmem:[%s18112_s3 + $0x5a0] ss:$24 sps:$4 sm:$0xff]   ;;  %v13472_v39 = vld [vmem:[%s18112_s3 + $0x5d4] ss:$24 sps:$4 sm:$0xff]  }
0x1ca7   : > { %10022 = vmatpush1.bf16.msra.mxu0 %v13386_v14  ;;  %10109 = vmatprep.subr.bf16.mxu1 %v13391_v19  ;;  %v13467_v14 = vld [vmem:[%s18112_s3 + $0x2d8] ss:$24 sps:$4 sm:$0xff]  }
0x1ca8   : > { %10023 = vmatprep.subr.bf16.mxu0 %v13394_v29  ;;  %v13470_v19 = vld [vmem:[%s18112_s3 + $0x5d0] ss:$24 sps:$4 sm:$0xff]   ;;  %v13475_v29 = vld [vmem:[%s18112_s3 + $0x30c] ss:$24 sps:$4 sm:$0xff]  }
0x1caa   : > { %10110 = vmatpush1.bf16.msra.mxu1 %v13389_v22  ;;  %v13473_v22 = vld [vmem:[%s18112_s3 + $0x308] ss:$24 sps:$4 sm:$0xff]  }
0x1cab   : > { %10024 = vmatpush1.bf16.msra.mxu0 %v13392_v26  ;;  %10111 = vmatprep.subr.bf16.mxu1 %v13397_v38  ;;  %v13478_v26 = vld [vmem:[%s18112_s3 + $0x33c] ss:$24 sps:$4 sm:$0xff]  }
0x1cac   : > { %10025 = vmatprep.subr.bf16.mxu0 %v13400_v32  ;;  %v17443_v38 = vld [vmem:[#allocation2 + $0x10] sm:$0xff] }
0x1cad   : > { %v13476_v32 = vld [vmem:[%s18112_s3 + $0x338] ss:$24 sps:$4 sm:$0xff]  }
0x1cae   : > { %10112 = vmatpush1.bf16.msra.mxu1 %v13395_v46  ;;  %v13481_v46 = vld [vmem:[%s18112_s3 + $0x36c] ss:$24 sps:$4 sm:$0xff]  }
0x1caf   : > { %10026 = vmatpush1.bf16.msra.mxu0 %v13398_v5  ;;  %10113 = vmatprep.subr.bf16.mxu1 %v13403_v16  ;;  %v13479_v5 = vld [vmem:[%s18112_s3 + $0x368] ss:$24 sps:$4 sm:$0xff]   ;;  %v13484_v16 = vld [vmem:[%s18112_s3 + $0x39c] ss:$24 sps:$4 sm:$0xff]  }
0x1cb0   : > { %10027 = vmatprep.subr.bf16.mxu0 %v13406_v54  ;;  %v13482_v54 = vld [vmem:[%s18112_s3 + $0x398] ss:$24 sps:$4 sm:$0xff]  }
0x1cb2   : > { %10114 = vmatpush1.bf16.msra.mxu1 %v13401_v52  ;;  %v13487_v52 = vld [vmem:[%s18112_s3 + $0x3cc] ss:$24 sps:$4 sm:$0xff]  }
0x1cb3   : > { %10028 = vmatpush1.bf16.msra.mxu0 %v13404_v35  ;;  %10115 = vmatprep.subr.bf16.mxu1 %v13409_v33  ;;  %v13485_v35 = vld [vmem:[%s18112_s3 + $0x3c8] ss:$24 sps:$4 sm:$0xff]   ;;  %v13490_v33 = vld [vmem:[%s18112_s3 + $0x3fc] ss:$24 sps:$4 sm:$0xff]  }
0x1cb4   : > { %10029 = vmatprep.subr.bf16.mxu0 %v13412_v37  ;;  %v13488_v37 = vld [vmem:[%s18112_s3 + $0x3f8] ss:$24 sps:$4 sm:$0xff]  }
0x1cb6   : > { %10116 = vmatpush1.bf16.msra.mxu1 %v13407_v61  ;;  %v13493_v61 = vld [vmem:[%s18112_s3 + $0x42c] ss:$24 sps:$4 sm:$0xff]  }
0x1cb7   : > { %10030 = vmatpush1.bf16.msra.mxu0 %v13410_v48  ;;  %10117 = vmatprep.subr.bf16.mxu1 %v13415_v44  ;;  %v13491_v48 = vld [vmem:[%s18112_s3 + $0x428] ss:$24 sps:$4 sm:$0xff]   ;;  %v13496_v44 = vld [vmem:[%s18112_s3 + $0x45c] ss:$24 sps:$4 sm:$0xff]  }
0x1cb8   : > { %10031 = vmatprep.subr.bf16.mxu0 %v13418_v53  ;;  %v13521_v53 = vld [vmem:[%s18112_s3 + $0x600] ss:$24 sps:$4 sm:$0xff]  }
0x1cba   : > { %10118 = vmatpush1.bf16.msra.mxu1 %v13413_v57  ;;  %v13523_v57 = vld [vmem:[%s18112_s3 + $0x604] ss:$24 sps:$4 sm:$0xff]  }
0x1cbb   : > { %10032 = vmatpush1.bf16.msra.mxu0 %v13416_v9  ;;  %10119 = vmatprep.subr.bf16.mxu1 %v13421_v60  ;;  %v13494_v9 = vld [vmem:[%s18112_s3 + $0x458] ss:$24 sps:$4 sm:$0xff]   ;;  %v13529_v60 = vld [vmem:[%s18112_s3 + $0x634] ss:$24 sps:$4 sm:$0xff]  }
0x1cbc   : > { %10033 = vmatprep.subr.bf16.mxu0 %v13424_v12  ;;  %v13499_v12 = vld [vmem:[%s18112_s3 + $0x48c] ss:$24 sps:$4 sm:$0xff]  }
0x1cbe   : > { %10120 = vmatpush1.bf16.msra.mxu1 %v13419_v45  ;;  %v13527_v45 = vld [vmem:[%s18112_s3 + $0x630] ss:$24 sps:$4 sm:$0xff]  }
0x1cbf   : > { %10034 = vmatpush1.bf16.msra.mxu0 %v13422_v13  ;;  %10121 = vmatprep.subr.bf16.mxu1 %v13427_v0  ;;  %v13535_v13 = vld [vmem:[%s18112_s3 + $0x664] ss:$24 sps:$4 sm:$0xff]   ;;  %v13497_v0 = vld [vmem:[%s18112_s3 + $0x488] ss:$24 sps:$4 sm:$0xff]  }
0x1cc0   : > { %10035 = vmatprep.subr.bf16.mxu0 %v13430_v11  ;;  %v13502_v11 = vld [vmem:[%s18112_s3 + $0x4bc] ss:$24 sps:$4 sm:$0xff]  }
0x1cc2   : > { %10122 = vmatpush1.bf16.msra.mxu1 %v13425_v63  ;;  %v13533_v63 = vld [vmem:[%s18112_s3 + $0x660] ss:$24 sps:$4 sm:$0xff]  }
0x1cc3   : > { %10036 = vmatpush1.bf16.msra.mxu0 %v13428_v59  ;;  %10123 = vmatprep.subr.bf16.mxu1 %v13433_v56  ;;  %v13541_v59 = vld [vmem:[%s18112_s3 + $0x694] ss:$24 sps:$4 sm:$0xff]   ;;  %v13500_v56 = vld [vmem:[%s18112_s3 + $0x4b8] ss:$24 sps:$4 sm:$0xff]  }
0x1cc4   : > { %10037 = vmatprep.subr.bf16.mxu0 %v13436_v6  ;;  %v13505_v6 = vld [vmem:[%s18112_s3 + $0x4ec] ss:$24 sps:$4 sm:$0xff]  }
0x1cc6   : > { %10124 = vmatpush1.bf16.msra.mxu1 %v13431_v58  ;;  %v13539_v58 = vld [vmem:[%s18112_s3 + $0x690] ss:$24 sps:$4 sm:$0xff]  }
0x1cc7   : > { %10038 = vmatpush1.bf16.msra.mxu0 %v13434_v21  ;;  %10125 = vmatprep.subr.bf16.mxu1 %v13439_v2  ;;  %v13547_v21 = vld [vmem:[%s18112_s3 + $0x6c4] ss:$24 sps:$4 sm:$0xff]   ;;  %v13503_v2 = vld [vmem:[%s18112_s3 + $0x4e8] ss:$24 sps:$4 sm:$0xff]  }
0x1cc8   : > { %10039 = vmatprep.subr.bf16.mxu0 %v13442_v7  ;;  %v13508_v7 = vld [vmem:[%s18112_s3 + $0x51c] ss:$24 sps:$4 sm:$0xff]  }
0x1cca   : > { %10126 = vmatpush1.bf16.msra.mxu1 %v13437_v23  ;;  %v13545_v23 = vld [vmem:[%s18112_s3 + $0x6c0] ss:$24 sps:$4 sm:$0xff]  }
0x1ccb   : > { %10040 = vmatpush1.bf16.msra.mxu0 %v13440_v10  ;;  %10127 = vmatprep.subr.bf16.mxu1 %v13445_v15  ;;  %v13553_v10 = vld [vmem:[%s18112_s3 + $0x6f4] ss:$24 sps:$4 sm:$0xff]   ;;  %v13506_v15 = vld [vmem:[%s18112_s3 + $0x518] ss:$24 sps:$4 sm:$0xff]  }
0x1ccc   : > { %10041 = vmatprep.subr.bf16.mxu0 %v13448_v20  ;;  %v13511_v20 = vld [vmem:[%s18112_s3 + $0x54c] ss:$24 sps:$4 sm:$0xff]  }
0x1cce   : > { %10128 = vmatpush1.bf16.msra.mxu1 %v13443_v50  ;;  %v13551_v50 = vld [vmem:[%s18112_s3 + $0x6f0] ss:$24 sps:$4 sm:$0xff]  }
0x1ccf   : > { %10042 = vmatpush1.bf16.msra.mxu0 %v13446_v49  ;;  %10129 = vmatprep.subr.bf16.mxu1 %v13451_v17  ;;  %v13559_v49 = vld [vmem:[%s18112_s3 + $0x724] ss:$24 sps:$4 sm:$0xff]   ;;  %v13509_v17 = vld [vmem:[%s18112_s3 + $0x548] ss:$24 sps:$4 sm:$0xff]  }
0x1cd0   : > { %10043 = vmatprep.subr.bf16.mxu0 %v13454_v24  ;;  %v13514_v24 = vld [vmem:[%s18112_s3 + $0x57c] ss:$24 sps:$4 sm:$0xff]  }
0x1cd2   : > { %10130 = vmatpush1.bf16.msra.mxu1 %v13449_v42  ;;  %v13557_v42 = vld [vmem:[%s18112_s3 + $0x720] ss:$24 sps:$4 sm:$0xff]  }
0x1cd3   : > { %10044 = vmatpush1.bf16.msra.mxu0 %v13452_v47  ;;  %10131 = vmatprep.subr.bf16.mxu1 %v13457_v4  ;;  %v13565_v47 = vld [vmem:[%s18112_s3 + $0x754] ss:$24 sps:$4 sm:$0xff]   ;;  %v13512_v4 = vld [vmem:[%s18112_s3 + $0x578] ss:$24 sps:$4 sm:$0xff]  }
0x1cd4   : > { %10045 = vmatprep.subr.bf16.mxu0 %v13460_v25  ;;  %v13517_v25 = vld [vmem:[%s18112_s3 + $0x5ac] ss:$24 sps:$4 sm:$0xff]  }
0x1cd6   : > { %10132 = vmatpush1.bf16.msra.mxu1 %v13455_v1  ;;  %v13563_v1 = vld [vmem:[%s18112_s3 + $0x750] ss:$24 sps:$4 sm:$0xff]  }
0x1cd7   : > { %10046 = vmatpush1.bf16.msra.mxu0 %v13458_v31  ;;  %10133 = vmatprep.subr.bf16.mxu1 %v13463_v28  ;;  %v13571_v31 = vld [vmem:[%s18112_s3 + $0x784] ss:$24 sps:$4 sm:$0xff]   ;;  %v13515_v28 = vld [vmem:[%s18112_s3 + $0x5a8] ss:$24 sps:$4 sm:$0xff]  }
0x1cd8   : > { %10047 = vmatprep.subr.bf16.mxu0 %v13466_v62  ;;  %v13520_v62 = vld [vmem:[%s18112_s3 + $0x5dc] ss:$24 sps:$4 sm:$0xff]  }
0x1cda   : > { %10134 = vmatpush1.bf16.msra.mxu1 %v13461_v40  ;;  %v13569_v40 = vld [vmem:[%s18112_s3 + $0x780] ss:$24 sps:$4 sm:$0xff]  }
0x1cdb   : > { %10048 = vmatpush1.bf16.msra.mxu0 %v13464_v27  ;;  %10135 = vmatprep.subr.bf16.mxu1 %v13469_v34  ;;  %v13577_v27 = vld [vmem:[%s18112_s3 + $0x7b4] ss:$24 sps:$4 sm:$0xff]   ;;  %v13518_v34 = vld [vmem:[%s18112_s3 + $0x5d8] ss:$24 sps:$4 sm:$0xff]  }
0x1cdc   : > { %10049 = vmatprep.subr.bf16.mxu0 %v13472_v39  ;;  %v13526_v39 = vld [vmem:[%s18112_s3 + $0x60c] ss:$24 sps:$4 sm:$0xff]  }
0x1cde   : > { %10136 = vmatpush1.bf16.msra.mxu1 %v13467_v14  ;;  %v13575_v14 = vld [vmem:[%s18112_s3 + $0x7b0] ss:$24 sps:$4 sm:$0xff]  }
0x1cdf   : > { %10050 = vmatpush1.bf16.msra.mxu0 %v13470_v19  ;;  %10148 = vmatprep.subr.bf16.mxu1 %v13475_v29  ;;  %v13583_v19 = vld [vmem:[%s18112_s3 + $0x7e4] ss:$24 sps:$4 sm:$0xff]   ;;  %v13524_v29 = vld [vmem:[%s18112_s3 + $0x608] ss:$24 sps:$4 sm:$0xff]  }
0x1ce0   : > { %10062 = vmatprep.subr.bf16.mxu0 %v13523_v57  ;;  %v13556_v57 = vld [vmem:[%s18112_s3 + $0x6fc] ss:$24 sps:$4 sm:$0xff]  }
0x1ce1   : > { %10138 = vmatmul.mubr.bf16.vlgmr.msra.gmra.mrb[116].mxu1 %v17251_v36 }
0x1ce2   : > { %10052 = vmatmul.mubr.bf16.vlgmr.msra.gmra.mrb[20].mxu0 %v17443_v38  ;;  %10149 = vmatpush1.bf16.msra.mxu1 %v13473_v22  ;;  %v13532_v22 = vld [vmem:[%s18112_s3 + $0x63c] ss:$24 sps:$4 sm:$0xff]  }
0x1ce3   : > { %10180 = vmatprep.mubr.bf16.mxu1 %v17268_v55  ;;  %10150 = vmatprep.subr.bf16.mxu1 %v13478_v26  ;;  %v13581_v26 = vld [vmem:[%s18112_s3 + $0x7e0] ss:$24 sps:$4 sm:$0xff]  }
0x1ce4   : > { %10063 = vmatpush1.bf16.msra.mxu0 %v13521_v53  ;;  %v13548_v53 = vld [vmem:[%s18112_s3 + $0x6c8] ss:$24 sps:$4 sm:$0xff]  }
0x1ce5   : > { %10064 = vmatprep.subr.bf16.mxu0 %v13529_v60  ;;  %v13562_v60 = vld [vmem:[%s18112_s3 + $0x72c] ss:$24 sps:$4 sm:$0xff]  }
0x1ce6   : > { %10151 = vmatpush1.bf16.msra.mxu1 %v13476_v32  ;;  %v13589_v32 = vld [vmem:[%s18112_s3 + $0x814] ss:$24 sps:$4 sm:$0xff]  }
0x1ce7   : > { %10152 = vmatprep.subr.bf16.mxu1 %v13481_v46  ;;  %v13530_v46 = vld [vmem:[%s18112_s3 + $0x638] ss:$24 sps:$4 sm:$0xff]  }
0x1ce8   : > { %10065 = vmatpush1.bf16.msra.mxu0 %v13527_v45  ;;  %v13568_v45 = vld [vmem:[%s18112_s3 + $0x75c] ss:$24 sps:$4 sm:$0xff]  }
0x1ce9   : > { %10066 = vmatprep.subr.bf16.mxu0 %v13535_v13  ;;  %v13566_v13 = vld [vmem:[%s18112_s3 + $0x758] ss:$24 sps:$4 sm:$0xff]  }
0x1cea   : > { %10153 = vmatpush1.bf16.msra.mxu1 %v13479_v5  ;;  %v13538_v5 = vld [vmem:[%s18112_s3 + $0x66c] ss:$24 sps:$4 sm:$0xff]  }
0x1ceb   : > { %10154 = vmatprep.subr.bf16.mxu1 %v13484_v16  ;;  %v13587_v16 = vld [vmem:[%s18112_s3 + $0x810] ss:$24 sps:$4 sm:$0xff]  }
0x1cec   : > { %10067 = vmatpush1.bf16.msra.mxu0 %v13533_v63  ;;  %v13580_v63 = vld [vmem:[%s18112_s3 + $0x7bc] ss:$24 sps:$4 sm:$0xff]  }
0x1ced   : > { %10068 = vmatprep.subr.bf16.mxu0 %v13541_v59  ;;  %v13578_v59 = vld [vmem:[%s18112_s3 + $0x7b8] ss:$24 sps:$4 sm:$0xff]  }
0x1cee   : > { %10155 = vmatpush1.bf16.msra.mxu1 %v13482_v54  ;;  %v13595_v54 = vld [vmem:[%s18112_s3 + $0x844] ss:$24 sps:$4 sm:$0xff]  }
0x1cef   : > { %10156 = vmatprep.subr.bf16.mxu1 %v13487_v52  ;;  %v13536_v52 = vld [vmem:[%s18112_s3 + $0x668] ss:$24 sps:$4 sm:$0xff]  }
0x1cf0   : > { %10069 = vmatpush1.bf16.msra.mxu0 %v13539_v58  ;;  %v13592_v58 = vld [vmem:[%s18112_s3 + $0x81c] ss:$24 sps:$4 sm:$0xff]  }
0x1cf1   : > { %10070 = vmatprep.subr.bf16.mxu0 %v13547_v21  ;;  %v13590_v21 = vld [vmem:[%s18112_s3 + $0x818] ss:$24 sps:$4 sm:$0xff]  }
0x1cf2   : > { %10157 = vmatpush1.bf16.msra.mxu1 %v13485_v35  ;;  %v13544_v35 = vld [vmem:[%s18112_s3 + $0x69c] ss:$24 sps:$4 sm:$0xff]  }
0x1cf3   : > { %10158 = vmatprep.subr.bf16.mxu1 %v13490_v33  ;;  %v13593_v33 = vld [vmem:[%s18112_s3 + $0x840] ss:$24 sps:$4 sm:$0xff]  }
0x1cf4   : > { %10071 = vmatpush1.bf16.msra.mxu0 %v13545_v23  ;;  %v13604_v23 = vld [vmem:[%s18112_s3 + $0x87c] ss:$24 sps:$4 sm:$0xff]  }
0x1cf5   : > { %10072 = vmatprep.subr.bf16.mxu0 %v13553_v10  ;;  %v13602_v10 = vld [vmem:[%s18112_s3 + $0x878] ss:$24 sps:$4 sm:$0xff]  }
0x1cf6   : > { %10159 = vmatpush1.bf16.msra.mxu1 %v13488_v37  ;;  %v13601_v37 = vld [vmem:[%s18112_s3 + $0x874] ss:$24 sps:$4 sm:$0xff]  }
0x1cf7   : > { %10160 = vmatprep.subr.bf16.mxu1 %v13493_v61  ;;  %v13542_v61 = vld [vmem:[%s18112_s3 + $0x698] ss:$24 sps:$4 sm:$0xff]  }
0x1cf8   : > { %10073 = vmatpush1.bf16.msra.mxu0 %v13551_v50  ;;  %v13608_v50 = vld [vmem:[%s18112_s3 + $0x8a8] ss:$24 sps:$4 sm:$0xff]  }
0x1cf9   : > { %10074 = vmatprep.subr.bf16.mxu0 %v13559_v49  ;;  %v13610_v49 = vld [vmem:[%s18112_s3 + $0x8ac] ss:$24 sps:$4 sm:$0xff]  }
0x1cfa   : > { %10161 = vmatpush1.bf16.msra.mxu1 %v13491_v48  ;;  %v13550_v48 = vld [vmem:[%s18112_s3 + $0x6cc] ss:$24 sps:$4 sm:$0xff]  }
0x1cfb   : > { %10162 = vmatprep.subr.bf16.mxu1 %v13496_v44  ;;  %v13599_v44 = vld [vmem:[%s18112_s3 + $0x870] ss:$24 sps:$4 sm:$0xff]  }
0x1cfc   : > { %10075 = vmatpush1.bf16.msra.mxu0 %v13557_v42  ;;  %v13611_v42 = vld [vmem:[%s18112_s3 + $0x8d0] ss:$24 sps:$4 sm:$0xff]  }
0x1cfd   : > { %10076 = vmatprep.subr.bf16.mxu0 %v13565_v47  ;;  %v13614_v47 = vld [vmem:[%s18112_s3 + $0x8d8] ss:$24 sps:$4 sm:$0xff]  }
0x1cfe   : > { %10163 = vmatpush1.bf16.msra.mxu1 %v13494_v9  ;;  %v13554_v9 = vld [vmem:[%s18112_s3 + $0x6f8] ss:$24 sps:$4 sm:$0xff]  }
0x1cff   : > { %10164 = vmatprep.subr.bf16.mxu1 %v13499_v12  ;;  %v13560_v12 = vld [vmem:[%s18112_s3 + $0x728] ss:$24 sps:$4 sm:$0xff]  }
0x1d00   : > { %10077 = vmatpush1.bf16.msra.mxu0 %v13563_v1 }
0x1d01   : > { %10078 = vmatprep.subr.bf16.mxu0 %v13571_v31 }
0x1d02   : > { %10165 = vmatpush1.bf16.msra.mxu1 %v13497_v0  ;;  %v13574_v0 = vld [vmem:[%s18112_s3 + $0x78c] ss:$24 sps:$4 sm:$0xff]  }
0x1d03   : > { %10166 = vmatprep.subr.bf16.mxu1 %v13502_v11  ;;  %v13572_v11 = vld [vmem:[%s18112_s3 + $0x788] ss:$24 sps:$4 sm:$0xff]  }
0x1d04   : > { %10079 = vmatpush1.bf16.msra.mxu0 %v13569_v40 }
0x1d05   : > { %10080 = vmatprep.subr.bf16.mxu0 %v13577_v27  ;;  %v13617_v27 = vld [vmem:[%s18112_s3 + $0x10] ss:$24 sps:$4 sm:$0xff]  }
0x1d06   : > { %10167 = vmatpush1.bf16.msra.mxu1 %v13500_v56  ;;  %v13586_v56 = vld [vmem:[%s18112_s3 + $0x7ec] ss:$24 sps:$4 sm:$0xff]  }
0x1d07   : > { %10168 = vmatprep.subr.bf16.mxu1 %v13505_v6  ;;  %v13584_v6 = vld [vmem:[%s18112_s3 + $0x7e8] ss:$24 sps:$4 sm:$0xff]  }
0x1d08   : > { %10081 = vmatpush1.bf16.msra.mxu0 %v13575_v14  ;;  %v17742_v14 = vld [vmem:[#allocation2 + $0x20] sm:$0xff] }
0x1d09   : > { %10082 = vmatprep.subr.bf16.mxu0 %v13583_v19  ;;  %v13620_v19 = vld [vmem:[%s18112_s3 + $0x40] ss:$24 sps:$4 sm:$0xff]  }
0x1d0a   : > { %10169 = vmatpush1.bf16.msra.mxu1 %v13503_v2  ;;  %v13598_v2 = vld [vmem:[%s18112_s3 + $0x84c] ss:$24 sps:$4 sm:$0xff]  }
0x1d0b   : > { %10170 = vmatprep.subr.bf16.mxu1 %v13508_v7  ;;  %v13596_v7 = vld [vmem:[%s18112_s3 + $0x848] ss:$24 sps:$4 sm:$0xff]  }
0x1d0c   : > { %10083 = vmatpush1.bf16.msra.mxu0 %v13581_v26  ;;  %v13628_v26 = vld [vmem:[%s18112_s3 + $0xa4] ss:$24 sps:$4 sm:$0xff]  }
0x1d0d   : > { %10084 = vmatprep.subr.bf16.mxu0 %v13589_v32  ;;  %v13631_v32 = vld [vmem:[%s18112_s3 + $0xd4] ss:$24 sps:$4 sm:$0xff]  }
0x1d0e   : > { %10171 = vmatpush1.bf16.msra.mxu1 %v13506_v15  ;;  %v13605_v15 = vld [vmem:[%s18112_s3 + $0x8a0] ss:$24 sps:$4 sm:$0xff]  }
0x1d0f   : > { %10172 = vmatprep.subr.bf16.mxu1 %v13511_v20  ;;  %v13607_v20 = vld [vmem:[%s18112_s3 + $0x8a4] ss:$24 sps:$4 sm:$0xff]  }
0x1d10   : > { %10085 = vmatpush1.bf16.msra.mxu0 %v13587_v16  ;;  %v13632_v16 = vld [vmem:[%s18112_s3 + $0x100] ss:$24 sps:$4 sm:$0xff]  }
0x1d11   : > { %10086 = vmatprep.subr.bf16.mxu0 %v13595_v54  ;;  %v13637_v54 = vld [vmem:[%s18112_s3 + $0x134] ss:$24 sps:$4 sm:$0xff]  }
0x1d12   : > { %10173 = vmatpush1.bf16.msra.mxu1 %v13509_v17  ;;  %v13613_v17 = vld [vmem:[%s18112_s3 + $0x8d4] ss:$24 sps:$4 sm:$0xff]  }
0x1d13   : > { %10174 = vmatprep.subr.bf16.mxu1 %v13514_v24  ;;  %v13616_v24 = vld [vmem:[%s18112_s3 + $0x8dc] ss:$24 sps:$4 sm:$0xff]  }
0x1d14   : > { %10087 = vmatpush1.bf16.msra.mxu0 %v13593_v33  ;;  %v13638_v33 = vld [vmem:[%s18112_s3 + $0x160] ss:$24 sps:$4 sm:$0xff]  }
0x1d15   : > { %10088 = vmatprep.subr.bf16.mxu0 %v13601_v37  ;;  %v13643_v37 = vld [vmem:[%s18112_s3 + $0x194] ss:$24 sps:$4 sm:$0xff]  }
0x1d16   : > { %10175 = vmatpush1.bf16.msra.mxu1 %v13512_v4 }
0x1d17   : > { %10176 = vmatprep.subr.bf16.mxu1 %v13517_v25  ;;  %v13619_v25 = vld [vmem:[%s18112_s3 + $0x14] ss:$24 sps:$4 sm:$0xff]  }
0x1d18   : > { %10089 = vmatpush1.bf16.msra.mxu0 %v13599_v44  ;;  %v13644_v44 = vld [vmem:[%s18112_s3 + $0x1c0] ss:$24 sps:$4 sm:$0xff]  }
0x1d19   : > { %10090 = vmatprep.subr.bf16.mxu0 %v13607_v20  ;;  %v13682_v20 = vld [vmem:[%s18112_s3 + $0x404] ss:$24 sps:$4 sm:$0xff]  }
0x1d1a   : > { %10177 = vmatpush1.bf16.msra.mxu1 %v13515_v28 }
0x1d1b   : > { %10178 = vmatprep.subr.bf16.mxu1 %v13520_v62 }
0x1d1c   : > { %10091 = vmatpush1.bf16.msra.mxu0 %v13605_v15  ;;  %v13677_v15 = vld [vmem:[%s18112_s3 + $0x3d0] ss:$24 sps:$4 sm:$0xff]  }
0x1d1d   : > { %10092 = vmatprep.subr.bf16.mxu0 %v13613_v17  ;;  %v13683_v17 = vld [vmem:[%s18112_s3 + $0x430] ss:$24 sps:$4 sm:$0xff]  }
0x1d1e   : > { %10179 = vmatpush1.bf16.msra.mxu1 %v13518_v34 }
0x1d1f   : > { %10191 = vmatprep.subr.bf16.mxu1 %v13526_v39  ;;  %v13622_v39 = vld [vmem:[%s18112_s3 + $0x44] ss:$24 sps:$4 sm:$0xff]  }
0x1d20   : > { %10093 = vmatpush1.bf16.msra.mxu0 %v13611_v42  ;;  %v13686_v42 = vld [vmem:[%s18112_s3 + $0x460] ss:$24 sps:$4 sm:$0xff]  }
0x1d21   : > { %10181 = vmatmul.mubr.bf16.vlgmr.msra.gmra.mrb[116].mxu1 %v17443_v38  ;;  %10234 = vmatprep.subr.bf16.mxu0 %v13619_v25  ;;  %v13694_v25 = vld [vmem:[%s18112_s3 + $0x4c4] ss:$24 sps:$4 sm:$0xff]  }
0x1d22   : > { %10192 = vmatpush1.bf16.msra.mxu1 %v13524_v29  ;;  %v13625_v29 = vld [vmem:[%s18112_s3 + $0x74] ss:$24 sps:$4 sm:$0xff]  }
0x1d23   : > { %10193 = vmatprep.subr.bf16.mxu1 %v13532_v22  ;;  %v13623_v22 = vld [vmem:[%s18112_s3 + $0x70] ss:$24 sps:$4 sm:$0xff]  }
0x1d26   : > { %10194 = vmatpush1.bf16.msra.mxu1 %v13530_v46  ;;  %v13629_v46 = vld [vmem:[%s18112_s3 + $0xd0] ss:$24 sps:$4 sm:$0xff]  }
0x1d27   : > { %10195 = vmatprep.subr.bf16.mxu1 %v13538_v5  ;;  %v13634_v5 = vld [vmem:[%s18112_s3 + $0x104] ss:$24 sps:$4 sm:$0xff]  }
0x1d2a   : > { %10196 = vmatpush1.bf16.msra.mxu1 %v13536_v52  ;;  %v13635_v52 = vld [vmem:[%s18112_s3 + $0x130] ss:$24 sps:$4 sm:$0xff]  }
0x1d2b   : > { %10197 = vmatprep.subr.bf16.mxu1 %v13544_v35  ;;  %v13640_v35 = vld [vmem:[%s18112_s3 + $0x164] ss:$24 sps:$4 sm:$0xff]  }
0x1d2e   : > { %10198 = vmatpush1.bf16.msra.mxu1 %v13542_v61  ;;  %v13641_v61 = vld [vmem:[%s18112_s3 + $0x190] ss:$24 sps:$4 sm:$0xff]  }
0x1d2f   : > { %10199 = vmatprep.subr.bf16.mxu1 %v13550_v48  ;;  %v13646_v48 = vld [vmem:[%s18112_s3 + $0x1c4] ss:$24 sps:$4 sm:$0xff]  }
0x1d32   : > { %10200 = vmatpush1.bf16.msra.mxu1 %v13548_v53  ;;  %v13649_v53 = vld [vmem:[%s18112_s3 + $0x1f4] ss:$24 sps:$4 sm:$0xff]  }
0x1d33   : > { %10201 = vmatprep.subr.bf16.mxu1 %v13556_v57  ;;  %v13647_v57 = vld [vmem:[%s18112_s3 + $0x1f0] ss:$24 sps:$4 sm:$0xff]  }
0x1d36   : > { %10202 = vmatpush1.bf16.msra.mxu1 %v13554_v9  ;;  %v13652_v9 = vld [vmem:[%s18112_s3 + $0x224] ss:$24 sps:$4 sm:$0xff]  }
0x1d37   : > { %10203 = vmatprep.subr.bf16.mxu1 %v13562_v60  ;;  %v13650_v60 = vld [vmem:[%s18112_s3 + $0x220] ss:$24 sps:$4 sm:$0xff]  }
0x1d3a   : > { %10204 = vmatpush1.bf16.msra.mxu1 %v13560_v12  ;;  %v13655_v12 = vld [vmem:[%s18112_s3 + $0x254] ss:$24 sps:$4 sm:$0xff]  }
0x1d3b   : > { %10205 = vmatprep.subr.bf16.mxu1 %v13568_v45  ;;  %v13653_v45 = vld [vmem:[%s18112_s3 + $0x250] ss:$24 sps:$4 sm:$0xff]  }
0x1d3e   : > { %10206 = vmatpush1.bf16.msra.mxu1 %v13566_v13  ;;  %v13658_v13 = vld [vmem:[%s18112_s3 + $0x284] ss:$24 sps:$4 sm:$0xff]  }
0x1d3f   : > { %10207 = vmatprep.subr.bf16.mxu1 %v13574_v0  ;;  %v13656_v0 = vld [vmem:[%s18112_s3 + $0x280] ss:$24 sps:$4 sm:$0xff]  }
0x1d42   : > { %10208 = vmatpush1.bf16.msra.mxu1 %v13572_v11  ;;  %v13661_v11 = vld [vmem:[%s18112_s3 + $0x2b4] ss:$24 sps:$4 sm:$0xff]  }
0x1d43   : > { %10209 = vmatprep.subr.bf16.mxu1 %v13580_v63  ;;  %v13659_v63 = vld [vmem:[%s18112_s3 + $0x2b0] ss:$24 sps:$4 sm:$0xff]  }
0x1d46   : > { %10210 = vmatpush1.bf16.msra.mxu1 %v13578_v59  ;;  %v13664_v59 = vld [vmem:[%s18112_s3 + $0x2e4] ss:$24 sps:$4 sm:$0xff]  }
0x1d47   : > { %10211 = vmatprep.subr.bf16.mxu1 %v13586_v56  ;;  %v13662_v56 = vld [vmem:[%s18112_s3 + $0x2e0] ss:$24 sps:$4 sm:$0xff]  }
0x1d4a   : > { %10212 = vmatpush1.bf16.msra.mxu1 %v13584_v6  ;;  %v13667_v6 = vld [vmem:[%s18112_s3 + $0x314] ss:$24 sps:$4 sm:$0xff]  }
0x1d4b   : > { %10213 = vmatprep.subr.bf16.mxu1 %v13592_v58  ;;  %v13665_v58 = vld [vmem:[%s18112_s3 + $0x310] ss:$24 sps:$4 sm:$0xff]  }
0x1d4e   : > { %10214 = vmatpush1.bf16.msra.mxu1 %v13590_v21  ;;  %v13670_v21 = vld [vmem:[%s18112_s3 + $0x344] ss:$24 sps:$4 sm:$0xff]  }
0x1d4f   : > { %10215 = vmatprep.subr.bf16.mxu1 %v13598_v2  ;;  %v13668_v2 = vld [vmem:[%s18112_s3 + $0x340] ss:$24 sps:$4 sm:$0xff]  }
0x1d52   : > { %10216 = vmatpush1.bf16.msra.mxu1 %v13596_v7  ;;  %v13673_v7 = vld [vmem:[%s18112_s3 + $0x374] ss:$24 sps:$4 sm:$0xff]  }
0x1d53   : > { %10217 = vmatprep.subr.bf16.mxu1 %v13604_v23  ;;  %v13671_v23 = vld [vmem:[%s18112_s3 + $0x370] ss:$24 sps:$4 sm:$0xff]  }
0x1d56   : > { %10218 = vmatpush1.bf16.msra.mxu1 %v13602_v10  ;;  %v13679_v10 = vld [vmem:[%s18112_s3 + $0x3d4] ss:$24 sps:$4 sm:$0xff]  }
0x1d57   : > { %10219 = vmatprep.subr.bf16.mxu1 %v13610_v49  ;;  %v13685_v49 = vld [vmem:[%s18112_s3 + $0x434] ss:$24 sps:$4 sm:$0xff]  }
0x1d5a   : > { %10220 = vmatpush1.bf16.msra.mxu1 %v13608_v50  ;;  %v13680_v50 = vld [vmem:[%s18112_s3 + $0x400] ss:$24 sps:$4 sm:$0xff]  }
0x1d5b   : > { %10221 = vmatprep.subr.bf16.mxu1 %v13616_v24  ;;  %v13688_v24 = vld [vmem:[%s18112_s3 + $0x464] ss:$24 sps:$4 sm:$0xff]  }
0x1d5e   : > { %10222 = vmatpush1.bf16.msra.mxu1 %v13614_v47  ;;  %v13691_v47 = vld [vmem:[%s18112_s3 + $0x494] ss:$24 sps:$4 sm:$0xff]  }
0x1d74   : > { %v8197_v4 = vpop.f32.mrb[112].mxu1 }
0x1d75   : > { %v11831_v1 = vpop.f32.mrb[113].mxu1 }
0x1d76   : > { %v8200_v31 = vpop.f32.mrb[114].mxu1  ;;  %v13692_v1 = vld [vmem:[%s18112_s3 + $0x4c0] ss:$24 sps:$4 sm:$0xff]  }
0x1d77   : > { %v8204_v28 = vpack.c.bf16 %v8200_v31, %v8197_v4  ;;  %v11832_v62 = vpop.f32.mrb[115].mxu1  ;;  %v13689_v4 = vld [vmem:[%s18112_s3 + $0x490] ss:$24 sps:$4 sm:$0xff]   ;;  %v13697_v31 = vld [vmem:[%s18112_s3 + $0x4f4] ss:$24 sps:$4 sm:$0xff]  }
0x1d78   : > { %v13700_v62 = vld [vmem:[%s18112_s3 + $0x524] ss:$24 sps:$4 sm:$0xff]  }
0x1d79   : > { %8206 = vrot.lane.b32.xlu0 %v8204_v28, %s13947_s23  ;;  %v13695_v28 = vld [vmem:[%s18112_s3 + $0x4f0] ss:$24 sps:$4 sm:$0xff]   ;;  %s10389_s23 = sshll.u32 %s18041_s25, 4  ;;  %s18062_s23 = int_to_ptr.vmem [resolvable:$true] %s10389_s23 }
0x1d7a   : > { %s13881_s26 = scalar_lea.vmem %s18062_s23, 1536  ;;  %p13888_p0 = scmp.lt.s32.totalorder %s18062_s23, %s13886_s6 }
0x1d7b   : > { %p13882_p11 = scmp.ne.s32.totalorder %s18062_s23, %s13881_s26  ;;  %p13889_p1 = scmp.lt.s32.totalorder %s13887_s7, %s13881_s26 }
0x1d7d   : > { %p13883_p12 = pnand %p13882_p11, %p14019_p5  ;;  %p13890_p2 = por %p13889_p1, %p13888_p0 }
0x1d7f   : > { %p13884_p13 = pneg %p13883_p12 }
0x1d81   : > { %p13891_p3 = pnand %p13890_p2, %p13884_p13 }
0x1deb   : > { %v8207_v40 = vpop.permute.xlu0 %8206 }
0x1dec   : > { %8209 = vst.msk [vmem:[#allocation2 + $0x28] sm:$0xff] %vm6978_vm3, %v8207_v40  ;;  %v13698_v40 = vld [vmem:[%s18112_s3 + $0x520] ss:$24 sps:$4 sm:$0xff]  }
0x1df3   : > { %v17735_v34 = vld [vmem:[#allocation2 + $0x28] sm:$0xff] }
0x1df4   : > { %10094 = vmatprep.mubr.bf16.mxu0 %v17735_v34  ;;  %10223 = vmatprep.mubr.bf16.mxu1 %v17735_v34 }
0x1df5   : > { %10095 = vmatmul.mubr.bf16.vlgmr.msra.gmra.mrb[20].mxu0 %v17742_v14  ;;  %10224 = vmatmul.mubr.bf16.vlgmr.msra.gmra.mrb[116].mxu1 %v17742_v14 }
0x1df6   : > { %10235 = vmatpush1.bf16.msra.mxu0 %v13617_v27  ;;  %10266 = vmatprep.mubr.bf16.mxu0 %v17187_v30  ;;  %v13626_v30 = vld [vmem:[%s18112_s3 + $0xa0] ss:$24 sps:$4 sm:$0xff]   ;;  %v13703_v27 = vld [vmem:[%s18112_s3 + $0x554] ss:$24 sps:$4 sm:$0xff]  }
0x1df7   : > { %10236 = vmatprep.subr.bf16.mxu0 %v13622_v39  ;;  %v13701_v39 = vld [vmem:[%s18112_s3 + $0x550] ss:$24 sps:$4 sm:$0xff]  }
0x1dfa   : > { %10237 = vmatpush1.bf16.msra.mxu0 %v13620_v19  ;;  %v13706_v19 = vld [vmem:[%s18112_s3 + $0x584] ss:$24 sps:$4 sm:$0xff]  }
0x1dfb   : > { %10238 = vmatprep.subr.bf16.mxu0 %v13625_v29  ;;  %v13704_v29 = vld [vmem:[%s18112_s3 + $0x580] ss:$24 sps:$4 sm:$0xff]  }
0x1dfe   : > { %10239 = vmatpush1.bf16.msra.mxu0 %v13623_v22  ;;  %v13709_v22 = vld [vmem:[%s18112_s3 + $0x5b4] ss:$24 sps:$4 sm:$0xff]  }
0x1dff   : > { %10240 = vmatprep.subr.bf16.mxu0 %v13628_v26  ;;  %v13707_v26 = vld [vmem:[%s18112_s3 + $0x5b0] ss:$24 sps:$4 sm:$0xff]  }
0x1e02   : > { %10241 = vmatpush1.bf16.msra.mxu0 %v13626_v30  ;;  %v13712_v30 = vld [vmem:[%s18112_s3 + $0x5e4] ss:$24 sps:$4 sm:$0xff]  }
0x1e03   : > { %10242 = vmatprep.subr.bf16.mxu0 %v13631_v32  ;;  %v13710_v32 = vld [vmem:[%s18112_s3 + $0x5e0] ss:$24 sps:$4 sm:$0xff]  }
0x1e06   : > { %10243 = vmatpush1.bf16.msra.mxu0 %v13629_v46  ;;  %v13715_v46 = vld [vmem:[%s18112_s3 + $0x614] ss:$24 sps:$4 sm:$0xff]  }
0x1e07   : > { %10244 = vmatprep.subr.bf16.mxu0 %v13634_v5  ;;  %v13713_v5 = vld [vmem:[%s18112_s3 + $0x610] ss:$24 sps:$4 sm:$0xff]  }
0x1e0a   : > { %10245 = vmatpush1.bf16.msra.mxu0 %v13632_v16  ;;  %v13718_v16 = vld [vmem:[%s18112_s3 + $0x644] ss:$24 sps:$4 sm:$0xff]  }
0x1e0b   : > { %10246 = vmatprep.subr.bf16.mxu0 %v13637_v54  ;;  %v13716_v54 = vld [vmem:[%s18112_s3 + $0x640] ss:$24 sps:$4 sm:$0xff]  }
0x1e0e   : > { %10247 = vmatpush1.bf16.msra.mxu0 %v13635_v52  ;;  %v13721_v52 = vld [vmem:[%s18112_s3 + $0x674] ss:$24 sps:$4 sm:$0xff]  }
0x1e0f   : > { %10248 = vmatprep.subr.bf16.mxu0 %v13640_v35  ;;  %v13719_v35 = vld [vmem:[%s18112_s3 + $0x670] ss:$24 sps:$4 sm:$0xff]  }
0x1e12   : > { %10249 = vmatpush1.bf16.msra.mxu0 %v13638_v33  ;;  %v13727_v33 = vld [vmem:[%s18112_s3 + $0x6d4] ss:$24 sps:$4 sm:$0xff]  }
0x1e13   : > { %10250 = vmatprep.subr.bf16.mxu0 %v13643_v37  ;;  %v13725_v37 = vld [vmem:[%s18112_s3 + $0x6d0] ss:$24 sps:$4 sm:$0xff]  }
0x1e16   : > { %10251 = vmatpush1.bf16.msra.mxu0 %v13641_v61  ;;  %v13730_v61 = vld [vmem:[%s18112_s3 + $0x704] ss:$24 sps:$4 sm:$0xff]  }
0x1e17   : > { %10252 = vmatprep.subr.bf16.mxu0 %v13646_v48  ;;  %v13728_v48 = vld [vmem:[%s18112_s3 + $0x700] ss:$24 sps:$4 sm:$0xff]  }
0x1e1a   : > { %10253 = vmatpush1.bf16.msra.mxu0 %v13644_v44  ;;  %v13733_v44 = vld [vmem:[%s18112_s3 + $0x734] ss:$24 sps:$4 sm:$0xff]  }
0x1e1b   : > { %10254 = vmatprep.subr.bf16.mxu0 %v13649_v53  ;;  %v13731_v53 = vld [vmem:[%s18112_s3 + $0x730] ss:$24 sps:$4 sm:$0xff]  }
0x1e1e   : > { %10255 = vmatpush1.bf16.msra.mxu0 %v13647_v57  ;;  %v13736_v57 = vld [vmem:[%s18112_s3 + $0x764] ss:$24 sps:$4 sm:$0xff]  }
0x1e1f   : > { %10256 = vmatprep.subr.bf16.mxu0 %v13652_v9  ;;  %v13734_v9 = vld [vmem:[%s18112_s3 + $0x760] ss:$24 sps:$4 sm:$0xff]  }
0x1e22   : > { %10257 = vmatpush1.bf16.msra.mxu0 %v13650_v60  ;;  %v13739_v60 = vld [vmem:[%s18112_s3 + $0x794] ss:$24 sps:$4 sm:$0xff]  }
0x1e23   : > { %10258 = vmatprep.subr.bf16.mxu0 %v13655_v12  ;;  %v13737_v12 = vld [vmem:[%s18112_s3 + $0x790] ss:$24 sps:$4 sm:$0xff]  }
0x1e26   : > { %10259 = vmatpush1.bf16.msra.mxu0 %v13653_v45  ;;  %v13742_v45 = vld [vmem:[%s18112_s3 + $0x7c4] ss:$24 sps:$4 sm:$0xff]  }
0x1e27   : > { %10260 = vmatprep.subr.bf16.mxu0 %v13658_v13  ;;  %v13740_v13 = vld [vmem:[%s18112_s3 + $0x7c0] ss:$24 sps:$4 sm:$0xff]  }
0x1e2a   : > { %10261 = vmatpush1.bf16.msra.mxu0 %v13656_v0  ;;  %v13745_v0 = vld [vmem:[%s18112_s3 + $0x7f4] ss:$24 sps:$4 sm:$0xff]  }
0x1e2b   : > { %10262 = vmatprep.subr.bf16.mxu0 %v13661_v11  ;;  %v13743_v11 = vld [vmem:[%s18112_s3 + $0x7f0] ss:$24 sps:$4 sm:$0xff]  }
0x1e2e   : > { %10263 = vmatpush1.bf16.msra.mxu0 %v13659_v63  ;;  %v13748_v63 = vld [vmem:[%s18112_s3 + $0x824] ss:$24 sps:$4 sm:$0xff]  }
0x1e2f   : > { %10264 = vmatprep.subr.bf16.mxu0 %v13664_v59  ;;  %v13746_v59 = vld [vmem:[%s18112_s3 + $0x820] ss:$24 sps:$4 sm:$0xff]  }
0x1e32   : > { %10265 = vmatpush1.bf16.msra.mxu0 %v13662_v56  ;;  %v13751_v56 = vld [vmem:[%s18112_s3 + $0x854] ss:$24 sps:$4 sm:$0xff]  }
0x1e33   : > { %10277 = vmatprep.subr.bf16.mxu0 %v13667_v6  ;;  %v13749_v6 = vld [vmem:[%s18112_s3 + $0x850] ss:$24 sps:$4 sm:$0xff]  }
0x1e35   : > { %10267 = vmatmul.mubr.bf16.vlgmr.msra.gmra.mrb[24].mxu0 %v17251_v36  ;;  %v13676_v36 = vld [vmem:[%s18112_s3 + $0x3a4] ss:$24 sps:$4 sm:$0xff]  }
0x1e36   : > { %10278 = vmatpush1.bf16.msra.mxu0 %v13665_v58  ;;  %10309 = vmatprep.mubr.bf16.mxu0 %v17268_v55  ;;  %v13674_v55 = vld [vmem:[%s18112_s3 + $0x3a0] ss:$24 sps:$4 sm:$0xff]   ;;  %v13754_v58 = vld [vmem:[%s18112_s3 + $0x884] ss:$24 sps:$4 sm:$0xff]  }
0x1e37   : > { %10279 = vmatprep.subr.bf16.mxu0 %v13670_v21  ;;  %v13752_v21 = vld [vmem:[%s18112_s3 + $0x880] ss:$24 sps:$4 sm:$0xff]  }
0x1e3a   : > { %10280 = vmatpush1.bf16.msra.mxu0 %v13668_v2  ;;  %v13757_v2 = vld [vmem:[%s18112_s3 + $0x8b4] ss:$24 sps:$4 sm:$0xff]  }
0x1e3b   : > { %10281 = vmatprep.subr.bf16.mxu0 %v13673_v7  ;;  %v13755_v7 = vld [vmem:[%s18112_s3 + $0x8b0] ss:$24 sps:$4 sm:$0xff]  }
0x1e3e   : > { %10282 = vmatpush1.bf16.msra.mxu0 %v13671_v23  ;;  %v13760_v23 = vld [vmem:[%s18112_s3 + $0x8e4] ss:$24 sps:$4 sm:$0xff]  }
0x1e3f   : > { %10283 = vmatprep.subr.bf16.mxu0 %v13676_v36  ;;  %v13758_v36 = vld [vmem:[%s18112_s3 + $0x8e0] ss:$24 sps:$4 sm:$0xff]  }
0x1e42   : > { %10284 = vmatpush1.bf16.msra.mxu0 %v13674_v55  ;;  %v8504_v55 = vld [vmem:[%s18113_s4] sm:$0x3f] }
0x1e43   : > { %10285 = vmatprep.subr.bf16.mxu0 %v13679_v10  ;;  %v8509_v10 = vrot.slane %v8504_v55, %v14813_v3 }
0x1e46   : > { %10286 = vmatpush1.bf16.msra.mxu0 %v13677_v15  ;;  %v8517_v15 = vrot.slane %v8504_v55, %v15239_v41 }
0x1e47   : > { %10287 = vmatprep.subr.bf16.mxu0 %v13682_v20  ;;  %v8513_v20 = vrot.slane %v8504_v55, %v14822_v8 }
0x1e4a   : > { %10288 = vmatpush1.bf16.msra.mxu0 %v13680_v50  ;;  %v8521_v50 = vrot.slane %v8504_v55, %v15245_v43 }
0x1e4b   : > { %10289 = vmatprep.subr.bf16.mxu0 %v13685_v49 }
0x1e4e   : > { %10290 = vmatpush1.bf16.msra.mxu0 %v13683_v17 }
0x1e4f   : > { %10291 = vmatprep.subr.bf16.mxu0 %v13688_v24 }
0x1e52   : > { %10292 = vmatpush1.bf16.msra.mxu0 %v13686_v42 }
0x1e53   : > { %10293 = vmatprep.subr.bf16.mxu0 %v13691_v47 }
0x1e56   : > { %10294 = vmatpush1.bf16.msra.mxu0 %v13689_v4 }
0x1e57   : > { %10295 = vmatprep.subr.bf16.mxu0 %v13694_v25 }
0x1e5a   : > { %10296 = vmatpush1.bf16.msra.mxu0 %v13692_v1 }
0x1e5b   : > { %10297 = vmatprep.subr.bf16.mxu0 %v13697_v31 }
0x1e5e   : > { %10298 = vmatpush1.bf16.msra.mxu0 %v13695_v28 }
0x1e5f   : > { %10299 = vmatprep.subr.bf16.mxu0 %v13700_v62 }
0x1e62   : > { %10300 = vmatpush1.bf16.msra.mxu0 %v13698_v40  ;;  %v8525_v40 = vrot.slane %v8504_v55, %v16082_v18 }
0x1e63   : > { %10301 = vmatprep.subr.bf16.mxu0 %v13703_v27  ;;  %v8529_v27 = vrot.slane %v8504_v55, %v16085_v51 }
0x1e66   : > { %10302 = vmatpush1.bf16.msra.mxu0 %v13701_v39 }
0x1e67   : > { %10303 = vmatprep.subr.bf16.mxu0 %v13706_v19 }
0x1e6a   : > { %10304 = vmatpush1.bf16.msra.mxu0 %v13704_v29 }
0x1e6b   : > { %10305 = vmatprep.subr.bf16.mxu0 %v13709_v22 }
0x1e6e   : > { %10306 = vmatpush1.bf16.msra.mxu0 %v13707_v26 }
0x1e6f   : > { %10307 = vmatprep.subr.bf16.mxu0 %v13712_v30 }
0x1e72   : > { %10308 = vmatpush1.bf16.msra.mxu0 %v13710_v32 }
0x1e73   : > { %10320 = vmatprep.subr.bf16.mxu0 %v13715_v46 }
0x1e75   : > { %10310 = vmatmul.mubr.bf16.vlgmr.msra.gmra.mrb[24].mxu0 %v17443_v38  ;;  %v13724_v38 = vld [vmem:[%s18112_s3 + $0x6a4] ss:$24 sps:$4 sm:$0xff]  }
0x1e76   : > { %10321 = vmatpush1.bf16.msra.mxu0 %v13713_v5  ;;  %10352 = vmatprep.mubr.bf16.mxu0 %v17735_v34  ;;  %v13722_v34 = vld [vmem:[%s18112_s3 + $0x6a0] ss:$24 sps:$4 sm:$0xff]  }
0x1e77   : > { %10322 = vmatprep.subr.bf16.mxu0 %v13718_v16 }
0x1e7a   : > { %10323 = vmatpush1.bf16.msra.mxu0 %v13716_v54 }
0x1e7b   : > { %10324 = vmatprep.subr.bf16.mxu0 %v13721_v52 }
0x1e7e   : > { %10325 = vmatpush1.bf16.msra.mxu0 %v13719_v35 }
0x1e7f   : > { %10326 = vmatprep.subr.bf16.mxu0 %v13724_v38 }
0x1e82   : > { %10327 = vmatpush1.bf16.msra.mxu0 %v13722_v34 }
0x1e83   : > { %10328 = vmatprep.subr.bf16.mxu0 %v13727_v33 }
0x1e86   : > { %10329 = vmatpush1.bf16.msra.mxu0 %v13725_v37 }
0x1e87   : > { %10330 = vmatprep.subr.bf16.mxu0 %v13730_v61 }
0x1e8a   : > { %10331 = vmatpush1.bf16.msra.mxu0 %v13728_v48 }
0x1e8b   : > { %10332 = vmatprep.subr.bf16.mxu0 %v13733_v44 }
0x1e8e   : > { %10333 = vmatpush1.bf16.msra.mxu0 %v13731_v53 }
0x1e8f   : > { %10334 = vmatprep.subr.bf16.mxu0 %v13736_v57 }
0x1e92   : > { %10335 = vmatpush1.bf16.msra.mxu0 %v13734_v9 }
0x1e93   : > { %10336 = vmatprep.subr.bf16.mxu0 %v13739_v60 }
0x1e96   : > { %10337 = vmatpush1.bf16.msra.mxu0 %v13737_v12 }
0x1e97   : > { %10338 = vmatprep.subr.bf16.mxu0 %v13742_v45 }
0x1e9a   : > { %10339 = vmatpush1.bf16.msra.mxu0 %v13740_v13 }
0x1e9b   : > { %10340 = vmatprep.subr.bf16.mxu0 %v13745_v0 }
0x1e9e   : > { %10341 = vmatpush1.bf16.msra.mxu0 %v13743_v11 }
0x1e9f   : > { %10342 = vmatprep.subr.bf16.mxu0 %v13748_v63 }
0x1ea2   : > { %10343 = vmatpush1.bf16.msra.mxu0 %v13746_v59 }
0x1ea3   : > { %10344 = vmatprep.subr.bf16.mxu0 %v13751_v56 }
0x1ea6   : > { %10345 = vmatpush1.bf16.msra.mxu0 %v13749_v6 }
0x1ea7   : > { %10346 = vmatprep.subr.bf16.mxu0 %v13754_v58 }
0x1eaa   : > { %10347 = vmatpush1.bf16.msra.mxu0 %v13752_v21 }
0x1eab   : > { %10348 = vmatprep.subr.bf16.mxu0 %v13757_v2 }
0x1eae   : > { %10349 = vmatpush1.bf16.msra.mxu0 %v13755_v7 }
0x1eaf   : > { %10350 = vmatprep.subr.bf16.mxu0 %v13760_v23 }
0x1eb2   : > { %10351 = vmatpush1.bf16.msra.mxu0 %v13758_v36 }
0x1eb5   : > { %10353 = vmatmul.mubr.bf16.vlgmr.msra.gmra.mrb[24].mxu0 %v17742_v14 }
0x1ec8   : > { %v10096_v49 = vpop.f32.mrb[20].mxu0  ;;  %v10225_v17 = vpop.f32.mrb[116].mxu1 }
0x1ec9   : > { %v11873_v24 = vadd.f32 %v10096_v49, %v8509_v10  ;;  %v11877_v42 = vadd.f32 %v10225_v17, %v8517_v15  ;;  %v10098_v14 = vpop.f32.mrb[21].mxu0  ;;  %v10227_v47 = vpop.f32.mrb[117].mxu1 }
0x1eca   : > { %v11874_v4 = vadd.f32 %v10098_v14, %v8513_v20  ;;  %v11878_v25 = vadd.f32 %v10227_v47, %v8521_v50  ;;  %v10100_v1 = vpop.f32.mrb[22].mxu0  ;;  %v10229_v31 = vpop.f32.mrb[118].mxu1 }
0x1ecb   : > { %10363 = vst [vmem:[%s18041_s25] sm:$0xff] %v11873_v24  ;;  %10365 = vst [vmem:[%s18041_s25 + $0x10] sm:$0xff] %v11877_v42  ;;  %v11875_v3 = vadd.f32 %v10100_v1, %v8509_v10  ;;  %v11879_v8 = vadd.f32 %v10229_v31, %v8517_v15  ;;  %v10102_v41 = vpop.f32.mrb[23].mxu0  ;;  %v10231_v43 = vpop.f32.mrb[119].mxu1 }
0x1ecc   : > { %10364 = vst [vmem:[%s18041_s25 + $0x8] sm:$0xff] %v11874_v4  ;;  %10366 = vst [vmem:[%s18041_s25 + $0x18] sm:$0xff] %v11878_v25  ;;  %v11876_v28 = vadd.f32 %v10102_v41, %v8513_v20  ;;  %v11880_v62 = vadd.f32 %v10231_v43, %v8521_v50 }
0x1ecd   : > { %10369 = vst [vmem:[%s18041_s25 + $0x30] sm:$0xff] %v11875_v3  ;;  %10371 = vst [vmem:[%s18041_s25 + $0x40] sm:$0xff] %v11879_v8 }
0x1ece   : > { %10370 = vst [vmem:[%s18041_s25 + $0x38] sm:$0xff] %v11876_v28  ;;  %10372 = vst [vmem:[%s18041_s25 + $0x48] sm:$0xff] %v11880_v62 }
0x1f88   : > { %v10354_v39 = vpop.f32.mrb[24].mxu0 }
0x1f89   : > { %v11881_v19 = vadd.f32 %v10354_v39, %v8525_v40  ;;  %v10356_v29 = vpop.f32.mrb[25].mxu0 }
0x1f8a   : > { %v11882_v22 = vadd.f32 %v10356_v29, %v8529_v27  ;;  %v10358_v26 = vpop.f32.mrb[26].mxu0 }
0x1f8b   : > { %10367 = vst [vmem:[%s18041_s25 + $0x20] sm:$0xff] %v11881_v19  ;;  %v11883_v30 = vadd.f32 %v10358_v26, %v8525_v40  ;;  %v10360_v32 = vpop.f32.mrb[27].mxu0 }
0x1f8c   : > { %10368 = vst [vmem:[%s18041_s25 + $0x28] sm:$0xff] %v11882_v22  ;;  %v11884_v18 = vadd.f32 %v10360_v32, %v8529_v27 }
0x1f8d   : > { %10373 = vst [vmem:[%s18041_s25 + $0x50] sm:$0xff] %v11883_v30 }
0x1f8e   : > { %10374 = vst [vmem:[%s18041_s25 + $0x58] sm:$0xff] %v11884_v18 }
0x1f8f   : > { %13894 = shalt.err (!%p13891_p3)
}
0x1f90   : > { %s13895_s9 = scalar_lea.hbm %s18059_s15, 1536  ;;  %s13899_s12 = scalar_lea.hbm %s18114_s5, 3072 }
0x1f91   : > { %p13896_p4 = scmp.ne.s32.totalorder %s18059_s15, %s13895_s9  ;;  %p13900_p9 = scmp.lt.u32.totalorder %s18059_s15, %s18114_s5 }
0x1f92   : > { %p13901_p10 = scmp.lt.u32.totalorder %s13899_s12, %s13895_s9  ;;  %p13903_p12 = scmp.lt.u32.totalorder %s13895_s9, %s18059_s15 }
0x1f93   : > { %p13897_p7 = pnand %p13896_p4, %p14019_p5 }
0x1f94   : > { %p13902_p11 = por %p13901_p10, %p13900_p9 }
0x1f95   : > { %p13898_p8 = pneg %p13897_p7 }
0x1f96   : > { %p13904_p13 = por %p13903_p12, %p13902_p11 }
0x1f98   : > { %p13905_p0 = pnand %p13904_p13, %p13898_p8 }
0x1f9a   : > { %13908 = shalt.err (!%p13905_p0)
}
0x1f9b   : > { %s13949_s25 = smov 768   ;;  %s13950_s14 = smov 48  }
0x1f9c   : > { %11980 = dma.vmem_to_hbm [thread:$0]  (%p14019_p5), %s18062_s23, 1536, %s18059_s15, %s18068_s22, %s13949_s25, %s13949_s25, %s13950_s14  }
0x1f9d PF: > { %p11986_p1 = scmp.ge.s32.totalorder %s13943_s21, 2  ;;  %s10404_s16 = sand.u32 1, %s13931_s18  }
0x1f9e   : > { %s10405_s17 = scalar_lea.sflag [#allocation4], %s10404_s16 }
0x1f9f   : > { %p11983_p2 = pnand %p11986_p1, %p14023_p6 }
0x1fa1   : > { %13926 = dma.done.wait (!%p11983_p2), %s10405_s17, 1536  }
0x1fa2   : > { %13928 = vsyncadd (!%p11983_p2), %s10405_s17, 4294965760  ;;  %p15_p3 = scmp.ge.s32.totalorder %s14006_s24, 4   ;;  %s18117_s18 = smov %s13935_s19 }
0x1fa3   : > { %s18118_s19 = smov %s13939_s20  ;;  %s18119_s20 = smov %s14017_s27 }
0x1fa4   : > { %s18120_s21 = smov %s14006_s24  ;;  %17 = sbr.rel (!%p15_p3) target bundleno = 3 (0x3), region = 75 }
0x1fab   :  { %10410 = vsyncpa [#allocation4], 1 }
0x1fac   :  { %10412 = vsyncpa [#allocation4 + $0x1], 1 }

</bundles_post_ra>
